<compile_context>
chip_gen: v7x
topology: tpu7x:2x2x1
jax: 0.10.0
libtpu: 0.0.40
codegen_flags: <defaults>
</compile_context>

<pallas_src>
import functools

import numpy as np
import jax
import jax.numpy as jnp
from jax.experimental import pallas as pl
from jax.experimental.pallas import tpu as pltpu


_VMEM_PLAN_BUDGET = 40 * 1024 * 1024   # plan against the tightest real limit (v7x)
_VMEM_LIMIT_BYTES = 48 * 1024 * 1024
_BN_EPS = 1e-5

# (param name, kernel size, stride, padding, batchnorm, activation); bias=False.
_LAYER_CFG = (
    ("w1", 4, 1, 0, True, "relu"),
    ("w2", 4, 2, 1, True, "relu"),
    ("w3", 4, 2, 1, True, "relu"),
    ("w4", 4, 2, 1, True, "relu"),
    ("w5", 5, 3, 1, False, "tanh"),
)


# ---------------------------------------------------------------------------
# VMEM-aware tile planning
# ---------------------------------------------------------------------------
def _tile_candidates(m):
    cands = {m}
    for d in (4096, 2048, 1024, 512, 256, 128, 64, 32, 16, 8):
        if d <= m and m % d == 0:
            cands.add(d)
    return sorted(cands, reverse=True)


def _plan_bn_layer(m, k, c, out_bytes):
    """Pick (row_tile, keep_raw_in_vmem) under a conservative VMEM budget."""
    w_bytes = k * c * 2                       # bf16 combined weight, resident
    stats_bytes = 4 * c * 4                   # sum / sq / scale / shift rows
    raw_bytes = m * c * 4                     # whole raw conv output, f32

    def fits(tm, keep_raw):
        tiles = 2 * (tm * k * 2 + tm * c * out_bytes) + 2 * tm * c * 4
        return (w_bytes + stats_bytes + tiles
                + (raw_bytes if keep_raw else 0)) <= _VMEM_PLAN_BUDGET

    for keep_raw in (True, False):
        for tm in _tile_candidates(m):
            if fits(tm, keep_raw):
                return tm, keep_raw
    return _tile_candidates(m)[-1], False


def _plan_plain_layer(m, k, c, out_bytes):
    w_bytes = k * c * 2
    for tm in _tile_candidates(m):
        if (w_bytes + 2 * (tm * k * 2 + tm * c * out_bytes)
                + 2 * tm * c * 4) <= _VMEM_PLAN_BUDGET:
            return tm
    return _tile_candidates(m)[-1]


def _apply_act(y, act):
    if act == "relu":
        return jnp.maximum(y, 0.0)
    if act == "tanh":
        return jnp.tanh(y)
    return y


# ---------------------------------------------------------------------------
# Fused conv-matmul + BatchNorm(batch stats) + activation kernel (2 phases)
# ---------------------------------------------------------------------------
def _conv_bn_act_kernel(p_ref, w_ref, o_ref,
                        sum_scr, sq_scr, scale_scr, shift_scr, *raw_scr,
                        groups, cout, count, keep_raw, act):
    ph = pl.program_id(0)
    i = pl.program_id(1)

    @pl.when((ph == 0) & (i == 0))
    def _init():
        sum_scr[...] = jnp.zeros_like(sum_scr)
        sq_scr[...] = jnp.zeros_like(sq_scr)

    @pl.when(ph == 0)
    def _matmul_and_stats():
        y = jnp.dot(p_ref[...], w_ref[...], preferred_element_type=jnp.float32)
        # VPU/XLU work running under the MXU -> essentially free filler.
        sum_scr[...] += jnp.sum(y, axis=0, keepdims=True)
        sq_scr[...] += jnp.sum(y * y, axis=0, keepdims=True)
        if keep_raw:
            raw_scr[0][i] = y          # raw output never leaves VMEM

    @pl.when(ph == 1)
    def _normalize_and_store():
        @pl.when(i == 0)
        def _finalize_stats():
            # Fold per-column (phase-group, channel) sums into per-channel
            # BatchNorm training-mode stats (gamma=1, beta=0, biased var).
            ch_sum = sum_scr[:, 0:cout]
            ch_sq = sq_scr[:, 0:cout]
            for g in range(1, groups):
                ch_sum = ch_sum + sum_scr[:, g * cout:(g + 1) * cout]
                ch_sq = ch_sq + sq_scr[:, g * cout:(g + 1) * cout]
            inv_n = 1.0 / count
            mean = ch_sum * inv_n
            # Single-pass E[x^2]-mean^2 (clamped); fine at DCGAN init scales.
            var = jnp.maximum(ch_sq * inv_n - mean * mean, 0.0)
            scale = jax.lax.rsqrt(var + _BN_EPS)
            shift = -mean * scale
            scale_scr[...] = jnp.concatenate([scale] * groups, axis=-1)
            shift_scr[...] = jnp.concatenate([shift] * groups, axis=-1)

        if keep_raw:
            y = raw_scr[0][i]
        else:
            y = jnp.dot(p_ref[...], w_ref[...],
                        preferred_element_type=jnp.float32)
        y = y * scale_scr[...] + shift_scr[...]
        o_ref[...] = _apply_act(y, act).astype(o_ref.dtype)


def fused_conv_bn_act(patches, w_mat, *, groups, cout, count, act, out_dtype):
    m, k = patches.shape
    c = w_mat.shape[1]
    assert c == groups * cout
    out_bytes = jnp.dtype(out_dtype).itemsize
    tm, keep_raw = _plan_bn_layer(m, k, c, out_bytes)
    n_mt = m // tm

    if keep_raw:
        patch_map = lambda ph, i: ((1 - ph) * i, 0)   # phase 1: no patch re-read
    else:
        patch_map = lambda ph, i: (i, 0)              # phase 1: recompute matmul

    scratch = [pltpu.VMEM((1, c), jnp.float32) for _ in range(4)]
    if keep_raw:
        scratch.append(pltpu.VMEM((n_mt, tm, c), jnp.float32))

    kernel = functools.partial(_conv_bn_act_kernel, groups=groups, cout=cout,
                               count=float(count), keep_raw=keep_raw, act=act)
    grid_spec = pltpu.PrefetchScalarGridSpec(
        num_scalar_prefetch=0,
        grid=(2, n_mt),
        in_specs=[pl.BlockSpec((tm, k), patch_map),
                  pl.BlockSpec((k, c), lambda ph, i: (0, 0))],
        # ph*i keeps the output block index constant during phase 0, so the
        # (never written there) output block is only flushed during phase 1.
        out_specs=pl.BlockSpec((tm, c), lambda ph, i: (ph * i, 0)),
        scratch_shapes=scratch,
    )
    return pl.pallas_call(
        kernel,
        out_shape=jax.ShapeDtypeStruct((m, c), out_dtype),
        grid_spec=grid_spec,
        compiler_params=pltpu.CompilerParams(
            dimension_semantics=("arbitrary", "arbitrary"),
            vmem_limit_bytes=_VMEM_LIMIT_BYTES),
    )(patches, w_mat)


# ---------------------------------------------------------------------------
# Stats-free conv-matmul + activation kernel (layer w5, no BatchNorm)
# ---------------------------------------------------------------------------
def _conv_act_kernel(p_ref, w_ref, o_ref, *, act):
    y = jnp.dot(p_ref[...], w_ref[...], preferred_element_type=jnp.float32)
    o_ref[...] = _apply_act(y, act).astype(o_ref.dtype)


def fused_conv_act(patches, w_mat, *, act, out_dtype):
    m, k = patches.shape
    c = w_mat.shape[1]
    tm = _plan_plain_layer(m, k, c, jnp.dtype(out_dtype).itemsize)
    return pl.pallas_call(
        functools.partial(_conv_act_kernel, act=act),
        out_shape=jax.ShapeDtypeStruct((m, c), out_dtype),
        grid=(m // tm,),
        in_specs=[pl.BlockSpec((tm, k), lambda i: (i, 0)),
                  pl.BlockSpec((k, c), lambda i: (0, 0))],
        out_specs=pl.BlockSpec((tm, c), lambda i: (i, 0)),
        compiler_params=pltpu.CompilerParams(
            dimension_semantics=("parallel",),   # independent tiles -> megacore
            vmem_limit_bytes=_VMEM_LIMIT_BYTES),
    )(patches, w_mat)


# ---------------------------------------------------------------------------
# ConvTranspose2d via sub-pixel (phase) decomposition
#   out[n, co, s*qh+rh, s*qw+rw] =
#       sum_{ci, dh, dw} x[n, qh+dh, qw+dw, ci] * Wsub[dh, dw, ci, rh, rw, co]
#   with Wsub[dh,.,rh,.] = W[ci, co, kh, kw], kh = rh + p - s*dh (if valid).
# ---------------------------------------------------------------------------
def _subpixel_geometry(k, s, p):
    d_min = -((k - 1 - p) // s)
    d_max = (s - 1 + p) // s
    return d_min, d_max - d_min + 1


def _build_subpixel_weight(weight, stride, padding, d_min, keff):
    cin, cout, k, _ = weight.shape
    s, p = stride, padding
    kidx = np.full((keff, s), k, dtype=np.int32)       # index k -> zero slot
    for j in range(keff):
        d = j + d_min
        for r in range(s):
            kk = r + p - s * d
            if 0 <= kk < k:
                kidx[j, r] = kk
    w_ext = jnp.pad(weight, ((0, 0), (0, 0), (0, 1), (0, 1)))
    a_idx = kidx[:, :, None, None]                      # (keff, s, 1, 1)  jh,rh
    b_idx = kidx[None, None, :, :]                      # (1, 1, keff, s)  jw,rw
    w_sub = w_ext[:, :, a_idx, b_idx]                   # (cin,cout,keff,s,keff,s)
    return w_sub.transpose(2, 4, 0, 3, 5, 1).reshape(keff * keff * cin,
                                                     s * s * cout)


def conv_transpose_layer(x, w_mat, ksize, stride, padding, use_bn, act,
                         out_dtype):
    n, h, w, cin = x.shape
    s, p = stride, padding
    d_min, keff = _subpixel_geometry(ksize, s, p)
    d_max = d_min + keff - 1
    ho = (h - 1) * s - 2 * p + ksize
    wo = (w - 1) * s - 2 * p + ksize
    assert ho % s == 0 and wo % s == 0
    hq, wq = ho // s, wo // s
    pad_lo = max(0, -d_min)
    pad_hi_h = max(0, hq + d_max - h)
    pad_hi_w = max(0, wq + d_max - w)
    c = w_mat.shape[1]
    cout = c // (s * s)

    # im2col on the *undiluted* input (small ceil(k/s)+1 window, no dilation
    # zeros), materialised by XLA.
    # TODO(synk): move this im2col fully in-kernel (halo-window slices of a
    # resident padded block) once Mosaic sublane-collapse reshapes allow it.
    x_pad = jnp.pad(x, ((0, 0), (pad_lo, pad_hi_h), (pad_lo, pad_hi_w), (0, 0)))
    cols = [x_pad[:, jh:jh + hq, jw:jw + wq, :]
            for jh in range(keff) for jw in range(keff)]
    patches = jnp.concatenate(cols, axis=-1).reshape(n * hq * wq,
                                                     keff * keff * cin)

    if use_bn:
        y2d = fused_conv_bn_act(patches, w_mat, groups=s * s, cout=cout,
                                count=n * ho * wo, act=act, out_dtype=out_dtype)
    else:
        y2d = fused_conv_act(patches, w_mat, act=act, out_dtype=out_dtype)

    # Phase un-shuffle (qh, qw, rh, rw, co) -> (ho, wo, co).
    # TODO(synk): fold this un-shuffle into the store via a strided index_map.
    y = y2d.reshape(n, hq, wq, s, s, cout).transpose(0, 1, 3, 2, 4, 5)
    return y.reshape(n, ho, wo, cout)


def project_layer(x, w_mat, ksize, act, out_dtype):
    """Layer w1: ConvTranspose2d on a 1x1 input == a dense projection.

    out[n, kh, kw, co] = sum_ci x[n, ci] * W[ci, co, kh, kw]
    """
    n = x.shape[0]
    cin = x.shape[-1]
    c = w_mat.shape[1]
    cout = c // (ksize * ksize)
    y2d = fused_conv_bn_act(x.reshape(n, cin), w_mat, groups=ksize * ksize,
                            cout=cout, count=n * ksize * ksize, act=act,
                            out_dtype=out_dtype)
    return y2d.reshape(n, ksize, ksize, cout)


# ---------------------------------------------------------------------------
# Generator
# ---------------------------------------------------------------------------
def init_generator_params(key, z_dim, out_channels, base):
    ks = jax.random.split(key, 5)

    def w(k, cin, cout, ksz):
        return (0.02 * jax.random.normal(k, (cin, cout, ksz, ksz))).astype(
            jnp.float32)

    return {
        "w1": w(ks[0], z_dim, base * 16, 4),
        "w2": w(ks[1], base * 16, base * 8, 4),
        "w3": w(ks[2], base * 8, base * 4, 4),
        "w4": w(ks[3], base * 4, base * 2, 4),
        "w5": w(ks[4], base * 2, out_channels, 5),
    }


def prepare_generator_weights(params):
    """Hoisted out of the forward path: combined sub-pixel weights, bf16."""
    mats = []
    for idx, (name, ksize, s, p, _bn, _act) in enumerate(_LAYER_CFG):
        w = params[name]                       # (Cin, Cout, k, k) f32
        if idx == 0:
            cin, cout = w.shape[0], w.shape[1]
            w_mat = jnp.transpose(w, (0, 2, 3, 1)).reshape(
                cin, ksize * ksize * cout)
        else:
            d_min, keff = _subpixel_geometry(ksize, s, p)
            w_mat = _build_subpixel_weight(w, s, p, d_min, keff)
        mats.append(w_mat.astype(jnp.bfloat16))
    return tuple(mats)


def generator_forward(x_nchw, w_mats):
    # NHWC + bf16 activations inside the network; NCHW / f32 at the boundary.
    x = jnp.transpose(x_nchw, (0, 2, 3, 1)).astype(jnp.bfloat16)
    for idx, (name, ksize, s, p, bn, act) in enumerate(_LAYER_CFG):
        last = idx == len(_LAYER_CFG) - 1
        out_dtype = jnp.float32 if last else jnp.bfloat16
        if idx == 0:
            x = project_layer(x, w_mats[idx], ksize, act, out_dtype)
        else:
            x = conv_transpose_layer(x, w_mats[idx], ksize, s, p, bn, act,
                                     out_dtype)
    return jnp.transpose(x, (0, 3, 1, 2))               # back to NCHW once


if __name__ == "__main__":
    # Small config consistent with the module: z of shape (N, z_dim, 1, 1).
    N, Z_DIM, OUT_CH, BASE = 2, 16, 3, 4

    key = jax.random.PRNGKey(0)
    k_params, k_x = jax.random.split(key)
    params = init_generator_params(k_params, Z_DIM, OUT_CH, BASE)
    w_mats = prepare_generator_weights(params)          # hoisted weight prep
    x = jax.random.normal(k_x, (N, Z_DIM, 1, 1), dtype=jnp.float32)

    fwd = jax.jit(generator_forward)
    out = jax.block_until_ready(fwd(x, w_mats))

    # 1x1 -> 4 -> 8 -> 16 -> 32 -> 96 spatial, channels -> out_channels
    assert out.shape == (N, OUT_CH, 96, 96), out.shape
    assert bool(jnp.all(jnp.isfinite(out)))
    print("KERNEL_OK")
</pallas_src>

<mosaic_0001>
module attributes {stable_mosaic.version = 11 : i64} {
  func.func @_conv_bn_act_kernel(%arg0: i32, %arg1: i32, %arg2: memref<2x16xbf16, #tpu.memory_space<vmem>>, %arg3: memref<16x1024xbf16, #tpu.memory_space<vmem>>, %arg4: memref<2x1024xbf16, #tpu.memory_space<vmem>>, %arg5: memref<1x1024xf32, #tpu.memory_space<vmem>>, %arg6: memref<1x1024xf32, #tpu.memory_space<vmem>>, %arg7: memref<1x1024xf32, #tpu.memory_space<vmem>>, %arg8: memref<1x1024xf32, #tpu.memory_space<vmem>>, %arg9: memref<1x2x1024xf32, #tpu.memory_space<vmem>>) attributes {dimension_semantics = [#tpu.dimension_semantics<arbitrary>, #tpu.dimension_semantics<arbitrary>], iteration_bounds = array<i64: 2, 1>, scalar_prefetch = 0 : i64, scratch_operands = 5 : i64, tpu.core_type = #tpu.core_type<tc>, window_params = [{transform_indices = @transform_0, window_bounds = array<i64: 2, 16>}, {pipeline_mode = #tpu.pipeline_mode<synchronous>, transform_indices = @transform_1, window_bounds = array<i64: 16, 1024>}, {transform_indices = @transform_2, window_bounds = array<i64: 2, 1024>}]} {
    %c0_i32 = arith.constant 0 : i32
    %0 = arith.cmpi eq, %arg0, %c0_i32 : i32
    %c0_i32_0 = arith.constant 0 : i32
    %1 = arith.cmpi eq, %arg1, %c0_i32_0 : i32
    %2 = arith.andi %0, %1 : i1
    %3 = arith.extui %2 : i1 to i32
    %c0_i32_1 = arith.constant 0 : i32
    %4 = arith.cmpi ne, %3, %c0_i32_1 : i32
    scf.if %4 {
      %cst = arith.constant 0.000000e+00 : f32
      %11 = vector.broadcast %cst : f32 to vector<1x1024xf32>
      %c0 = arith.constant 0 : index
      %c0_5 = arith.constant 0 : index
      %12 = vector.load %arg5[%c0, %c0_5] : memref<1x1024xf32, #tpu.memory_space<vmem>>, vector<1x1024xf32>
      tpu.vector_store %arg5[%c0, %c0_5], %11 {strides = array<i32>} : memref<1x1024xf32, #tpu.memory_space<vmem>>, vector<1x1024xf32>,
      %cst_6 = arith.constant 0.000000e+00 : f32
      %13 = vector.broadcast %cst_6 : f32 to vector<1x1024xf32>
      %c0_7 = arith.constant 0 : index
      %c0_8 = arith.constant 0 : index
      %14 = vector.load %arg6[%c0_7, %c0_8] : memref<1x1024xf32, #tpu.memory_space<vmem>>, vector<1x1024xf32>
      tpu.vector_store %arg6[%c0_7, %c0_8], %13 {strides = array<i32>} : memref<1x1024xf32, #tpu.memory_space<vmem>>, vector<1x1024xf32>,
    } else {
    }
    %c0_i32_2 = arith.constant 0 : i32
    %5 = arith.cmpi eq, %arg0, %c0_i32_2 : i32
    %6 = arith.extui %5 : i1 to i32
    %c0_i32_3 = arith.constant 0 : i32
    %7 = arith.cmpi ne, %6, %c0_i32_3 : i32
    scf.if %7 {
      %c0 = arith.constant 0 : index
      %c0_5 = arith.constant 0 : index
      %11 = vector.load %arg2[%c0, %c0_5] : memref<2x16xbf16, #tpu.memory_space<vmem>>, vector<2x16xbf16>
      %c0_6 = arith.constant 0 : index
      %c0_7 = arith.constant 0 : index
      %12 = vector.load %arg3[%c0_6, %c0_7] : memref<16x1024xbf16, #tpu.memory_space<vmem>>, vector<16x1024xbf16>
      %cst = arith.constant dense<0.000000e+00> : vector<2x1024xf32>
      %13 = tpu.matmul %11, %12, %cst {dimension_numbers = #tpu.dot_dimension_numbers<[1], [0], [0], [1], [0, 0, 1, 1], [], []>} : vector<2x16xbf16>, vector<16x1024xbf16>, vector<2x1024xf32> -> vector<2x1024xf32>
      %c0_8 = arith.constant 0 : index
      %c0_9 = arith.constant 0 : index
      %14 = vector.load %arg5[%c0_8, %c0_9] : memref<1x1024xf32, #tpu.memory_space<vmem>>, vector<1x1024xf32>
      %cst_10 = arith.constant dense<0.000000e+00> : vector<1024xf32>
      %15 = vector.multi_reduction <add>, %13, %cst_10 [0] : vector<2x1024xf32> to vector<1024xf32>
      %16 = vector.shape_cast %15 : vector<1024xf32> to vector<1x1024xf32>
      %17 = arith.addf %14, %16 : vector<1x1024xf32>
      %c0_11 = arith.constant 0 : index
      %c0_12 = arith.constant 0 : index
      %18 = vector.load %arg5[%c0_11, %c0_12] : memref<1x1024xf32, #tpu.memory_space<vmem>>, vector<1x1024xf32>
      tpu.vector_store %arg5[%c0_11, %c0_12], %17 {strides = array<i32>} : memref<1x1024xf32, #tpu.memory_space<vmem>>, vector<1x1024xf32>,
      %c0_13 = arith.constant 0 : index
      %c0_14 = arith.constant 0 : index
      %19 = vector.load %arg6[%c0_13, %c0_14] : memref<1x1024xf32, #tpu.memory_space<vmem>>, vector<1x1024xf32>
      %20 = arith.mulf %13, %13 : vector<2x1024xf32>
      %cst_15 = arith.constant dense<0.000000e+00> : vector<1024xf32>
      %21 = vector.multi_reduction <add>, %20, %cst_15 [0] : vector<2x1024xf32> to vector<1024xf32>
      %22 = vector.shape_cast %21 : vector<1024xf32> to vector<1x1024xf32>
      %23 = arith.addf %19, %22 : vector<1x1024xf32>
      %c0_16 = arith.constant 0 : index
      %c0_17 = arith.constant 0 : index
      %24 = vector.load %arg6[%c0_16, %c0_17] : memref<1x1024xf32, #tpu.memory_space<vmem>>, vector<1x1024xf32>
      tpu.vector_store %arg6[%c0_16, %c0_17], %23 {strides = array<i32>} : memref<1x1024xf32, #tpu.memory_space<vmem>>, vector<1x1024xf32>,
      %25 = arith.index_cast %arg1 : i32 to index
      %c0_18 = arith.constant 0 : index
      %c0_19 = arith.constant 0 : index
      %26 = vector.load %arg9[%25, %c0_18, %c0_19] : memref<1x2x1024xf32, #tpu.memory_space<vmem>>, vector<1x2x1024xf32>
      %27 = vector.shape_cast %26 : vector<1x2x1024xf32> to vector<2x1024xf32>
      %28 = vector.shape_cast %13 : vector<2x1024xf32> to vector<1x2x1024xf32>
      tpu.vector_store %arg9[%25, %c0_18, %c0_19], %28 {strides = array<i32>} : memref<1x2x1024xf32, #tpu.memory_space<vmem>>, vector<1x2x1024xf32>,
    } else {
    }
    %c1_i32 = arith.constant 1 : i32
    %8 = arith.cmpi eq, %arg0, %c1_i32 : i32
    %9 = arith.extui %8 : i1 to i32
    %c0_i32_4 = arith.constant 0 : i32
    %10 = arith.cmpi ne, %9, %c0_i32_4 : i32
    scf.if %10 {
      %c0_i32_5 = arith.constant 0 : i32
      %11 = arith.cmpi eq, %arg1, %c0_i32_5 : i32
      %12 = arith.extui %11 : i1 to i32
      %c0_i32_6 = arith.constant 0 : i32
      %13 = arith.cmpi ne, %12, %c0_i32_6 : i32
      scf.if %13 {
        %c0_14 = arith.constant 0 : index
        %c0_15 = arith.constant 0 : index
        %27 = vector.load %arg5[%c0_14, %c0_15] : memref<1x1024xf32, #tpu.memory_space<vmem>>, vector<1x64xf32>
        %c0_16 = arith.constant 0 : index
        %c0_17 = arith.constant 0 : index
        %28 = vector.load %arg6[%c0_16, %c0_17] : memref<1x1024xf32, #tpu.memory_space<vmem>>, vector<1x64xf32>
        %c0_18 = arith.constant 0 : index
        %c64 = arith.constant 64 : index
        %29 = vector.load %arg5[%c0_18, %c64] : memref<1x1024xf32, #tpu.memory_space<vmem>>, vector<1x64xf32>
        %30 = arith.addf %27, %29 : vector<1x64xf32>
        %c0_19 = arith.constant 0 : index
        %c64_20 = arith.constant 64 : index
        %31 = vector.load %arg6[%c0_19, %c64_20] : memref<1x1024xf32, #tpu.memory_space<vmem>>, vector<1x64xf32>
        %32 = arith.addf %28, %31 : vector<1x64xf32>
        %c0_21 = arith.constant 0 : index
        %c128 = arith.constant 128 : index
        %33 = vector.load %arg5[%c0_21, %c128] : memref<1x1024xf32, #tpu.memory_space<vmem>>, vector<1x64xf32>
        %34 = arith.addf %30, %33 : vector<1x64xf32>
        %c0_22 = arith.constant 0 : index
        %c128_23 = arith.constant 128 : index
        %35 = vector.load %arg6[%c0_22, %c128_23] : memref<1x1024xf32, #tpu.memory_space<vmem>>, vector<1x64xf32>
        %36 = arith.addf %32, %35 : vector<1x64xf32>
        %c0_24 = arith.constant 0 : index
        %c192 = arith.constant 192 : index
        %37 = vector.load %arg5[%c0_24, %c192] : memref<1x1024xf32, #tpu.memory_space<vmem>>, vector<1x64xf32>
        %38 = arith.addf %34, %37 : vector<1x64xf32>
        %c0_25 = arith.constant 0 : index
        %c192_26 = arith.constant 192 : index
        %39 = vector.load %arg6[%c0_25, %c192_26] : memref<1x1024xf32, #tpu.memory_space<vmem>>, vector<1x64xf32>
        %40 = arith.addf %36, %39 : vector<1x64xf32>
        %c0_27 = arith.constant 0 : index
        %c256 = arith.constant 256 : index
        %41 = vector.load %arg5[%c0_27, %c256] : memref<1x1024xf32, #tpu.memory_space<vmem>>, vector<1x64xf32>
        %42 = arith.addf %38, %41 : vector<1x64xf32>
        %c0_28 = arith.constant 0 : index
        %c256_29 = arith.constant 256 : index
        %43 = vector.load %arg6[%c0_28, %c256_29] : memref<1x1024xf32, #tpu.memory_space<vmem>>, vector<1x64xf32>
        %44 = arith.addf %40, %43 : vector<1x64xf32>
        %c0_30 = arith.constant 0 : index
        %c320 = arith.constant 320 : index
        %45 = vector.load %arg5[%c0_30, %c320] : memref<1x1024xf32, #tpu.memory_space<vmem>>, vector<1x64xf32>
        %46 = arith.addf %42, %45 : vector<1x64xf32>
        %c0_31 = arith.constant 0 : index
        %c320_32 = arith.constant 320 : index
        %47 = vector.load %arg6[%c0_31, %c320_32] : memref<1x1024xf32, #tpu.memory_space<vmem>>, vector<1x64xf32>
        %48 = arith.addf %44, %47 : vector<1x64xf32>
        %c0_33 = arith.constant 0 : index
        %c384 = arith.constant 384 : index
        %49 = vector.load %arg5[%c0_33, %c384] : memref<1x1024xf32, #tpu.memory_space<vmem>>, vector<1x64xf32>
        %50 = arith.addf %46, %49 : vector<1x64xf32>
        %c0_34 = arith.constant 0 : index
        %c384_35 = arith.constant 384 : index
        %51 = vector.load %arg6[%c0_34, %c384_35] : memref<1x1024xf32, #tpu.memory_space<vmem>>, vector<1x64xf32>
        %52 = arith.addf %48, %51 : vector<1x64xf32>
        %c0_36 = arith.constant 0 : index
        %c448 = arith.constant 448 : index
        %53 = vector.load %arg5[%c0_36, %c448] : memref<1x1024xf32, #tpu.memory_space<vmem>>, vector<1x64xf32>
        %54 = arith.addf %50, %53 : vector<1x64xf32>
        %c0_37 = arith.constant 0 : index
        %c448_38 = arith.constant 448 : index
        %55 = vector.load %arg6[%c0_37, %c448_38] : memref<1x1024xf32, #tpu.memory_space<vmem>>, vector<1x64xf32>
        %56 = arith.addf %52, %55 : vector<1x64xf32>
        %c0_39 = arith.constant 0 : index
        %c512 = arith.constant 512 : index
        %57 = vector.load %arg5[%c0_39, %c512] : memref<1x1024xf32, #tpu.memory_space<vmem>>, vector<1x64xf32>
        %58 = arith.addf %54, %57 : vector<1x64xf32>
        %c0_40 = arith.constant 0 : index
        %c512_41 = arith.constant 512 : index
        %59 = vector.load %arg6[%c0_40, %c512_41] : memref<1x1024xf32, #tpu.memory_space<vmem>>, vector<1x64xf32>
        %60 = arith.addf %56, %59 : vector<1x64xf32>
        %c0_42 = arith.constant 0 : index
        %c576 = arith.constant 576 : index
        %61 = vector.load %arg5[%c0_42, %c576] : memref<1x1024xf32, #tpu.memory_space<vmem>>, vector<1x64xf32>
        %62 = arith.addf %58, %61 : vector<1x64xf32>
        %c0_43 = arith.constant 0 : index
        %c576_44 = arith.constant 576 : index
        %63 = vector.load %arg6[%c0_43, %c576_44] : memref<1x1024xf32, #tpu.memory_space<vmem>>, vector<1x64xf32>
        %64 = arith.addf %60, %63 : vector<1x64xf32>
        %c0_45 = arith.constant 0 : index
        %c640 = arith.constant 640 : index
        %65 = vector.load %arg5[%c0_45, %c640] : memref<1x1024xf32, #tpu.memory_space<vmem>>, vector<1x64xf32>
        %66 = arith.addf %62, %65 : vector<1x64xf32>
        %c0_46 = arith.constant 0 : index
        %c640_47 = arith.constant 640 : index
        %67 = vector.load %arg6[%c0_46, %c640_47] : memref<1x1024xf32, #tpu.memory_space<vmem>>, vector<1x64xf32>
        %68 = arith.addf %64, %67 : vector<1x64xf32>
        %c0_48 = arith.constant 0 : index
        %c704 = arith.constant 704 : index
        %69 = vector.load %arg5[%c0_48, %c704] : memref<1x1024xf32, #tpu.memory_space<vmem>>, vector<1x64xf32>
        %70 = arith.addf %66, %69 : vector<1x64xf32>
        %c0_49 = arith.constant 0 : index
        %c704_50 = arith.constant 704 : index
        %71 = vector.load %arg6[%c0_49, %c704_50] : memref<1x1024xf32, #tpu.memory_space<vmem>>, vector<1x64xf32>
        %72 = arith.addf %68, %71 : vector<1x64xf32>
        %c0_51 = arith.constant 0 : index
        %c768 = arith.constant 768 : index
        %73 = vector.load %arg5[%c0_51, %c768] : memref<1x1024xf32, #tpu.memory_space<vmem>>, vector<1x64xf32>
        %74 = arith.addf %70, %73 : vector<1x64xf32>
        %c0_52 = arith.constant 0 : index
        %c768_53 = arith.constant 768 : index
        %75 = vector.load %arg6[%c0_52, %c768_53] : memref<1x1024xf32, #tpu.memory_space<vmem>>, vector<1x64xf32>
        %76 = arith.addf %72, %75 : vector<1x64xf32>
        %c0_54 = arith.constant 0 : index
        %c832 = arith.constant 832 : index
        %77 = vector.load %arg5[%c0_54, %c832] : memref<1x1024xf32, #tpu.memory_space<vmem>>, vector<1x64xf32>
        %78 = arith.addf %74, %77 : vector<1x64xf32>
        %c0_55 = arith.constant 0 : index
        %c832_56 = arith.constant 832 : index
        %79 = vector.load %arg6[%c0_55, %c832_56] : memref<1x1024xf32, #tpu.memory_space<vmem>>, vector<1x64xf32>
        %80 = arith.addf %76, %79 : vector<1x64xf32>
        %c0_57 = arith.constant 0 : index
        %c896 = arith.constant 896 : index
        %81 = vector.load %arg5[%c0_57, %c896] : memref<1x1024xf32, #tpu.memory_space<vmem>>, vector<1x64xf32>
        %82 = arith.addf %78, %81 : vector<1x64xf32>
        %c0_58 = arith.constant 0 : index
        %c896_59 = arith.constant 896 : index
        %83 = vector.load %arg6[%c0_58, %c896_59] : memref<1x1024xf32, #tpu.memory_space<vmem>>, vector<1x64xf32>
        %84 = arith.addf %80, %83 : vector<1x64xf32>
        %c0_60 = arith.constant 0 : index
        %c960 = arith.constant 960 : index
        %85 = vector.load %arg5[%c0_60, %c960] : memref<1x1024xf32, #tpu.memory_space<vmem>>, vector<1x64xf32>
        %86 = arith.addf %82, %85 : vector<1x64xf32>
        %c0_61 = arith.constant 0 : index
        %c960_62 = arith.constant 960 : index
        %87 = vector.load %arg6[%c0_61, %c960_62] : memref<1x1024xf32, #tpu.memory_space<vmem>>, vector<1x64xf32>
        %88 = arith.addf %84, %87 : vector<1x64xf32>
        %cst_63 = arith.constant 3.125000e-02 : f32
        %89 = vector.broadcast %cst_63 : f32 to vector<1x64xf32>
        %90 = arith.mulf %86, %89 : vector<1x64xf32>
        %cst_64 = arith.constant 3.125000e-02 : f32
        %91 = vector.broadcast %cst_64 : f32 to vector<1x64xf32>
        %92 = arith.mulf %88, %91 : vector<1x64xf32>
        %93 = arith.mulf %90, %90 : vector<1x64xf32>
        %94 = arith.subf %92, %93 : vector<1x64xf32>
        %cst_65 = arith.constant 0.000000e+00 : f32
        %95 = vector.broadcast %cst_65 : f32 to vector<1x64xf32>
        %96 = arith.maximumf %94, %95 : vector<1x64xf32>
        %cst_66 = arith.constant 9.99999974E-6 : f32
        %97 = vector.broadcast %cst_66 : f32 to vector<1x64xf32>
        %98 = arith.addf %96, %97 : vector<1x64xf32>
        %99 = math.rsqrt %98 : vector<1x64xf32>
        %cst_67 = arith.constant 0.000000e+00 : f32
        %100 = vector.broadcast %cst_67 : f32 to vector<1x64xf32>
        %101 = arith.subf %100, %90 : vector<1x64xf32>
        %102 = arith.mulf %101, %99 : vector<1x64xf32>
        %103 = tpu.concatenate %99, %99, %99, %99, %99, %99, %99, %99, %99, %99, %99, %99, %99, %99, %99, %99 in 1 : vector<1x64xf32>, vector<1x64xf32>, vector<1x64xf32>, vector<1x64xf32>, vector<1x64xf32>, vector<1x64xf32>, vector<1x64xf32>, vector<1x64xf32>, vector<1x64xf32>, vector<1x64xf32>, vector<1x64xf32>, vector<1x64xf32>, vector<1x64xf32>, vector<1x64xf32>, vector<1x64xf32>, vector<1x64xf32> -> vector<1x1024xf32>
        %c0_68 = arith.constant 0 : index
        %c0_69 = arith.constant 0 : index
        %104 = vector.load %arg7[%c0_68, %c0_69] : memref<1x1024xf32, #tpu.memory_space<vmem>>, vector<1x1024xf32>
        tpu.vector_store %arg7[%c0_68, %c0_69], %103 {strides = array<i32>} : memref<1x1024xf32, #tpu.memory_space<vmem>>, vector<1x1024xf32>,
        %105 = tpu.concatenate %102, %102, %102, %102, %102, %102, %102, %102, %102, %102, %102, %102, %102, %102, %102, %102 in 1 : vector<1x64xf32>, vector<1x64xf32>, vector<1x64xf32>, vector<1x64xf32>, vector<1x64xf32>, vector<1x64xf32>, vector<1x64xf32>, vector<1x64xf32>, vector<1x64xf32>, vector<1x64xf32>, vector<1x64xf32>, vector<1x64xf32>, vector<1x64xf32>, vector<1x64xf32>, vector<1x64xf32>, vector<1x64xf32> -> vector<1x1024xf32>
        %c0_70 = arith.constant 0 : index
        %c0_71 = arith.constant 0 : index
        %106 = vector.load %arg8[%c0_70, %c0_71] : memref<1x1024xf32, #tpu.memory_space<vmem>>, vector<1x1024xf32>
        tpu.vector_store %arg8[%c0_70, %c0_71], %105 {strides = array<i32>} : memref<1x1024xf32, #tpu.memory_space<vmem>>, vector<1x1024xf32>,
      } else {
      }
      %14 = arith.index_cast %arg1 : i32 to index
      %c0 = arith.constant 0 : index
      %c0_7 = arith.constant 0 : index
      %15 = vector.load %arg9[%14, %c0, %c0_7] : memref<1x2x1024xf32, #tpu.memory_space<vmem>>, vector<1x2x1024xf32>
      %16 = vector.shape_cast %15 : vector<1x2x1024xf32> to vector<2x1024xf32>
      %c0_8 = arith.constant 0 : index
      %c0_9 = arith.constant 0 : index
      %17 = vector.load %arg7[%c0_8, %c0_9] : memref<1x1024xf32, #tpu.memory_space<vmem>>, vector<1x1024xf32>
      %18 = vector.broadcast %17 : vector<1x1024xf32> to vector<2x1024xf32>
      %19 = arith.mulf %16, %18 : vector<2x1024xf32>
      %c0_10 = arith.constant 0 : index
      %c0_11 = arith.constant 0 : index
      %20 = vector.load %arg8[%c0_10, %c0_11] : memref<1x1024xf32, #tpu.memory_space<vmem>>, vector<1x1024xf32>
      %21 = vector.broadcast %20 : vector<1x1024xf32> to vector<2x1024xf32>
      %22 = arith.addf %19, %21 : vector<2x1024xf32>
      %cst = arith.constant 0.000000e+00 : f32
      %23 = vector.broadcast %cst : f32 to vector<2x1024xf32>
      %24 = arith.maximumf %22, %23 : vector<2x1024xf32>
      %25 = arith.truncf %24 : vector<2x1024xf32> to vector<2x1024xbf16>
      %c0_12 = arith.constant 0 : index
      %c0_13 = arith.constant 0 : index
      %26 = vector.load %arg4[%c0_12, %c0_13] : memref<2x1024xbf16, #tpu.memory_space<vmem>>, vector<2x1024xbf16>
      tpu.vector_store %arg4[%c0_12, %c0_13], %25 {strides = array<i32>} : memref<2x1024xbf16, #tpu.memory_space<vmem>>, vector<2x1024xbf16>,
    } else {
    }
    return
  }
  func.func @transform_0(%arg0: i32, %arg1: i32) -> (i32, i32) {
    %c1_i32 = arith.constant 1 : i32
    %0 = arith.subi %c1_i32, %arg0 : i32
    %1 = arith.muli %0, %arg1 : i32
    %c0_i32 = arith.constant 0 : i32
    %c0_i32_0 = arith.constant 0 : i32
    return %1, %c0_i32 : i32, i32
  }
  func.func @transform_1(%arg0: i32, %arg1: i32) -> (i32, i32) {
    %c0_i32 = arith.constant 0 : i32
    %c0_i32_0 = arith.constant 0 : i32
    %c0_i32_1 = arith.constant 0 : i32
    return %c0_i32, %c0_i32_0 : i32, i32
  }
  func.func @transform_2(%arg0: i32, %arg1: i32) -> (i32, i32) {
    %0 = arith.muli %arg0, %arg1 : i32
    %c0_i32 = arith.constant 0 : i32
    %c0_i32_0 = arith.constant 0 : i32
    return %0, %c0_i32 : i32, i32
  }
}

module attributes {stable_mosaic.version = 11 : i64} {
  func.func @_conv_bn_act_kernel(%arg0: i32, %arg1: i32, %arg2: memref<32x576xbf16, #tpu.memory_space<vmem>>, %arg3: memref<576x128xbf16, #tpu.memory_space<vmem>>, %arg4: memref<32x128xbf16, #tpu.memory_space<vmem>>, %arg5: memref<1x128xf32, #tpu.memory_space<vmem>>, %arg6: memref<1x128xf32, #tpu.memory_space<vmem>>, %arg7: memref<1x128xf32, #tpu.memory_space<vmem>>, %arg8: memref<1x128xf32, #tpu.memory_space<vmem>>, %arg9: memref<1x32x128xf32, #tpu.memory_space<vmem>>) attributes {dimension_semantics = [#tpu.dimension_semantics<arbitrary>, #tpu.dimension_semantics<arbitrary>], iteration_bounds = array<i64: 2, 1>, scalar_prefetch = 0 : i64, scratch_operands = 5 : i64, tpu.core_type = #tpu.core_type<tc>, window_params = [{transform_indices = @transform_0, window_bounds = array<i64: 32, 576>}, {pipeline_mode = #tpu.pipeline_mode<synchronous>, transform_indices = @transform_1, window_bounds = array<i64: 576, 128>}, {transform_indices = @transform_2, window_bounds = array<i64: 32, 128>}]} {
    %c0_i32 = arith.constant 0 : i32
    %0 = arith.cmpi eq, %arg0, %c0_i32 : i32
    %c0_i32_0 = arith.constant 0 : i32
    %1 = arith.cmpi eq, %arg1, %c0_i32_0 : i32
    %2 = arith.andi %0, %1 : i1
    %3 = arith.extui %2 : i1 to i32
    %c0_i32_1 = arith.constant 0 : i32
    %4 = arith.cmpi ne, %3, %c0_i32_1 : i32
    scf.if %4 {
      %cst = arith.constant 0.000000e+00 : f32
      %11 = vector.broadcast %cst : f32 to vector<1x128xf32>
      %c0 = arith.constant 0 : index
      %c0_5 = arith.constant 0 : index
      %12 = vector.load %arg5[%c0, %c0_5] : memref<1x128xf32, #tpu.memory_space<vmem>>, vector<1x128xf32>
      tpu.vector_store %arg5[%c0, %c0_5], %11 {strides = array<i32>} : memref<1x128xf32, #tpu.memory_space<vmem>>, vector<1x128xf32>,
      %cst_6 = arith.constant 0.000000e+00 : f32
      %13 = vector.broadcast %cst_6 : f32 to vector<1x128xf32>
      %c0_7 = arith.constant 0 : index
      %c0_8 = arith.constant 0 : index
      %14 = vector.load %arg6[%c0_7, %c0_8] : memref<1x128xf32, #tpu.memory_space<vmem>>, vector<1x128xf32>
      tpu.vector_store %arg6[%c0_7, %c0_8], %13 {strides = array<i32>} : memref<1x128xf32, #tpu.memory_space<vmem>>, vector<1x128xf32>,
    } else {
    }
    %c0_i32_2 = arith.constant 0 : i32
    %5 = arith.cmpi eq, %arg0, %c0_i32_2 : i32
    %6 = arith.extui %5 : i1 to i32
    %c0_i32_3 = arith.constant 0 : i32
    %7 = arith.cmpi ne, %6, %c0_i32_3 : i32
    scf.if %7 {
      %c0 = arith.constant 0 : index
      %c0_5 = arith.constant 0 : index
      %11 = vector.load %arg2[%c0, %c0_5] : memref<32x576xbf16, #tpu.memory_space<vmem>>, vector<32x576xbf16>
      %c0_6 = arith.constant 0 : index
      %c0_7 = arith.constant 0 : index
      %12 = vector.load %arg3[%c0_6, %c0_7] : memref<576x128xbf16, #tpu.memory_space<vmem>>, vector<576x128xbf16>
      %cst = arith.constant dense<0.000000e+00> : vector<32x128xf32>
      %13 = tpu.matmul %11, %12, %cst {dimension_numbers = #tpu.dot_dimension_numbers<[1], [0], [0], [1], [0, 0, 1, 1], [], []>} : vector<32x576xbf16>, vector<576x128xbf16>, vector<32x128xf32> -> vector<32x128xf32>
      %c0_8 = arith.constant 0 : index
      %c0_9 = arith.constant 0 : index
      %14 = vector.load %arg5[%c0_8, %c0_9] : memref<1x128xf32, #tpu.memory_space<vmem>>, vector<1x128xf32>
      %cst_10 = arith.constant dense<0.000000e+00> : vector<128xf32>
      %15 = vector.multi_reduction <add>, %13, %cst_10 [0] : vector<32x128xf32> to vector<128xf32>
      %16 = vector.shape_cast %15 : vector<128xf32> to vector<1x128xf32>
      %17 = arith.addf %14, %16 : vector<1x128xf32>
      %c0_11 = arith.constant 0 : index
      %c0_12 = arith.constant 0 : index
      %18 = vector.load %arg5[%c0_11, %c0_12] : memref<1x128xf32, #tpu.memory_space<vmem>>, vector<1x128xf32>
      tpu.vector_store %arg5[%c0_11, %c0_12], %17 {strides = array<i32>} : memref<1x128xf32, #tpu.memory_space<vmem>>, vector<1x128xf32>,
      %c0_13 = arith.constant 0 : index
      %c0_14 = arith.constant 0 : index
      %19 = vector.load %arg6[%c0_13, %c0_14] : memref<1x128xf32, #tpu.memory_space<vmem>>, vector<1x128xf32>
      %20 = arith.mulf %13, %13 : vector<32x128xf32>
      %cst_15 = arith.constant dense<0.000000e+00> : vector<128xf32>
      %21 = vector.multi_reduction <add>, %20, %cst_15 [0] : vector<32x128xf32> to vector<128xf32>
      %22 = vector.shape_cast %21 : vector<128xf32> to vector<1x128xf32>
      %23 = arith.addf %19, %22 : vector<1x128xf32>
      %c0_16 = arith.constant 0 : index
      %c0_17 = arith.constant 0 : index
      %24 = vector.load %arg6[%c0_16, %c0_17] : memref<1x128xf32, #tpu.memory_space<vmem>>, vector<1x128xf32>
      tpu.vector_store %arg6[%c0_16, %c0_17], %23 {strides = array<i32>} : memref<1x128xf32, #tpu.memory_space<vmem>>, vector<1x128xf32>,
      %25 = arith.index_cast %arg1 : i32 to index
      %c0_18 = arith.constant 0 : index
      %c0_19 = arith.constant 0 : index
      %26 = vector.load %arg9[%25, %c0_18, %c0_19] : memref<1x32x128xf32, #tpu.memory_space<vmem>>, vector<1x32x128xf32>
      %27 = vector.shape_cast %26 : vector<1x32x128xf32> to vector<32x128xf32>
      %28 = vector.shape_cast %13 : vector<32x128xf32> to vector<1x32x128xf32>
      tpu.vector_store %arg9[%25, %c0_18, %c0_19], %28 {strides = array<i32>} : memref<1x32x128xf32, #tpu.memory_space<vmem>>, vector<1x32x128xf32>,
    } else {
    }
    %c1_i32 = arith.constant 1 : i32
    %8 = arith.cmpi eq, %arg0, %c1_i32 : i32
    %9 = arith.extui %8 : i1 to i32
    %c0_i32_4 = arith.constant 0 : i32
    %10 = arith.cmpi ne, %9, %c0_i32_4 : i32
    scf.if %10 {
      %c0_i32_5 = arith.constant 0 : i32
      %11 = arith.cmpi eq, %arg1, %c0_i32_5 : i32
      %12 = arith.extui %11 : i1 to i32
      %c0_i32_6 = arith.constant 0 : i32
      %13 = arith.cmpi ne, %12, %c0_i32_6 : i32
      scf.if %13 {
        %c0_14 = arith.constant 0 : index
        %c0_15 = arith.constant 0 : index
        %27 = vector.load %arg5[%c0_14, %c0_15] : memref<1x128xf32, #tpu.memory_space<vmem>>, vector<1x32xf32>
        %c0_16 = arith.constant 0 : index
        %c0_17 = arith.constant 0 : index
        %28 = vector.load %arg6[%c0_16, %c0_17] : memref<1x128xf32, #tpu.memory_space<vmem>>, vector<1x32xf32>
        %c0_18 = arith.constant 0 : index
        %c32 = arith.constant 32 : index
        %29 = vector.load %arg5[%c0_18, %c32] : memref<1x128xf32, #tpu.memory_space<vmem>>, vector<1x32xf32>
        %30 = arith.addf %27, %29 : vector<1x32xf32>
        %c0_19 = arith.constant 0 : index
        %c32_20 = arith.constant 32 : index
        %31 = vector.load %arg6[%c0_19, %c32_20] : memref<1x128xf32, #tpu.memory_space<vmem>>, vector<1x32xf32>
        %32 = arith.addf %28, %31 : vector<1x32xf32>
        %c0_21 = arith.constant 0 : index
        %c64 = arith.constant 64 : index
        %33 = vector.load %arg5[%c0_21, %c64] : memref<1x128xf32, #tpu.memory_space<vmem>>, vector<1x32xf32>
        %34 = arith.addf %30, %33 : vector<1x32xf32>
        %c0_22 = arith.constant 0 : index
        %c64_23 = arith.constant 64 : index
        %35 = vector.load %arg6[%c0_22, %c64_23] : memref<1x128xf32, #tpu.memory_space<vmem>>, vector<1x32xf32>
        %36 = arith.addf %32, %35 : vector<1x32xf32>
        %c0_24 = arith.constant 0 : index
        %c96 = arith.constant 96 : index
        %37 = vector.load %arg5[%c0_24, %c96] : memref<1x128xf32, #tpu.memory_space<vmem>>, vector<1x32xf32>
        %38 = arith.addf %34, %37 : vector<1x32xf32>
        %c0_25 = arith.constant 0 : index
        %c96_26 = arith.constant 96 : index
        %39 = vector.load %arg6[%c0_25, %c96_26] : memref<1x128xf32, #tpu.memory_space<vmem>>, vector<1x32xf32>
        %40 = arith.addf %36, %39 : vector<1x32xf32>
        %cst_27 = arith.constant 7.812500e-03 : f32
        %41 = vector.broadcast %cst_27 : f32 to vector<1x32xf32>
        %42 = arith.mulf %38, %41 : vector<1x32xf32>
        %cst_28 = arith.constant 7.812500e-03 : f32
        %43 = vector.broadcast %cst_28 : f32 to vector<1x32xf32>
        %44 = arith.mulf %40, %43 : vector<1x32xf32>
        %45 = arith.mulf %42, %42 : vector<1x32xf32>
        %46 = arith.subf %44, %45 : vector<1x32xf32>
        %cst_29 = arith.constant 0.000000e+00 : f32
        %47 = vector.broadcast %cst_29 : f32 to vector<1x32xf32>
        %48 = arith.maximumf %46, %47 : vector<1x32xf32>
        %cst_30 = arith.constant 9.99999974E-6 : f32
        %49 = vector.broadcast %cst_30 : f32 to vector<1x32xf32>
        %50 = arith.addf %48, %49 : vector<1x32xf32>
        %51 = math.rsqrt %50 : vector<1x32xf32>
        %cst_31 = arith.constant 0.000000e+00 : f32
        %52 = vector.broadcast %cst_31 : f32 to vector<1x32xf32>
        %53 = arith.subf %52, %42 : vector<1x32xf32>
        %54 = arith.mulf %53, %51 : vector<1x32xf32>
        %55 = tpu.concatenate %51, %51, %51, %51 in 1 : vector<1x32xf32>, vector<1x32xf32>, vector<1x32xf32>, vector<1x32xf32> -> vector<1x128xf32>
        %c0_32 = arith.constant 0 : index
        %c0_33 = arith.constant 0 : index
        %56 = vector.load %arg7[%c0_32, %c0_33] : memref<1x128xf32, #tpu.memory_space<vmem>>, vector<1x128xf32>
        tpu.vector_store %arg7[%c0_32, %c0_33], %55 {strides = array<i32>} : memref<1x128xf32, #tpu.memory_space<vmem>>, vector<1x128xf32>,
        %57 = tpu.concatenate %54, %54, %54, %54 in 1 : vector<1x32xf32>, vector<1x32xf32>, vector<1x32xf32>, vector<1x32xf32> -> vector<1x128xf32>
        %c0_34 = arith.constant 0 : index
        %c0_35 = arith.constant 0 : index
        %58 = vector.load %arg8[%c0_34, %c0_35] : memref<1x128xf32, #tpu.memory_space<vmem>>, vector<1x128xf32>
        tpu.vector_store %arg8[%c0_34, %c0_35], %57 {strides = array<i32>} : memref<1x128xf32, #tpu.memory_space<vmem>>, vector<1x128xf32>,
      } else {
      }
      %14 = arith.index_cast %arg1 : i32 to index
      %c0 = arith.constant 0 : index
      %c0_7 = arith.constant 0 : index
      %15 = vector.load %arg9[%14, %c0, %c0_7] : memref<1x32x128xf32, #tpu.memory_space<vmem>>, vector<1x32x128xf32>
      %16 = vector.shape_cast %15 : vector<1x32x128xf32> to vector<32x128xf32>
      %c0_8 = arith.constant 0 : index
      %c0_9 = arith.constant 0 : index
      %17 = vector.load %arg7[%c0_8, %c0_9] : memref<1x128xf32, #tpu.memory_space<vmem>>, vector<1x128xf32>
      %18 = vector.broadcast %17 : vector<1x128xf32> to vector<32x128xf32>
      %19 = arith.mulf %16, %18 : vector<32x128xf32>
      %c0_10 = arith.constant 0 : index
      %c0_11 = arith.constant 0 : index
      %20 = vector.load %arg8[%c0_10, %c0_11] : memref<1x128xf32, #tpu.memory_space<vmem>>, vector<1x128xf32>
      %21 = vector.broadcast %20 : vector<1x128xf32> to vector<32x128xf32>
      %22 = arith.addf %19, %21 : vector<32x128xf32>
      %cst = arith.constant 0.000000e+00 : f32
      %23 = vector.broadcast %cst : f32 to vector<32x128xf32>
      %24 = arith.maximumf %22, %23 : vector<32x128xf32>
      %25 = arith.truncf %24 : vector<32x128xf32> to vector<32x128xbf16>
      %c0_12 = arith.constant 0 : index
      %c0_13 = arith.constant 0 : index
      %26 = vector.load %arg4[%c0_12, %c0_13] : memref<32x128xbf16, #tpu.memory_space<vmem>>, vector<32x128xbf16>
      tpu.vector_store %arg4[%c0_12, %c0_13], %25 {strides = array<i32>} : memref<32x128xbf16, #tpu.memory_space<vmem>>, vector<32x128xbf16>,
    } else {
    }
    return
  }
  func.func @transform_0(%arg0: i32, %arg1: i32) -> (i32, i32) {
    %c1_i32 = arith.constant 1 : i32
    %0 = arith.subi %c1_i32, %arg0 : i32
    %1 = arith.muli %0, %arg1 : i32
    %c0_i32 = arith.constant 0 : i32
    %c0_i32_0 = arith.constant 0 : i32
    return %1, %c0_i32 : i32, i32
  }
  func.func @transform_1(%arg0: i32, %arg1: i32) -> (i32, i32) {
    %c0_i32 = arith.constant 0 : i32
    %c0_i32_0 = arith.constant 0 : i32
    %c0_i32_1 = arith.constant 0 : i32
    return %c0_i32, %c0_i32_0 : i32, i32
  }
  func.func @transform_2(%arg0: i32, %arg1: i32) -> (i32, i32) {
    %0 = arith.muli %arg0, %arg1 : i32
    %c0_i32 = arith.constant 0 : i32
    %c0_i32_0 = arith.constant 0 : i32
    return %0, %c0_i32 : i32, i32
  }
}

module attributes {stable_mosaic.version = 11 : i64} {
  func.func @_conv_bn_act_kernel(%arg0: i32, %arg1: i32, %arg2: memref<128x288xbf16, #tpu.memory_space<vmem>>, %arg3: memref<288x64xbf16, #tpu.memory_space<vmem>>, %arg4: memref<128x64xbf16, #tpu.memory_space<vmem>>, %arg5: memref<1x64xf32, #tpu.memory_space<vmem>>, %arg6: memref<1x64xf32, #tpu.memory_space<vmem>>, %arg7: memref<1x64xf32, #tpu.memory_space<vmem>>, %arg8: memref<1x64xf32, #tpu.memory_space<vmem>>, %arg9: memref<1x128x64xf32, #tpu.memory_space<vmem>>) attributes {dimension_semantics = [#tpu.dimension_semantics<arbitrary>, #tpu.dimension_semantics<arbitrary>], iteration_bounds = array<i64: 2, 1>, scalar_prefetch = 0 : i64, scratch_operands = 5 : i64, tpu.core_type = #tpu.core_type<tc>, window_params = [{transform_indices = @transform_0, window_bounds = array<i64: 128, 288>}, {pipeline_mode = #tpu.pipeline_mode<synchronous>, transform_indices = @transform_1, window_bounds = array<i64: 288, 64>}, {transform_indices = @transform_2, window_bounds = array<i64: 128, 64>}]} {
    %c0_i32 = arith.constant 0 : i32
    %0 = arith.cmpi eq, %arg0, %c0_i32 : i32
    %c0_i32_0 = arith.constant 0 : i32
    %1 = arith.cmpi eq, %arg1, %c0_i32_0 : i32
    %2 = arith.andi %0, %1 : i1
    %3 = arith.extui %2 : i1 to i32
    %c0_i32_1 = arith.constant 0 : i32
    %4 = arith.cmpi ne, %3, %c0_i32_1 : i32
    scf.if %4 {
      %cst = arith.constant 0.000000e+00 : f32
      %11 = vector.broadcast %cst : f32 to vector<1x64xf32>
      %c0 = arith.constant 0 : index
      %c0_5 = arith.constant 0 : index
      %12 = vector.load %arg5[%c0, %c0_5] : memref<1x64xf32, #tpu.memory_space<vmem>>, vector<1x64xf32>
      tpu.vector_store %arg5[%c0, %c0_5], %11 {strides = array<i32>} : memref<1x64xf32, #tpu.memory_space<vmem>>, vector<1x64xf32>,
      %cst_6 = arith.constant 0.000000e+00 : f32
      %13 = vector.broadcast %cst_6 : f32 to vector<1x64xf32>
      %c0_7 = arith.constant 0 : index
      %c0_8 = arith.constant 0 : index
      %14 = vector.load %arg6[%c0_7, %c0_8] : memref<1x64xf32, #tpu.memory_space<vmem>>, vector<1x64xf32>
      tpu.vector_store %arg6[%c0_7, %c0_8], %13 {strides = array<i32>} : memref<1x64xf32, #tpu.memory_space<vmem>>, vector<1x64xf32>,
    } else {
    }
    %c0_i32_2 = arith.constant 0 : i32
    %5 = arith.cmpi eq, %arg0, %c0_i32_2 : i32
    %6 = arith.extui %5 : i1 to i32
    %c0_i32_3 = arith.constant 0 : i32
    %7 = arith.cmpi ne, %6, %c0_i32_3 : i32
    scf.if %7 {
      %c0 = arith.constant 0 : index
      %c0_5 = arith.constant 0 : index
      %11 = vector.load %arg2[%c0, %c0_5] : memref<128x288xbf16, #tpu.memory_space<vmem>>, vector<128x288xbf16>
      %c0_6 = arith.constant 0 : index
      %c0_7 = arith.constant 0 : index
      %12 = vector.load %arg3[%c0_6, %c0_7] : memref<288x64xbf16, #tpu.memory_space<vmem>>, vector<288x64xbf16>
      %cst = arith.constant dense<0.000000e+00> : vector<128x64xf32>
      %13 = tpu.matmul %11, %12, %cst {dimension_numbers = #tpu.dot_dimension_numbers<[1], [0], [0], [1], [0, 0, 1, 1], [], []>} : vector<128x288xbf16>, vector<288x64xbf16>, vector<128x64xf32> -> vector<128x64xf32>
      %c0_8 = arith.constant 0 : index
      %c0_9 = arith.constant 0 : index
      %14 = vector.load %arg5[%c0_8, %c0_9] : memref<1x64xf32, #tpu.memory_space<vmem>>, vector<1x64xf32>
      %cst_10 = arith.constant dense<0.000000e+00> : vector<64xf32>
      %15 = vector.multi_reduction <add>, %13, %cst_10 [0] : vector<128x64xf32> to vector<64xf32>
      %16 = vector.shape_cast %15 : vector<64xf32> to vector<1x64xf32>
      %17 = arith.addf %14, %16 : vector<1x64xf32>
      %c0_11 = arith.constant 0 : index
      %c0_12 = arith.constant 0 : index
      %18 = vector.load %arg5[%c0_11, %c0_12] : memref<1x64xf32, #tpu.memory_space<vmem>>, vector<1x64xf32>
      tpu.vector_store %arg5[%c0_11, %c0_12], %17 {strides = array<i32>} : memref<1x64xf32, #tpu.memory_space<vmem>>, vector<1x64xf32>,
      %c0_13 = arith.constant 0 : index
      %c0_14 = arith.constant 0 : index
      %19 = vector.load %arg6[%c0_13, %c0_14] : memref<1x64xf32, #tpu.memory_space<vmem>>, vector<1x64xf32>
      %20 = arith.mulf %13, %13 : vector<128x64xf32>
      %cst_15 = arith.constant dense<0.000000e+00> : vector<64xf32>
      %21 = vector.multi_reduction <add>, %20, %cst_15 [0] : vector<128x64xf32> to vector<64xf32>
      %22 = vector.shape_cast %21 : vector<64xf32> to vector<1x64xf32>
      %23 = arith.addf %19, %22 : vector<1x64xf32>
      %c0_16 = arith.constant 0 : index
      %c0_17 = arith.constant 0 : index
      %24 = vector.load %arg6[%c0_16, %c0_17] : memref<1x64xf32, #tpu.memory_space<vmem>>, vector<1x64xf32>
      tpu.vector_store %arg6[%c0_16, %c0_17], %23 {strides = array<i32>} : memref<1x64xf32, #tpu.memory_space<vmem>>, vector<1x64xf32>,
      %25 = arith.index_cast %arg1 : i32 to index
      %c0_18 = arith.constant 0 : index
      %c0_19 = arith.constant 0 : index
      %26 = vector.load %arg9[%25, %c0_18, %c0_19] : memref<1x128x64xf32, #tpu.memory_space<vmem>>, vector<1x128x64xf32>
      %27 = vector.shape_cast %26 : vector<1x128x64xf32> to vector<128x64xf32>
      %28 = vector.shape_cast %13 : vector<128x64xf32> to vector<1x128x64xf32>
      tpu.vector_store %arg9[%25, %c0_18, %c0_19], %28 {strides = array<i32>} : memref<1x128x64xf32, #tpu.memory_space<vmem>>, vector<1x128x64xf32>,
    } else {
    }
    %c1_i32 = arith.constant 1 : i32
    %8 = arith.cmpi eq, %arg0, %c1_i32 : i32
    %9 = arith.extui %8 : i1 to i32
    %c0_i32_4 = arith.constant 0 : i32
    %10 = arith.cmpi ne, %9, %c0_i32_4 : i32
    scf.if %10 {
      %c0_i32_5 = arith.constant 0 : i32
      %11 = arith.cmpi eq, %arg1, %c0_i32_5 : i32
      %12 = arith.extui %11 : i1 to i32
      %c0_i32_6 = arith.constant 0 : i32
      %13 = arith.cmpi ne, %12, %c0_i32_6 : i32
      scf.if %13 {
        %c0_14 = arith.constant 0 : index
        %c0_15 = arith.constant 0 : index
        %27 = vector.load %arg5[%c0_14, %c0_15] : memref<1x64xf32, #tpu.memory_space<vmem>>, vector<1x16xf32>
        %c0_16 = arith.constant 0 : index
        %c0_17 = arith.constant 0 : index
        %28 = vector.load %arg6[%c0_16, %c0_17] : memref<1x64xf32, #tpu.memory_space<vmem>>, vector<1x16xf32>
        %c0_18 = arith.constant 0 : index
        %c16 = arith.constant 16 : index
        %29 = vector.load %arg5[%c0_18, %c16] : memref<1x64xf32, #tpu.memory_space<vmem>>, vector<1x16xf32>
        %30 = arith.addf %27, %29 : vector<1x16xf32>
        %c0_19 = arith.constant 0 : index
        %c16_20 = arith.constant 16 : index
        %31 = vector.load %arg6[%c0_19, %c16_20] : memref<1x64xf32, #tpu.memory_space<vmem>>, vector<1x16xf32>
        %32 = arith.addf %28, %31 : vector<1x16xf32>
        %c0_21 = arith.constant 0 : index
        %c32 = arith.constant 32 : index
        %33 = vector.load %arg5[%c0_21, %c32] : memref<1x64xf32, #tpu.memory_space<vmem>>, vector<1x16xf32>
        %34 = arith.addf %30, %33 : vector<1x16xf32>
        %c0_22 = arith.constant 0 : index
        %c32_23 = arith.constant 32 : index
        %35 = vector.load %arg6[%c0_22, %c32_23] : memref<1x64xf32, #tpu.memory_space<vmem>>, vector<1x16xf32>
        %36 = arith.addf %32, %35 : vector<1x16xf32>
        %c0_24 = arith.constant 0 : index
        %c48 = arith.constant 48 : index
        %37 = vector.load %arg5[%c0_24, %c48] : memref<1x64xf32, #tpu.memory_space<vmem>>, vector<1x16xf32>
        %38 = arith.addf %34, %37 : vector<1x16xf32>
        %c0_25 = arith.constant 0 : index
        %c48_26 = arith.constant 48 : index
        %39 = vector.load %arg6[%c0_25, %c48_26] : memref<1x64xf32, #tpu.memory_space<vmem>>, vector<1x16xf32>
        %40 = arith.addf %36, %39 : vector<1x16xf32>
        %cst_27 = arith.constant 0.001953125 : f32
        %41 = vector.broadcast %cst_27 : f32 to vector<1x16xf32>
        %42 = arith.mulf %38, %41 : vector<1x16xf32>
        %cst_28 = arith.constant 0.001953125 : f32
        %43 = vector.broadcast %cst_28 : f32 to vector<1x16xf32>
        %44 = arith.mulf %40, %43 : vector<1x16xf32>
        %45 = arith.mulf %42, %42 : vector<1x16xf32>
        %46 = arith.subf %44, %45 : vector<1x16xf32>
        %cst_29 = arith.constant 0.000000e+00 : f32
        %47 = vector.broadcast %cst_29 : f32 to vector<1x16xf32>
        %48 = arith.maximumf %46, %47 : vector<1x16xf32>
        %cst_30 = arith.constant 9.99999974E-6 : f32
        %49 = vector.broadcast %cst_30 : f32 to vector<1x16xf32>
        %50 = arith.addf %48, %49 : vector<1x16xf32>
        %51 = math.rsqrt %50 : vector<1x16xf32>
        %cst_31 = arith.constant 0.000000e+00 : f32
        %52 = vector.broadcast %cst_31 : f32 to vector<1x16xf32>
        %53 = arith.subf %52, %42 : vector<1x16xf32>
        %54 = arith.mulf %53, %51 : vector<1x16xf32>
        %55 = tpu.concatenate %51, %51, %51, %51 in 1 : vector<1x16xf32>, vector<1x16xf32>, vector<1x16xf32>, vector<1x16xf32> -> vector<1x64xf32>
        %c0_32 = arith.constant 0 : index
        %c0_33 = arith.constant 0 : index
        %56 = vector.load %arg7[%c0_32, %c0_33] : memref<1x64xf32, #tpu.memory_space<vmem>>, vector<1x64xf32>
        tpu.vector_store %arg7[%c0_32, %c0_33], %55 {strides = array<i32>} : memref<1x64xf32, #tpu.memory_space<vmem>>, vector<1x64xf32>,
        %57 = tpu.concatenate %54, %54, %54, %54 in 1 : vector<1x16xf32>, vector<1x16xf32>, vector<1x16xf32>, vector<1x16xf32> -> vector<1x64xf32>
        %c0_34 = arith.constant 0 : index
        %c0_35 = arith.constant 0 : index
        %58 = vector.load %arg8[%c0_34, %c0_35] : memref<1x64xf32, #tpu.memory_space<vmem>>, vector<1x64xf32>
        tpu.vector_store %arg8[%c0_34, %c0_35], %57 {strides = array<i32>} : memref<1x64xf32, #tpu.memory_space<vmem>>, vector<1x64xf32>,
      } else {
      }
      %14 = arith.index_cast %arg1 : i32 to index
      %c0 = arith.constant 0 : index
      %c0_7 = arith.constant 0 : index
      %15 = vector.load %arg9[%14, %c0, %c0_7] : memref<1x128x64xf32, #tpu.memory_space<vmem>>, vector<1x128x64xf32>
      %16 = vector.shape_cast %15 : vector<1x128x64xf32> to vector<128x64xf32>
      %c0_8 = arith.constant 0 : index
      %c0_9 = arith.constant 0 : index
      %17 = vector.load %arg7[%c0_8, %c0_9] : memref<1x64xf32, #tpu.memory_space<vmem>>, vector<1x64xf32>
      %18 = vector.broadcast %17 : vector<1x64xf32> to vector<128x64xf32>
      %19 = arith.mulf %16, %18 : vector<128x64xf32>
      %c0_10 = arith.constant 0 : index
      %c0_11 = arith.constant 0 : index
      %20 = vector.load %arg8[%c0_10, %c0_11] : memref<1x64xf32, #tpu.memory_space<vmem>>, vector<1x64xf32>
      %21 = vector.broadcast %20 : vector<1x64xf32> to vector<128x64xf32>
      %22 = arith.addf %19, %21 : vector<128x64xf32>
      %cst = arith.constant 0.000000e+00 : f32
      %23 = vector.broadcast %cst : f32 to vector<128x64xf32>
      %24 = arith.maximumf %22, %23 : vector<128x64xf32>
      %25 = arith.truncf %24 : vector<128x64xf32> to vector<128x64xbf16>
      %c0_12 = arith.constant 0 : index
      %c0_13 = arith.constant 0 : index
      %26 = vector.load %arg4[%c0_12, %c0_13] : memref<128x64xbf16, #tpu.memory_space<vmem>>, vector<128x64xbf16>
      tpu.vector_store %arg4[%c0_12, %c0_13], %25 {strides = array<i32>} : memref<128x64xbf16, #tpu.memory_space<vmem>>, vector<128x64xbf16>,
    } else {
    }
    return
  }
  func.func @transform_0(%arg0: i32, %arg1: i32) -> (i32, i32) {
    %c1_i32 = arith.constant 1 : i32
    %0 = arith.subi %c1_i32, %arg0 : i32
    %1 = arith.muli %0, %arg1 : i32
    %c0_i32 = arith.constant 0 : i32
    %c0_i32_0 = arith.constant 0 : i32
    return %1, %c0_i32 : i32, i32
  }
  func.func @transform_1(%arg0: i32, %arg1: i32) -> (i32, i32) {
    %c0_i32 = arith.constant 0 : i32
    %c0_i32_0 = arith.constant 0 : i32
    %c0_i32_1 = arith.constant 0 : i32
    return %c0_i32, %c0_i32_0 : i32, i32
  }
  func.func @transform_2(%arg0: i32, %arg1: i32) -> (i32, i32) {
    %0 = arith.muli %arg0, %arg1 : i32
    %c0_i32 = arith.constant 0 : i32
    %c0_i32_0 = arith.constant 0 : i32
    return %0, %c0_i32 : i32, i32
  }
}

module attributes {stable_mosaic.version = 11 : i64} {
  func.func @_conv_bn_act_kernel(%arg0: i32, %arg1: i32, %arg2: memref<512x144xbf16, #tpu.memory_space<vmem>>, %arg3: memref<144x32xbf16, #tpu.memory_space<vmem>>, %arg4: memref<512x32xbf16, #tpu.memory_space<vmem>>, %arg5: memref<1x32xf32, #tpu.memory_space<vmem>>, %arg6: memref<1x32xf32, #tpu.memory_space<vmem>>, %arg7: memref<1x32xf32, #tpu.memory_space<vmem>>, %arg8: memref<1x32xf32, #tpu.memory_space<vmem>>, %arg9: memref<1x512x32xf32, #tpu.memory_space<vmem>>) attributes {dimension_semantics = [#tpu.dimension_semantics<arbitrary>, #tpu.dimension_semantics<arbitrary>], iteration_bounds = array<i64: 2, 1>, scalar_prefetch = 0 : i64, scratch_operands = 5 : i64, tpu.core_type = #tpu.core_type<tc>, window_params = [{transform_indices = @transform_0, window_bounds = array<i64: 512, 144>}, {pipeline_mode = #tpu.pipeline_mode<synchronous>, transform_indices = @transform_1, window_bounds = array<i64: 144, 32>}, {transform_indices = @transform_2, window_bounds = array<i64: 512, 32>}]} {
    %c0_i32 = arith.constant 0 : i32
    %0 = arith.cmpi eq, %arg0, %c0_i32 : i32
    %c0_i32_0 = arith.constant 0 : i32
    %1 = arith.cmpi eq, %arg1, %c0_i32_0 : i32
    %2 = arith.andi %0, %1 : i1
    %3 = arith.extui %2 : i1 to i32
    %c0_i32_1 = arith.constant 0 : i32
    %4 = arith.cmpi ne, %3, %c0_i32_1 : i32
    scf.if %4 {
      %cst = arith.constant 0.000000e+00 : f32
      %11 = vector.broadcast %cst : f32 to vector<1x32xf32>
      %c0 = arith.constant 0 : index
      %c0_5 = arith.constant 0 : index
      %12 = vector.load %arg5[%c0, %c0_5] : memref<1x32xf32, #tpu.memory_space<vmem>>, vector<1x32xf32>
      tpu.vector_store %arg5[%c0, %c0_5], %11 {strides = array<i32>} : memref<1x32xf32, #tpu.memory_space<vmem>>, vector<1x32xf32>,
      %cst_6 = arith.constant 0.000000e+00 : f32
      %13 = vector.broadcast %cst_6 : f32 to vector<1x32xf32>
      %c0_7 = arith.constant 0 : index
      %c0_8 = arith.constant 0 : index
      %14 = vector.load %arg6[%c0_7, %c0_8] : memref<1x32xf32, #tpu.memory_space<vmem>>, vector<1x32xf32>
      tpu.vector_store %arg6[%c0_7, %c0_8], %13 {strides = array<i32>} : memref<1x32xf32, #tpu.memory_space<vmem>>, vector<1x32xf32>,
    } else {
    }
    %c0_i32_2 = arith.constant 0 : i32
    %5 = arith.cmpi eq, %arg0, %c0_i32_2 : i32
    %6 = arith.extui %5 : i1 to i32
    %c0_i32_3 = arith.constant 0 : i32
    %7 = arith.cmpi ne, %6, %c0_i32_3 : i32
    scf.if %7 {
      %c0 = arith.constant 0 : index
      %c0_5 = arith.constant 0 : index
      %11 = vector.load %arg2[%c0, %c0_5] : memref<512x144xbf16, #tpu.memory_space<vmem>>, vector<512x144xbf16>
      %c0_6 = arith.constant 0 : index
      %c0_7 = arith.constant 0 : index
      %12 = vector.load %arg3[%c0_6, %c0_7] : memref<144x32xbf16, #tpu.memory_space<vmem>>, vector<144x32xbf16>
      %cst = arith.constant dense<0.000000e+00> : vector<512x32xf32>
      %13 = tpu.matmul %11, %12, %cst {dimension_numbers = #tpu.dot_dimension_numbers<[1], [0], [0], [1], [0, 0, 1, 1], [], []>} : vector<512x144xbf16>, vector<144x32xbf16>, vector<512x32xf32> -> vector<512x32xf32>
      %c0_8 = arith.constant 0 : index
      %c0_9 = arith.constant 0 : index
      %14 = vector.load %arg5[%c0_8, %c0_9] : memref<1x32xf32, #tpu.memory_space<vmem>>, vector<1x32xf32>
      %cst_10 = arith.constant dense<0.000000e+00> : vector<32xf32>
      %15 = vector.multi_reduction <add>, %13, %cst_10 [0] : vector<512x32xf32> to vector<32xf32>
      %16 = vector.shape_cast %15 : vector<32xf32> to vector<1x32xf32>
      %17 = arith.addf %14, %16 : vector<1x32xf32>
      %c0_11 = arith.constant 0 : index
      %c0_12 = arith.constant 0 : index
      %18 = vector.load %arg5[%c0_11, %c0_12] : memref<1x32xf32, #tpu.memory_space<vmem>>, vector<1x32xf32>
      tpu.vector_store %arg5[%c0_11, %c0_12], %17 {strides = array<i32>} : memref<1x32xf32, #tpu.memory_space<vmem>>, vector<1x32xf32>,
      %c0_13 = arith.constant 0 : index
      %c0_14 = arith.constant 0 : index
      %19 = vector.load %arg6[%c0_13, %c0_14] : memref<1x32xf32, #tpu.memory_space<vmem>>, vector<1x32xf32>
      %20 = arith.mulf %13, %13 : vector<512x32xf32>
      %cst_15 = arith.constant dense<0.000000e+00> : vector<32xf32>
      %21 = vector.multi_reduction <add>, %20, %cst_15 [0] : vector<512x32xf32> to vector<32xf32>
      %22 = vector.shape_cast %21 : vector<32xf32> to vector<1x32xf32>
      %23 = arith.addf %19, %22 : vector<1x32xf32>
      %c0_16 = arith.constant 0 : index
      %c0_17 = arith.constant 0 : index
      %24 = vector.load %arg6[%c0_16, %c0_17] : memref<1x32xf32, #tpu.memory_space<vmem>>, vector<1x32xf32>
      tpu.vector_store %arg6[%c0_16, %c0_17], %23 {strides = array<i32>} : memref<1x32xf32, #tpu.memory_space<vmem>>, vector<1x32xf32>,
      %25 = arith.index_cast %arg1 : i32 to index
      %c0_18 = arith.constant 0 : index
      %c0_19 = arith.constant 0 : index
      %26 = vector.load %arg9[%25, %c0_18, %c0_19] : memref<1x512x32xf32, #tpu.memory_space<vmem>>, vector<1x512x32xf32>
      %27 = vector.shape_cast %26 : vector<1x512x32xf32> to vector<512x32xf32>
      %28 = vector.shape_cast %13 : vector<512x32xf32> to vector<1x512x32xf32>
      tpu.vector_store %arg9[%25, %c0_18, %c0_19], %28 {strides = array<i32>} : memref<1x512x32xf32, #tpu.memory_space<vmem>>, vector<1x512x32xf32>,
    } else {
    }
    %c1_i32 = arith.constant 1 : i32
    %8 = arith.cmpi eq, %arg0, %c1_i32 : i32
    %9 = arith.extui %8 : i1 to i32
    %c0_i32_4 = arith.constant 0 : i32
    %10 = arith.cmpi ne, %9, %c0_i32_4 : i32
    scf.if %10 {
      %c0_i32_5 = arith.constant 0 : i32
      %11 = arith.cmpi eq, %arg1, %c0_i32_5 : i32
      %12 = arith.extui %11 : i1 to i32
      %c0_i32_6 = arith.constant 0 : i32
      %13 = arith.cmpi ne, %12, %c0_i32_6 : i32
      scf.if %13 {
        %c0_14 = arith.constant 0 : index
        %c0_15 = arith.constant 0 : index
        %27 = vector.load %arg5[%c0_14, %c0_15] : memref<1x32xf32, #tpu.memory_space<vmem>>, vector<1x8xf32>
        %c0_16 = arith.constant 0 : index
        %c0_17 = arith.constant 0 : index
        %28 = vector.load %arg6[%c0_16, %c0_17] : memref<1x32xf32, #tpu.memory_space<vmem>>, vector<1x8xf32>
        %c0_18 = arith.constant 0 : index
        %c8 = arith.constant 8 : index
        %29 = vector.load %arg5[%c0_18, %c8] : memref<1x32xf32, #tpu.memory_space<vmem>>, vector<1x8xf32>
        %30 = arith.addf %27, %29 : vector<1x8xf32>
        %c0_19 = arith.constant 0 : index
        %c8_20 = arith.constant 8 : index
        %31 = vector.load %arg6[%c0_19, %c8_20] : memref<1x32xf32, #tpu.memory_space<vmem>>, vector<1x8xf32>
        %32 = arith.addf %28, %31 : vector<1x8xf32>
        %c0_21 = arith.constant 0 : index
        %c16 = arith.constant 16 : index
        %33 = vector.load %arg5[%c0_21, %c16] : memref<1x32xf32, #tpu.memory_space<vmem>>, vector<1x8xf32>
        %34 = arith.addf %30, %33 : vector<1x8xf32>
        %c0_22 = arith.constant 0 : index
        %c16_23 = arith.constant 16 : index
        %35 = vector.load %arg6[%c0_22, %c16_23] : memref<1x32xf32, #tpu.memory_space<vmem>>, vector<1x8xf32>
        %36 = arith.addf %32, %35 : vector<1x8xf32>
        %c0_24 = arith.constant 0 : index
        %c24 = arith.constant 24 : index
        %37 = vector.load %arg5[%c0_24, %c24] : memref<1x32xf32, #tpu.memory_space<vmem>>, vector<1x8xf32>
        %38 = arith.addf %34, %37 : vector<1x8xf32>
        %c0_25 = arith.constant 0 : index
        %c24_26 = arith.constant 24 : index
        %39 = vector.load %arg6[%c0_25, %c24_26] : memref<1x32xf32, #tpu.memory_space<vmem>>, vector<1x8xf32>
        %40 = arith.addf %36, %39 : vector<1x8xf32>
        %cst_27 = arith.constant 4.8828125E-4 : f32
        %41 = vector.broadcast %cst_27 : f32 to vector<1x8xf32>
        %42 = arith.mulf %38, %41 : vector<1x8xf32>
        %cst_28 = arith.constant 4.8828125E-4 : f32
        %43 = vector.broadcast %cst_28 : f32 to vector<1x8xf32>
        %44 = arith.mulf %40, %43 : vector<1x8xf32>
        %45 = arith.mulf %42, %42 : vector<1x8xf32>
        %46 = arith.subf %44, %45 : vector<1x8xf32>
        %cst_29 = arith.constant 0.000000e+00 : f32
        %47 = vector.broadcast %cst_29 : f32 to vector<1x8xf32>
        %48 = arith.maximumf %46, %47 : vector<1x8xf32>
        %cst_30 = arith.constant 9.99999974E-6 : f32
        %49 = vector.broadcast %cst_30 : f32 to vector<1x8xf32>
        %50 = arith.addf %48, %49 : vector<1x8xf32>
        %51 = math.rsqrt %50 : vector<1x8xf32>
        %cst_31 = arith.constant 0.000000e+00 : f32
        %52 = vector.broadcast %cst_31 : f32 to vector<1x8xf32>
        %53 = arith.subf %52, %42 : vector<1x8xf32>
        %54 = arith.mulf %53, %51 : vector<1x8xf32>
        %55 = tpu.concatenate %51, %51, %51, %51 in 1 : vector<1x8xf32>, vector<1x8xf32>, vector<1x8xf32>, vector<1x8xf32> -> vector<1x32xf32>
        %c0_32 = arith.constant 0 : index
        %c0_33 = arith.constant 0 : index
        %56 = vector.load %arg7[%c0_32, %c0_33] : memref<1x32xf32, #tpu.memory_space<vmem>>, vector<1x32xf32>
        tpu.vector_store %arg7[%c0_32, %c0_33], %55 {strides = array<i32>} : memref<1x32xf32, #tpu.memory_space<vmem>>, vector<1x32xf32>,
        %57 = tpu.concatenate %54, %54, %54, %54 in 1 : vector<1x8xf32>, vector<1x8xf32>, vector<1x8xf32>, vector<1x8xf32> -> vector<1x32xf32>
        %c0_34 = arith.constant 0 : index
        %c0_35 = arith.constant 0 : index
        %58 = vector.load %arg8[%c0_34, %c0_35] : memref<1x32xf32, #tpu.memory_space<vmem>>, vector<1x32xf32>
        tpu.vector_store %arg8[%c0_34, %c0_35], %57 {strides = array<i32>} : memref<1x32xf32, #tpu.memory_space<vmem>>, vector<1x32xf32>,
      } else {
      }
      %14 = arith.index_cast %arg1 : i32 to index
      %c0 = arith.constant 0 : index
      %c0_7 = arith.constant 0 : index
      %15 = vector.load %arg9[%14, %c0, %c0_7] : memref<1x512x32xf32, #tpu.memory_space<vmem>>, vector<1x512x32xf32>
      %16 = vector.shape_cast %15 : vector<1x512x32xf32> to vector<512x32xf32>
      %c0_8 = arith.constant 0 : index
      %c0_9 = arith.constant 0 : index
      %17 = vector.load %arg7[%c0_8, %c0_9] : memref<1x32xf32, #tpu.memory_space<vmem>>, vector<1x32xf32>
      %18 = vector.broadcast %17 : vector<1x32xf32> to vector<512x32xf32>
      %19 = arith.mulf %16, %18 : vector<512x32xf32>
      %c0_10 = arith.constant 0 : index
      %c0_11 = arith.constant 0 : index
      %20 = vector.load %arg8[%c0_10, %c0_11] : memref<1x32xf32, #tpu.memory_space<vmem>>, vector<1x32xf32>
      %21 = vector.broadcast %20 : vector<1x32xf32> to vector<512x32xf32>
      %22 = arith.addf %19, %21 : vector<512x32xf32>
      %cst = arith.constant 0.000000e+00 : f32
      %23 = vector.broadcast %cst : f32 to vector<512x32xf32>
      %24 = arith.maximumf %22, %23 : vector<512x32xf32>
      %25 = arith.truncf %24 : vector<512x32xf32> to vector<512x32xbf16>
      %c0_12 = arith.constant 0 : index
      %c0_13 = arith.constant 0 : index
      %26 = vector.load %arg4[%c0_12, %c0_13] : memref<512x32xbf16, #tpu.memory_space<vmem>>, vector<512x32xbf16>
      tpu.vector_store %arg4[%c0_12, %c0_13], %25 {strides = array<i32>} : memref<512x32xbf16, #tpu.memory_space<vmem>>, vector<512x32xbf16>,
    } else {
    }
    return
  }
  func.func @transform_0(%arg0: i32, %arg1: i32) -> (i32, i32) {
    %c1_i32 = arith.constant 1 : i32
    %0 = arith.subi %c1_i32, %arg0 : i32
    %1 = arith.muli %0, %arg1 : i32
    %c0_i32 = arith.constant 0 : i32
    %c0_i32_0 = arith.constant 0 : i32
    return %1, %c0_i32 : i32, i32
  }
  func.func @transform_1(%arg0: i32, %arg1: i32) -> (i32, i32) {
    %c0_i32 = arith.constant 0 : i32
    %c0_i32_0 = arith.constant 0 : i32
    %c0_i32_1 = arith.constant 0 : i32
    return %c0_i32, %c0_i32_0 : i32, i32
  }
  func.func @transform_2(%arg0: i32, %arg1: i32) -> (i32, i32) {
    %0 = arith.muli %arg0, %arg1 : i32
    %c0_i32 = arith.constant 0 : i32
    %c0_i32_0 = arith.constant 0 : i32
    return %0, %c0_i32 : i32, i32
  }
}

module attributes {stable_mosaic.version = 11 : i64} {
  func.func @_conv_act_kernel(%arg0: i32, %arg1: memref<2048x72xbf16, #tpu.memory_space<vmem>>, %arg2: memref<72x27xbf16, #tpu.memory_space<vmem>>, %arg3: memref<2048x27xf32, #tpu.memory_space<vmem>>) attributes {dimension_semantics = [#tpu.dimension_semantics<parallel>], iteration_bounds = array<i64: 1>, scalar_prefetch = 0 : i64, scratch_operands = 0 : i64, tpu.core_type = #tpu.core_type<tc>, window_params = [{transform_indices = @transform_0, window_bounds = array<i64: 2048, 72>}, {pipeline_mode = #tpu.pipeline_mode<synchronous>, transform_indices = @transform_1, window_bounds = array<i64: 72, 27>}, {transform_indices = @transform_2, window_bounds = array<i64: 2048, 27>}]} {
    %c0 = arith.constant 0 : index
    %c0_0 = arith.constant 0 : index
    %0 = vector.load %arg1[%c0, %c0_0] : memref<2048x72xbf16, #tpu.memory_space<vmem>>, vector<2048x72xbf16>
    %c0_1 = arith.constant 0 : index
    %c0_2 = arith.constant 0 : index
    %1 = vector.load %arg2[%c0_1, %c0_2] : memref<72x27xbf16, #tpu.memory_space<vmem>>, vector<72x27xbf16>
    %cst = arith.constant dense<0.000000e+00> : vector<2048x27xf32>
    %2 = tpu.matmul %0, %1, %cst {dimension_numbers = #tpu.dot_dimension_numbers<[1], [0], [0], [1], [0, 0, 1, 1], [], []>} : vector<2048x72xbf16>, vector<72x27xbf16>, vector<2048x27xf32> -> vector<2048x27xf32>
    %3 = math.tanh %2 : vector<2048x27xf32>
    %c0_3 = arith.constant 0 : index
    %c0_4 = arith.constant 0 : index
    %4 = vector.load %arg3[%c0_3, %c0_4] : memref<2048x27xf32, #tpu.memory_space<vmem>>, vector<2048x27xf32>
    tpu.vector_store %arg3[%c0_3, %c0_4], %3 {strides = array<i32>} : memref<2048x27xf32, #tpu.memory_space<vmem>>, vector<2048x27xf32>,
    return
  }
  func.func @transform_0(%arg0: i32) -> (i32, i32) {
    %c0_i32 = arith.constant 0 : i32
    %c0_i32_0 = arith.constant 0 : i32
    return %arg0, %c0_i32 : i32, i32
  }
  func.func @transform_1(%arg0: i32) -> (i32, i32) {
    %c0_i32 = arith.constant 0 : i32
    %c0_i32_0 = arith.constant 0 : i32
    %c0_i32_1 = arith.constant 0 : i32
    return %c0_i32, %c0_i32_0 : i32, i32
  }
  func.func @transform_2(%arg0: i32) -> (i32, i32) {
    %c0_i32 = arith.constant 0 : i32
    %c0_i32_0 = arith.constant 0 : i32
    return %arg0, %c0_i32 : i32, i32
  }
}

</mosaic_0001>

<bundles_post_ra>
// kernel: generator_forward.5
= control target key start
LH: loop header
LB: loop body
LE: loop exit
PB: predicated region body
PF: predicated region fallthrough
CT: control target
= control target key end

     0   :  { %7 = vsyncpa [#allocation8], 0  ;;  %s1387_s9 = smov 0   ;;  %s1389_s10 = smov 0   ;;  %s1605_s0 = inlined_call_operand.vmem [shape: bf16[2,16], index: 0, kind: input, shape index: {}]   ;;  %s1606_s1 = inlined_call_operand.hbm [shape: bf16[16,1024], index: 1, kind: input, shape index: {}]   ;;  %s1607_s2 = inlined_call_operand.vmem [shape: bf16[2,1024], index: 2, kind: output, shape index: {}]  }
   0x1   :  { %s1391_s11 = smov 0  }
   0x2 LB: > { %s1228_s12 = sadd.s32 4294967295, %s1360_s11   ;;  %s25_s13 = sadd.s32 1, %s1356_s10  ;;  %s1360_s11 = sphi %s1391_s11, %s13_s11   ;;  %s1356_s10 = sphi %s1389_s10, %s1617_s10   ;;  %s1352_s9 = sphi %s1387_s9, %s1616_s9  }
   0x3   : > { %p27_p0 = scmp.ge.s32.totalorder %s25_s13, 2  ;;  %p1230_p1 = scmp.ge.s32.totalorder %s1360_s11, 1 }
   0x4   : > { %p109_p2 = scmp.lt.s32.totalorder %s1360_s11, 3  ;;  %p1412_p4 = scmp.eq.s32.totalorder %s1228_s12, 0 }
   0x5   : > { %s1619_s13 = smov (%p27_p0, %s25_s13), 0  ;;  %s1362_s16 = smov [#allocation7]  }
   0x6   : > { %p1408_p3 = pnand %p1230_p1, %p109_p2  ;;  %s121_s17 = sshll.u32 %s1362_s16, 4  ;;  %s122_s17 = int_to_ptr.vmem [resolvable:$true] %s121_s17 }
   0x7   : > { %s1612_s15 = scalar_select %p1412_p4, 1, 0 }
   0x8   : > { %s1611_s14 = scalar_select %p1408_p3, 1, 0 }
   0x9   : > { %p1264_p5 = pneg %p1408_p3  ;;  %s1306_s21 = scalar_lea.hbm %s1606_s1, 1024 }
   0xa   : > { %p1307_p7 = scmp.ne.s32.totalorder %s1606_s1, %s1306_s21  ;;  %p1313_p11 = scmp.lt.u32.totalorder %s1306_s21, %s1606_s1 }
   0xb   : > { %p1420_p6 = pnand %p1412_p4, %p1264_p5 }
   0xd   : > { %p1308_p8 = pneg %p1420_p6 }
   0xf   : > { %p1309_p9 = pnand %p1308_p8, %p1307_p7 }
  0x11   : > { %p1310_p10 = pneg %p1309_p9 }
  0x13   : > { %p1315_p12 = pnand %p1313_p11, %p1310_p10 }
  0x15   : > { %1318 = shalt.err (!%p1315_p12)
}
  0x16   : > { %s1319_s26 = scalar_lea.vmem %s122_s17, 1024  ;;  %p1327_p2 = scmp.lt.s32.totalorder %s122_s17, %s122_s17 }
  0x17   : > { %p1320_p13 = scmp.ne.s32.totalorder %s122_s17, %s1319_s26  ;;  %p1328_p5 = scmp.lt.s32.totalorder %s1319_s26, %s1319_s26 }
  0x19   : > { %p1322_p0 = pnand %p1320_p13, %p1308_p8  ;;  %p1329_p4 = por %p1328_p5, %p1327_p2 }
  0x1b   : > { %p1323_p1 = pneg %p1322_p0 }
  0x1d   : > { %p1330_p3 = pnand %p1329_p4, %p1323_p1 }
  0x1f   : > { %1333 = shalt.err (!%p1330_p3)
}
  0x20   : > { %s1363_s27 = smov 512   ;;  %s1364_s28 = smov 32  }
  0x21   : > { %1267 = dma.hbm_to_vmem [thread:$0]  (!%p1420_p6), %s1606_s1, 1024, %s122_s17, [#allocation8], %s1363_s27, %s1363_s27, %s1364_s28  }
  0x22   : > { %p1614_p7 = scmp.ne.s32.totalorder %s1611_s14, 0 }
  0x23   : > { %p1615_p9 = scmp.ne.s32.totalorder (!%p1614_p7), %s1612_s15, 0 }
  0x24   : > { %147 = sbr.rel (%p1614_p7) target bundleno = 665 (0x299), region = 28 }
  0x2b   : > { %1347 = dma.done.wait (%p1615_p9), [#allocation8], 1024  }
  0x2c   : > { %1349 = vsyncadd (%p1615_p9), [#allocation8], 4294966272  ;;  %p183_p4 = scmp.eq.s32.totalorder %s1352_s9, 0 }
  0x2d   : > { %v1365_v0 = vmov (%p183_p4), 0.0  }
  0x2e   : > { %188 = sbr.rel (!%p183_p4) target bundleno = 53 (0x35), region = 36  ;;  %189 = vst [vmem:[#allocation2] sm:$0xff] (%p183_p4), %v1365_v0  ;;  %190 = vst [vmem:[#allocation3] sm:$0xff] (%p183_p4), %v1365_v0 }
  0x35 PF: > { %p1237_p3 = scmp.ne.s32.totalorder %s1352_s9, 0 }
  0x36   : > { %v195_v1 = vld [vmem:[#allocation7] sm:$0xff] (!%p1237_p3)  ;;  %v196_v3 = vld [vmem:[#allocation7 + $0x8] sm:$0xff] (!%p1237_p3)  ;;  %v1366_v7 = vmov (!%p1237_p3), 0   ;;  %v197_v8 = vld [vmem:[#allocation7 + $0x10] sm:$0xff] (!%p1237_p3)  ;;  %vm243_vm0 = vcmask (!%p1237_p3), 130048   ;;  %v484_v19 = vlaneseq (!%p1237_p3)  ;;  %vm412_vm1 = vcmask (!%p1237_p3), 1041408  }
  0x37   : > { %193 = sbr.rel (%p1237_p3) target bundleno = 329 (0x149), region = 40  ;;  %v199_v2 = vld [vmem:[#allocation7 + $0x20] sm:$0xff] (!%p1237_p3)  ;;  %v200_v5 = vld [vmem:[#allocation7 + $0x28] sm:$0xff] (!%p1237_p3)  ;;  %279 = vmatprep.mubr.bf16.mxu0 (!%p1237_p3), %v1366_v7  ;;  %320 = vmatprep.mubr.bf16.mxu1 (!%p1237_p3), %v1366_v7  ;;  %v201_v11 = vld [vmem:[#allocation7 + $0x30] sm:$0xff] (!%p1237_p3)  ;;  %v1367_v20 = vmov (!%p1237_p3), 1983009808  }
  0x38   : > { %v1239_v4 = vcombine.high (!%p1237_p3), %v195_v1, %v199_v2  ;;  %v1238_v6 = vcombine.low (!%p1237_p3), %v195_v1, %v199_v2  ;;  %v1241_v9 = vcombine.high (!%p1237_p3), %v196_v3, %v200_v5  ;;  %v1240_v10 = vcombine.low (!%p1237_p3), %v196_v3, %v200_v5  ;;  %v198_v12 = vld [vmem:[#allocation7 + $0x18] sm:$0xff] (!%p1237_p3)  ;;  %v194_v16 = vld [vmem:[%s1605_s0] sm:$0x1] (!%p1237_p3) }
  0x39   : > { %v202_v13 = vld [vmem:[#allocation7 + $0x38] sm:$0xff] (!%p1237_p3)  ;;  %v1243_v14 = vcombine.high (!%p1237_p3), %v197_v8, %v201_v11  ;;  %v1242_v17 = vcombine.low (!%p1237_p3), %v197_v8, %v201_v11  ;;  %v665_v21 = vunpack.c.l.s4 (!%p1237_p3), %v1367_v20  ;;  %v1368_v22 = vmov (!%p1237_p3), 1966171168  }
  0x3a   : > { %247 = vmatprep.subr.bf16.mxu0 (!%p1237_p3), %v1239_v4  ;;  %v1245_v15 = vcombine.high (!%p1237_p3), %v198_v12, %v202_v13  ;;  %288 = vmatprep.subr.bf16.mxu1 (!%p1237_p3), %v1241_v9  ;;  %v1244_v18 = vcombine.low (!%p1237_p3), %v198_v12, %v202_v13  ;;  %v482_v23 = vunpack.c.l.s4 (!%p1237_p3), %v1368_v22  ;;  %v485_v24 = vshrl.u32 (!%p1237_p3), %v484_v19, 7 }
  0x3b   : > { %248 = vmatpush1.bf16.msra.mxu0 (!%p1237_p3), %v1238_v6  ;;  %289 = vmatpush1.bf16.msra.mxu1 (!%p1237_p3), %v1240_v10  ;;  %v666_v25 = vunpack.c.0.s8 (!%p1237_p3), %v665_v21 }
  0x3c   : > { %329 = vmatprep.subr.bf16.mxu0 (!%p1237_p3), %v1243_v14  ;;  %370 = vmatprep.subr.bf16.mxu1 (!%p1237_p3), %v1245_v15  ;;  %v483_v31 = vunpack.c.0.s8 (!%p1237_p3), %v482_v23 }
  0x3d   : > { %v1461_v32 = vsub.s32 (!%p1237_p3), %v666_v25, %v485_v24 }
  0x3e   : > { %1246 = vmatmul.mubr.msk.bf16.vlgmr.msra.gmra.mrb[0].mxu0 %vm243_vm0, %v194_v16  ;;  %1247 = vmatmul.mubr.msk.bf16.vlgmr.msra.gmra.mrb[0].mxu1 %vm243_vm0, %v194_v16  ;;  %v1478_v56 = vsub.s32 %v483_v31, %v485_v24 }
  0x3f   : > { %330 = vmatpush1.bf16.msra.mxu0 %v1242_v17  ;;  %371 = vmatpush1.bf16.msra.mxu1 %v1244_v18 }
  0x40   : > { %361 = vmatprep.mubr.bf16.mxu0 %v1366_v7  ;;  %402 = vmatprep.mubr.bf16.mxu1 %v1366_v7 }
  0x46   : > { %1248 = vmatmul.mubr.msk.bf16.vlgmr.msra.gmra.mrb[4].mxu0 %vm243_vm0, %v194_v16  ;;  %1249 = vmatmul.mubr.msk.bf16.vlgmr.msra.gmra.mrb[4].mxu1 %vm243_vm0, %v194_v16 }
 0x111   : > { %v1451_v26 = vpop.f32.mrb[0].mxu0  ;;  %v1457_v29 = vpop.f32.mrb[0].mxu1 }
 0x112   : > { %v413_v27 = vsel %vm412_vm1, %v1451_v26, 0.0  ;;  %v530_v28 = vmul.f32 %v1451_v26, %v1451_v26  ;;  %v1459_v30 = vpop.f32.mrb[1].mxu0  ;;  %v427_v34 = vsel %vm412_vm1, %v1457_v29, 0.0  ;;  %v532_v35 = vmul.f32 %v1457_v29, %v1457_v29  ;;  %v1469_v37 = vpop.f32.mrb[1].mxu1 }
 0x113   : > { %v414_v33 = vrot.slane %v413_v27, 4  ;;  %v420_v36 = vsel %vm412_vm1, %v1459_v30, 0.0  ;;  %v285_v38 = vpop.f32.mrb[2].mxu0  ;;  %v428_v40 = vrot.slane %v427_v34, 4  ;;  %v531_v42 = vmul.f32 %v1459_v30, %v1459_v30  ;;  %v326_v43 = vpop.f32.mrb[2].mxu1 }
 0x114   : > { %v538_v39 = vsel %vm412_vm1, %v530_v28, 0.0  ;;  %v421_v41 = vrot.slane %v420_v36, 4  ;;  %v286_v44 = vpop.f32.mrb[3].mxu0  ;;  %v552_v47 = vsel %vm412_vm1, %v532_v35, 0.0  ;;  %v662_v48 = vcombine.low %v1451_v26, %v1459_v30  ;;  %v327_v49 = vpop.f32.mrb[3].mxu1 }
 0x115   : > { %v415_v45 = vadd.f32 %v414_v33, %v413_v27  ;;  %v539_v46 = vrot.slane %v538_v39, 4  ;;  %v429_v50 = vadd.f32 %v428_v40, %v427_v34  ;;  %v553_v51 = vrot.slane %v552_v47, 4 }
 0x116   : > { %v422_v52 = vadd.f32 %v421_v41, %v420_v36  ;;  %v545_v53 = vsel %vm412_vm1, %v531_v42, 0.0  ;;  %v434_v61 = vsel %vm412_vm1, %v1469_v37, 0.0  ;;  %v533_v6 = vmul.f32 %v1469_v37, %v1469_v37 }
 0x117   : > { %v416_v54 = vrot.slane %v415_v45, 2  ;;  %v540_v55 = vadd.f32 %v539_v46, %v538_v39  ;;  %v546_v57 = vrot.slane %v545_v53, 4  ;;  %v430_v58 = vrot.slane %v429_v50, 2 }
 0x118   : > { %v554_v59 = vadd.f32 %v553_v51, %v552_v47  ;;  %v423_v60 = vrot.slane %v422_v52, 2  ;;  %v435_v1 = vrot.slane %v434_v61, 4  ;;  %v559_v18 = vsel %vm412_vm1, %v533_v6, 0.0 }
 0x119   : > { %v417_v62 = vadd.f32 %v416_v54, %v415_v45  ;;  %v541_v63 = vrot.slane %v540_v55, 2  ;;  %v547_v0 = vadd.f32 %v546_v57, %v545_v53  ;;  %v1482_v2 = vpop.f32.mrb[4].mxu0  ;;  %v431_v3 = vadd.f32 %v430_v58, %v429_v50  ;;  %v1486_v7 = vpop.f32.mrb[4].mxu1 }
 0x11a   : > { %v555_v4 = vrot.slane %v554_v59, 2  ;;  %v424_v5 = vadd.f32 %v423_v60, %v422_v52  ;;  %v1488_v8 = vpop.f32.mrb[5].mxu0  ;;  %v436_v12 = vadd.f32 %v435_v1, %v434_v61  ;;  %v1490_v13 = vpop.f32.mrb[5].mxu1  ;;  %v670_v28 = vrot.slane %v662_v48, %v1461_v32 }
 0x11b   : > { %v418_v9 = vrot.slane %v417_v62, 1  ;;  %v542_v10 = vadd.f32 %v541_v63, %v540_v55  ;;  %v548_v11 = vrot.slane %v547_v0, 2  ;;  %v367_v14 = vpop.f32.mrb[6].mxu0  ;;  %v432_v15 = vrot.slane %v431_v3, 1  ;;  %v408_v19 = vpop.f32.mrb[6].mxu1 }
 0x11c   : > { %v556_v16 = vadd.f32 %v555_v4, %v554_v59  ;;  %v425_v17 = vrot.slane %v424_v5, 1  ;;  %v368_v20 = vpop.f32.mrb[7].mxu0  ;;  %v437_v24 = vrot.slane %v436_v12, 2  ;;  %v409_v25 = vpop.f32.mrb[7].mxu1  ;;  %v560_v30 = vrot.slane %v559_v18, 4 }
 0x11d   : > { %v419_v21 = vadd.f32 %v418_v9, %v417_v62  ;;  %v543_v22 = vrot.slane %v542_v10, 1  ;;  %v549_v23 = vadd.f32 %v548_v11, %v547_v0  ;;  %v663_v35 = vcombine.low %v1457_v29, %v1469_v37 }
 0x11e   : > { %v557_v26 = vrot.slane %v556_v16, 1  ;;  %v426_v27 = vadd.f32 %v425_v17, %v424_v5  ;;  %v438_v34 = vadd.f32 %v437_v24, %v436_v12  ;;  %v433_v36 = vadd.f32 %v432_v15, %v431_v3 }
 0x11f   : > { %v544_v31 = vadd.f32 %v543_v22, %v542_v10  ;;  %v550_v33 = vrot.slane %v549_v23, 1  ;;  %v561_v39 = vadd.f32 %v560_v30, %v559_v18  ;;  %v441_v40 = vsel %vm412_vm1, %v1482_v2, 0.0 }
 0x120   : > { %v477_v38 = vcombine.low %v419_v21, %v426_v27  ;;  %v439_v42 = vrot.slane %v438_v34, 1  ;;  %v677_v43 = vrot.slane %v663_v35, %v1461_v32  ;;  %v442_v44 = vrot.slane %v441_v40, 4 }
 0x121   : > { %v551_v41 = vadd.f32 %v550_v33, %v549_v23  ;;  %v558_v45 = vadd.f32 %v557_v26, %v556_v16  ;;  %v562_v46 = vrot.slane %v561_v39, 2  ;;  %v534_v47 = vmul.f32 %v1482_v2, %v1482_v2 }
 0x122   : > { %v455_v48 = vsel %vm412_vm1, %v1486_v7, 0.0  ;;  %v440_v37 = vadd.f32 %v439_v42, %v438_v34  ;;  %v678_v49 = vcombine.low %v670_v28, %v677_v43  ;;  %v443_v50 = vadd.f32 %v442_v44, %v441_v40 }
 0x123   : > { %v602_v29 = vcombine.low %v544_v31, %v551_v41  ;;  %v563_v51 = vadd.f32 %v562_v46, %v561_v39  ;;  %v566_v52 = vsel %vm412_vm1, %v534_v47, 0.0  ;;  %v456_v53 = vrot.slane %v455_v48, 4 }
 0x124   : > { %v536_v54 = vmul.f32 %v1486_v7, %v1486_v7  ;;  %v1507_v55 = vrot.slane %v477_v38, %v1478_v56  ;;  %v478_v57 = vcombine.low %v433_v36, %v440_v37  ;;  %701 = vst [vmem:[#allocation6] sm:$0xff] %v678_v49  ;;  %v444_v58 = vrot.slane %v443_v50, 2 }
 0x125   : > { %v567_v59 = vrot.slane %v566_v52, 4  ;;  %v564_v60 = vrot.slane %v563_v51, 1  ;;  %v457_v61 = vadd.f32 %v456_v53, %v455_v48  ;;  %v448_v63 = vsel %vm412_vm1, %v1488_v8, 0.0 }
 0x126   : > { %v580_v62 = vsel %vm412_vm1, %v536_v54, 0.0  ;;  %v1513_v0 = vrot.slane %v478_v57, %v1478_v56  ;;  %v445_v1 = vadd.f32 %v444_v58, %v443_v50  ;;  %v449_v6 = vrot.slane %v448_v63, 4 }
 0x127   : > { %v568_v3 = vadd.f32 %v567_v59, %v566_v52  ;;  %v581_v4 = vrot.slane %v580_v62, 4  ;;  %v565_v5 = vadd.f32 %v564_v60, %v563_v51  ;;  %v535_v9 = vmul.f32 %v1488_v8, %v1488_v8 }
 0x128   : > { %v1518_v10 = vrot.slane %v602_v29, %v1478_v56  ;;  %v509_v11 = vcombine.low %v1507_v55, %v1513_v0  ;;  %v458_v15 = vrot.slane %v457_v61, 2  ;;  %v450_v16 = vadd.f32 %v449_v6, %v448_v63 }
 0x129   : > { %v569_v12 = vrot.slane %v568_v3, 2  ;;  %v603_v14 = vcombine.low %v558_v45, %v565_v5  ;;  %v573_v17 = vsel %vm412_vm1, %v535_v9, 0.0  ;;  %v446_v18 = vrot.slane %v445_v1, 1 }
 0x12a   : > { %v582_v19 = vadd.f32 %v581_v4, %v580_v62  ;;  %v451_v22 = vrot.slane %v450_v16, 2  ;;  %v574_v23 = vrot.slane %v573_v17, 4  ;;  %v679_v24 = vcombine.low %v1482_v2, %v1488_v8 }
 0x12b   : > { %v619_v20 = vrot.slane %v603_v14, %v1478_v56  ;;  %v570_v21 = vadd.f32 %v569_v12, %v568_v3  ;;  %v462_v25 = vsel %vm412_vm1, %v1490_v13, 0.0  ;;  %v459_v27 = vadd.f32 %v458_v15, %v457_v61 }
 0x12c   : > { %v452_v28 = vadd.f32 %v451_v22, %v450_v16  ;;  %v575_v30 = vadd.f32 %v574_v23, %v573_v17  ;;  %v447_v31 = vadd.f32 %v446_v18, %v445_v1  ;;  %v583_v33 = vrot.slane %v582_v19, 2  ;;  %v529_v18 = vld [vmem:[#allocation3] sm:$0xff] }
 0x12d   : > { %v634_v26 = vcombine.low %v1518_v10, %v619_v20  ;;  %v463_v34 = vrot.slane %v462_v25, 4  ;;  %v571_v35 = vrot.slane %v570_v21, 1  ;;  %v537_v39 = vmul.f32 %v1490_v13, %v1490_v13  ;;  %v411_v10 = vld [vmem:[#allocation2] sm:$0xff] }
 0x12e   : > { %v453_v36 = vrot.slane %v452_v28, 1  ;;  %v576_v38 = vrot.slane %v575_v30, 2  ;;  %v687_v40 = vrot.slane %v679_v24, %v1461_v32  ;;  %v680_v8 = vcombine.low %v1486_v7, %v1490_v13 }
 0x12f   : > { %v464_v2 = vadd.f32 %v463_v34, %v462_v25  ;;  %v460_v41 = vrot.slane %v459_v27, 1  ;;  %v587_v44 = vsel %vm412_vm1, %v537_v39, 0.0  ;;  %v584_v45 = vadd.f32 %v583_v33, %v582_v19 }
 0x130   : > { %v454_v42 = vadd.f32 %v453_v36, %v452_v28  ;;  %v577_v43 = vadd.f32 %v576_v38, %v575_v30  ;;  %v588_v47 = vrot.slane %v587_v44, 4  ;;  %v694_v48 = vrot.slane %v680_v8, %v1461_v32 }
 0x131   : > { %v465_v46 = vrot.slane %v464_v2, 2  ;;  %v572_v29 = vadd.f32 %v571_v35, %v570_v21  ;;  %v461_v54 = vadd.f32 %v460_v41, %v459_v27  ;;  %v585_v55 = vrot.slane %v584_v45, 1 }
 0x132   : > { %v479_v37 = vcombine.low %v447_v31, %v454_v42  ;;  %v578_v49 = vrot.slane %v577_v43, 1  ;;  %v589_v51 = vadd.f32 %v588_v47, %v587_v44  ;;  %v695_v52 = vcombine.low %v687_v40, %v694_v48 }
 0x133   : > { %v466_v50 = vadd.f32 %v465_v46, %v464_v2  ;;  %v586_v60 = vadd.f32 %v585_v55, %v584_v45  ;;  %v517_v5 = vrot.slane %v509_v11, %v1478_v56  ;;  %v642_v15 = vrot.slane %v634_v26, %v1478_v56 }
 0x134   : > { %v579_v53 = vadd.f32 %v578_v49, %v577_v43  ;;  %v590_v13 = vrot.slane %v589_v51, 2  ;;  %702 = vst [vmem:[#allocation6 + $0x8] sm:$0xff] %v695_v52  ;;  %v501_v61 = vrot.slane %v479_v37, %v1478_v56 }
 0x135   : > { %v467_v7 = vrot.slane %v466_v50, 1 }
 0x136   : > { %v604_v57 = vcombine.low %v572_v29, %v579_v53  ;;  %v591_v59 = vadd.f32 %v590_v13, %v589_v51 }
 0x137   : > { %v468_v58 = vadd.f32 %v467_v7, %v466_v50 }
 0x138   : > { %v592_v32 = vrot.slane %v591_v59, 1  ;;  %v626_v1 = vrot.slane %v604_v57, %v1478_v56 }
 0x139   : > { %v480_v62 = vcombine.low %v461_v54, %v468_v58 }
 0x13a   : > { %v593_v0 = vadd.f32 %v592_v32, %v591_v59 }
 0x13b   : > { %v508_v63 = vrot.slane %v480_v62, %v1478_v56 }
 0x13c   : > { %v605_v4 = vcombine.low %v586_v60, %v593_v0 }
 0x13d   : > { %v510_v3 = vcombine.low %v501_v61, %v508_v63 }
 0x13e   : > { %v633_v9 = vrot.slane %v605_v4, %v1478_v56 }
 0x13f   : > { %v524_v6 = vrot.slane %v510_v3, %v1478_v56 }
 0x140   : > { %v635_v14 = vcombine.low %v626_v1, %v633_v9 }
 0x141   : > { %v525_v12 = vcombine.low %v517_v5, %v524_v6 }
 0x142   : > { %v649_v17 = vrot.slane %v635_v14, %v1478_v56 }
 0x143   : > { %v527_v16 = vadd.f32 %v525_v12, %v411_v10 }
 0x144   : > { %v650_v19 = vcombine.low %v642_v15, %v649_v17 }
 0x145   : > { %528 = vst [vmem:[#allocation2] sm:$0xff] %v527_v16 }
 0x146   : > { %v652_v20 = vadd.f32 %v650_v19, %v529_v18 }
 0x148   : > { %653 = vst [vmem:[#allocation3] sm:$0xff] %v652_v20 }
 0x149 PF: > { %p1250_p6 = scmp.ne.s32.totalorder %s1352_s9, 1 }
 0x14a   : > { %s1369_s5 = smov (!%p1250_p6), 64   ;;  %vm837_vm2 = vcmask (!%p1250_p6), 523264  }
 0x14b   : > { %706 = sbr.rel (%p1250_p6) target bundleno = 665 (0x299), region = 44 }
 0x14c   : > { %v710_v11 = vld [vmem:[#allocation2] sm:$0x1] (!%p1250_p6)  ;;  %v722_v21 = vld [vmem:[#allocation2 + $0x1] sm:$0x1] (!%p1250_p6)  ;;  %v736_v56 = vld [vmem:[#allocation2 + $0x2] sm:$0x1] (!%p1250_p6) }
 0x14d   : > { %713 = vrot.lane.b32.xlu0 (!%p1250_p6), %v710_v11, %s1369_s5  ;;  %727 = vrot.lane.b32.xlu1 (!%p1250_p6), %v722_v21, %s1369_s5  ;;  %v750_v25 = vld [vmem:[#allocation2 + $0x3] sm:$0x1] (!%p1250_p6)  ;;  %v764_v27 = vld [vmem:[#allocation2 + $0x4] sm:$0x1] (!%p1250_p6)  ;;  %v778_v30 = vld [vmem:[#allocation2 + $0x5] sm:$0x1] (!%p1250_p6) }
 0x14e   : > { %v792_v33 = vld [vmem:[#allocation2 + $0x6] sm:$0x1] (!%p1250_p6)  ;;  %v806_v35 = vld [vmem:[#allocation2 + $0x7] sm:$0x1] (!%p1250_p6) }
 0x14f   : > { %v711_v22 = vld [vmem:[#allocation3] sm:$0x1] (!%p1250_p6)  ;;  %v724_v23 = vld [vmem:[#allocation3 + $0x1] sm:$0x1] (!%p1250_p6)  ;;  %v738_v24 = vld [vmem:[#allocation3 + $0x2] sm:$0x1] (!%p1250_p6) }
 0x150   : > { %v752_v26 = vld [vmem:[#allocation3 + $0x3] sm:$0x1] (!%p1250_p6)  ;;  %v766_v28 = vld [vmem:[#allocation3 + $0x4] sm:$0x1] (!%p1250_p6)  ;;  %v780_v31 = vld [vmem:[#allocation3 + $0x5] sm:$0x1] (!%p1250_p6) }
 0x151   : > { %718 = vrot.lane.b32.xlu0 (!%p1250_p6), %v711_v22, %s1369_s5  ;;  %732 = vrot.lane.b32.xlu1 (!%p1250_p6), %v724_v23, %s1369_s5  ;;  %v794_v34 = vld [vmem:[#allocation3 + $0x6] sm:$0x1] (!%p1250_p6)  ;;  %v808_v36 = vld [vmem:[#allocation3 + $0x7] sm:$0x1] (!%p1250_p6) }
 0x155   : > { %741 = vrot.lane.b32.xlu0 %v736_v56, %s1369_s5  ;;  %746 = vrot.lane.b32.xlu1 %v738_v24, %s1369_s5 }
 0x159   : > { %755 = vrot.lane.b32.xlu0 %v750_v25, %s1369_s5  ;;  %760 = vrot.lane.b32.xlu1 %v752_v26, %s1369_s5 }
 0x15d   : > { %769 = vrot.lane.b32.xlu0 %v764_v27, %s1369_s5  ;;  %774 = vrot.lane.b32.xlu1 %v766_v28, %s1369_s5 }
 0x161   : > { %783 = vrot.lane.b32.xlu0 %v778_v30, %s1369_s5  ;;  %788 = vrot.lane.b32.xlu1 %v780_v31, %s1369_s5 }
 0x165   : > { %797 = vrot.lane.b32.xlu0 %v792_v33, %s1369_s5  ;;  %802 = vrot.lane.b32.xlu1 %v794_v34, %s1369_s5 }
 0x169   : > { %811 = vrot.lane.b32.xlu0 %v806_v35, %s1369_s5  ;;  %816 = vrot.lane.b32.xlu1 %v808_v36, %s1369_s5 }
 0x1bf   : > { %v714_v38 = vpop.permute.xlu0 %713  ;;  %v728_v39 = vpop.permute.xlu1 %727 }
 0x1c0   : > { %v716_v40 = vadd.f32 %v714_v38, %v710_v11 }
 0x1c2   : > { %v723_v2 = vadd.f32 %v722_v21, %v716_v40 }
 0x1c3   : > { %v719_v8 = vpop.permute.xlu0 %718  ;;  %v733_v41 = vpop.permute.xlu1 %732 }
 0x1c4   : > { %v730_v42 = vadd.f32 %v728_v39, %v723_v2  ;;  %v721_v43 = vadd.f32 %v719_v8, %v711_v22  ;;  %v1371_v8 = vmov 1983009808  }
 0x1c6   : > { %v725_v44 = vadd.f32 %v724_v23, %v721_v43  ;;  %v737_v45 = vadd.f32 %v736_v56, %v730_v42  ;;  %v830_v56 = vlaneseq }
 0x1c7   : > { %v742_v46 = vpop.permute.xlu0 %741  ;;  %v747_v47 = vpop.permute.xlu1 %746 }
 0x1c8   : > { %v735_v48 = vadd.f32 %v733_v41, %v725_v44  ;;  %v744_v29 = vadd.f32 %v742_v46, %v737_v45  ;;  %v930_v41 = vunpack.c.l.s4 %v1371_v8 }
 0x1ca   : > { %v739_v37 = vadd.f32 %v738_v24, %v735_v48  ;;  %v751_v49 = vadd.f32 %v750_v25, %v744_v29  ;;  %v1561_v24 = vshrl.u32 %v830_v56, 7 }
 0x1cb   : > { %v756_v50 = vpop.permute.xlu0 %755  ;;  %v761_v51 = vpop.permute.xlu1 %760 }
 0x1cc   : > { %v749_v52 = vadd.f32 %v747_v47, %v739_v37  ;;  %v758_v53 = vadd.f32 %v756_v50, %v751_v49  ;;  %v1564_v25 = vsub.s32 0, %v1561_v24  ;;  %v931_v47 = vunpack.c.0.s8 %v930_v41 }
 0x1cd   : > { %v901_v48 = vsub.s32 1, %v1561_v24  ;;  %v905_v29 = vsub.s32 2, %v1561_v24  ;;  %v909_v37 = vsub.s32 3, %v1561_v24 }
 0x1ce   : > { %v753_v54 = vadd.f32 %v752_v26, %v749_v52  ;;  %v765_v55 = vadd.f32 %v764_v27, %v758_v53  ;;  %v917_v52 = vsub.s32 5, %v1561_v24  ;;  %v921_v53 = vsub.s32 6, %v1561_v24 }
 0x1cf   : > { %v770_v7 = vpop.permute.xlu0 %769  ;;  %v775_v13 = vpop.permute.xlu1 %774 }
 0x1d0   : > { %v763_v57 = vadd.f32 %v761_v51, %v753_v54  ;;  %v772_v58 = vadd.f32 %v770_v7, %v765_v55  ;;  %v913_v51 = vsub.s32 4, %v1561_v24  ;;  %v925_v54 = vsub.s32 7, %v1561_v24 }
 0x1d2   : > { %v767_v59 = vadd.f32 %v766_v28, %v763_v57  ;;  %v779_v60 = vadd.f32 %v778_v30, %v772_v58 }
 0x1d3   : > { %v784_v61 = vpop.permute.xlu0 %783  ;;  %v789_v62 = vpop.permute.xlu1 %788 }
 0x1d4   : > { %v777_v32 = vadd.f32 %v775_v13, %v767_v59  ;;  %v786_v63 = vadd.f32 %v784_v61, %v779_v60  ;;  %v934_v13 = vsub.s32 %v931_v47, %v1561_v24 }
 0x1d6   : > { %v781_v0 = vadd.f32 %v780_v31, %v777_v32  ;;  %v793_v1 = vadd.f32 %v792_v33, %v786_v63  ;;  %v1370_v33 = vmov 1966171168  }
 0x1d7   : > { %v798_v3 = vpop.permute.xlu0 %797  ;;  %v803_v4 = vpop.permute.xlu1 %802 }
 0x1d8   : > { %v791_v5 = vadd.f32 %v789_v62, %v781_v0  ;;  %v800_v6 = vadd.f32 %v798_v3, %v793_v1 }
 0x1da   : > { %v795_v9 = vadd.f32 %v794_v34, %v791_v5  ;;  %v807_v10 = vadd.f32 %v806_v35, %v800_v6  ;;  %v842_v34 = vunpack.c.l.s4 %v1370_v33 }
 0x1db   : > { %v812_v12 = vpop.permute.xlu0 %811  ;;  %v817_v16 = vpop.permute.xlu1 %816 }
 0x1dc   : > { %v805_v14 = vadd.f32 %v803_v4, %v795_v9  ;;  %v814_v15 = vadd.f32 %v812_v12, %v807_v10  ;;  %v843_v35 = vunpack.c.0.s8 %v842_v34 }
 0x1de   : > { %v820_v17 = vmul.f32 0.03125, %v814_v15  ;;  %v809_v18 = vadd.f32 %v808_v36, %v805_v14  ;;  %v1571_v36 = vsub.s32 %v843_v35, %v1561_v24 }
 0x1e0   : > { %v819_v19 = vadd.f32 %v817_v16, %v809_v18  ;;  %v822_v20 = vmul.f32 %v820_v17, %v820_v17  ;;  %v827_v26 = vsub.f32 0.0, %v820_v17  ;;  %v891_v18 = vld [vmem:[#allocation6] sm:$0xff] }
 0x1e2   : > { %v821_v11 = vmul.f32 0.03125, %v819_v19 }
 0x1e4   : > { %v823_v21 = vsub.f32 %v821_v11, %v822_v20 }
 0x1e6   : > { %v824_v22 = vmax.f32 %v823_v21, 0.0 }
 0x1e8   : > { %v825_v23 = vadd.f32 1e-05, %v824_v22 }
 0x1ea   : > { %1304 = vrsqrt.f32 %v825_v23 }
 0x1f4   : > { %v1305_v27 = vpop.eup %1304 }
 0x1f5   : > { %v833_v28 = vrot.slane %v1305_v27, %v1564_v25  ;;  %v828_v30 = vmul.f32 %v1305_v27, %v827_v26  ;;  %v892_v26 = vld [vmem:[#allocation6 + $0x8] sm:$0xff] }
 0x1f7   : > { %834 = vrot.lane.b32.xlu0 %v833_v28, %s1369_s5  ;;  %v863_v31 = vrot.slane %v828_v30, %v1564_v25 }
 0x1f9   : > { %864 = vrot.lane.b32.xlu1 %v863_v31, %s1369_s5 }
 0x269   : > { %v835_v38 = vpop.permute.xlu0 %834 }
 0x26a   : > { %v838_v39 = vsel %vm837_vm2, %v1305_v27, %v835_v38 }
 0x26b   : > { %v840_v40 = vcombine.low %v838_v39, %v838_v39  ;;  %v865_v2 = vpop.permute.xlu1 %864 }
 0x26c   : > { %v867_v42 = vsel %vm837_vm2, %v828_v30, %v865_v2 }
 0x26d   : > { %v847_v43 = vrot.slane %v840_v40, %v1571_v36  ;;  %v869_v44 = vcombine.low %v867_v42, %v867_v42 }
 0x26f   : > { %v848_v45 = vcombine.low %v847_v43, %v847_v43  ;;  %v876_v46 = vrot.slane %v869_v44, %v1571_v36 }
 0x271   : > { %v855_v49 = vrot.slane %v848_v45, %v1571_v36  ;;  %v877_v50 = vcombine.low %v876_v46, %v876_v46 }
 0x273   : > { %v856_v55 = vcombine.low %v855_v49, %v855_v49  ;;  %v884_v7 = vrot.slane %v877_v50, %v1571_v36 }
 0x275   : > { %v898_v57 = vrot.slane %v856_v55, %v1564_v25  ;;  %v902_v58 = vrot.slane %v856_v55, %v901_v48  ;;  %v906_v59 = vrot.slane %v856_v55, %v905_v29  ;;  %v910_v60 = vrot.slane %v856_v55, %v909_v37 }
 0x276   : > { %v914_v61 = vrot.slane %v856_v55, %v913_v51  ;;  %v918_v62 = vrot.slane %v856_v55, %v917_v52  ;;  %v922_v32 = vrot.slane %v856_v55, %v921_v53  ;;  %v926_v63 = vrot.slane %v856_v55, %v925_v54 }
 0x277   : > { %v927_v0 = vcombine.low %v898_v57, %v902_v58  ;;  %v928_v1 = vcombine.low %v906_v59, %v910_v60  ;;  %v885_v3 = vcombine.low %v884_v7, %v884_v7 }
 0x278   : > { %v944_v4 = vcombine.low %v914_v61, %v918_v62  ;;  %v945_v5 = vcombine.low %v922_v32, %v926_v63 }
 0x279   : > { %v935_v6 = vrot.slane %v927_v0, %v934_v13  ;;  %v942_v9 = vrot.slane %v928_v1, %v934_v13  ;;  %v970_v10 = vrot.slane %v885_v3, %v1564_v25  ;;  %v974_v12 = vrot.slane %v885_v3, %v901_v48 }
 0x27a   : > { %v952_v14 = vrot.slane %v944_v4, %v934_v13  ;;  %v959_v15 = vrot.slane %v945_v5, %v934_v13  ;;  %v978_v16 = vrot.slane %v885_v3, %v905_v29  ;;  %v982_v17 = vrot.slane %v885_v3, %v909_v37 }
 0x27b   : > { %v943_v19 = vcombine.low %v935_v6, %v942_v9  ;;  %v986_v20 = vrot.slane %v885_v3, %v913_v51  ;;  %v990_v11 = vrot.slane %v885_v3, %v917_v52  ;;  %v994_v21 = vrot.slane %v885_v3, %v921_v53 }
 0x27c   : > { %v960_v22 = vcombine.low %v952_v14, %v959_v15  ;;  %v998_v23 = vrot.slane %v885_v3, %v925_v54  ;;  %v999_v56 = vcombine.low %v970_v10, %v974_v12  ;;  %v1000_v24 = vcombine.low %v978_v16, %v982_v17 }
 0x27d   : > { %v1016_v27 = vcombine.low %v986_v20, %v990_v11  ;;  %v963_v28 = vmul.f32 %v943_v19, %v891_v18 }
 0x27e   : > { %v1007_v30 = vrot.slane %v999_v56, %v934_v13  ;;  %v1014_v31 = vrot.slane %v1000_v24, %v934_v13  ;;  %v1017_v25 = vcombine.low %v994_v21, %v998_v23  ;;  %v964_v34 = vmul.f32 %v960_v22, %v892_v26 }
 0x27f   : > { %v1024_v33 = vrot.slane %v1016_v27, %v934_v13 }
 0x280   : > { %v1015_v35 = vcombine.low %v1007_v30, %v1014_v31  ;;  %v1031_v38 = vrot.slane %v1017_v25, %v934_v13 }
 0x282   : > { %v1032_v39 = vcombine.low %v1024_v33, %v1031_v38  ;;  %v1035_v40 = vadd.f32 %v1015_v35, %v963_v28 }
 0x284   : > { %v1036_v2 = vadd.f32 %v1032_v39, %v964_v34  ;;  %v1037_v8 = vmax.f32 %v1035_v40, 0.0 }
 0x286   : > { %v1038_v41 = vmax.f32 %v1036_v2, 0.0  ;;  %v1041_v42 = vcombine.high %v1037_v8, %v1037_v8  ;;  %v1048_v43 = vrot.slane %v1037_v8, %v934_v13 }
 0x288   : > { %v1055_v44 = vrot.slane %v1041_v42, %v934_v13  ;;  %v1056_v45 = vcombine.high %v1048_v43, %v1048_v43  ;;  %v1058_v46 = vcombine.high %v1038_v41, %v1038_v41  ;;  %v1065_v47 = vrot.slane %v1038_v41, %v934_v13 }
 0x28a   : > { %v1057_v48 = vcombine.high %v1055_v44, %v1055_v44  ;;  %v1072_v29 = vrot.slane %v1058_v46, %v934_v13  ;;  %v1073_v37 = vcombine.high %v1065_v47, %v1065_v47  ;;  %v1251_v49 = vpack.c.bf16 %v1056_v45, %v1048_v43 }
 0x28c   : > { %v1074_v50 = vcombine.high %v1072_v29, %v1072_v29  ;;  %v1252_v51 = vpack.c.bf16 %v1057_v48, %v1055_v44  ;;  %v1253_v52 = vpack.c.bf16 %v1073_v37, %v1065_v47  ;;  %v1109_v54 = vrot.slane %v1251_v49, %v1571_v36 }
 0x28e   : > { %v1254_v53 = vpack.c.bf16 %v1074_v50, %v1072_v29  ;;  %v1116_v55 = vrot.slane %v1252_v51, %v1571_v36  ;;  %v1123_v7 = vrot.slane %v1253_v52, %v1571_v36 }
 0x290   : > { %v1130_v57 = vrot.slane %v1254_v53, %v1571_v36  ;;  %v1131_v58 = vcombine.low %v1109_v54, %v1116_v55 }
 0x292   : > { %v1132_v59 = vcombine.low %v1123_v7, %v1130_v57  ;;  %v1139_v60 = vrot.slane %v1131_v58, %v1571_v36 }
 0x294   : > { %v1146_v13 = vrot.slane %v1132_v59, %v1571_v36 }
 0x296   : > { %v1147_v61 = vcombine.low %v1139_v60, %v1146_v13 }
 0x298   : > { %1149 = vst [vmem:[%s1607_s2] sm:$0xff] %v1147_v61 }
 0x299 PF: > { %s13_s11 = sadd.s32 1, %s1360_s11   ;;  %s1616_s9 = smov %s1356_s10 }
 0x29a   : > { %p10_p8 = scmp.ge.s32.totalorder %s13_s11, 4   ;;  %s1617_s10 = smov %s1619_s13 }
 0x29c   :  { %12 = sbr.rel (!%p10_p8) target bundleno = 2 (0x2), region = 81 }
 0x2a3   :  { %1172 = vsyncpa [#allocation8], 1 }
 0x2a4   :  { %1174 = vsyncpa [#allocation8 + $0x1], 1 }

// kernel: generator_forward.6
= control target key start
LH: loop header
LB: loop body
LE: loop exit
PB: predicated region body
PF: predicated region fallthrough
CT: control target
= control target key end

     0   :  { %7 = vsyncpa [#allocation8], 0  ;;  %s1295_s9 = smov 0   ;;  %s1297_s10 = smov 0   ;;  %s1414_s0 = inlined_call_operand.vmem [shape: bf16[32,576], index: 0, kind: input, shape index: {}]   ;;  %s1415_s1 = inlined_call_operand.hbm [shape: bf16[576,128], index: 1, kind: input, shape index: {}]   ;;  %s1416_s2 = inlined_call_operand.vmem [shape: bf16[32,128], index: 2, kind: output, shape index: {}]  }
   0x1   :  { %s1299_s11 = smov 0  }
   0x2 LB: > { %s965_s12 = sadd.s32 4294967295, %s1271_s11   ;;  %s25_s13 = sadd.s32 1, %s1267_s10  ;;  %s1271_s11 = sphi %s1299_s11, %s13_s11   ;;  %s1267_s10 = sphi %s1297_s10, %s1426_s10   ;;  %s1263_s9 = sphi %s1295_s9, %s1425_s9  }
   0x3   : > { %p27_p0 = scmp.ge.s32.totalorder %s25_s13, 2  ;;  %p967_p1 = scmp.ge.s32.totalorder %s1271_s11, 1 }
   0x4   : > { %p109_p2 = scmp.lt.s32.totalorder %s1271_s11, 3  ;;  %p1320_p4 = scmp.eq.s32.totalorder %s965_s12, 0 }
   0x5   : > { %s1428_s13 = smov (%p27_p0, %s25_s13), 0  ;;  %s1273_s16 = smov [#allocation7]  }
   0x6   : > { %p1316_p3 = pnand %p967_p1, %p109_p2  ;;  %s121_s17 = sshll.u32 %s1273_s16, 4  ;;  %s122_s17 = int_to_ptr.vmem [resolvable:$true] %s121_s17 }
   0x7   : > { %s1421_s15 = scalar_select %p1320_p4, 1, 0 }
   0x8   : > { %s1420_s14 = scalar_select %p1316_p3, 1, 0 }
   0x9   : > { %p1128_p5 = pneg %p1316_p3  ;;  %s1217_s21 = scalar_lea.hbm %s1415_s1, 4608 }
   0xa   : > { %p1218_p7 = scmp.ne.s32.totalorder %s1415_s1, %s1217_s21  ;;  %p1224_p11 = scmp.lt.u32.totalorder %s1217_s21, %s1415_s1 }
   0xb   : > { %p1328_p6 = pnand %p1320_p4, %p1128_p5 }
   0xd   : > { %p1219_p8 = pneg %p1328_p6 }
   0xf   : > { %p1220_p9 = pnand %p1219_p8, %p1218_p7 }
  0x11   : > { %p1221_p10 = pneg %p1220_p9 }
  0x13   : > { %p1226_p12 = pnand %p1224_p11, %p1221_p10 }
  0x15   : > { %1229 = shalt.err (!%p1226_p12)
}
  0x16   : > { %s1230_s26 = scalar_lea.vmem %s122_s17, 4608  ;;  %p1238_p2 = scmp.lt.s32.totalorder %s122_s17, %s122_s17 }
  0x17   : > { %p1231_p13 = scmp.ne.s32.totalorder %s122_s17, %s1230_s26  ;;  %p1239_p5 = scmp.lt.s32.totalorder %s1230_s26, %s1230_s26 }
  0x19   : > { %p1233_p0 = pnand %p1231_p13, %p1219_p8  ;;  %p1240_p4 = por %p1239_p5, %p1238_p2 }
  0x1b   : > { %p1234_p1 = pneg %p1233_p0 }
  0x1d   : > { %p1241_p3 = pnand %p1240_p4, %p1234_p1 }
  0x1f   : > { %1244 = shalt.err (!%p1241_p3)
}
  0x20   : > { %s1274_s27 = smov 64   ;;  %s1275_s28 = smov 4  }
  0x21   : > { %1131 = dma.hbm_to_vmem [thread:$0]  (!%p1328_p6), %s1415_s1, 4608, %s122_s17, [#allocation8], %s1274_s27, %s1274_s27, %s1275_s28  }
  0x22   : > { %p1423_p7 = scmp.ne.s32.totalorder %s1420_s14, 0 }
  0x23   : > { %p1424_p9 = scmp.ne.s32.totalorder (!%p1423_p7), %s1421_s15, 0 }
  0x24   : > { %151 = sbr.rel (%p1423_p7) target bundleno = 638 (0x27e), region = 28 }
  0x2b   : > { %1258 = dma.done.wait (%p1424_p9), [#allocation8], 4608  }
  0x2c   : > { %1260 = vsyncadd (%p1424_p9), [#allocation8], 4294962688  ;;  %p197_p4 = scmp.eq.s32.totalorder %s1263_s9, 0 }
  0x2d   : > { %v1276_v0 = vmov (%p197_p4), 0.0  }
  0x2e   : > { %202 = sbr.rel (!%p197_p4) target bundleno = 53 (0x35), region = 36  ;;  %203 = vst [vmem:[#allocation2] sm:$0x1] (%p197_p4), %v1276_v0  ;;  %204 = vst [vmem:[#allocation3] sm:$0x1] (%p197_p4), %v1276_v0 }
  0x35 PF: > { %p974_p3 = scmp.ne.s32.totalorder %s1263_s9, 0 }
  0x36   : > { %v1165_v1 = vld [vmem:[#allocation7 + $0x40] sm:$0xff] (!%p974_p3)   ;;  %v1169_v5 = vld [vmem:[#allocation7 + $0x48] sm:$0xff] (!%p974_p3)   ;;  %v1173_v9 = vld [vmem:[#allocation7 + $0x50] sm:$0xff] (!%p974_p3)   ;;  %vm558_vm0 = vcmask (!%p974_p3), 523264  }
  0x37   : > { %207 = sbr.rel (%p974_p3) target bundleno = 345 (0x159), region = 40  ;;  %v1166_v2 = vld [vmem:[#allocation7 + $0xc0] sm:$0xff] (!%p974_p3)   ;;  %1050 = vmatprep.subr.bf16.mxu0 (!%p974_p3), %v1165_v1  ;;  %v1170_v6 = vld [vmem:[#allocation7 + $0xc8] sm:$0xff] (!%p974_p3)   ;;  %v1174_v10 = vld [vmem:[#allocation7 + $0xd0] sm:$0xff] (!%p974_p3)  }
  0x38   : > { %v1167_v3 = vld [vmem:[#allocation7] sm:$0xff] (!%p974_p3)   ;;  %1078 = vmatprep.subr.bf16.mxu1 (!%p974_p3), %v1166_v2  ;;  %v1171_v7 = vld [vmem:[#allocation7 + $0x8] sm:$0xff] (!%p974_p3)   ;;  %v1175_v11 = vld [vmem:[#allocation7 + $0x10] sm:$0xff] (!%p974_p3)  }
  0x39   : > { %v1168_v4 = vld [vmem:[#allocation7 + $0x80] sm:$0xff] (!%p974_p3)   ;;  %1051 = vmatpush3.bf16.msra.mxu0 (!%p974_p3), %v1167_v3  ;;  %v1172_v8 = vld [vmem:[#allocation7 + $0x88] sm:$0xff] (!%p974_p3)   ;;  %v1176_v12 = vld [vmem:[#allocation7 + $0x90] sm:$0xff] (!%p974_p3)  }
  0x3a   : > { %1079 = vmatpush3.bf16.msra.mxu1 (!%p974_p3), %v1168_v4  ;;  %1052 = vmatprep.subr.bf16.mxu0 (!%p974_p3), %v1169_v5  ;;  %v1177_v13 = vld [vmem:[#allocation7 + $0x58] sm:$0xff] (!%p974_p3)   ;;  %v1181_v17 = vld [vmem:[#allocation7 + $0x60] sm:$0xff] (!%p974_p3)   ;;  %v1185_v21 = vld [vmem:[#allocation7 + $0x68] sm:$0xff] (!%p974_p3)  }
  0x3b   : > { %1080 = vmatprep.subr.bf16.mxu1 (!%p974_p3), %v1170_v6  ;;  %v1178_v14 = vld [vmem:[#allocation7 + $0xd8] sm:$0xff] (!%p974_p3)   ;;  %v1182_v18 = vld [vmem:[#allocation7 + $0xe0] sm:$0xff] (!%p974_p3)   ;;  %v1186_v22 = vld [vmem:[#allocation7 + $0xe8] sm:$0xff] (!%p974_p3)  }
  0x3c   : > { %v1179_v15 = vld [vmem:[#allocation7 + $0x18] sm:$0xff] (!%p974_p3)   ;;  %v1183_v19 = vld [vmem:[#allocation7 + $0x20] sm:$0xff] (!%p974_p3)   ;;  %v1187_v23 = vld [vmem:[#allocation7 + $0x28] sm:$0xff] (!%p974_p3)  }
  0x3d   : > { %1053 = vmatpush3.bf16.msra.mxu0 (!%p974_p3), %v1171_v7  ;;  %v1180_v16 = vld [vmem:[#allocation7 + $0x98] sm:$0xff] (!%p974_p3)   ;;  %v1184_v20 = vld [vmem:[#allocation7 + $0xa0] sm:$0xff] (!%p974_p3)   ;;  %v1188_v24 = vld [vmem:[#allocation7 + $0xa8] sm:$0xff] (!%p974_p3)  }
  0x3e   : > { %1081 = vmatpush3.bf16.msra.mxu1 %v1172_v8  ;;  %1054 = vmatprep.subr.bf16.mxu0 %v1173_v9  ;;  %v1189_v25 = vld [vmem:[#allocation7 + $0x70] sm:$0xff]   ;;  %v1193_v29 = vld [vmem:[#allocation7 + $0x78] sm:$0xff]   ;;  %v1197_v33 = vld [vmem:[%s1414_s0] ss:$20 sps:$4 sm:$0xff]  }
  0x3f   : > { %1082 = vmatprep.subr.bf16.mxu1 %v1174_v10  ;;  %v1190_v26 = vld [vmem:[#allocation7 + $0xf0] sm:$0xff]   ;;  %v1194_v30 = vld [vmem:[#allocation7 + $0xf8] sm:$0xff]   ;;  %v1203_v37 = vld [vmem:[#allocation7 + $0x100] sm:$0xff]  }
  0x40   : > { %v1191_v27 = vld [vmem:[#allocation7 + $0x30] sm:$0xff]   ;;  %v1195_v31 = vld [vmem:[#allocation7 + $0x38] sm:$0xff]   ;;  %v1204_v38 = vld [vmem:[#allocation7 + $0x108] sm:$0xff]  }
  0x41   : > { %1055 = vmatpush3.bf16.msra.mxu0 %v1175_v11  ;;  %v1192_v28 = vld [vmem:[#allocation7 + $0xb0] sm:$0xff]   ;;  %v1196_v32 = vld [vmem:[#allocation7 + $0xb8] sm:$0xff]  }
  0x42   : > { %1083 = vmatpush3.bf16.msra.mxu1 %v1176_v12  ;;  %1056 = vmatprep.subr.bf16.mxu0 %v1177_v13  ;;  %v1199_v34 = vld [vmem:[%s1414_s0 + $0x4] ss:$20 sps:$4 sm:$0xff]   ;;  %v1200_v35 = vld [vmem:[%s1414_s0 + $0x8] ss:$20 sps:$4 sm:$0xff]   ;;  %v1202_v36 = vld [vmem:[%s1414_s0 + $0xc] ss:$20 sps:$4 sm:$0xff]  }
  0x43   : > { %1084 = vmatprep.subr.bf16.mxu1 %v1178_v14  ;;  %597 = vmatprep.mubr.bf16.mxu0 %v1199_v34  ;;  %v1205_v39 = vld [vmem:[%s1414_s0 + $0x2c] ss:$20 sps:$4 sm:$0xff]   ;;  %v1207_v40 = vld [vmem:[%s1414_s0 + $0x34] ss:$20 sps:$4 sm:$0xff]   ;;  %v1210_v43 = vld [vmem:[%s1414_s0 + $0x30] ss:$20 sps:$4 sm:$0xff]  }
  0x44   : > { %646 = vmatprep.mubr.bf16.mxu1 %v1202_v36  ;;  %v1209_v41 = vld [vmem:[%s1414_s0 + $0x28] ss:$20 sps:$4 sm:$0xff]   ;;  %v1213_v44 = vld [vmem:[%s1414_s0 + $0x10] ss:$20 sps:$4 sm:$0xff]   ;;  %v1214_v46 = vld [vmem:[%s1414_s0 + $0x38] ss:$20 sps:$4 sm:$0xff]  }
  0x45   : > { %1057 = vmatpush3.bf16.msra.mxu0 %v1179_v15  ;;  %v1211_v42 = vld [vmem:[#allocation7 + $0x110] sm:$0xff]   ;;  %v1212_v45 = vld [vmem:[#allocation7 + $0x118] sm:$0xff]  }
  0x46   : > { %1085 = vmatpush3.bf16.msra.mxu1 %v1180_v16  ;;  %1058 = vmatprep.subr.bf16.mxu0 %v1181_v17 }
  0x47   : > { %1086 = vmatprep.subr.bf16.mxu1 %v1182_v18 }
  0x49   : > { %1059 = vmatpush3.bf16.msra.mxu0 %v1183_v19 }
  0x4a   : > { %1087 = vmatpush3.bf16.msra.mxu1 %v1184_v20  ;;  %1060 = vmatprep.subr.bf16.mxu0 %v1185_v21 }
  0x4b   : > { %1088 = vmatprep.subr.bf16.mxu1 %v1186_v22 }
  0x4d   : > { %1061 = vmatpush3.bf16.msra.mxu0 %v1187_v23 }
  0x4e   : > { %1089 = vmatpush3.bf16.msra.mxu1 %v1188_v24  ;;  %1062 = vmatprep.subr.bf16.mxu0 %v1189_v25 }
  0x4f   : > { %1090 = vmatprep.subr.bf16.mxu1 %v1190_v26 }
  0x51   : > { %1063 = vmatpush3.bf16.msra.mxu0 %v1191_v27 }
  0x52   : > { %1091 = vmatpush3.bf16.msra.mxu1 %v1192_v28  ;;  %1064 = vmatprep.subr.bf16.mxu0 %v1193_v29 }
  0x53   : > { %1092 = vmatprep.subr.bf16.mxu1 %v1194_v30 }
  0x55   : > { %1065 = vmatpush3.bf16.msra.mxu0 %v1195_v31 }
  0x56   : > { %1093 = vmatpush3.bf16.msra.mxu1 %v1196_v32  ;;  %1112 = vmatprep.subr.bf16.mxu0 %v1203_v37 }
  0x58   : > { %598 = vmatmul.mubr.bf16.vlgmr.msra.gmra.mrb[0].mxu0 %v1197_v33 }
  0x59   : > { %647 = vmatmul.mubr.bf16.vlgmr.msra.gmra.mrb[0].mxu1 %v1200_v35  ;;  %1113 = vmatpush3.bf16.msra.mxu0 %v1203_v37 }
  0x5a   : > { %1114 = vmatprep.subr.bf16.mxu0 %v1204_v38  ;;  %605 = vmatprep.mubr.bf16.mxu0 %v1205_v39 }
  0x5b   : > { %654 = vmatprep.mubr.bf16.mxu1 %v1207_v40 }
  0x5d   : > { %1115 = vmatpush3.bf16.msra.mxu0 %v1204_v38  ;;  %v712_v38 = vld [vmem:[#allocation2] sm:$0x1] }
  0x5e   : > { %1116 = vmatprep.subr.bf16.mxu0 %v1211_v42 }
  0x60   : > { %606 = vmatmul.mubr.bf16.gmra.mrb[4].mxu0 %v1209_v41  ;;  %v724_v41 = vld [vmem:[#allocation3] sm:$0x1] }
  0x61   : > { %655 = vmatmul.mubr.bf16.gmra.mrb[4].mxu1 %v1210_v43  ;;  %1120 = vmatprep.mubr.msk.bf16.mxu0 %vm558_vm0, %v1213_v44 }
  0x62   : > { %1117 = vmatpush3.bf16.msra.mxu0 %v1211_v42 }
  0x63   : > { %1118 = vmatprep.subr.bf16.mxu0 %v1212_v45 }
  0x66   : > { %1119 = vmatpush3.bf16.msra.mxu0 %v1212_v45 }
  0x69   : > { %1121 = vmatmul.mubr.msk.bf16.vlgmr.msra.gmra.mrb[8].mxu0 %vm558_vm0, %v1214_v46 }
 0x12b   : > { %v1066_v47 = vpop.f32.mrb[0].mxu0 }
 0x12c   : > { %v1094_v48 = vpop.f32.mrb[0].mxu1  ;;  %v1067_v49 = vpop.f32.mrb[1].mxu0 }
 0x12d   : > { %v1068_v50 = vadd.f32 %v1067_v49, %v1066_v47  ;;  %v1095_v51 = vpop.f32.mrb[1].mxu1  ;;  %v1069_v52 = vpop.f32.mrb[2].mxu0 }
 0x12e   : > { %v1096_v53 = vadd.f32 %v1095_v51, %v1094_v48  ;;  %v1097_v54 = vpop.f32.mrb[2].mxu1  ;;  %v1070_v55 = vpop.f32.mrb[3].mxu0 }
 0x12f   : > { %v1071_v56 = vadd.f32 %v1070_v55, %v1069_v52  ;;  %v1098_v57 = vpop.f32.mrb[3].mxu1 }
 0x130   : > { %v1099_v58 = vadd.f32 %v1098_v57, %v1097_v54  ;;  %v649_v59 = vadd.f32 %v1096_v53, %v1068_v50 }
 0x132   : > { %v652_v60 = vadd.f32 %v1099_v58, %v1071_v56 }
 0x133   : > { %v1072_v61 = vpop.f32.mrb[4].mxu0 }
 0x134   : > { %v1100_v62 = vpop.f32.mrb[4].mxu1  ;;  %v1073_v63 = vpop.f32.mrb[5].mxu0 }
 0x135   : > { %v1074_v0 = vadd.f32 %v1073_v63, %v1072_v61  ;;  %v1101_v1 = vpop.f32.mrb[5].mxu1  ;;  %v1075_v2 = vpop.f32.mrb[6].mxu0 }
 0x136   : > { %v1102_v3 = vadd.f32 %v1101_v1, %v1100_v62  ;;  %v1103_v4 = vpop.f32.mrb[6].mxu1  ;;  %v1076_v5 = vpop.f32.mrb[7].mxu0 }
 0x137   : > { %v1077_v6 = vadd.f32 %v1076_v5, %v1075_v2  ;;  %v1104_v7 = vpop.f32.mrb[7].mxu1 }
 0x138   : > { %v1105_v8 = vadd.f32 %v1104_v7, %v1103_v4  ;;  %v657_v9 = vadd.f32 %v1102_v3, %v1074_v0 }
 0x13a   : > { %v660_v10 = vadd.f32 %v1105_v8, %v1077_v6 }
 0x13c   : > { %v1122_v11 = vpop.f32.mrb[8].mxu0 }
 0x13d   : > { %v706_v12 = vadd.f32 %v1122_v11, %v657_v9  ;;  %v697_v13 = vpop.f32.mrb[9].mxu0 }
 0x13e   : > { %v698_v14 = vadd.f32 %v697_v13, %v649_v59  ;;  %v1123_v15 = vpop.f32.mrb[10].mxu0 }
 0x13f   : > { %744 = vst [vmem:[#allocation6 + $0x10] sm:$0xff] %v706_v12  ;;  %v709_v16 = vadd.f32 %v1123_v15, %v660_v10  ;;  %v700_v17 = vpop.f32.mrb[11].mxu0  ;;  %v727_v22 = vmul.f32 %v706_v12, %v706_v12 }
 0x140   : > { %742 = vst [vmem:[#allocation6] sm:$0xff] %v698_v14  ;;  %v701_v18 = vadd.f32 %v700_v17, %v652_v60  ;;  %v725_v19 = vmul.f32 %v698_v14, %v698_v14 }
 0x141   : > { %745 = vst [vmem:[#allocation6 + $0x18] sm:$0xff] %v709_v16  ;;  %v728_v25 = vmul.f32 %v709_v16, %v709_v16 }
 0x142   : > { %v713_v20 = vadd.f32 %v701_v18, %v698_v14  ;;  %v726_v21 = vmul.f32 %v701_v18, %v701_v18  ;;  %743 = vst [vmem:[#allocation6 + $0x8] sm:$0xff] %v701_v18 }
 0x144   : > { %v714_v23 = vadd.f32 %v713_v20, %v706_v12  ;;  %v729_v24 = vadd.f32 %v726_v21, %v725_v19 }
 0x146   : > { %v715_v26 = vadd.f32 %v714_v23, %v709_v16  ;;  %v730_v27 = vadd.f32 %v729_v24, %v727_v22 }
 0x148   : > { %v716_v28 = vrot.slane %v715_v26, 4  ;;  %v731_v29 = vadd.f32 %v730_v27, %v728_v25 }
 0x14a   : > { %v717_v30 = vadd.f32 %v716_v28, %v715_v26  ;;  %v732_v31 = vrot.slane %v731_v29, 4 }
 0x14c   : > { %v718_v32 = vrot.slane %v717_v30, 2  ;;  %v733_v33 = vadd.f32 %v732_v31, %v731_v29 }
 0x14e   : > { %v719_v34 = vadd.f32 %v718_v32, %v717_v30  ;;  %v734_v35 = vrot.slane %v733_v33, 2 }
 0x150   : > { %v720_v36 = vrot.slane %v719_v34, 1  ;;  %v735_v37 = vadd.f32 %v734_v35, %v733_v33 }
 0x152   : > { %v721_v39 = vadd.f32 %v720_v36, %v719_v34  ;;  %v736_v40 = vrot.slane %v735_v37, 1 }
 0x154   : > { %v722_v42 = vadd.f32 %v721_v39, %v712_v38  ;;  %v737_v43 = vadd.f32 %v736_v40, %v735_v37 }
 0x156   : > { %723 = vst [vmem:[#allocation2] sm:$0x1] %v722_v42  ;;  %v738_v44 = vadd.f32 %v737_v43, %v724_v41 }
 0x158   : > { %739 = vst [vmem:[#allocation3] sm:$0x1] %v738_v44 }
 0x159 PF: > { %p1023_p6 = scmp.ne.s32.totalorder %s1263_s9, 1 }
 0x15a   : > { %s1277_s27 = smov (!%p1023_p6), 64   ;;  %s1278_s28 = smov (!%p1023_p6), 96   ;;  %v791_v1 = vlaneseq (!%p1023_p6)  ;;  %vm804_vm1 = vcmask (!%p1023_p6), 261120   ;;  %vm806_vm2 = vcmask (!%p1023_p6), 523264   ;;  %vm808_vm3 = vcmask (!%p1023_p6), 785408   ;;  %v831_v21 = vld [vmem:[#allocation6] sm:$0xff] (!%p1023_p6) }
 0x15b   : > { %749 = sbr.rel (%p1023_p6) target bundleno = 638 (0x27e), region = 44  ;;  %s1279_s29 = smov (!%p1023_p6), 32   ;;  %v832_v22 = vld [vmem:[#allocation6 + $0x8] sm:$0xff] (!%p1023_p6)  ;;  %v833_v23 = vld [vmem:[#allocation6 + $0x10] sm:$0xff] (!%p1023_p6)  ;;  %v834_v24 = vld [vmem:[#allocation6 + $0x18] sm:$0xff] (!%p1023_p6) }
 0x15c   : > { %v792_v2 = vshrl.u32 (!%p1023_p6), %v791_v1, 7 }
 0x15d   : > { %v753_v45 = vld [vmem:[#allocation2] sm:$0x1] (!%p1023_p6) }
 0x15e   : > { %765 = vrot.lane.b32.xlu1 (!%p1023_p6), %v753_v45, %s1277_s27  ;;  %756 = vrot.lane.b32.xlu0 (!%p1023_p6), %v753_v45, %s1278_s28  ;;  %v793_v3 = vsub.s32 (!%p1023_p6), 0, %v792_v2 }
 0x15f   : > { %v754_v46 = vld [vmem:[#allocation3] sm:$0x1] (!%p1023_p6) }
 0x162   : > { %769 = vrot.lane.b32.xlu1 %v754_v46, %s1277_s27  ;;  %761 = vrot.lane.b32.xlu0 %v754_v46, %s1278_s28 }
 0x166   : > { %777 = vrot.lane.b32.xlu1 %v754_v46, %s1279_s29  ;;  %773 = vrot.lane.b32.xlu0 %v753_v45, %s1279_s29 }
 0x1d0   : > { %v766_v47 = vpop.permute.xlu1 %765  ;;  %v757_v48 = vpop.permute.xlu0 %756 }
 0x1d1   : > { %v759_v49 = vadd.f32 %v757_v48, %v753_v45 }
 0x1d3   : > { %v768_v54 = vadd.f32 %v766_v47, %v759_v49 }
 0x1d4   : > { %v770_v50 = vpop.permute.xlu1 %769  ;;  %v762_v51 = vpop.permute.xlu0 %761 }
 0x1d5   : > { %v764_v52 = vadd.f32 %v762_v51, %v754_v46 }
 0x1d7   : > { %v772_v53 = vadd.f32 %v770_v50, %v764_v52 }
 0x1d8   : > { %v778_v55 = vpop.permute.xlu1 %777  ;;  %v774_v56 = vpop.permute.xlu0 %773 }
 0x1d9   : > { %v780_v57 = vadd.f32 %v778_v55, %v772_v53  ;;  %v776_v58 = vadd.f32 %v774_v56, %v768_v54 }
 0x1db   : > { %v781_v59 = vmul.f32 0.0078125, %v776_v58  ;;  %v782_v60 = vmul.f32 0.0078125, %v780_v57 }
 0x1dd   : > { %v783_v61 = vmul.f32 %v781_v59, %v781_v59  ;;  %v788_v4 = vsub.f32 0.0, %v781_v59 }
 0x1df   : > { %v784_v62 = vsub.f32 %v782_v60, %v783_v61 }
 0x1e1   : > { %v785_v63 = vmax.f32 %v784_v62, 0.0 }
 0x1e3   : > { %v786_v0 = vadd.f32 1e-05, %v785_v63 }
 0x1e5   : > { %1215 = vrsqrt.f32 %v786_v0 }
 0x1ef   : > { %v1216_v5 = vpop.eup %1215 }
 0x1f0   : > { %v789_v6 = vmul.f32 %v1216_v5, %v788_v4  ;;  %v794_v7 = vrot.slane %v1216_v5, %v793_v3 }
 0x1f2   : > { %798 = vrot.lane.b32.xlu1 %v794_v7, %s1277_s27  ;;  %795 = vrot.lane.b32.xlu0 %v794_v7, %s1279_s29  ;;  %v815_v8 = vrot.slane %v789_v6, %v793_v3 }
 0x1f6   : > { %801 = vrot.lane.b32.xlu0 %v794_v7, %s1278_s28  ;;  %816 = vrot.lane.b32.xlu1 %v815_v8, %s1279_s29 }
 0x1fa   : > { %819 = vrot.lane.b32.xlu0 %v815_v8, %s1277_s27  ;;  %822 = vrot.lane.b32.xlu1 %v815_v8, %s1278_s28 }
 0x264   : > { %v799_v9 = vpop.permute.xlu1 %798  ;;  %v796_v10 = vpop.permute.xlu0 %795 }
 0x265   : > { %v805_v11 = vsel %vm804_vm1, %v1216_v5, %v796_v10 }
 0x266   : > { %v807_v12 = vsel %vm806_vm2, %v805_v11, %v799_v9 }
 0x268   : > { %v802_v13 = vpop.permute.xlu0 %801  ;;  %v817_v14 = vpop.permute.xlu1 %816 }
 0x269   : > { %v809_v15 = vsel %vm808_vm3, %v807_v12, %v802_v13  ;;  %v825_v16 = vsel %vm804_vm1, %v789_v6, %v817_v14 }
 0x26a   : > { %810 = vst [vmem:[#allocation4] sm:$0x1] %v809_v15 }
 0x26c   : > { %v820_v17 = vpop.permute.xlu0 %819  ;;  %v823_v18 = vpop.permute.xlu1 %822 }
 0x26d   : > { %v826_v19 = vsel %vm806_vm2, %v825_v16, %v820_v17 }
 0x26e   : > { %v827_v20 = vsel %vm808_vm3, %v826_v19, %v823_v18 }
 0x26f   : > { %828 = vst [vmem:[#allocation5] sm:$0x1] %v827_v20 }
 0x271   : > { %v1024_v25 = vld [vmem:[#allocation4] ss:$0 sm:$0xff] }
 0x272   : > { %v842_v26 = vmul.f32 %v1024_v25, %v831_v21  ;;  %v843_v27 = vmul.f32 %v1024_v25, %v832_v22  ;;  %v844_v28 = vmul.f32 %v1024_v25, %v833_v23  ;;  %v845_v29 = vmul.f32 %v1024_v25, %v834_v24 }
 0x276   : > { %v1025_v30 = vld [vmem:[#allocation5] ss:$0 sm:$0xff] }
 0x277   : > { %v853_v31 = vadd.f32 %v1025_v30, %v842_v26  ;;  %v854_v32 = vadd.f32 %v1025_v30, %v843_v27  ;;  %v855_v33 = vadd.f32 %v1025_v30, %v844_v28  ;;  %v856_v34 = vadd.f32 %v1025_v30, %v845_v29 }
 0x279   : > { %v857_v35 = vmax.f32 %v853_v31, 0.0  ;;  %v858_v36 = vmax.f32 %v854_v32, 0.0  ;;  %v859_v37 = vmax.f32 %v855_v33, 0.0  ;;  %v860_v38 = vmax.f32 %v856_v34, 0.0 }
 0x27b   : > { %v1042_v39 = vpack.c.bf16 %v858_v36, %v857_v35  ;;  %v1047_v40 = vpack.c.bf16 %v860_v38, %v859_v37 }
 0x27d   : > { %1043 = vst [vmem:[%s1416_s2] sm:$0xff] %v1042_v39   ;;  %1049 = vst [vmem:[%s1416_s2 + $0x8] sm:$0xff] %v1047_v40  }
 0x27e PF: > { %s13_s11 = sadd.s32 1, %s1271_s11   ;;  %s1425_s9 = smov %s1267_s10 }
 0x27f   : > { %p10_p8 = scmp.ge.s32.totalorder %s13_s11, 4   ;;  %s1426_s10 = smov %s1428_s13 }
 0x281   :  { %12 = sbr.rel (!%p10_p8) target bundleno = 2 (0x2), region = 81 }
 0x288   :  { %906 = vsyncpa [#allocation8], 1 }
 0x289   :  { %908 = vsyncpa [#allocation8 + $0x1], 1 }

// kernel: generator_forward.7
= control target key start
LH: loop header
LB: loop body
LE: loop exit
PB: predicated region body
PF: predicated region fallthrough
CT: control target
= control target key end

     0   :  { %s1479_s9 = smov 0   ;;  %s1481_s10 = smov 0   ;;  %s1771_s0 = inlined_call_operand.vmem [shape: bf16[128,288], index: 0, kind: input, shape index: {}]   ;;  %s1772_s1 = inlined_call_operand.vmem [shape: bf16[288,64], index: 1, kind: input, shape index: {}]   ;;  %s1773_s2 = inlined_call_operand.vmem [shape: bf16[128,64], index: 2, kind: output, shape index: {}]  }
   0x1   :  { %s1483_s11 = smov 0  }
   0x2 LB: > { %s24_s12 = sadd.s32 1, %s1451_s10  ;;  %p1147_p0 = scmp.ge.s32.totalorder %s1455_s11, 1  ;;  %s1455_s11 = sphi %s1483_s11, %s12_s11   ;;  %s1451_s10 = sphi %s1481_s10, %s1775_s10   ;;  %s1447_s9 = sphi %s1479_s9, %s1774_s9  }
   0x3   : > { %p26_p1 = scmp.ge.s32.totalorder %s24_s12, 2  ;;  %p136_p2 = scmp.lt.s32.totalorder %s1455_s11, 3 }
   0x5   : > { %s1777_s12 = smov (%p26_p1, %s24_s12), 0  ;;  %p137_p3 = pnand %p1147_p0, %p136_p2 }
   0x6   : > { %p182_p4 = scmp.eq.s32.totalorder (!%p137_p3), %s1447_s9, 0 }
   0x7   : > { %140 = sbr.rel (%p137_p3) target bundleno = 647 (0x287), region = 28 }
   0xe   : > { %187 = sbr.rel (!%p182_p4) target bundleno = 21 (0x15), region = 32  ;;  %vm188_vm0 = vcmask (%p182_p4), 516096   ;;  %v1457_v0 = vmov (%p182_p4), 0.0  }
   0xf   : > { %189 = vst.msk [vmem:[#allocation2] sm:$0x1] (%p182_p4), %vm188_vm0, %v1457_v0  ;;  %190 = vst.msk [vmem:[#allocation3] sm:$0x1] (%p182_p4), %vm188_vm0, %v1457_v0 }
  0x15 PF: > { %p1149_p5 = scmp.ne.s32.totalorder %s1447_s9, 0 }
  0x16   : > { %v1381_v1 = vld [vmem:[%s1772_s1 + $0x40] sm:$0xff] (!%p1149_p5)   ;;  %v1383_v3 = vld [vmem:[%s1772_s1 + $0x48] sm:$0xff] (!%p1149_p5)   ;;  %v1385_v5 = vld [vmem:[%s1772_s1 + $0x50] sm:$0xff] (!%p1149_p5)   ;;  %vm490_vm1 = vcmask (!%p1149_p5), 261120   ;;  %vm710_vm2 = vcmask (!%p1149_p5), 523264   ;;  %vm749_vm3 = vcmask (!%p1149_p5), 516096  }
  0x17   : > { %193 = sbr.rel (%p1149_p5) target bundleno = 342 (0x156), region = 36  ;;  %v1382_v2 = vld [vmem:[%s1772_s1] sm:$0xff] (!%p1149_p5)   ;;  %1240 = vmatprep.subr.bf16.mxu0 (!%p1149_p5), %v1381_v1  ;;  %1334 = vmatprep.subr.bf16.mxu1 (!%p1149_p5), %v1381_v1  ;;  %v1384_v4 = vld [vmem:[%s1772_s1 + $0x8] sm:$0xff] (!%p1149_p5)   ;;  %v1386_v6 = vld [vmem:[%s1772_s1 + $0x10] sm:$0xff] (!%p1149_p5)  }
  0x18   : > { %1241 = vmatpush3.bf16.msra.mxu0 (!%p1149_p5), %v1382_v2  ;;  %1342 = vmatpush3.bf16.msra.mxu1 (!%p1149_p5), %v1382_v2  ;;  %v1387_v7 = vld [vmem:[%s1772_s1 + $0x58] sm:$0xff] (!%p1149_p5)   ;;  %v1389_v9 = vld [vmem:[%s1772_s1 + $0x60] sm:$0xff] (!%p1149_p5)   ;;  %v1391_v11 = vld [vmem:[%s1772_s1 + $0x68] sm:$0xff] (!%p1149_p5)  }
  0x19   : > { %1242 = vmatprep.subr.bf16.mxu0 (!%p1149_p5), %v1383_v3  ;;  %1335 = vmatprep.subr.bf16.mxu1 (!%p1149_p5), %v1383_v3  ;;  %v1388_v8 = vld [vmem:[%s1772_s1 + $0x18] sm:$0xff] (!%p1149_p5)   ;;  %v1390_v10 = vld [vmem:[%s1772_s1 + $0x20] sm:$0xff] (!%p1149_p5)   ;;  %v1392_v14 = vld [vmem:[%s1772_s1 + $0x28] sm:$0xff] (!%p1149_p5)  }
  0x1a   : > { %v1399_v12 = vld [vmem:[%s1771_s0 + $0x4] ss:$12 sps:$4 sm:$0xff] (!%p1149_p5)   ;;  %v1402_v13 = vld [vmem:[%s1771_s0 + $0x94] ss:$12 sps:$4 sm:$0xff] (!%p1149_p5)   ;;  %v1395_v17 = vld [vmem:[%s1772_s1 + $0x78] sm:$0xff] (!%p1149_p5)  }
  0x1b   : > { %v1393_v15 = vld [vmem:[%s1772_s1 + $0x70] sm:$0xff] (!%p1149_p5)   ;;  %547 = vmatprep.mubr.bf16.mxu0 (!%p1149_p5), %v1399_v12  ;;  %595 = vmatprep.mubr.bf16.mxu1 (!%p1149_p5), %v1402_v13  ;;  %v1396_v18 = vld [vmem:[%s1772_s1 + $0x38] sm:$0xff] (!%p1149_p5)   ;;  %v1397_v19 = vld [vmem:[%s1771_s0] ss:$12 sps:$4 sm:$0xff] (!%p1149_p5)  }
  0x1c   : > { %1243 = vmatpush3.bf16.msra.mxu0 (!%p1149_p5), %v1384_v4  ;;  %1343 = vmatpush3.bf16.msra.mxu1 (!%p1149_p5), %v1384_v4  ;;  %v1394_v16 = vld [vmem:[%s1772_s1 + $0x30] sm:$0xff] (!%p1149_p5)   ;;  %v1403_v20 = vld [vmem:[%s1772_s1 + $0x80] sm:$0xff] (!%p1149_p5)   ;;  %v1404_v22 = vld [vmem:[%s1771_s0 + $0x1c] ss:$12 sps:$4 sm:$0xff] (!%p1149_p5)  }
  0x1d   : > { %1244 = vmatprep.subr.bf16.mxu0 (!%p1149_p5), %v1385_v5  ;;  %1336 = vmatprep.subr.bf16.mxu1 (!%p1149_p5), %v1385_v5  ;;  %v1400_v21 = vld [vmem:[%s1771_s0 + $0x90] ss:$12 sps:$4 sm:$0xff] (!%p1149_p5)   ;;  %v1406_v23 = vld [vmem:[%s1771_s0 + $0xac] ss:$12 sps:$4 sm:$0xff] (!%p1149_p5)   ;;  %v1409_v26 = vld [vmem:[%s1771_s0 + $0xa8] ss:$12 sps:$4 sm:$0xff] (!%p1149_p5)  }
  0x1e   : > { %v1410_v24 = vld [vmem:[%s1772_s1 + $0x88] sm:$0xff]   ;;  %v1408_v25 = vld [vmem:[%s1771_s0 + $0x18] ss:$12 sps:$4 sm:$0xff]   ;;  %v1411_v27 = vld [vmem:[%s1771_s0 + $0x34] ss:$12 sps:$4 sm:$0xff]  }
  0x1f   : > { %v1413_v28 = vld [vmem:[%s1771_s0 + $0x8] ss:$12 sps:$4 sm:$0xff]   ;;  %v1414_v29 = vld [vmem:[%s1771_s0 + $0x30] ss:$12 sps:$4 sm:$0xff]   ;;  %v1415_v30 = vld [vmem:[%s1771_s0 + $0x20] ss:$12 sps:$4 sm:$0xff]  }
  0x20   : > { %1245 = vmatpush3.bf16.msra.mxu0 %v1386_v6  ;;  %1344 = vmatpush3.bf16.msra.mxu1 %v1386_v6  ;;  %v1416_v31 = vld [vmem:[%s1771_s0 + $0x4c] ss:$12 sps:$4 sm:$0xff]   ;;  %v1419_v33 = vld [vmem:[%s1771_s0 + $0x48] ss:$12 sps:$4 sm:$0xff]   ;;  %v1420_v34 = vld [vmem:[%s1771_s0 + $0x50] ss:$12 sps:$4 sm:$0xff]  }
  0x21   : > { %1246 = vmatprep.subr.bf16.mxu0 %v1387_v7  ;;  %1337 = vmatprep.subr.bf16.mxu1 %v1387_v7  ;;  %v1418_v32 = vld [vmem:[%s1771_s0 + $0x38] ss:$12 sps:$4 sm:$0xff]   ;;  %v1423_v36 = vld [vmem:[%s1771_s0 + $0x68] ss:$12 sps:$4 sm:$0xff]   ;;  %v1424_v37 = vld [vmem:[%s1771_s0 + $0x60] ss:$12 sps:$4 sm:$0xff]  }
  0x22   : > { %v1421_v35 = vld [vmem:[%s1771_s0 + $0x64] ss:$12 sps:$4 sm:$0xff]   ;;  %v1425_v38 = vld [vmem:[%s1771_s0 + $0x80] ss:$12 sps:$4 sm:$0xff]   ;;  %v1426_v39 = vld [vmem:[%s1771_s0 + $0x7c] ss:$12 sps:$4 sm:$0xff]  }
  0x23   : > { %v1428_v40 = vld [vmem:[%s1771_s0 + $0x98] ss:$12 sps:$4 sm:$0xff]   ;;  %v1430_v42 = vld [vmem:[%s1771_s0 + $0xb0] ss:$12 sps:$4 sm:$0xff]  }
  0x24   : > { %1247 = vmatpush3.bf16.msra.mxu0 %v1388_v8  ;;  %1345 = vmatpush3.bf16.msra.mxu1 %v1388_v8  ;;  %v1429_v41 = vld [vmem:[%s1771_s0 + $0x78] ss:$12 sps:$4 sm:$0xff]  }
  0x25   : > { %1248 = vmatprep.subr.bf16.mxu0 %v1389_v9  ;;  %1338 = vmatprep.subr.bf16.mxu1 %v1389_v9 }
  0x28   : > { %1249 = vmatpush3.bf16.msra.mxu0 %v1390_v10  ;;  %1346 = vmatpush3.bf16.msra.mxu1 %v1390_v10 }
  0x29   : > { %1250 = vmatprep.subr.bf16.mxu0 %v1391_v11  ;;  %1339 = vmatprep.subr.bf16.mxu1 %v1391_v11 }
  0x2c   : > { %1251 = vmatpush3.bf16.msra.mxu0 %v1392_v14  ;;  %1347 = vmatpush3.bf16.msra.mxu1 %v1392_v14 }
  0x2d   : > { %1252 = vmatprep.subr.bf16.mxu0 %v1393_v15  ;;  %1340 = vmatprep.subr.bf16.mxu1 %v1393_v15 }
  0x30   : > { %1253 = vmatpush3.bf16.msra.mxu0 %v1394_v16  ;;  %1348 = vmatpush3.bf16.msra.mxu1 %v1394_v16 }
  0x31   : > { %1254 = vmatprep.subr.bf16.mxu0 %v1395_v17  ;;  %1341 = vmatprep.subr.bf16.mxu1 %v1395_v17 }
  0x34   : > { %1255 = vmatpush3.bf16.msra.mxu0 %v1396_v18  ;;  %1349 = vmatpush3.bf16.msra.mxu1 %v1396_v18 }
  0x35   : > { %1314 = vmatprep.subr.bf16.mxu1 %v1403_v20 }
  0x37   : > { %548 = vmatmul.mubr.bf16.vlgmr.msra.gmra.mrb[0].mxu0 %v1397_v19  ;;  %596 = vmatmul.mubr.bf16.vlgmr.msra.gmra.mrb[0].mxu1 %v1400_v21 }
  0x38   : > { %1315 = vmatpush3.bf16.msra.mxu1 %v1403_v20  ;;  %555 = vmatprep.mubr.bf16.mxu0 %v1404_v22 }
  0x39   : > { %603 = vmatprep.mubr.bf16.mxu1 %v1406_v23  ;;  %1316 = vmatprep.subr.bf16.mxu1 %v1410_v24 }
  0x3c   : > { %1317 = vmatpush3.bf16.msra.mxu1 %v1410_v24 }
  0x3f   : > { %556 = vmatmul.mubr.bf16.gmra.mrb[4].mxu0 %v1408_v25  ;;  %604 = vmatmul.mubr.bf16.gmra.mrb[4].mxu1 %v1409_v26 }
  0x40   : > { %563 = vmatprep.mubr.bf16.mxu0 %v1411_v27  ;;  %1318 = vmatprep.mubr.msk.bf16.mxu1 %vm490_vm1, %v1413_v28 }
  0x47   : > { %564 = vmatmul.mubr.bf16.gmra.mrb[8].mxu0 %v1414_v29  ;;  %1319 = vmatmul.mubr.msk.bf16.vlgmr.msra.gmra.mrb[8].mxu1 %vm490_vm1, %v1415_v30 }
  0x48   : > { %571 = vmatprep.mubr.bf16.mxu0 %v1416_v31  ;;  %1322 = vmatprep.mubr.msk.bf16.mxu1 %vm490_vm1, %v1418_v32 }
  0x4f   : > { %572 = vmatmul.mubr.bf16.gmra.mrb[12].mxu0 %v1419_v33  ;;  %1323 = vmatmul.mubr.msk.bf16.gmra.mrb[12].mxu1 %vm490_vm1, %v1420_v34 }
  0x50   : > { %579 = vmatprep.mubr.bf16.mxu0 %v1421_v35  ;;  %1326 = vmatprep.mubr.msk.bf16.mxu1 %vm490_vm1, %v1423_v36 }
  0x57   : > { %580 = vmatmul.mubr.bf16.gmra.mrb[16].mxu0 %v1424_v37  ;;  %1327 = vmatmul.mubr.msk.bf16.gmra.mrb[16].mxu1 %vm490_vm1, %v1425_v38 }
  0x58   : > { %587 = vmatprep.mubr.bf16.mxu0 %v1426_v39  ;;  %1330 = vmatprep.mubr.msk.bf16.mxu1 %vm490_vm1, %v1428_v40 }
  0x5f   : > { %588 = vmatmul.mubr.bf16.gmra.mrb[20].mxu0 %v1429_v41  ;;  %1331 = vmatmul.mubr.msk.bf16.gmra.mrb[20].mxu1 %vm490_vm1, %v1430_v42 }
 0x10a   : > { %v1256_v43 = vpop.f32.mrb[0].mxu0  ;;  %v1292_v44 = vpop.f32.mrb[0].mxu1 }
 0x10b   : > { %v1257_v45 = vpop.f32.mrb[1].mxu0  ;;  %v1293_v46 = vpop.f32.mrb[1].mxu1 }
 0x10c   : > { %v1258_v47 = vadd.f32 %v1257_v45, %v1256_v43  ;;  %v1259_v48 = vpop.f32.mrb[2].mxu0  ;;  %v1635_v49 = vadd.f32 %v1293_v46, %v1292_v44  ;;  %v1295_v50 = vpop.f32.mrb[2].mxu1 }
 0x10d   : > { %v1260_v51 = vpop.f32.mrb[3].mxu0  ;;  %v1296_v52 = vpop.f32.mrb[3].mxu1 }
 0x10e   : > { %v1261_v53 = vadd.f32 %v1260_v51, %v1259_v48  ;;  %v1637_v54 = vadd.f32 %v1296_v52, %v1295_v50 }
 0x112   : > { %v1262_v55 = vpop.f32.mrb[4].mxu0  ;;  %v1298_v56 = vpop.f32.mrb[4].mxu1 }
 0x113   : > { %v1263_v57 = vpop.f32.mrb[5].mxu0  ;;  %v1299_v58 = vpop.f32.mrb[5].mxu1 }
 0x114   : > { %v1264_v59 = vadd.f32 %v1263_v57, %v1262_v55  ;;  %v1265_v60 = vpop.f32.mrb[6].mxu0  ;;  %v1639_v61 = vadd.f32 %v1299_v58, %v1298_v56  ;;  %v1301_v62 = vpop.f32.mrb[6].mxu1 }
 0x115   : > { %v1266_v63 = vpop.f32.mrb[7].mxu0  ;;  %v1302_v0 = vpop.f32.mrb[7].mxu1 }
 0x116   : > { %v1267_v1 = vadd.f32 %v1266_v63, %v1265_v60  ;;  %v1641_v2 = vadd.f32 %v1302_v0, %v1301_v62 }
 0x11a   : > { %v1268_v3 = vpop.f32.mrb[8].mxu0  ;;  %v1320_v4 = vpop.f32.mrb[8].mxu1 }
 0x11b   : > { %v655_v5 = vadd.f32 %v1320_v4, %v1264_v59  ;;  %v1269_v6 = vpop.f32.mrb[9].mxu0  ;;  %v646_v7 = vpop.f32.mrb[9].mxu1 }
 0x11c   : > { %v1270_v8 = vadd.f32 %v1269_v6, %v1268_v3  ;;  %v647_v9 = vadd.f32 %v1258_v47, %v646_v7  ;;  %v1271_v10 = vpop.f32.mrb[10].mxu0  ;;  %v1321_v11 = vpop.f32.mrb[10].mxu1 }
 0x11d   : > { %811 = vst.msk [vmem:[#allocation6 + $0x10] sm:$0xff] %vm710_vm2, %v655_v5  ;;  %v658_v12 = vadd.f32 %v1321_v11, %v1267_v1  ;;  %v1272_v13 = vpop.f32.mrb[11].mxu0  ;;  %v649_v14 = vpop.f32.mrb[11].mxu1  ;;  %v754_v18 = vmul.f32 %v655_v5, %v655_v5  ;;  %v714_v24 = vsel %vm710_vm2, %v655_v5, 0.0 }
 0x11e   : > { %v752_v15 = vmul.f32 %v647_v9, %v647_v9  ;;  %809 = vst.msk [vmem:[#allocation6] sm:$0xff] %vm710_vm2, %v647_v9  ;;  %v1273_v16 = vadd.f32 %v1272_v13, %v1271_v10  ;;  %v650_v17 = vadd.f32 %v1261_v53, %v649_v14  ;;  %v711_v19 = vsel %vm710_vm2, %v647_v9, 0.0 }
 0x11f   : > { %812 = vst.msk [vmem:[#allocation6 + $0x18] sm:$0xff] %vm710_vm2, %v658_v12  ;;  %v755_v22 = vmul.f32 %v658_v12, %v658_v12  ;;  %v771_v33 = vsel %vm710_vm2, %v754_v18, 0.0  ;;  %v716_v34 = vsel %vm710_vm2, %v658_v12, 0.0 }
 0x120   : > { %v712_v20 = vsel %vm710_vm2, %v650_v17, 0.0  ;;  %v753_v21 = vmul.f32 %v650_v17, %v650_v17  ;;  %810 = vst.msk [vmem:[#allocation6 + $0x8] sm:$0xff] %vm710_vm2, %v650_v17  ;;  %v768_v25 = vsel %vm710_vm2, %v752_v15, 0.0 }
 0x121   : > { %v713_v23 = vadd.f32 %v712_v20, %v711_v19  ;;  %v773_v39 = vsel %vm710_vm2, %v755_v22, 0.0 }
 0x122   : > { %v769_v26 = vsel %vm710_vm2, %v753_v21, 0.0  ;;  %v1274_v27 = vpop.f32.mrb[12].mxu0  ;;  %v1324_v28 = vpop.f32.mrb[12].mxu1 }
 0x123   : > { %v715_v29 = vadd.f32 %v714_v24, %v713_v23  ;;  %v770_v30 = vadd.f32 %v769_v26, %v768_v25  ;;  %v1275_v31 = vpop.f32.mrb[13].mxu0  ;;  %v662_v32 = vpop.f32.mrb[13].mxu1 }
 0x124   : > { %v1276_v35 = vadd.f32 %v1275_v31, %v1274_v27  ;;  %v663_v36 = vadd.f32 %v1270_v8, %v662_v32  ;;  %v1277_v37 = vpop.f32.mrb[14].mxu0  ;;  %v1325_v38 = vpop.f32.mrb[14].mxu1 }
 0x125   : > { %v772_v40 = vadd.f32 %v771_v33, %v770_v30  ;;  %v717_v41 = vadd.f32 %v716_v34, %v715_v29  ;;  %v1278_v42 = vpop.f32.mrb[15].mxu0  ;;  %v665_v43 = vpop.f32.mrb[15].mxu1 }
 0x126   : > { %v671_v44 = vadd.f32 %v1324_v28, %v1276_v35  ;;  %v718_v45 = vsel %vm710_vm2, %v663_v36, 0.0  ;;  %v756_v46 = vmul.f32 %v663_v36, %v663_v36  ;;  %813 = vst.msk [vmem:[#allocation6 + $0x20] sm:$0xff] %vm710_vm2, %v663_v36  ;;  %v1279_v47 = vadd.f32 %v1278_v42, %v1277_v37 }
 0x127   : > { %v719_v48 = vadd.f32 %v718_v45, %v717_v41  ;;  %v774_v50 = vadd.f32 %v773_v39, %v772_v40  ;;  %v666_v51 = vadd.f32 %v1273_v16, %v665_v43 }
 0x128   : > { %815 = vst.msk [vmem:[#allocation6 + $0x30] sm:$0xff] %vm710_vm2, %v671_v44  ;;  %v775_v52 = vsel %vm710_vm2, %v756_v46, 0.0  ;;  %v674_v53 = vadd.f32 %v1325_v38, %v1279_v47  ;;  %v758_v55 = vmul.f32 %v671_v44, %v671_v44  ;;  %v722_v63 = vsel %vm710_vm2, %v671_v44, 0.0 }
 0x129   : > { %v776_v56 = vadd.f32 %v775_v52, %v774_v50  ;;  %v720_v57 = vsel %vm710_vm2, %v666_v51, 0.0  ;;  %v757_v58 = vmul.f32 %v666_v51, %v666_v51  ;;  %814 = vst.msk [vmem:[#allocation6 + $0x28] sm:$0xff] %vm710_vm2, %v666_v51 }
 0x12a   : > { %816 = vst.msk [vmem:[#allocation6 + $0x38] sm:$0xff] %vm710_vm2, %v674_v53  ;;  %v721_v59 = vadd.f32 %v720_v57, %v719_v48  ;;  %v1280_v60 = vpop.f32.mrb[16].mxu0  ;;  %v1328_v62 = vpop.f32.mrb[16].mxu1  ;;  %v759_v0 = vmul.f32 %v674_v53, %v674_v53  ;;  %v779_v10 = vsel %vm710_vm2, %v758_v55, 0.0  ;;  %v724_v11 = vsel %vm710_vm2, %v674_v53, 0.0 }
 0x12b   : > { %v777_v1 = vsel %vm710_vm2, %v757_v58, 0.0  ;;  %v1281_v3 = vpop.f32.mrb[17].mxu0  ;;  %v678_v4 = vpop.f32.mrb[17].mxu1 }
 0x12c   : > { %v723_v5 = vadd.f32 %v722_v63, %v721_v59  ;;  %v778_v6 = vadd.f32 %v777_v1, %v776_v56  ;;  %v1282_v7 = vadd.f32 %v1281_v3, %v1280_v60  ;;  %v1283_v8 = vpop.f32.mrb[18].mxu0  ;;  %v1329_v9 = vpop.f32.mrb[18].mxu1  ;;  %v781_v18 = vsel %vm710_vm2, %v759_v0, 0.0 }
 0x12d   : > { %v1284_v12 = vpop.f32.mrb[19].mxu0  ;;  %v681_v13 = vpop.f32.mrb[19].mxu1 }
 0x12e   : > { %v780_v14 = vadd.f32 %v779_v10, %v778_v6  ;;  %v1285_v15 = vadd.f32 %v1284_v12, %v1283_v8  ;;  %v679_v16 = vadd.f32 %v1282_v7, %v678_v4  ;;  %v725_v17 = vadd.f32 %v724_v11, %v723_v5 }
 0x130   : > { %v726_v19 = vsel %vm710_vm2, %v679_v16, 0.0  ;;  %v760_v20 = vmul.f32 %v679_v16, %v679_v16  ;;  %v782_v21 = vadd.f32 %v781_v18, %v780_v14  ;;  %817 = vst.msk [vmem:[#allocation6 + $0x40] sm:$0xff] %vm710_vm2, %v679_v16  ;;  %v682_v22 = vadd.f32 %v1285_v15, %v681_v13 }
 0x131   : > { %v727_v23 = vadd.f32 %v726_v19, %v725_v17 }
 0x132   : > { %v783_v24 = vsel %vm710_vm2, %v760_v20, 0.0  ;;  %v728_v25 = vsel %vm710_vm2, %v682_v22, 0.0  ;;  %v761_v26 = vmul.f32 %v682_v22, %v682_v22  ;;  %818 = vst.msk [vmem:[#allocation6 + $0x48] sm:$0xff] %vm710_vm2, %v682_v22  ;;  %v1286_v27 = vpop.f32.mrb[20].mxu0  ;;  %v1332_v28 = vpop.f32.mrb[20].mxu1 }
 0x133   : > { %v784_v29 = vadd.f32 %v783_v24, %v782_v21  ;;  %v729_v30 = vadd.f32 %v728_v25, %v727_v23  ;;  %v703_v31 = vadd.f32 %v1332_v28, %v1639_v61  ;;  %v1287_v32 = vpop.f32.mrb[21].mxu0  ;;  %v694_v33 = vpop.f32.mrb[21].mxu1  ;;  %v709_v22 = vld [vmem:[#allocation2] sm:$0x1]  ;;  %v751_v25 = vld [vmem:[#allocation3] sm:$0x1] }
 0x134   : > { %v785_v34 = vsel %vm710_vm2, %v761_v26, 0.0  ;;  %v1288_v35 = vadd.f32 %v1287_v32, %v1286_v27  ;;  %v695_v36 = vadd.f32 %v1635_v49, %v694_v33  ;;  %v1289_v37 = vpop.f32.mrb[22].mxu0  ;;  %v1333_v38 = vpop.f32.mrb[22].mxu1 }
 0x135   : > { %v786_v39 = vadd.f32 %v785_v34, %v784_v29  ;;  %823 = vst.msk [vmem:[#allocation6 + $0x70] sm:$0xff] %vm710_vm2, %v703_v31  ;;  %v706_v40 = vadd.f32 %v1333_v38, %v1641_v2  ;;  %v1290_v41 = vpop.f32.mrb[23].mxu0  ;;  %v697_v42 = vpop.f32.mrb[23].mxu1  ;;  %v766_v59 = vmul.f32 %v703_v31, %v703_v31  ;;  %v738_v1 = vsel %vm710_vm2, %v703_v31, 0.0 }
 0x136   : > { %v687_v43 = vadd.f32 %v1328_v62, %v1288_v35  ;;  %821 = vst.msk [vmem:[#allocation6 + $0x60] sm:$0xff] %vm710_vm2, %v695_v36  ;;  %v1291_v61 = vadd.f32 %v1290_v41, %v1289_v37  ;;  %v698_v44 = vadd.f32 %v1637_v54, %v697_v42  ;;  %v764_v48 = vmul.f32 %v695_v36, %v695_v36 }
 0x137   : > { %824 = vst.msk [vmem:[#allocation6 + $0x78] sm:$0xff] %vm710_vm2, %v706_v40  ;;  %v734_v54 = vsel %vm710_vm2, %v695_v36, 0.0  ;;  %v767_v3 = vmul.f32 %v706_v40, %v706_v40  ;;  %v795_v7 = vsel %vm710_vm2, %v766_v59, 0.0  ;;  %v740_v8 = vsel %vm710_vm2, %v706_v40, 0.0 }
 0x138   : > { %v730_v45 = vsel %vm710_vm2, %v687_v43, 0.0  ;;  %v762_v49 = vmul.f32 %v687_v43, %v687_v43  ;;  %819 = vst.msk [vmem:[#allocation6 + $0x50] sm:$0xff] %vm710_vm2, %v687_v43  ;;  %v690_v46 = vadd.f32 %v1329_v9, %v1291_v61  ;;  %822 = vst.msk [vmem:[#allocation6 + $0x68] sm:$0xff] %vm710_vm2, %v698_v44  ;;  %v765_v56 = vmul.f32 %v698_v44, %v698_v44 }
 0x139   : > { %v731_v47 = vadd.f32 %v730_v45, %v729_v30  ;;  %v791_v60 = vsel %vm710_vm2, %v764_v48, 0.0  ;;  %v736_v62 = vsel %vm710_vm2, %v698_v44, 0.0  ;;  %v797_v11 = vsel %vm710_vm2, %v767_v3, 0.0 }
 0x13a   : > { %v787_v2 = vsel %vm710_vm2, %v762_v49, 0.0  ;;  %v732_v50 = vsel %vm710_vm2, %v690_v46, 0.0  ;;  %v763_v51 = vmul.f32 %v690_v46, %v690_v46  ;;  %820 = vst.msk [vmem:[#allocation6 + $0x58] sm:$0xff] %vm710_vm2, %v690_v46  ;;  %v793_v4 = vsel %vm710_vm2, %v765_v56, 0.0 }
 0x13b   : > { %v788_v52 = vadd.f32 %v787_v2, %v786_v39  ;;  %v733_v53 = vadd.f32 %v732_v50, %v731_v47 }
 0x13c   : > { %v789_v55 = vsel %vm710_vm2, %v763_v51, 0.0 }
 0x13d   : > { %v790_v57 = vadd.f32 %v789_v55, %v788_v52  ;;  %v735_v58 = vadd.f32 %v734_v54, %v733_v53 }
 0x13f   : > { %v737_v63 = vadd.f32 %v736_v62, %v735_v58  ;;  %v792_v0 = vadd.f32 %v791_v60, %v790_v57 }
 0x141   : > { %v739_v5 = vadd.f32 %v738_v1, %v737_v63  ;;  %v794_v6 = vadd.f32 %v793_v4, %v792_v0 }
 0x143   : > { %v741_v9 = vadd.f32 %v740_v8, %v739_v5  ;;  %v796_v10 = vadd.f32 %v795_v7, %v794_v6 }
 0x145   : > { %v742_v12 = vrot.slane %v741_v9, 4  ;;  %v798_v13 = vadd.f32 %v797_v11, %v796_v10 }
 0x147   : > { %v743_v14 = vadd.f32 %v742_v12, %v741_v9  ;;  %v799_v15 = vrot.slane %v798_v13, 4 }
 0x149   : > { %v744_v16 = vrot.slane %v743_v14, 2  ;;  %v800_v17 = vadd.f32 %v799_v15, %v798_v13 }
 0x14b   : > { %v745_v18 = vadd.f32 %v744_v16, %v743_v14  ;;  %v801_v19 = vrot.slane %v800_v17, 2 }
 0x14d   : > { %v746_v20 = vrot.slane %v745_v18, 1  ;;  %v802_v21 = vadd.f32 %v801_v19, %v800_v17 }
 0x14f   : > { %v747_v23 = vadd.f32 %v746_v20, %v745_v18  ;;  %v803_v24 = vrot.slane %v802_v21, 1 }
 0x151   : > { %v748_v26 = vadd.f32 %v747_v23, %v709_v22  ;;  %v804_v27 = vadd.f32 %v803_v24, %v802_v21 }
 0x153   : > { %750 = vst.msk [vmem:[#allocation2] sm:$0x1] %vm749_vm3, %v748_v26  ;;  %v805_v28 = vadd.f32 %v804_v27, %v751_v25 }
 0x155   : > { %806 = vst.msk [vmem:[#allocation3] sm:$0x1] %vm749_vm3, %v805_v28 }
 0x156 PF: > { %p1200_p6 = scmp.ne.s32.totalorder %s1447_s9, 1 }
 0x157   : > { %s1458_s25 = smov (!%p1200_p6), 96   ;;  %s1459_s26 = smov (!%p1200_p6), 112   ;;  %v870_v47 = vlaneseq (!%p1200_p6)  ;;  %vm883_vm4 = vcmask (!%p1200_p6), 130048   ;;  %vm885_vm5 = vcmask (!%p1200_p6), 261120   ;;  %vm887_vm6 = vcmask (!%p1200_p6), 392192   ;;  %v911_v4 = vld [vmem:[#allocation6] sm:$0xff] (!%p1200_p6) }
 0x158   : > { %828 = sbr.rel (%p1200_p6) target bundleno = 647 (0x287), region = 40  ;;  %s1460_s27 = smov (!%p1200_p6), 80   ;;  %vm889_vm7 = vcmask (!%p1200_p6), 516096   ;;  %v912_v5 = vld [vmem:[#allocation6 + $0x8] sm:$0xff] (!%p1200_p6)  ;;  %v913_v7 = vld [vmem:[#allocation6 + $0x10] sm:$0xff] (!%p1200_p6)  ;;  %v914_v8 = vld [vmem:[#allocation6 + $0x18] sm:$0xff] (!%p1200_p6) }
 0x159   : > { %v871_v2 = vshrl.u32 (!%p1200_p6), %v870_v47, 7  ;;  %s1461_s9 = smov (!%p1200_p6), 32   ;;  %s1462_s28 = smov (!%p1200_p6), 16   ;;  %v915_v9 = vld [vmem:[#allocation6 + $0x20] sm:$0xff] (!%p1200_p6)  ;;  %v916_v10 = vld [vmem:[#allocation6 + $0x28] sm:$0xff] (!%p1200_p6)  ;;  %v917_v11 = vld [vmem:[#allocation6 + $0x30] sm:$0xff] (!%p1200_p6) }
 0x15a   : > { %v832_v29 = vld [vmem:[#allocation2] sm:$0x1] (!%p1200_p6)  ;;  %s1463_s29 = smov (!%p1200_p6), 48   ;;  %v919_v13 = vld [vmem:[#allocation6 + $0x40] sm:$0xff] (!%p1200_p6)  ;;  %v920_v14 = vld [vmem:[#allocation6 + $0x48] sm:$0xff] (!%p1200_p6)  ;;  %vm1053_vm8 = vcmask (!%p1200_p6), 519168  }
 0x15b   : > { %844 = vrot.lane.b32.xlu1 (!%p1200_p6), %v832_v29, %s1458_s25  ;;  %835 = vrot.lane.b32.xlu0 (!%p1200_p6), %v832_v29, %s1459_s26  ;;  %v872_v48 = vsub.s32 (!%p1200_p6), 0, %v871_v2  ;;  %v918_v12 = vld [vmem:[#allocation6 + $0x38] sm:$0xff] (!%p1200_p6)  ;;  %v921_v16 = vld [vmem:[#allocation6 + $0x50] sm:$0xff] (!%p1200_p6)  ;;  %v923_v18 = vld [vmem:[#allocation6 + $0x60] sm:$0xff] (!%p1200_p6) }
 0x15c   : > { %v833_v30 = vld [vmem:[#allocation3] sm:$0x1] (!%p1200_p6)  ;;  %v924_v19 = vld [vmem:[#allocation6 + $0x68] sm:$0xff] (!%p1200_p6)  ;;  %v925_v20 = vld [vmem:[#allocation6 + $0x70] sm:$0xff] (!%p1200_p6) }
 0x15d   : > { %v922_v17 = vld [vmem:[#allocation6 + $0x58] sm:$0xff] (!%p1200_p6) }
 0x15e   : > { %v926_v21 = vld [vmem:[#allocation6 + $0x78] sm:$0xff] (!%p1200_p6) }
 0x15f   : > { %848 = vrot.lane.b32.xlu1 %v833_v30, %s1458_s25  ;;  %840 = vrot.lane.b32.xlu0 %v833_v30, %s1459_s26 }
 0x163   : > { %856 = vrot.lane.b32.xlu1 %v833_v30, %s1460_s27  ;;  %852 = vrot.lane.b32.xlu0 %v832_v29, %s1460_s27 }
 0x1cd   : > { %v845_v31 = vpop.permute.xlu1 %844  ;;  %v836_v32 = vpop.permute.xlu0 %835 }
 0x1ce   : > { %v838_v33 = vadd.f32 %v836_v32, %v832_v29 }
 0x1d0   : > { %v847_v38 = vadd.f32 %v845_v31, %v838_v33 }
 0x1d1   : > { %v849_v34 = vpop.permute.xlu1 %848  ;;  %v841_v35 = vpop.permute.xlu0 %840 }
 0x1d2   : > { %v843_v36 = vadd.f32 %v841_v35, %v833_v30 }
 0x1d4   : > { %v851_v37 = vadd.f32 %v849_v34, %v843_v36 }
 0x1d5   : > { %v857_v39 = vpop.permute.xlu1 %856  ;;  %v853_v40 = vpop.permute.xlu0 %852 }
 0x1d6   : > { %v859_v41 = vadd.f32 %v857_v39, %v851_v37  ;;  %v855_v42 = vadd.f32 %v853_v40, %v847_v38 }
 0x1d8   : > { %v860_v43 = vmul.f32 0.001953125, %v855_v42  ;;  %v861_v61 = vmul.f32 0.001953125, %v859_v41 }
 0x1da   : > { %v862_v44 = vmul.f32 %v860_v43, %v860_v43  ;;  %v867_v50 = vsub.f32 0.0, %v860_v43 }
 0x1dc   : > { %v863_v45 = vsub.f32 %v861_v61, %v862_v44 }
 0x1de   : > { %v864_v49 = vmax.f32 %v863_v45, 0.0 }
 0x1e0   : > { %v865_v46 = vadd.f32 1e-05, %v864_v49 }
 0x1e2   : > { %1431 = vrsqrt.f32 %v865_v46 }
 0x1ec   : > { %v1432_v51 = vpop.eup %1431 }
 0x1ed   : > { %v868_v52 = vmul.f32 %v1432_v51, %v867_v50  ;;  %v873_v53 = vrot.slane %v1432_v51, %v872_v48 }
 0x1ef   : > { %877 = vrot.lane.b32.xlu1 %v873_v53, %s1461_s9  ;;  %874 = vrot.lane.b32.xlu0 %v873_v53, %s1462_s28  ;;  %v895_v54 = vrot.slane %v868_v52, %v872_v48 }
 0x1f3   : > { %880 = vrot.lane.b32.xlu0 %v873_v53, %s1463_s29  ;;  %896 = vrot.lane.b32.xlu1 %v895_v54, %s1462_s28 }
 0x1f7   : > { %899 = vrot.lane.b32.xlu0 %v895_v54, %s1461_s9  ;;  %902 = vrot.lane.b32.xlu1 %v895_v54, %s1463_s29 }
 0x261   : > { %v878_v55 = vpop.permute.xlu1 %877  ;;  %v875_v56 = vpop.permute.xlu0 %874 }
 0x262   : > { %v884_v57 = vsel %vm883_vm4, %v1432_v51, %v875_v56 }
 0x263   : > { %v886_v58 = vsel %vm885_vm5, %v884_v57, %v878_v55 }
 0x265   : > { %v881_v59 = vpop.permute.xlu0 %880  ;;  %v897_v60 = vpop.permute.xlu1 %896 }
 0x266   : > { %v888_v62 = vsel %vm887_vm6, %v886_v58, %v881_v59  ;;  %v905_v63 = vsel %vm883_vm4, %v868_v52, %v897_v60 }
 0x267   : > { %890 = vst.msk [vmem:[#allocation4] sm:$0x1] %vm889_vm7, %v888_v62 }
 0x269   : > { %v900_v0 = vpop.permute.xlu0 %899  ;;  %v903_v1 = vpop.permute.xlu1 %902 }
 0x26a   : > { %v906_v3 = vsel %vm885_vm5, %v905_v63, %v900_v0 }
 0x26b   : > { %v907_v6 = vsel %vm887_vm6, %v906_v3, %v903_v1 }
 0x26c   : > { %908 = vst.msk [vmem:[#allocation5] sm:$0x1] %vm889_vm7, %v907_v6 }
 0x26e   : > { %v1201_v15 = vld [vmem:[#allocation4] ss:$0 sm:$0xff] }
 0x26f   : > { %v934_v22 = vmul.f32 %v1201_v15, %v911_v4  ;;  %v935_v23 = vmul.f32 %v1201_v15, %v912_v5  ;;  %v936_v24 = vmul.f32 %v1201_v15, %v913_v7  ;;  %v937_v25 = vmul.f32 %v1201_v15, %v914_v8 }
 0x270   : > { %v938_v26 = vmul.f32 %v1201_v15, %v915_v9  ;;  %v939_v27 = vmul.f32 %v1201_v15, %v916_v10  ;;  %v940_v28 = vmul.f32 %v1201_v15, %v917_v11  ;;  %v941_v29 = vmul.f32 %v1201_v15, %v918_v12 }
 0x271   : > { %v942_v30 = vmul.f32 %v1201_v15, %v919_v13  ;;  %v943_v31 = vmul.f32 %v1201_v15, %v920_v14  ;;  %v944_v32 = vmul.f32 %v1201_v15, %v921_v16  ;;  %v945_v33 = vmul.f32 %v1201_v15, %v922_v17 }
 0x272   : > { %v946_v34 = vmul.f32 %v1201_v15, %v923_v18  ;;  %v947_v35 = vmul.f32 %v1201_v15, %v924_v19  ;;  %v948_v36 = vmul.f32 %v1201_v15, %v925_v20  ;;  %v949_v37 = vmul.f32 %v1201_v15, %v926_v21 }
 0x273   : > { %v1202_v38 = vld [vmem:[#allocation5] ss:$0 sm:$0xff] }
 0x274   : > { %v957_v39 = vadd.f32 %v1202_v38, %v934_v22  ;;  %v958_v40 = vadd.f32 %v1202_v38, %v935_v23  ;;  %v959_v41 = vadd.f32 %v1202_v38, %v936_v24  ;;  %v960_v42 = vadd.f32 %v1202_v38, %v937_v25 }
 0x275   : > { %v961_v43 = vadd.f32 %v1202_v38, %v938_v26  ;;  %v962_v61 = vadd.f32 %v1202_v38, %v939_v27  ;;  %v963_v44 = vadd.f32 %v1202_v38, %v940_v28  ;;  %v964_v45 = vadd.f32 %v1202_v38, %v941_v29 }
 0x276   : > { %v965_v49 = vadd.f32 %v1202_v38, %v942_v30  ;;  %v966_v46 = vadd.f32 %v1202_v38, %v943_v31  ;;  %v967_v47 = vadd.f32 %v1202_v38, %v944_v32  ;;  %v968_v2 = vadd.f32 %v1202_v38, %v945_v33 }
 0x277   : > { %v969_v48 = vadd.f32 %v1202_v38, %v946_v34  ;;  %v970_v50 = vadd.f32 %v1202_v38, %v947_v35  ;;  %v971_v51 = vadd.f32 %v1202_v38, %v948_v36  ;;  %v972_v52 = vadd.f32 %v1202_v38, %v949_v37 }
 0x278   : > { %v973_v53 = vmax.f32 %v957_v39, 0.0  ;;  %v974_v54 = vmax.f32 %v958_v40, 0.0  ;;  %v975_v55 = vmax.f32 %v959_v41, 0.0  ;;  %v976_v56 = vmax.f32 %v960_v42, 0.0 }
 0x279   : > { %v977_v57 = vmax.f32 %v961_v43, 0.0  ;;  %v978_v58 = vmax.f32 %v962_v61, 0.0  ;;  %v979_v59 = vmax.f32 %v963_v44, 0.0  ;;  %v980_v60 = vmax.f32 %v964_v45, 0.0 }
 0x27a   : > { %v981_v62 = vmax.f32 %v965_v49, 0.0  ;;  %v982_v63 = vmax.f32 %v966_v46, 0.0  ;;  %v983_v0 = vmax.f32 %v967_v47, 0.0  ;;  %v984_v1 = vmax.f32 %v968_v2, 0.0 }
 0x27b   : > { %v985_v3 = vmax.f32 %v969_v48, 0.0  ;;  %v986_v4 = vmax.f32 %v970_v50, 0.0  ;;  %v987_v5 = vmax.f32 %v971_v51, 0.0  ;;  %v988_v6 = vmax.f32 %v972_v52, 0.0 }
 0x27c   : > { %v1224_v7 = vpack.c.bf16 %v973_v53, %v973_v53  ;;  %v1225_v8 = vpack.c.bf16 %v974_v54, %v974_v54  ;;  %v1226_v9 = vpack.c.bf16 %v975_v55, %v975_v55  ;;  %v1227_v10 = vpack.c.bf16 %v976_v56, %v976_v56 }
 0x27d   : > { %v1228_v11 = vpack.c.bf16 %v977_v57, %v977_v57  ;;  %v1229_v12 = vpack.c.bf16 %v978_v58, %v978_v58  ;;  %v1230_v13 = vpack.c.bf16 %v979_v59, %v979_v59  ;;  %v1231_v14 = vpack.c.bf16 %v980_v60, %v980_v60 }
 0x27e   : > { %v1232_v15 = vpack.c.bf16 %v981_v62, %v981_v62  ;;  %v1233_v16 = vpack.c.bf16 %v982_v63, %v982_v63  ;;  %v1234_v17 = vpack.c.bf16 %v983_v0, %v983_v0  ;;  %v1235_v18 = vpack.c.bf16 %v984_v1, %v984_v1  ;;  %1054 = vst.msk [vmem:[%s1773_s2] sm:$0xf] %vm1053_vm8, %v1224_v7 }
 0x27f   : > { %1055 = vst.msk [vmem:[%s1773_s2 + $0x4] sm:$0xf] %vm1053_vm8, %v1225_v8  ;;  %1056 = vst.msk [vmem:[%s1773_s2 + $0x8] sm:$0xf] %vm1053_vm8, %v1226_v9  ;;  %v1236_v19 = vpack.c.bf16 %v985_v3, %v985_v3  ;;  %v1237_v20 = vpack.c.bf16 %v986_v4, %v986_v4  ;;  %v1238_v21 = vpack.c.bf16 %v987_v5, %v987_v5 }
 0x280   : > { %1057 = vst.msk [vmem:[%s1773_s2 + $0xc] sm:$0xf] %vm1053_vm8, %v1227_v10  ;;  %v1239_v22 = vpack.c.bf16 %v988_v6, %v988_v6  ;;  %1058 = vst.msk [vmem:[%s1773_s2 + $0x10] sm:$0xf] %vm1053_vm8, %v1228_v11 }
 0x281   : > { %1059 = vst.msk [vmem:[%s1773_s2 + $0x14] sm:$0xf] %vm1053_vm8, %v1229_v12  ;;  %1060 = vst.msk [vmem:[%s1773_s2 + $0x18] sm:$0xf] %vm1053_vm8, %v1230_v13 }
 0x282   : > { %1061 = vst.msk [vmem:[%s1773_s2 + $0x1c] sm:$0xf] %vm1053_vm8, %v1231_v14  ;;  %1062 = vst.msk [vmem:[%s1773_s2 + $0x20] sm:$0xf] %vm1053_vm8, %v1232_v15 }
 0x283   : > { %1063 = vst.msk [vmem:[%s1773_s2 + $0x24] sm:$0xf] %vm1053_vm8, %v1233_v16  ;;  %1064 = vst.msk [vmem:[%s1773_s2 + $0x28] sm:$0xf] %vm1053_vm8, %v1234_v17 }
 0x284   : > { %1065 = vst.msk [vmem:[%s1773_s2 + $0x2c] sm:$0xf] %vm1053_vm8, %v1235_v18  ;;  %1066 = vst.msk [vmem:[%s1773_s2 + $0x30] sm:$0xf] %vm1053_vm8, %v1236_v19 }
 0x285   : > { %1067 = vst.msk [vmem:[%s1773_s2 + $0x34] sm:$0xf] %vm1053_vm8, %v1237_v20  ;;  %1068 = vst.msk [vmem:[%s1773_s2 + $0x38] sm:$0xf] %vm1053_vm8, %v1238_v21 }
 0x286   : > { %1069 = vst.msk [vmem:[%s1773_s2 + $0x3c] sm:$0xf] %vm1053_vm8, %v1239_v22 }
 0x287 PF: > { %s12_s11 = sadd.s32 1, %s1455_s11   ;;  %s1774_s9 = smov %s1451_s10 }
 0x288   : > { %p9_p7 = scmp.ge.s32.totalorder %s12_s11, 4   ;;  %s1775_s10 = smov %s1777_s12 }
 0x28a   :  { %11 = sbr.rel (!%p9_p7) target bundleno = 2 (0x2), region = 76 }

// kernel: generator_forward.8
= control target key start
LH: loop header
LB: loop body
LE: loop exit
PB: predicated region body
PF: predicated region fallthrough
CT: control target
= control target key end

     0   :  { %s2610_s9 = smov 0   ;;  %s2612_s10 = smov 0   ;;  %s4245_s0 = inlined_call_operand.vmem [shape: bf16[512,144], index: 0, kind: input, shape index: {}]   ;;  %s4246_s1 = inlined_call_operand.vmem [shape: bf16[144,32], index: 1, kind: input, shape index: {}]   ;;  %s4247_s2 = inlined_call_operand.vmem [shape: bf16[512,32], index: 2, kind: output, shape index: {}]  }
   0x1   :  { %s2614_s11 = smov 0  }
   0x2 LB: > { %s24_s12 = sadd.s32 1, %s2581_s10  ;;  %p2162_p0 = scmp.ge.s32.totalorder %s2585_s11, 1  ;;  %s2585_s11 = sphi %s2614_s11, %s12_s11   ;;  %s2581_s10 = sphi %s2612_s10, %s4392_s10   ;;  %s2577_s9 = sphi %s2610_s9, %s4391_s9  }
   0x3   : > { %p26_p1 = scmp.ge.s32.totalorder %s24_s12, 2  ;;  %p136_p2 = scmp.lt.s32.totalorder %s2585_s11, 3 }
   0x5   : > { %s4394_s12 = smov (%p26_p1, %s24_s12), 0  ;;  %p137_p3 = pnand %p2162_p0, %p136_p2 }
   0x6   : > { %p182_p4 = scmp.eq.s32.totalorder (!%p137_p3), %s2577_s9, 0 }
   0x7   : > { %140 = sbr.rel (%p137_p3) target bundleno = 836 (0x344), region = 28 }
   0xe   : > { %187 = sbr.rel (!%p182_p4) target bundleno = 21 (0x15), region = 32  ;;  %vm188_vm0 = vcmask (%p182_p4), 253952   ;;  %v2587_v0 = vmov (%p182_p4), 0.0  }
   0xf   : > { %189 = vst.msk [vmem:[#allocation2] sm:$0x1] (%p182_p4), %vm188_vm0, %v2587_v0  ;;  %190 = vst.msk [vmem:[#allocation3] sm:$0x1] (%p182_p4), %vm188_vm0, %v2587_v0 }
  0x15 PF: > { %p2164_p5 = scmp.ne.s32.totalorder %s2577_s9, 0 }
  0x16   : > { %v2456_v1 = vld [vmem:[%s4246_s1] sm:$0xff] (!%p2164_p5)   ;;  %v2588_v2 = vmov (!%p2164_p5), 0   ;;  %v2457_v3 = vld [vmem:[%s4246_s1 + $0x8] sm:$0xff] (!%p2164_p5)   ;;  %v2458_v4 = vld [vmem:[%s4246_s1 + $0x10] sm:$0xff] (!%p2164_p5)   ;;  %vm618_vm1 = vcmask (!%p2164_p5), 130048   ;;  %vm1005_vm2 = vcmask (!%p2164_p5), 261120  }
  0x17   : > { %193 = sbr.rel (%p2164_p5) target bundleno = 477 (0x1dd), region = 36  ;;  %715 = vmatprep.subr.bf16.mxu0 (!%p2164_p5), %v2588_v2  ;;  %2406 = vmatprep.subr.bf16.mxu1 (!%p2164_p5), %v2588_v2  ;;  %v2459_v5 = vld [vmem:[%s4246_s1 + $0x18] sm:$0xff] (!%p2164_p5)   ;;  %v2467_v6 = vld [vmem:[%s4245_s0 + $0x4] ss:$8 sps:$4 sm:$0xff] (!%p2164_p5)   ;;  %v2462_v10 = vld [vmem:[%s4246_s1 + $0x30] sm:$0xff] (!%p2164_p5)   ;;  %vm1140_vm3 = vcmask (!%p2164_p5), 253952  }
  0x18   : > { %716 = vmatpush1.bf16.msra.mxu0 (!%p2164_p5), %v2456_v1  ;;  %2415 = vmatpush1.bf16.msra.mxu1 (!%p2164_p5), %v2456_v1  ;;  %v2460_v7 = vld [vmem:[%s4246_s1 + $0x20] sm:$0xff] (!%p2164_p5)   ;;  %v2461_v8 = vld [vmem:[%s4246_s1 + $0x28] sm:$0xff] (!%p2164_p5)   ;;  %v2463_v11 = vld [vmem:[%s4246_s1 + $0x38] sm:$0xff] (!%p2164_p5)  }
  0x19   : > { %717 = vmatprep.subr.bf16.mxu0 (!%p2164_p5), %v2588_v2  ;;  %2407 = vmatprep.subr.bf16.mxu1 (!%p2164_p5), %v2588_v2  ;;  %v2491_v9 = vld [vmem:[%s4245_s0 + $0x104] ss:$8 sps:$4 sm:$0xff] (!%p2164_p5)   ;;  %v2465_v13 = vld [vmem:[%s4245_s0] ss:$8 sps:$4 sm:$0xff] (!%p2164_p5)   ;;  %v2468_v14 = vld [vmem:[%s4245_s0 + $0x14] ss:$8 sps:$4 sm:$0xff] (!%p2164_p5)  }
  0x1a   : > { %2238 = vmatprep.mubr.msk.bf16.mxu0 (!%p2164_p5), %vm618_vm1, %v2467_v6  ;;  %2254 = vmatprep.mubr.msk.bf16.mxu1 (!%p2164_p5), %vm618_vm1, %v2491_v9  ;;  %v2464_v12 = vld [vmem:[%s4246_s1 + $0x40] sm:$0xff] (!%p2164_p5)   ;;  %v2495_v16 = vld [vmem:[%s4245_s0 + $0x114] ss:$8 sps:$4 sm:$0xff] (!%p2164_p5)   ;;  %v2470_v17 = vld [vmem:[%s4245_s0 + $0x10] ss:$8 sps:$4 sm:$0xff] (!%p2164_p5)  }
  0x1b   : > { %v2489_v15 = vld [vmem:[%s4245_s0 + $0x100] ss:$8 sps:$4 sm:$0xff] (!%p2164_p5)   ;;  %v2471_v18 = vld [vmem:[%s4245_s0 + $0x24] ss:$8 sps:$4 sm:$0xff] (!%p2164_p5)   ;;  %v2497_v19 = vld [vmem:[%s4245_s0 + $0x110] ss:$8 sps:$4 sm:$0xff] (!%p2164_p5)  }
  0x1c   : > { %718 = vmatpush1.bf16.msra.mxu0 (!%p2164_p5), %v2457_v3  ;;  %2416 = vmatpush1.bf16.msra.mxu1 (!%p2164_p5), %v2457_v3  ;;  %v2501_v20 = vld [vmem:[%s4245_s0 + $0x124] ss:$8 sps:$4 sm:$0xff] (!%p2164_p5)   ;;  %v2473_v21 = vld [vmem:[%s4245_s0 + $0x20] ss:$8 sps:$4 sm:$0xff] (!%p2164_p5)   ;;  %v2474_v22 = vld [vmem:[%s4245_s0 + $0x34] ss:$8 sps:$4 sm:$0xff] (!%p2164_p5)  }
  0x1d   : > { %719 = vmatprep.subr.bf16.mxu0 (!%p2164_p5), %v2588_v2  ;;  %2408 = vmatprep.subr.bf16.mxu1 (!%p2164_p5), %v2588_v2  ;;  %v2503_v23 = vld [vmem:[%s4245_s0 + $0x120] ss:$8 sps:$4 sm:$0xff] (!%p2164_p5)   ;;  %v2507_v24 = vld [vmem:[%s4245_s0 + $0x134] ss:$8 sps:$4 sm:$0xff] (!%p2164_p5)   ;;  %v2476_v25 = vld [vmem:[%s4245_s0 + $0x30] ss:$8 sps:$4 sm:$0xff] (!%p2164_p5)  }
  0x1e   : > { %v2509_v26 = vld [vmem:[%s4245_s0 + $0x130] ss:$8 sps:$4 sm:$0xff]   ;;  %v2477_v27 = vld [vmem:[%s4245_s0 + $0x44] ss:$8 sps:$4 sm:$0xff]   ;;  %v2479_v29 = vld [vmem:[%s4245_s0 + $0x40] ss:$8 sps:$4 sm:$0xff]  }
  0x1f   : > { %v2513_v28 = vld [vmem:[%s4245_s0 + $0x144] ss:$8 sps:$4 sm:$0xff]   ;;  %v2515_v30 = vld [vmem:[%s4245_s0 + $0x140] ss:$8 sps:$4 sm:$0xff]   ;;  %v2480_v31 = vld [vmem:[%s4245_s0 + $0x54] ss:$8 sps:$4 sm:$0xff]  }
  0x20   : > { %720 = vmatpush1.bf16.msra.mxu0 %v2458_v4  ;;  %2417 = vmatpush1.bf16.msra.mxu1 %v2458_v4  ;;  %v2519_v32 = vld [vmem:[%s4245_s0 + $0x154] ss:$8 sps:$4 sm:$0xff]   ;;  %v2482_v33 = vld [vmem:[%s4245_s0 + $0x50] ss:$8 sps:$4 sm:$0xff]   ;;  %v2483_v35 = vld [vmem:[%s4245_s0 + $0x64] ss:$8 sps:$4 sm:$0xff]  }
  0x21   : > { %721 = vmatprep.subr.bf16.mxu0 %v2588_v2  ;;  %2409 = vmatprep.subr.bf16.mxu1 %v2588_v2  ;;  %v2521_v34 = vld [vmem:[%s4245_s0 + $0x150] ss:$8 sps:$4 sm:$0xff]   ;;  %v2525_v36 = vld [vmem:[%s4245_s0 + $0x164] ss:$8 sps:$4 sm:$0xff]   ;;  %v2485_v37 = vld [vmem:[%s4245_s0 + $0x60] ss:$8 sps:$4 sm:$0xff]  }
  0x22   : > { %v2527_v38 = vld [vmem:[%s4245_s0 + $0x160] ss:$8 sps:$4 sm:$0xff]   ;;  %v2486_v39 = vld [vmem:[%s4245_s0 + $0x74] ss:$8 sps:$4 sm:$0xff]   ;;  %v2488_v41 = vld [vmem:[%s4245_s0 + $0x70] ss:$8 sps:$4 sm:$0xff]  }
  0x23   : > { %v2531_v40 = vld [vmem:[%s4245_s0 + $0x174] ss:$8 sps:$4 sm:$0xff]   ;;  %v2533_v42 = vld [vmem:[%s4245_s0 + $0x170] ss:$8 sps:$4 sm:$0xff]   ;;  %v2492_v43 = vld [vmem:[%s4245_s0 + $0x84] ss:$8 sps:$4 sm:$0xff]  }
  0x24   : > { %722 = vmatpush1.bf16.msra.mxu0 %v2459_v5  ;;  %2418 = vmatpush1.bf16.msra.mxu1 %v2459_v5  ;;  %v2537_v44 = vld [vmem:[%s4245_s0 + $0x184] ss:$8 sps:$4 sm:$0xff]   ;;  %v2494_v45 = vld [vmem:[%s4245_s0 + $0x80] ss:$8 sps:$4 sm:$0xff]   ;;  %v2498_v47 = vld [vmem:[%s4245_s0 + $0x94] ss:$8 sps:$4 sm:$0xff]  }
  0x25   : > { %723 = vmatprep.subr.bf16.mxu0 %v2588_v2  ;;  %2410 = vmatprep.subr.bf16.mxu1 %v2588_v2  ;;  %v2539_v46 = vld [vmem:[%s4245_s0 + $0x180] ss:$8 sps:$4 sm:$0xff]   ;;  %v2540_v48 = vld [vmem:[%s4245_s0 + $0x194] ss:$8 sps:$4 sm:$0xff]   ;;  %v2500_v49 = vld [vmem:[%s4245_s0 + $0x90] ss:$8 sps:$4 sm:$0xff]  }
  0x26   : > { %v2542_v50 = vld [vmem:[%s4245_s0 + $0x190] ss:$8 sps:$4 sm:$0xff]   ;;  %v2504_v51 = vld [vmem:[%s4245_s0 + $0xa4] ss:$8 sps:$4 sm:$0xff]   ;;  %v2506_v53 = vld [vmem:[%s4245_s0 + $0xa0] ss:$8 sps:$4 sm:$0xff]  }
  0x27   : > { %v2543_v52 = vld [vmem:[%s4245_s0 + $0x1a4] ss:$8 sps:$4 sm:$0xff]   ;;  %v2545_v54 = vld [vmem:[%s4245_s0 + $0x1a0] ss:$8 sps:$4 sm:$0xff]   ;;  %v2510_v55 = vld [vmem:[%s4245_s0 + $0xb4] ss:$8 sps:$4 sm:$0xff]  }
  0x28   : > { %724 = vmatpush1.bf16.msra.mxu0 %v2460_v7  ;;  %2419 = vmatpush1.bf16.msra.mxu1 %v2460_v7  ;;  %v2546_v56 = vld [vmem:[%s4245_s0 + $0x1b4] ss:$8 sps:$4 sm:$0xff]   ;;  %v2512_v57 = vld [vmem:[%s4245_s0 + $0xb0] ss:$8 sps:$4 sm:$0xff]   ;;  %v2516_v59 = vld [vmem:[%s4245_s0 + $0xc4] ss:$8 sps:$4 sm:$0xff]  }
  0x29   : > { %725 = vmatprep.subr.bf16.mxu0 %v2588_v2  ;;  %2411 = vmatprep.subr.bf16.mxu1 %v2588_v2  ;;  %v2548_v58 = vld [vmem:[%s4245_s0 + $0x1b0] ss:$8 sps:$4 sm:$0xff]   ;;  %v2549_v60 = vld [vmem:[%s4245_s0 + $0x1c4] ss:$8 sps:$4 sm:$0xff]   ;;  %v2518_v61 = vld [vmem:[%s4245_s0 + $0xc0] ss:$8 sps:$4 sm:$0xff]  }
  0x2a   : > { %v2551_v62 = vld [vmem:[%s4245_s0 + $0x1c0] ss:$8 sps:$4 sm:$0xff]   ;;  %v2522_v63 = vld [vmem:[%s4245_s0 + $0xd4] ss:$8 sps:$4 sm:$0xff]   ;;  %v2524_v1 = vld [vmem:[%s4245_s0 + $0xd0] ss:$8 sps:$4 sm:$0xff]  }
  0x2b   : > { %v2552_v0 = vld [vmem:[%s4245_s0 + $0x1d4] ss:$8 sps:$4 sm:$0xff]   ;;  %v2528_v3 = vld [vmem:[%s4245_s0 + $0xe4] ss:$8 sps:$4 sm:$0xff]   ;;  %v2530_v5 = vld [vmem:[%s4245_s0 + $0xe0] ss:$8 sps:$4 sm:$0xff]  }
  0x2c   : > { %726 = vmatpush1.bf16.msra.mxu0 %v2461_v8  ;;  %2420 = vmatpush1.bf16.msra.mxu1 %v2461_v8  ;;  %v2555_v4 = vld [vmem:[%s4245_s0 + $0x1e4] ss:$8 sps:$4 sm:$0xff]   ;;  %v2557_v6 = vld [vmem:[%s4245_s0 + $0x1e0] ss:$8 sps:$4 sm:$0xff]   ;;  %v2534_v7 = vld [vmem:[%s4245_s0 + $0xf4] ss:$8 sps:$4 sm:$0xff]  }
  0x2d   : > { %727 = vmatprep.subr.bf16.mxu0 %v2588_v2  ;;  %2412 = vmatprep.subr.bf16.mxu1 %v2588_v2  ;;  %v2558_v8 = vld [vmem:[%s4245_s0 + $0x1f4] ss:$8 sps:$4 sm:$0xff]   ;;  %v2536_v9 = vld [vmem:[%s4245_s0 + $0xf0] ss:$8 sps:$4 sm:$0xff]  }
  0x30   : > { %728 = vmatpush1.bf16.msra.mxu0 %v2462_v10  ;;  %2421 = vmatpush1.bf16.msra.mxu1 %v2462_v10  ;;  %v2560_v10 = vld [vmem:[%s4245_s0 + $0x1f0] ss:$8 sps:$4 sm:$0xff]  }
  0x31   : > { %729 = vmatprep.subr.bf16.mxu0 %v2588_v2  ;;  %2413 = vmatprep.subr.bf16.mxu1 %v2588_v2 }
  0x34   : > { %730 = vmatpush1.bf16.msra.mxu0 %v2463_v11  ;;  %2422 = vmatpush1.bf16.msra.mxu1 %v2463_v11 }
  0x35   : > { %731 = vmatprep.subr.bf16.mxu0 %v2588_v2  ;;  %2414 = vmatprep.subr.bf16.mxu1 %v2588_v2  ;;  %v2554_v2 = vld [vmem:[%s4245_s0 + $0x1d0] ss:$8 sps:$4 sm:$0xff]  }
  0x38   : > { %732 = vmatpush1.bf16.msra.mxu0 %v2464_v12  ;;  %2423 = vmatpush1.bf16.msra.mxu1 %v2464_v12 }
  0x3b   : > { %748 = vmatmul.mubr.bf16.vlgmr.msra.gmra.mrb[0].mxu0 %v2465_v13  ;;  %876 = vmatmul.mubr.bf16.vlgmr.msra.gmra.mrb[0].mxu1 %v2489_v15 }
  0x3c   : > { %2239 = vmatprep.mubr.msk.bf16.mxu0 %vm618_vm1, %v2468_v14  ;;  %2255 = vmatprep.mubr.msk.bf16.mxu1 %vm618_vm1, %v2495_v16 }
  0x43   : > { %756 = vmatmul.mubr.bf16.gmra.mrb[4].mxu0 %v2470_v17  ;;  %884 = vmatmul.mubr.bf16.gmra.mrb[4].mxu1 %v2497_v19 }
  0x44   : > { %2240 = vmatprep.mubr.msk.bf16.mxu0 %vm618_vm1, %v2471_v18  ;;  %2256 = vmatprep.mubr.msk.bf16.mxu1 %vm618_vm1, %v2501_v20 }
  0x4b   : > { %764 = vmatmul.mubr.bf16.gmra.mrb[8].mxu0 %v2473_v21  ;;  %892 = vmatmul.mubr.bf16.gmra.mrb[8].mxu1 %v2503_v23 }
  0x4c   : > { %2241 = vmatprep.mubr.msk.bf16.mxu0 %vm618_vm1, %v2474_v22  ;;  %2257 = vmatprep.mubr.msk.bf16.mxu1 %vm618_vm1, %v2507_v24 }
  0x53   : > { %772 = vmatmul.mubr.bf16.gmra.mrb[12].mxu0 %v2476_v25  ;;  %900 = vmatmul.mubr.bf16.gmra.mrb[12].mxu1 %v2509_v26 }
  0x54   : > { %2242 = vmatprep.mubr.msk.bf16.mxu0 %vm618_vm1, %v2477_v27  ;;  %2258 = vmatprep.mubr.msk.bf16.mxu1 %vm618_vm1, %v2513_v28 }
  0x5b   : > { %780 = vmatmul.mubr.bf16.gmra.mrb[16].mxu0 %v2479_v29  ;;  %908 = vmatmul.mubr.bf16.gmra.mrb[16].mxu1 %v2515_v30 }
  0x5c   : > { %2243 = vmatprep.mubr.msk.bf16.mxu0 %vm618_vm1, %v2480_v31  ;;  %2259 = vmatprep.mubr.msk.bf16.mxu1 %vm618_vm1, %v2519_v32 }
  0x63   : > { %788 = vmatmul.mubr.bf16.gmra.mrb[20].mxu0 %v2482_v33  ;;  %916 = vmatmul.mubr.bf16.gmra.mrb[20].mxu1 %v2521_v34 }
  0x64   : > { %2244 = vmatprep.mubr.msk.bf16.mxu0 %vm618_vm1, %v2483_v35  ;;  %2260 = vmatprep.mubr.msk.bf16.mxu1 %vm618_vm1, %v2525_v36 }
  0x6b   : > { %796 = vmatmul.mubr.bf16.gmra.mrb[24].mxu0 %v2485_v37  ;;  %924 = vmatmul.mubr.bf16.gmra.mrb[24].mxu1 %v2527_v38 }
  0x6c   : > { %2245 = vmatprep.mubr.msk.bf16.mxu0 %vm618_vm1, %v2486_v39  ;;  %2261 = vmatprep.mubr.msk.bf16.mxu1 %vm618_vm1, %v2531_v40 }
  0x73   : > { %804 = vmatmul.mubr.bf16.gmra.mrb[28].mxu0 %v2488_v41  ;;  %932 = vmatmul.mubr.bf16.gmra.mrb[28].mxu1 %v2533_v42 }
  0x74   : > { %2246 = vmatprep.mubr.msk.bf16.mxu0 %vm618_vm1, %v2492_v43  ;;  %2262 = vmatprep.mubr.msk.bf16.mxu1 %vm618_vm1, %v2537_v44 }
  0x7b   : > { %812 = vmatmul.mubr.bf16.gmra.mrb[32].mxu0 %v2494_v45  ;;  %940 = vmatmul.mubr.bf16.gmra.mrb[32].mxu1 %v2539_v46 }
  0x7c   : > { %2247 = vmatprep.mubr.msk.bf16.mxu0 %vm618_vm1, %v2498_v47  ;;  %2263 = vmatprep.mubr.msk.bf16.mxu1 %vm618_vm1, %v2540_v48 }
  0x83   : > { %820 = vmatmul.mubr.bf16.gmra.mrb[36].mxu0 %v2500_v49  ;;  %948 = vmatmul.mubr.bf16.gmra.mrb[36].mxu1 %v2542_v50 }
  0x84   : > { %2248 = vmatprep.mubr.msk.bf16.mxu0 %vm618_vm1, %v2504_v51  ;;  %2264 = vmatprep.mubr.msk.bf16.mxu1 %vm618_vm1, %v2543_v52 }
  0x8b   : > { %828 = vmatmul.mubr.bf16.gmra.mrb[40].mxu0 %v2506_v53  ;;  %956 = vmatmul.mubr.bf16.gmra.mrb[40].mxu1 %v2545_v54 }
  0x8c   : > { %2249 = vmatprep.mubr.msk.bf16.mxu0 %vm618_vm1, %v2510_v55  ;;  %2265 = vmatprep.mubr.msk.bf16.mxu1 %vm618_vm1, %v2546_v56 }
  0x93   : > { %836 = vmatmul.mubr.bf16.gmra.mrb[44].mxu0 %v2512_v57  ;;  %964 = vmatmul.mubr.bf16.gmra.mrb[44].mxu1 %v2548_v58 }
  0x94   : > { %2250 = vmatprep.mubr.msk.bf16.mxu0 %vm618_vm1, %v2516_v59  ;;  %2266 = vmatprep.mubr.msk.bf16.mxu1 %vm618_vm1, %v2549_v60 }
  0x9b   : > { %844 = vmatmul.mubr.bf16.gmra.mrb[48].mxu0 %v2518_v61  ;;  %972 = vmatmul.mubr.bf16.gmra.mrb[48].mxu1 %v2551_v62 }
  0x9c   : > { %2251 = vmatprep.mubr.msk.bf16.mxu0 %vm618_vm1, %v2522_v63  ;;  %2267 = vmatprep.mubr.msk.bf16.mxu1 %vm618_vm1, %v2552_v0 }
  0xa3   : > { %852 = vmatmul.mubr.bf16.gmra.mrb[52].mxu0 %v2524_v1  ;;  %980 = vmatmul.mubr.bf16.gmra.mrb[52].mxu1 %v2554_v2 }
  0xa4   : > { %2252 = vmatprep.mubr.msk.bf16.mxu0 %vm618_vm1, %v2528_v3  ;;  %2268 = vmatprep.mubr.msk.bf16.mxu1 %vm618_vm1, %v2555_v4 }
  0xab   : > { %860 = vmatmul.mubr.bf16.gmra.mrb[56].mxu0 %v2530_v5  ;;  %988 = vmatmul.mubr.bf16.gmra.mrb[56].mxu1 %v2557_v6 }
  0xac   : > { %2253 = vmatprep.mubr.msk.bf16.mxu0 %vm618_vm1, %v2534_v7  ;;  %2269 = vmatprep.mubr.msk.bf16.mxu1 %vm618_vm1, %v2558_v8 }
  0xb3   : > { %868 = vmatmul.mubr.bf16.gmra.mrb[60].mxu0 %v2536_v9  ;;  %996 = vmatmul.mubr.bf16.gmra.mrb[60].mxu1 %v2560_v10 }
 0x10e   : > { %v749_v11 = vpop.f32.mrb[0].mxu0  ;;  %v2883_v12 = vpop.f32.mrb[0].mxu1 }
 0x10f   : > { %v1143_v13 = vmul.f32 %v749_v11, %v749_v11  ;;  %1344 = vst.msk [vmem:[#allocation6] sm:$0xff] %vm1005_vm2, %v749_v11  ;;  %v751_v14 = vpop.f32.mrb[1].mxu0  ;;  %1376 = vst.msk [vmem:[#allocation6 + $0x100] sm:$0xff] %vm1005_vm2, %v2883_v12  ;;  %v879_v15 = vpop.f32.mrb[1].mxu1  ;;  %v1006_v18 = vsel %vm1005_vm2, %v749_v11, 0.0 }
 0x110   : > { %v752_v16 = vpop.f32.mrb[2].mxu0  ;;  %v2888_v17 = vpop.f32.mrb[2].mxu1 }
 0x111   : > { %v1007_v19 = vsel %vm1005_vm2, %v752_v16, 0.0  ;;  %v1144_v20 = vmul.f32 %v752_v16, %v752_v16  ;;  %1345 = vst.msk [vmem:[#allocation6 + $0x8] sm:$0xff] %vm1005_vm2, %v752_v16  ;;  %v754_v21 = vpop.f32.mrb[3].mxu0  ;;  %1377 = vst.msk [vmem:[#allocation6 + $0x108] sm:$0xff] %vm1005_vm2, %v2888_v17  ;;  %v882_v22 = vpop.f32.mrb[3].mxu1  ;;  %v1207_v24 = vsel %vm1005_vm2, %v1143_v13, 0.0 }
 0x112   : > { %v1008_v23 = vadd.f32 %v1007_v19, %v1006_v18 }
 0x113   : > { %v1208_v25 = vsel %vm1005_vm2, %v1144_v20, 0.0 }
 0x114   : > { %v1209_v26 = vadd.f32 %v1208_v25, %v1207_v24 }
 0x116   : > { %v757_v27 = vpop.f32.mrb[4].mxu0  ;;  %v2897_v28 = vpop.f32.mrb[4].mxu1 }
 0x117   : > { %v1009_v29 = vsel %vm1005_vm2, %v757_v27, 0.0  ;;  %v1145_v30 = vmul.f32 %v757_v27, %v757_v27  ;;  %1346 = vst.msk [vmem:[#allocation6 + $0x10] sm:$0xff] %vm1005_vm2, %v757_v27  ;;  %v759_v31 = vpop.f32.mrb[5].mxu0  ;;  %1378 = vst.msk [vmem:[#allocation6 + $0x110] sm:$0xff] %vm1005_vm2, %v2897_v28  ;;  %v887_v32 = vpop.f32.mrb[5].mxu1 }
 0x118   : > { %v1010_v33 = vadd.f32 %v1009_v29, %v1008_v23  ;;  %v760_v34 = vpop.f32.mrb[6].mxu0  ;;  %v2903_v35 = vpop.f32.mrb[6].mxu1 }
 0x119   : > { %v1210_v36 = vsel %vm1005_vm2, %v1145_v30, 0.0  ;;  %v1011_v37 = vsel %vm1005_vm2, %v760_v34, 0.0  ;;  %v1146_v38 = vmul.f32 %v760_v34, %v760_v34  ;;  %1347 = vst.msk [vmem:[#allocation6 + $0x18] sm:$0xff] %vm1005_vm2, %v760_v34  ;;  %v762_v39 = vpop.f32.mrb[7].mxu0  ;;  %1379 = vst.msk [vmem:[#allocation6 + $0x118] sm:$0xff] %vm1005_vm2, %v2903_v35  ;;  %v890_v40 = vpop.f32.mrb[7].mxu1 }
 0x11a   : > { %v1211_v41 = vadd.f32 %v1210_v36, %v1209_v26  ;;  %v1012_v42 = vadd.f32 %v1011_v37, %v1010_v33 }
 0x11b   : > { %v1212_v43 = vsel %vm1005_vm2, %v1146_v38, 0.0 }
 0x11c   : > { %v1213_v44 = vadd.f32 %v1212_v43, %v1211_v41 }
 0x11e   : > { %v765_v45 = vpop.f32.mrb[8].mxu0  ;;  %v2911_v46 = vpop.f32.mrb[8].mxu1 }
 0x11f   : > { %v1013_v47 = vsel %vm1005_vm2, %v765_v45, 0.0  ;;  %v1147_v48 = vmul.f32 %v765_v45, %v765_v45  ;;  %1348 = vst.msk [vmem:[#allocation6 + $0x20] sm:$0xff] %vm1005_vm2, %v765_v45  ;;  %v767_v49 = vpop.f32.mrb[9].mxu0  ;;  %1380 = vst.msk [vmem:[#allocation6 + $0x120] sm:$0xff] %vm1005_vm2, %v2911_v46  ;;  %v895_v50 = vpop.f32.mrb[9].mxu1 }
 0x120   : > { %v1014_v51 = vadd.f32 %v1013_v47, %v1012_v42  ;;  %v768_v52 = vpop.f32.mrb[10].mxu0  ;;  %v2917_v53 = vpop.f32.mrb[10].mxu1 }
 0x121   : > { %v1214_v54 = vsel %vm1005_vm2, %v1147_v48, 0.0  ;;  %v1015_v55 = vsel %vm1005_vm2, %v768_v52, 0.0  ;;  %v1148_v56 = vmul.f32 %v768_v52, %v768_v52  ;;  %1349 = vst.msk [vmem:[#allocation6 + $0x28] sm:$0xff] %vm1005_vm2, %v768_v52  ;;  %v770_v57 = vpop.f32.mrb[11].mxu0  ;;  %1381 = vst.msk [vmem:[#allocation6 + $0x128] sm:$0xff] %vm1005_vm2, %v2917_v53  ;;  %v898_v58 = vpop.f32.mrb[11].mxu1 }
 0x122   : > { %v1215_v59 = vadd.f32 %v1214_v54, %v1213_v44  ;;  %v1016_v60 = vadd.f32 %v1015_v55, %v1014_v51 }
 0x123   : > { %v1216_v61 = vsel %vm1005_vm2, %v1148_v56, 0.0 }
 0x124   : > { %v1217_v62 = vadd.f32 %v1216_v61, %v1215_v59 }
 0x126   : > { %v773_v63 = vpop.f32.mrb[12].mxu0  ;;  %v2925_v0 = vpop.f32.mrb[12].mxu1 }
 0x127   : > { %v1017_v1 = vsel %vm1005_vm2, %v773_v63, 0.0  ;;  %v1149_v2 = vmul.f32 %v773_v63, %v773_v63  ;;  %1350 = vst.msk [vmem:[#allocation6 + $0x30] sm:$0xff] %vm1005_vm2, %v773_v63  ;;  %v775_v3 = vpop.f32.mrb[13].mxu0  ;;  %1382 = vst.msk [vmem:[#allocation6 + $0x130] sm:$0xff] %vm1005_vm2, %v2925_v0  ;;  %v903_v4 = vpop.f32.mrb[13].mxu1 }
 0x128   : > { %v1018_v5 = vadd.f32 %v1017_v1, %v1016_v60  ;;  %v776_v6 = vpop.f32.mrb[14].mxu0  ;;  %v2931_v7 = vpop.f32.mrb[14].mxu1 }
 0x129   : > { %v1218_v8 = vsel %vm1005_vm2, %v1149_v2, 0.0  ;;  %v1019_v9 = vsel %vm1005_vm2, %v776_v6, 0.0  ;;  %v1150_v10 = vmul.f32 %v776_v6, %v776_v6  ;;  %1351 = vst.msk [vmem:[#allocation6 + $0x38] sm:$0xff] %vm1005_vm2, %v776_v6  ;;  %v778_v11 = vpop.f32.mrb[15].mxu0  ;;  %1383 = vst.msk [vmem:[#allocation6 + $0x138] sm:$0xff] %vm1005_vm2, %v2931_v7  ;;  %v906_v13 = vpop.f32.mrb[15].mxu1 }
 0x12a   : > { %v1219_v14 = vadd.f32 %v1218_v8, %v1217_v62  ;;  %v1020_v15 = vadd.f32 %v1019_v9, %v1018_v5 }
 0x12b   : > { %v1220_v16 = vsel %vm1005_vm2, %v1150_v10, 0.0 }
 0x12c   : > { %v1221_v18 = vadd.f32 %v1220_v16, %v1219_v14 }
 0x12e   : > { %v781_v19 = vpop.f32.mrb[16].mxu0  ;;  %v2939_v20 = vpop.f32.mrb[16].mxu1 }
 0x12f   : > { %v1021_v21 = vsel %vm1005_vm2, %v781_v19, 0.0  ;;  %v1151_v22 = vmul.f32 %v781_v19, %v781_v19  ;;  %1352 = vst.msk [vmem:[#allocation6 + $0x40] sm:$0xff] %vm1005_vm2, %v781_v19  ;;  %v783_v23 = vpop.f32.mrb[17].mxu0  ;;  %1384 = vst.msk [vmem:[#allocation6 + $0x140] sm:$0xff] %vm1005_vm2, %v2939_v20  ;;  %v911_v24 = vpop.f32.mrb[17].mxu1 }
 0x130   : > { %v1022_v25 = vadd.f32 %v1021_v21, %v1020_v15  ;;  %v784_v26 = vpop.f32.mrb[18].mxu0  ;;  %v2945_v27 = vpop.f32.mrb[18].mxu1 }
 0x131   : > { %v1222_v29 = vsel %vm1005_vm2, %v1151_v22, 0.0  ;;  %v1023_v30 = vsel %vm1005_vm2, %v784_v26, 0.0  ;;  %v1152_v31 = vmul.f32 %v784_v26, %v784_v26  ;;  %1353 = vst.msk [vmem:[#allocation6 + $0x48] sm:$0xff] %vm1005_vm2, %v784_v26  ;;  %v786_v32 = vpop.f32.mrb[19].mxu0  ;;  %1385 = vst.msk [vmem:[#allocation6 + $0x148] sm:$0xff] %vm1005_vm2, %v2945_v27  ;;  %v914_v33 = vpop.f32.mrb[19].mxu1 }
 0x132   : > { %v1223_v34 = vadd.f32 %v1222_v29, %v1221_v18  ;;  %v1024_v36 = vadd.f32 %v1023_v30, %v1022_v25 }
 0x133   : > { %v1224_v37 = vsel %vm1005_vm2, %v1152_v31, 0.0 }
 0x134   : > { %v1225_v38 = vadd.f32 %v1224_v37, %v1223_v34 }
 0x136   : > { %v789_v39 = vpop.f32.mrb[20].mxu0  ;;  %v2953_v40 = vpop.f32.mrb[20].mxu1 }
 0x137   : > { %v1025_v41 = vsel %vm1005_vm2, %v789_v39, 0.0  ;;  %v1153_v42 = vmul.f32 %v789_v39, %v789_v39  ;;  %1354 = vst.msk [vmem:[#allocation6 + $0x50] sm:$0xff] %vm1005_vm2, %v789_v39  ;;  %v791_v43 = vpop.f32.mrb[21].mxu0  ;;  %1386 = vst.msk [vmem:[#allocation6 + $0x150] sm:$0xff] %vm1005_vm2, %v2953_v40  ;;  %v919_v44 = vpop.f32.mrb[21].mxu1 }
 0x138   : > { %v1026_v45 = vadd.f32 %v1025_v41, %v1024_v36  ;;  %v792_v47 = vpop.f32.mrb[22].mxu0  ;;  %v2959_v48 = vpop.f32.mrb[22].mxu1 }
 0x139   : > { %v1226_v49 = vsel %vm1005_vm2, %v1153_v42, 0.0  ;;  %v1027_v50 = vsel %vm1005_vm2, %v792_v47, 0.0  ;;  %v1154_v51 = vmul.f32 %v792_v47, %v792_v47  ;;  %1355 = vst.msk [vmem:[#allocation6 + $0x58] sm:$0xff] %vm1005_vm2, %v792_v47  ;;  %v794_v52 = vpop.f32.mrb[23].mxu0  ;;  %1387 = vst.msk [vmem:[#allocation6 + $0x158] sm:$0xff] %vm1005_vm2, %v2959_v48  ;;  %v922_v54 = vpop.f32.mrb[23].mxu1 }
 0x13a   : > { %v1227_v55 = vadd.f32 %v1226_v49, %v1225_v38  ;;  %v1028_v56 = vadd.f32 %v1027_v50, %v1026_v45 }
 0x13b   : > { %v1228_v57 = vsel %vm1005_vm2, %v1154_v51, 0.0 }
 0x13c   : > { %v1229_v58 = vadd.f32 %v1228_v57, %v1227_v55 }
 0x13e   : > { %v797_v59 = vpop.f32.mrb[24].mxu0  ;;  %v2967_v60 = vpop.f32.mrb[24].mxu1 }
 0x13f   : > { %v1029_v61 = vsel %vm1005_vm2, %v797_v59, 0.0  ;;  %v1155_v62 = vmul.f32 %v797_v59, %v797_v59  ;;  %1356 = vst.msk [vmem:[#allocation6 + $0x60] sm:$0xff] %vm1005_vm2, %v797_v59  ;;  %v799_v63 = vpop.f32.mrb[25].mxu0  ;;  %1388 = vst.msk [vmem:[#allocation6 + $0x160] sm:$0xff] %vm1005_vm2, %v2967_v60  ;;  %v927_v1 = vpop.f32.mrb[25].mxu1 }
 0x140   : > { %v1030_v2 = vadd.f32 %v1029_v61, %v1028_v56  ;;  %v800_v3 = vpop.f32.mrb[26].mxu0  ;;  %v2973_v4 = vpop.f32.mrb[26].mxu1 }
 0x141   : > { %v1230_v5 = vsel %vm1005_vm2, %v1155_v62, 0.0  ;;  %v1031_v6 = vsel %vm1005_vm2, %v800_v3, 0.0  ;;  %v1156_v8 = vmul.f32 %v800_v3, %v800_v3  ;;  %1357 = vst.msk [vmem:[#allocation6 + $0x68] sm:$0xff] %vm1005_vm2, %v800_v3  ;;  %v802_v9 = vpop.f32.mrb[27].mxu0  ;;  %1389 = vst.msk [vmem:[#allocation6 + $0x168] sm:$0xff] %vm1005_vm2, %v2973_v4  ;;  %v930_v10 = vpop.f32.mrb[27].mxu1 }
 0x142   : > { %v1231_v11 = vadd.f32 %v1230_v5, %v1229_v58  ;;  %v1032_v13 = vadd.f32 %v1031_v6, %v1030_v2 }
 0x143   : > { %v1232_v14 = vsel %vm1005_vm2, %v1156_v8, 0.0 }
 0x144   : > { %v1233_v15 = vadd.f32 %v1232_v14, %v1231_v11 }
 0x146   : > { %v805_v16 = vpop.f32.mrb[28].mxu0  ;;  %v2981_v18 = vpop.f32.mrb[28].mxu1 }
 0x147   : > { %v1033_v19 = vsel %vm1005_vm2, %v805_v16, 0.0  ;;  %v1157_v21 = vmul.f32 %v805_v16, %v805_v16  ;;  %1358 = vst.msk [vmem:[#allocation6 + $0x70] sm:$0xff] %vm1005_vm2, %v805_v16  ;;  %v807_v22 = vpop.f32.mrb[29].mxu0  ;;  %1390 = vst.msk [vmem:[#allocation6 + $0x170] sm:$0xff] %vm1005_vm2, %v2981_v18  ;;  %v935_v23 = vpop.f32.mrb[29].mxu1 }
 0x148   : > { %v1034_v24 = vadd.f32 %v1033_v19, %v1032_v13  ;;  %v808_v25 = vpop.f32.mrb[30].mxu0  ;;  %v2987_v26 = vpop.f32.mrb[30].mxu1 }
 0x149   : > { %v1234_v29 = vsel %vm1005_vm2, %v1157_v21, 0.0  ;;  %v1035_v30 = vsel %vm1005_vm2, %v808_v25, 0.0  ;;  %v1158_v31 = vmul.f32 %v808_v25, %v808_v25  ;;  %1359 = vst.msk [vmem:[#allocation6 + $0x78] sm:$0xff] %vm1005_vm2, %v808_v25  ;;  %v810_v32 = vpop.f32.mrb[31].mxu0  ;;  %1391 = vst.msk [vmem:[#allocation6 + $0x178] sm:$0xff] %vm1005_vm2, %v2987_v26  ;;  %v938_v33 = vpop.f32.mrb[31].mxu1 }
 0x14a   : > { %v1235_v34 = vadd.f32 %v1234_v29, %v1233_v15  ;;  %v1036_v36 = vadd.f32 %v1035_v30, %v1034_v24 }
 0x14b   : > { %v1236_v37 = vsel %vm1005_vm2, %v1158_v31, 0.0 }
 0x14c   : > { %v1237_v38 = vadd.f32 %v1236_v37, %v1235_v34 }
 0x14e   : > { %v813_v39 = vpop.f32.mrb[32].mxu0  ;;  %v2995_v41 = vpop.f32.mrb[32].mxu1 }
 0x14f   : > { %v1037_v42 = vsel %vm1005_vm2, %v813_v39, 0.0  ;;  %v1159_v43 = vmul.f32 %v813_v39, %v813_v39  ;;  %1360 = vst.msk [vmem:[#allocation6 + $0x80] sm:$0xff] %vm1005_vm2, %v813_v39  ;;  %v815_v44 = vpop.f32.mrb[33].mxu0  ;;  %1392 = vst.msk [vmem:[#allocation6 + $0x180] sm:$0xff] %vm1005_vm2, %v2995_v41  ;;  %v943_v45 = vpop.f32.mrb[33].mxu1 }
 0x150   : > { %v1038_v47 = vadd.f32 %v1037_v42, %v1036_v36  ;;  %v816_v49 = vpop.f32.mrb[34].mxu0  ;;  %v3001_v50 = vpop.f32.mrb[34].mxu1 }
 0x151   : > { %v1238_v51 = vsel %vm1005_vm2, %v1159_v43, 0.0  ;;  %v1039_v52 = vsel %vm1005_vm2, %v816_v49, 0.0  ;;  %v1160_v54 = vmul.f32 %v816_v49, %v816_v49  ;;  %1361 = vst.msk [vmem:[#allocation6 + $0x88] sm:$0xff] %vm1005_vm2, %v816_v49  ;;  %v818_v55 = vpop.f32.mrb[35].mxu0  ;;  %1393 = vst.msk [vmem:[#allocation6 + $0x188] sm:$0xff] %vm1005_vm2, %v3001_v50  ;;  %v946_v56 = vpop.f32.mrb[35].mxu1 }
 0x152   : > { %v1239_v57 = vadd.f32 %v1238_v51, %v1237_v38  ;;  %v1040_v58 = vadd.f32 %v1039_v52, %v1038_v47 }
 0x153   : > { %v1240_v59 = vsel %vm1005_vm2, %v1160_v54, 0.0 }
 0x154   : > { %v1241_v61 = vadd.f32 %v1240_v59, %v1239_v57 }
 0x156   : > { %v821_v62 = vpop.f32.mrb[36].mxu0  ;;  %v3009_v63 = vpop.f32.mrb[36].mxu1 }
 0x157   : > { %v1041_v1 = vsel %vm1005_vm2, %v821_v62, 0.0  ;;  %v1161_v2 = vmul.f32 %v821_v62, %v821_v62  ;;  %1362 = vst.msk [vmem:[#allocation6 + $0x90] sm:$0xff] %vm1005_vm2, %v821_v62  ;;  %v823_v3 = vpop.f32.mrb[37].mxu0  ;;  %1394 = vst.msk [vmem:[#allocation6 + $0x190] sm:$0xff] %vm1005_vm2, %v3009_v63  ;;  %v951_v5 = vpop.f32.mrb[37].mxu1 }
 0x158   : > { %v1042_v6 = vadd.f32 %v1041_v1, %v1040_v58  ;;  %v824_v8 = vpop.f32.mrb[38].mxu0  ;;  %v3015_v9 = vpop.f32.mrb[38].mxu1 }
 0x159   : > { %v1242_v10 = vsel %vm1005_vm2, %v1161_v2, 0.0  ;;  %v1043_v11 = vsel %vm1005_vm2, %v824_v8, 0.0  ;;  %v1162_v13 = vmul.f32 %v824_v8, %v824_v8  ;;  %1363 = vst.msk [vmem:[#allocation6 + $0x98] sm:$0xff] %vm1005_vm2, %v824_v8  ;;  %v826_v14 = vpop.f32.mrb[39].mxu0  ;;  %1395 = vst.msk [vmem:[#allocation6 + $0x198] sm:$0xff] %vm1005_vm2, %v3015_v9  ;;  %v954_v15 = vpop.f32.mrb[39].mxu1 }
 0x15a   : > { %v1243_v16 = vadd.f32 %v1242_v10, %v1241_v61  ;;  %v1044_v19 = vadd.f32 %v1043_v11, %v1042_v6 }
 0x15b   : > { %v1244_v21 = vsel %vm1005_vm2, %v1162_v13, 0.0 }
 0x15c   : > { %v1245_v22 = vadd.f32 %v1244_v21, %v1243_v16 }
 0x15e   : > { %v829_v23 = vpop.f32.mrb[40].mxu0  ;;  %v3023_v24 = vpop.f32.mrb[40].mxu1 }
 0x15f   : > { %v1045_v25 = vsel %vm1005_vm2, %v829_v23, 0.0  ;;  %v1163_v29 = vmul.f32 %v829_v23, %v829_v23  ;;  %1364 = vst.msk [vmem:[#allocation6 + $0xa0] sm:$0xff] %vm1005_vm2, %v829_v23  ;;  %v831_v30 = vpop.f32.mrb[41].mxu0  ;;  %1396 = vst.msk [vmem:[#allocation6 + $0x1a0] sm:$0xff] %vm1005_vm2, %v3023_v24  ;;  %v959_v31 = vpop.f32.mrb[41].mxu1 }
 0x160   : > { %v1046_v32 = vadd.f32 %v1045_v25, %v1044_v19  ;;  %v832_v33 = vpop.f32.mrb[42].mxu0  ;;  %v3029_v34 = vpop.f32.mrb[42].mxu1 }
 0x161   : > { %v1246_v36 = vsel %vm1005_vm2, %v1163_v29, 0.0  ;;  %v1047_v37 = vsel %vm1005_vm2, %v832_v33, 0.0  ;;  %v1164_v38 = vmul.f32 %v832_v33, %v832_v33  ;;  %1365 = vst.msk [vmem:[#allocation6 + $0xa8] sm:$0xff] %vm1005_vm2, %v832_v33  ;;  %v834_v39 = vpop.f32.mrb[43].mxu0  ;;  %1397 = vst.msk [vmem:[#allocation6 + $0x1a8] sm:$0xff] %vm1005_vm2, %v3029_v34  ;;  %v962_v42 = vpop.f32.mrb[43].mxu1 }
 0x162   : > { %v1247_v43 = vadd.f32 %v1246_v36, %v1245_v22  ;;  %v1048_v44 = vadd.f32 %v1047_v37, %v1046_v32 }
 0x163   : > { %v1248_v45 = vsel %vm1005_vm2, %v1164_v38, 0.0 }
 0x164   : > { %v1249_v47 = vadd.f32 %v1248_v45, %v1247_v43 }
 0x166   : > { %v837_v49 = vpop.f32.mrb[44].mxu0  ;;  %v3037_v51 = vpop.f32.mrb[44].mxu1 }
 0x167   : > { %v1049_v52 = vsel %vm1005_vm2, %v837_v49, 0.0  ;;  %v1165_v54 = vmul.f32 %v837_v49, %v837_v49  ;;  %1366 = vst.msk [vmem:[#allocation6 + $0xb0] sm:$0xff] %vm1005_vm2, %v837_v49  ;;  %v839_v55 = vpop.f32.mrb[45].mxu0  ;;  %1398 = vst.msk [vmem:[#allocation6 + $0x1b0] sm:$0xff] %vm1005_vm2, %v3037_v51  ;;  %v967_v56 = vpop.f32.mrb[45].mxu1 }
 0x168   : > { %v1050_v57 = vadd.f32 %v1049_v52, %v1048_v44  ;;  %v840_v58 = vpop.f32.mrb[46].mxu0  ;;  %v3043_v59 = vpop.f32.mrb[46].mxu1 }
 0x169   : > { %v1250_v61 = vsel %vm1005_vm2, %v1165_v54, 0.0  ;;  %v1051_v62 = vsel %vm1005_vm2, %v840_v58, 0.0  ;;  %v1166_v1 = vmul.f32 %v840_v58, %v840_v58  ;;  %1367 = vst.msk [vmem:[#allocation6 + $0xb8] sm:$0xff] %vm1005_vm2, %v840_v58  ;;  %v842_v2 = vpop.f32.mrb[47].mxu0  ;;  %1399 = vst.msk [vmem:[#allocation6 + $0x1b8] sm:$0xff] %vm1005_vm2, %v3043_v59  ;;  %v970_v3 = vpop.f32.mrb[47].mxu1 }
 0x16a   : > { %v1251_v5 = vadd.f32 %v1250_v61, %v1249_v47  ;;  %v1052_v6 = vadd.f32 %v1051_v62, %v1050_v57 }
 0x16b   : > { %v1252_v8 = vsel %vm1005_vm2, %v1166_v1, 0.0 }
 0x16c   : > { %v1253_v10 = vadd.f32 %v1252_v8, %v1251_v5 }
 0x16e   : > { %v845_v11 = vpop.f32.mrb[48].mxu0  ;;  %v3051_v13 = vpop.f32.mrb[48].mxu1 }
 0x16f   : > { %v1053_v14 = vsel %vm1005_vm2, %v845_v11, 0.0  ;;  %v1167_v15 = vmul.f32 %v845_v11, %v845_v11  ;;  %1368 = vst.msk [vmem:[#allocation6 + $0xc0] sm:$0xff] %vm1005_vm2, %v845_v11  ;;  %v847_v16 = vpop.f32.mrb[49].mxu0  ;;  %1400 = vst.msk [vmem:[#allocation6 + $0x1c0] sm:$0xff] %vm1005_vm2, %v3051_v13  ;;  %v975_v19 = vpop.f32.mrb[49].mxu1 }
 0x170   : > { %v1054_v21 = vadd.f32 %v1053_v14, %v1052_v6  ;;  %v848_v22 = vpop.f32.mrb[50].mxu0  ;;  %v3057_v23 = vpop.f32.mrb[50].mxu1 }
 0x171   : > { %v1254_v25 = vsel %vm1005_vm2, %v1167_v15, 0.0  ;;  %v1055_v29 = vsel %vm1005_vm2, %v848_v22, 0.0  ;;  %v1168_v30 = vmul.f32 %v848_v22, %v848_v22  ;;  %1369 = vst.msk [vmem:[#allocation6 + $0xc8] sm:$0xff] %vm1005_vm2, %v848_v22  ;;  %v850_v31 = vpop.f32.mrb[51].mxu0  ;;  %1401 = vst.msk [vmem:[#allocation6 + $0x1c8] sm:$0xff] %vm1005_vm2, %v3057_v23  ;;  %v978_v32 = vpop.f32.mrb[51].mxu1 }
 0x172   : > { %v1255_v33 = vadd.f32 %v1254_v25, %v1253_v10  ;;  %v1056_v36 = vadd.f32 %v1055_v29, %v1054_v21 }
 0x173   : > { %v1256_v37 = vsel %vm1005_vm2, %v1168_v30, 0.0 }
 0x174   : > { %v1257_v38 = vadd.f32 %v1256_v37, %v1255_v33 }
 0x176   : > { %v853_v39 = vpop.f32.mrb[52].mxu0  ;;  %v3065_v42 = vpop.f32.mrb[52].mxu1 }
 0x177   : > { %v1057_v43 = vsel %vm1005_vm2, %v853_v39, 0.0  ;;  %v1169_v44 = vmul.f32 %v853_v39, %v853_v39  ;;  %1370 = vst.msk [vmem:[#allocation6 + $0xd0] sm:$0xff] %vm1005_vm2, %v853_v39  ;;  %v855_v45 = vpop.f32.mrb[53].mxu0  ;;  %1402 = vst.msk [vmem:[#allocation6 + $0x1d0] sm:$0xff] %vm1005_vm2, %v3065_v42  ;;  %v983_v47 = vpop.f32.mrb[53].mxu1 }
 0x178   : > { %v1058_v49 = vadd.f32 %v1057_v43, %v1056_v36  ;;  %v856_v52 = vpop.f32.mrb[54].mxu0  ;;  %v3071_v54 = vpop.f32.mrb[54].mxu1 }
 0x179   : > { %v1258_v55 = vsel %vm1005_vm2, %v1169_v44, 0.0  ;;  %v1059_v56 = vsel %vm1005_vm2, %v856_v52, 0.0  ;;  %v1170_v57 = vmul.f32 %v856_v52, %v856_v52  ;;  %1371 = vst.msk [vmem:[#allocation6 + $0xd8] sm:$0xff] %vm1005_vm2, %v856_v52  ;;  %v858_v58 = vpop.f32.mrb[55].mxu0  ;;  %1403 = vst.msk [vmem:[#allocation6 + $0x1d8] sm:$0xff] %vm1005_vm2, %v3071_v54  ;;  %v986_v61 = vpop.f32.mrb[55].mxu1 }
 0x17a   : > { %v1259_v62 = vadd.f32 %v1258_v55, %v1257_v38  ;;  %v1060_v1 = vadd.f32 %v1059_v56, %v1058_v49  ;;  %v1175_v55 = vmul.f32 %v2883_v12, %v2883_v12 }
 0x17b   : > { %v1260_v2 = vsel %vm1005_vm2, %v1170_v57, 0.0 }
 0x17c   : > { %v1261_v3 = vadd.f32 %v1260_v2, %v1259_v62 }
 0x17e   : > { %v861_v5 = vpop.f32.mrb[56].mxu0  ;;  %v3079_v6 = vpop.f32.mrb[56].mxu1 }
 0x17f   : > { %v1061_v8 = vsel %vm1005_vm2, %v861_v5, 0.0  ;;  %v1171_v10 = vmul.f32 %v861_v5, %v861_v5  ;;  %1372 = vst.msk [vmem:[#allocation6 + $0xe0] sm:$0xff] %vm1005_vm2, %v861_v5  ;;  %v863_v11 = vpop.f32.mrb[57].mxu0  ;;  %1404 = vst.msk [vmem:[#allocation6 + $0x1e0] sm:$0xff] %vm1005_vm2, %v3079_v6  ;;  %v991_v14 = vpop.f32.mrb[57].mxu1  ;;  %v1176_v5 = vmul.f32 %v2888_v17, %v2888_v17 }
 0x180   : > { %v1062_v15 = vadd.f32 %v1061_v8, %v1060_v1  ;;  %v864_v16 = vpop.f32.mrb[58].mxu0  ;;  %v3085_v19 = vpop.f32.mrb[58].mxu1  ;;  %v1270_v14 = vsel %vm1005_vm2, %v1175_v55, 0.0 }
 0x181   : > { %v1262_v21 = vsel %vm1005_vm2, %v1171_v10, 0.0  ;;  %v1063_v22 = vsel %vm1005_vm2, %v864_v16, 0.0  ;;  %v1172_v25 = vmul.f32 %v864_v16, %v864_v16  ;;  %1373 = vst.msk [vmem:[#allocation6 + $0xe8] sm:$0xff] %vm1005_vm2, %v864_v16  ;;  %v866_v29 = vpop.f32.mrb[59].mxu0  ;;  %1405 = vst.msk [vmem:[#allocation6 + $0x1e8] sm:$0xff] %vm1005_vm2, %v3085_v19  ;;  %v994_v30 = vpop.f32.mrb[59].mxu1  ;;  %v1177_v16 = vmul.f32 %v2897_v28, %v2897_v28 }
 0x182   : > { %v1263_v31 = vadd.f32 %v1262_v21, %v1261_v3  ;;  %v1064_v32 = vadd.f32 %v1063_v22, %v1062_v15  ;;  %v1069_v3 = vsel %vm1005_vm2, %v2883_v12, 0.0  ;;  %v1071_v15 = vsel %vm1005_vm2, %v2888_v17, 0.0 }
 0x183   : > { %v1264_v33 = vsel %vm1005_vm2, %v1172_v25, 0.0  ;;  %v1272_v25 = vsel %vm1005_vm2, %v1176_v5, 0.0  ;;  %v1073_v12 = vsel %vm1005_vm2, %v2897_v28, 0.0  ;;  %v1178_v29 = vmul.f32 %v2903_v35, %v2903_v35 }
 0x184   : > { %v1265_v36 = vadd.f32 %v1264_v33, %v1263_v31  ;;  %v1075_v17 = vsel %vm1005_vm2, %v2903_v35, 0.0  ;;  %v1179_v33 = vmul.f32 %v2911_v46, %v2911_v46  ;;  %v1077_v28 = vsel %vm1005_vm2, %v2911_v46, 0.0 }
 0x185   : > { %v1079_v35 = vsel %vm1005_vm2, %v2917_v53, 0.0  ;;  %v1081_v46 = vsel %vm1005_vm2, %v2925_v0, 0.0 }
 0x186   : > { %v869_v37 = vpop.f32.mrb[60].mxu0  ;;  %v3093_v38 = vpop.f32.mrb[60].mxu1 }
 0x187   : > { %v1065_v39 = vsel %vm1005_vm2, %v869_v37, 0.0  ;;  %v1173_v43 = vmul.f32 %v869_v37, %v869_v37  ;;  %1374 = vst.msk [vmem:[#allocation6 + $0xf0] sm:$0xff] %vm1005_vm2, %v869_v37  ;;  %v871_v44 = vpop.f32.mrb[61].mxu0  ;;  %1406 = vst.msk [vmem:[#allocation6 + $0x1f0] sm:$0xff] %vm1005_vm2, %v3093_v38  ;;  %v999_v45 = vpop.f32.mrb[61].mxu1 }
 0x188   : > { %v1066_v47 = vadd.f32 %v1065_v39, %v1064_v32  ;;  %v872_v49 = vpop.f32.mrb[62].mxu0  ;;  %v3099_v52 = vpop.f32.mrb[62].mxu1  ;;  %v1274_v32 = vsel %vm1005_vm2, %v1177_v16, 0.0  ;;  %v1276_v39 = vsel %vm1005_vm2, %v1178_v29, 0.0  ;;  %v1185_v16 = vmul.f32 %v2953_v40, %v2953_v40 }
 0x189   : > { %v1266_v56 = vsel %vm1005_vm2, %v1173_v43, 0.0  ;;  %v1067_v57 = vsel %vm1005_vm2, %v872_v49, 0.0  ;;  %v1174_v58 = vmul.f32 %v872_v49, %v872_v49  ;;  %1375 = vst.msk [vmem:[#allocation6 + $0xf8] sm:$0xff] %vm1005_vm2, %v872_v49  ;;  %v874_v61 = vpop.f32.mrb[63].mxu0  ;;  %1407 = vst.msk [vmem:[#allocation6 + $0x1f8] sm:$0xff] %vm1005_vm2, %v3099_v52  ;;  %v1002_v62 = vpop.f32.mrb[63].mxu1  ;;  %v1180_v43 = vmul.f32 %v2917_v53, %v2917_v53 }
 0x18a   : > { %v1267_v1 = vadd.f32 %v1266_v56, %v1265_v36  ;;  %v1068_v2 = vadd.f32 %v1067_v57, %v1066_v47  ;;  %v1278_v47 = vsel %vm1005_vm2, %v1179_v33, 0.0  ;;  %v1181_v49 = vmul.f32 %v2925_v0, %v2925_v0 }
 0x18b   : > { %v1268_v8 = vsel %vm1005_vm2, %v1174_v58, 0.0  ;;  %v1280_v57 = vsel %vm1005_vm2, %v1180_v43, 0.0  ;;  %v1182_v58 = vmul.f32 %v2931_v7, %v2931_v7  ;;  %v1083_v53 = vsel %vm1005_vm2, %v2931_v7, 0.0 }
 0x18c   : > { %v1070_v10 = vadd.f32 %v1069_v3, %v1068_v2  ;;  %v1269_v11 = vadd.f32 %v1268_v8, %v1267_v1  ;;  %v1282_v1 = vsel %vm1005_vm2, %v1181_v49, 0.0  ;;  %v1183_v2 = vmul.f32 %v2939_v20, %v2939_v20 }
 0x18d   : > { %v1284_v8 = vsel %vm1005_vm2, %v1182_v58, 0.0  ;;  %v1085_v0 = vsel %vm1005_vm2, %v2939_v20, 0.0  ;;  %v1087_v7 = vsel %vm1005_vm2, %v2945_v27, 0.0  ;;  %v1089_v20 = vsel %vm1005_vm2, %v2953_v40, 0.0 }
 0x18e   : > { %v1072_v21 = vadd.f32 %v1071_v15, %v1070_v10  ;;  %v1271_v22 = vadd.f32 %v1270_v14, %v1269_v11  ;;  %v1184_v10 = vmul.f32 %v2945_v27, %v2945_v27  ;;  %v1286_v15 = vsel %vm1005_vm2, %v1183_v2, 0.0 }
 0x18f   : > { %v1091_v27 = vsel %vm1005_vm2, %v2959_v48, 0.0  ;;  %v1093_v40 = vsel %vm1005_vm2, %v2967_v60, 0.0  ;;  %v1190_v49 = vmul.f32 %v2987_v26, %v2987_v26 }
 0x190   : > { %v1074_v30 = vadd.f32 %v1073_v12, %v1072_v21  ;;  %v1273_v31 = vadd.f32 %v1272_v25, %v1271_v22  ;;  %v1288_v25 = vsel %vm1005_vm2, %v1184_v10, 0.0  ;;  %v1186_v12 = vmul.f32 %v2959_v48, %v2959_v48 }
 0x191   : > { %v1095_v48 = vsel %vm1005_vm2, %v2973_v4, 0.0 }
 0x192   : > { %v1076_v36 = vadd.f32 %v1075_v17, %v1074_v30  ;;  %v1275_v37 = vadd.f32 %v1274_v32, %v1273_v31  ;;  %v1290_v31 = vsel %vm1005_vm2, %v1185_v16, 0.0  ;;  %v1187_v32 = vmul.f32 %v2967_v60, %v2967_v60 }
 0x193   : > { %v1097_v60 = vsel %vm1005_vm2, %v2981_v18, 0.0  ;;  %v1195_v16 = vmul.f32 %v3023_v24, %v3023_v24 }
 0x194   : > { %v1078_v44 = vadd.f32 %v1077_v28, %v1076_v36  ;;  %v1277_v45 = vadd.f32 %v1276_v39, %v1275_v37  ;;  %v1292_v36 = vsel %vm1005_vm2, %v1186_v12, 0.0  ;;  %v1188_v37 = vmul.f32 %v2973_v4, %v2973_v4 }
 0x195   : > { %v1294_v43 = vsel %vm1005_vm2, %v1187_v32, 0.0  ;;  %v1099_v4 = vsel %vm1005_vm2, %v2987_v26, 0.0  ;;  %v1103_v26 = vsel %vm1005_vm2, %v3001_v50, 0.0 }
 0x196   : > { %v1080_v55 = vadd.f32 %v1079_v35, %v1078_v44  ;;  %v1279_v56 = vadd.f32 %v1278_v47, %v1277_v45  ;;  %v1189_v44 = vmul.f32 %v2981_v18, %v2981_v18  ;;  %v1296_v35 = vsel %vm1005_vm2, %v1188_v37, 0.0 }
 0x197   : > { %v1101_v18 = vsel %vm1005_vm2, %v2995_v41, 0.0 }
 0x198   : > { %v1082_v61 = vadd.f32 %v1081_v46, %v1080_v55  ;;  %v1281_v62 = vadd.f32 %v1280_v57, %v1279_v56  ;;  %v1298_v57 = vsel %vm1005_vm2, %v1189_v44, 0.0  ;;  %v1191_v46 = vmul.f32 %v2995_v41, %v2995_v41 }
 0x199   : > { %v1105_v41 = vsel %vm1005_vm2, %v3009_v63, 0.0  ;;  %v1200_v44 = vmul.f32 %v3057_v23, %v3057_v23 }
 0x19a   : > { %v1084_v3 = vadd.f32 %v1083_v53, %v1082_v61  ;;  %v1283_v5 = vadd.f32 %v1282_v1, %v1281_v62  ;;  %v1300_v62 = vsel %vm1005_vm2, %v1190_v49, 0.0  ;;  %v1192_v1 = vmul.f32 %v3001_v50, %v3001_v50 }
 0x19b   : > { %v1107_v50 = vsel %vm1005_vm2, %v3015_v9, 0.0 }
 0x19c   : > { %v1285_v11 = vadd.f32 %v1284_v8, %v1283_v5  ;;  %v1086_v14 = vadd.f32 %v1085_v0, %v1084_v3  ;;  %v1302_v3 = vsel %vm1005_vm2, %v1191_v46, 0.0  ;;  %v1193_v5 = vmul.f32 %v3009_v63, %v3009_v63 }
 0x19d   : > { %v1304_v10 = vsel %vm1005_vm2, %v1192_v1, 0.0  ;;  %v1109_v63 = vsel %vm1005_vm2, %v3023_v24, 0.0  ;;  %v1113_v24 = vsel %vm1005_vm2, %v3037_v51, 0.0 }
 0x19e   : > { %v1088_v21 = vadd.f32 %v1087_v7, %v1086_v14  ;;  %v1287_v22 = vadd.f32 %v1286_v15, %v1285_v11  ;;  %v1194_v11 = vmul.f32 %v3015_v9, %v3015_v9  ;;  %v1306_v7 = vsel %vm1005_vm2, %v1193_v5, 0.0 }
 0x19f   : > { %v1111_v9 = vsel %vm1005_vm2, %v3029_v34, 0.0  ;;  %v1127_v5 = vsel %vm1005_vm2, %v3085_v19, 0.0 }
 0x1a0   : > { %v1090_v29 = vadd.f32 %v1089_v20, %v1088_v21  ;;  %v1289_v30 = vadd.f32 %v1288_v25, %v1287_v22  ;;  %v1308_v25 = vsel %vm1005_vm2, %v1194_v11, 0.0  ;;  %v1196_v20 = vmul.f32 %v3029_v34, %v3029_v34 }
 0x1a1   : > { %v1115_v34 = vsel %vm1005_vm2, %v3043_v59, 0.0  ;;  %v1206_v11 = vmul.f32 %v3099_v52, %v3099_v52 }
 0x1a2   : > { %v1092_v17 = vadd.f32 %v1091_v27, %v1090_v29  ;;  %v1291_v33 = vadd.f32 %v1290_v31, %v1289_v30  ;;  %v1310_v30 = vsel %vm1005_vm2, %v1195_v16, 0.0  ;;  %v1197_v31 = vmul.f32 %v3037_v51, %v3037_v51 }
 0x1a3   : > { %v1117_v51 = vsel %vm1005_vm2, %v3051_v13, 0.0 }
 0x1a4   : > { %v1094_v39 = vadd.f32 %v1093_v40, %v1092_v17  ;;  %v1293_v28 = vadd.f32 %v1292_v36, %v1291_v33  ;;  %v1312_v17 = vsel %vm1005_vm2, %v1196_v20, 0.0  ;;  %v1198_v33 = vmul.f32 %v3043_v59, %v3043_v59 }
 0x1a5   : > { %v1314_v37 = vsel %vm1005_vm2, %v1197_v31, 0.0  ;;  %v1119_v59 = vsel %vm1005_vm2, %v3057_v23, 0.0  ;;  %v1123_v23 = vsel %vm1005_vm2, %v3071_v54, 0.0  ;;  %v1004_v31 = vld [vmem:[#allocation2] sm:$0x1] }
 0x1a6   : > { %v1096_v45 = vadd.f32 %v1095_v48, %v1094_v39  ;;  %v1295_v47 = vadd.f32 %v1294_v43, %v1293_v28  ;;  %v1199_v39 = vmul.f32 %v3051_v13, %v3051_v13  ;;  %v1316_v48 = vsel %vm1005_vm2, %v1198_v33, 0.0 }
 0x1a7   : > { %v1121_v13 = vsel %vm1005_vm2, %v3065_v42, 0.0 }
 0x1a8   : > { %v1098_v55 = vadd.f32 %v1097_v60, %v1096_v45  ;;  %v1297_v56 = vadd.f32 %v1296_v35, %v1295_v47  ;;  %v1318_v35 = vsel %vm1005_vm2, %v1199_v39, 0.0  ;;  %v1201_v60 = vmul.f32 %v3065_v42, %v3065_v42 }
 0x1a9   : > { %v1125_v42 = vsel %vm1005_vm2, %v3079_v6, 0.0 }
 0x1aa   : > { %v1100_v58 = vadd.f32 %v1099_v4, %v1098_v55  ;;  %v1299_v61 = vadd.f32 %v1298_v57, %v1297_v56  ;;  %v1320_v56 = vsel %vm1005_vm2, %v1200_v44, 0.0  ;;  %v1202_v57 = vmul.f32 %v3071_v54, %v3071_v54 }
 0x1ac   : > { %v1102_v53 = vadd.f32 %v1101_v18, %v1100_v58  ;;  %v1301_v2 = vadd.f32 %v1300_v62, %v1299_v61  ;;  %v1322_v58 = vsel %vm1005_vm2, %v1201_v60, 0.0  ;;  %v1203_v61 = vmul.f32 %v3079_v6, %v3079_v6 }
 0x1ad   : > { %v1324_v1 = vsel %vm1005_vm2, %v1202_v57, 0.0 }
 0x1ae   : > { %v1303_v8 = vadd.f32 %v1302_v3, %v1301_v2  ;;  %v1104_v0 = vadd.f32 %v1103_v26, %v1102_v53  ;;  %v1204_v53 = vmul.f32 %v3085_v19, %v3085_v19  ;;  %v1205_v2 = vmul.f32 %v3093_v38, %v3093_v38 }
 0x1af   : > { %v1326_v54 = vsel %vm1005_vm2, %v1203_v61, 0.0  ;;  %v1332_v19 = vsel %vm1005_vm2, %v1206_v11, 0.0 }
 0x1b0   : > { %v1305_v14 = vadd.f32 %v1304_v10, %v1303_v8  ;;  %v1106_v15 = vadd.f32 %v1105_v41, %v1104_v0  ;;  %v1129_v8 = vsel %vm1005_vm2, %v3093_v38, 0.0  ;;  %v1328_v6 = vsel %vm1005_vm2, %v1204_v53, 0.0 }
 0x1b1   : > { %v1330_v41 = vsel %vm1005_vm2, %v1205_v2, 0.0 }
 0x1b2   : > { %v1307_v21 = vadd.f32 %v1306_v7, %v1305_v14  ;;  %v1108_v22 = vadd.f32 %v1107_v50, %v1106_v15  ;;  %v1131_v7 = vsel %vm1005_vm2, %v3099_v52, 0.0 }
 0x1b4   : > { %v1309_v12 = vadd.f32 %v1308_v25, %v1307_v21  ;;  %v1110_v29 = vadd.f32 %v1109_v63, %v1108_v22 }
 0x1b6   : > { %v1311_v27 = vadd.f32 %v1310_v30, %v1309_v12  ;;  %v1112_v32 = vadd.f32 %v1111_v9, %v1110_v29 }
 0x1b8   : > { %v1313_v36 = vadd.f32 %v1312_v17, %v1311_v27  ;;  %v1114_v40 = vadd.f32 %v1113_v24, %v1112_v32  ;;  %v1142_v17 = vld [vmem:[#allocation3] sm:$0x1] }
 0x1ba   : > { %v1315_v28 = vadd.f32 %v1314_v37, %v1313_v36  ;;  %v1116_v43 = vadd.f32 %v1115_v34, %v1114_v40 }
 0x1bc   : > { %v1317_v45 = vadd.f32 %v1316_v48, %v1315_v28  ;;  %v1118_v47 = vadd.f32 %v1117_v51, %v1116_v43 }
 0x1be   : > { %v1319_v49 = vadd.f32 %v1318_v35, %v1317_v45  ;;  %v1120_v55 = vadd.f32 %v1119_v59, %v1118_v47 }
 0x1c0   : > { %v1321_v4 = vadd.f32 %v1320_v56, %v1319_v49  ;;  %v1122_v46 = vadd.f32 %v1121_v13, %v1120_v55 }
 0x1c2   : > { %v1323_v62 = vadd.f32 %v1322_v58, %v1321_v4  ;;  %v1124_v18 = vadd.f32 %v1123_v23, %v1122_v46 }
 0x1c4   : > { %v1325_v3 = vadd.f32 %v1324_v1, %v1323_v62  ;;  %v1126_v26 = vadd.f32 %v1125_v42, %v1124_v18 }
 0x1c6   : > { %v1327_v0 = vadd.f32 %v1326_v54, %v1325_v3  ;;  %v1128_v10 = vadd.f32 %v1127_v5, %v1126_v26 }
 0x1c8   : > { %v1329_v14 = vadd.f32 %v1328_v6, %v1327_v0  ;;  %v1130_v15 = vadd.f32 %v1129_v8, %v1128_v10 }
 0x1ca   : > { %v1331_v50 = vadd.f32 %v1330_v41, %v1329_v14  ;;  %v1132_v16 = vadd.f32 %v1131_v7, %v1130_v15 }
 0x1cc   : > { %v1133_v21 = vrot.slane %v1132_v16, 4  ;;  %v1333_v38 = vadd.f32 %v1332_v19, %v1331_v50 }
 0x1ce   : > { %v1134_v22 = vadd.f32 %v1133_v21, %v1132_v16  ;;  %v1334_v25 = vrot.slane %v1333_v38, 4 }
 0x1d0   : > { %v1135_v63 = vrot.slane %v1134_v22, 2  ;;  %v1335_v20 = vadd.f32 %v1334_v25, %v1333_v38 }
 0x1d2   : > { %v1136_v12 = vadd.f32 %v1135_v63, %v1134_v22  ;;  %v1336_v29 = vrot.slane %v1335_v20, 2 }
 0x1d4   : > { %v1137_v30 = vrot.slane %v1136_v12, 1  ;;  %v1337_v9 = vadd.f32 %v1336_v29, %v1335_v20 }
 0x1d6   : > { %v1138_v27 = vadd.f32 %v1137_v30, %v1136_v12  ;;  %v1338_v32 = vrot.slane %v1337_v9, 1 }
 0x1d8   : > { %v1139_v52 = vadd.f32 %v1138_v27, %v1004_v31  ;;  %v1339_v24 = vadd.f32 %v1338_v32, %v1337_v9 }
 0x1da   : > { %1141 = vst.msk [vmem:[#allocation2] sm:$0x1] %vm1140_vm3, %v1139_v52  ;;  %v1340_v33 = vadd.f32 %v1339_v24, %v1142_v17 }
 0x1dc   : > { %1341 = vst.msk [vmem:[#allocation3] sm:$0x1] %vm1140_vm3, %v1340_v33 }
 0x1dd PF: > { %p2270_p6 = scmp.ne.s32.totalorder %s2577_s9, 1 }
 0x1df   : > { %1411 = sbr.rel (%p2270_p6) target bundleno = 836 (0x344), region = 40 }
 0x1e6   : > { %v1415_v36 = vld [vmem:[#allocation2] sm:$0x1]  ;;  %s2589_s15 = smov 112   ;;  %s2590_s16 = smov 120   ;;  %v1416_v40 = vld [vmem:[#allocation3] sm:$0x1]  ;;  %v1453_v4 = vlaneseq }
 0x1e7   : > { %1427 = vrot.lane.b32.xlu1 %v1415_v36, %s2589_s15  ;;  %1418 = vrot.lane.b32.xlu0 %v1415_v36, %s2590_s16  ;;  %s2591_s17 = smov 104   ;;  %s2592_s9 = smov 16   ;;  %vm1466_vm4 = vcmask 64512   ;;  %vm1468_vm5 = vcmask 130048   ;;  %vm1470_vm6 = vcmask 195584   ;;  %vm1472_vm7 = vcmask 253952  }
 0x1e8   : > { %v1454_v46 = vshrl.u32 %v1453_v4, 7  ;;  %s2593_s18 = smov 8   ;;  %s2594_s19 = smov 24   ;;  %v1494_v6 = vld [vmem:[#allocation6] sm:$0xff]  ;;  %v1495_v41 = vld [vmem:[#allocation6 + $0x8] sm:$0xff]  ;;  %v1496_v11 = vld [vmem:[#allocation6 + $0x10] sm:$0xff] }
 0x1e9   : > { %v1497_v14 = vld [vmem:[#allocation6 + $0x18] sm:$0xff]  ;;  %v1498_v7 = vld [vmem:[#allocation6 + $0x20] sm:$0xff]  ;;  %v1499_v50 = vld [vmem:[#allocation6 + $0x28] sm:$0xff]  ;;  %vm2020_vm8 = vcmask 257024  }
 0x1ea   : > { %v1455_v58 = vsub.s32 0, %v1454_v46  ;;  %v1500_v16 = vld [vmem:[#allocation6 + $0x30] sm:$0xff]  ;;  %v1501_v19 = vld [vmem:[#allocation6 + $0x38] sm:$0xff]  ;;  %v1502_v38 = vld [vmem:[#allocation6 + $0x40] sm:$0xff] }
 0x1eb   : > { %1431 = vrot.lane.b32.xlu1 %v1416_v40, %s2589_s15  ;;  %1423 = vrot.lane.b32.xlu0 %v1416_v40, %s2590_s16  ;;  %v1503_v22 = vld [vmem:[#allocation6 + $0x48] sm:$0xff]  ;;  %v1504_v25 = vld [vmem:[#allocation6 + $0x50] sm:$0xff]  ;;  %v1505_v63 = vld [vmem:[#allocation6 + $0x58] sm:$0xff] }
 0x1ec   : > { %v1506_v20 = vld [vmem:[#allocation6 + $0x60] sm:$0xff]  ;;  %v1507_v12 = vld [vmem:[#allocation6 + $0x68] sm:$0xff]  ;;  %v1508_v29 = vld [vmem:[#allocation6 + $0x70] sm:$0xff] }
 0x1ed   : > { %v1509_v30 = vld [vmem:[#allocation6 + $0x78] sm:$0xff]  ;;  %v1510_v9 = vld [vmem:[#allocation6 + $0x80] sm:$0xff]  ;;  %v1511_v31 = vld [vmem:[#allocation6 + $0x88] sm:$0xff] }
 0x1ee   : > { %v1512_v27 = vld [vmem:[#allocation6 + $0x90] sm:$0xff]  ;;  %v1513_v32 = vld [vmem:[#allocation6 + $0x98] sm:$0xff]  ;;  %v1514_v52 = vld [vmem:[#allocation6 + $0xa0] sm:$0xff] }
 0x1ef   : > { %1439 = vrot.lane.b32.xlu1 %v1416_v40, %s2591_s17  ;;  %1435 = vrot.lane.b32.xlu0 %v1415_v36, %s2591_s17  ;;  %v1515_v24 = vld [vmem:[#allocation6 + $0xa8] sm:$0xff]  ;;  %v1516_v33 = vld [vmem:[#allocation6 + $0xb0] sm:$0xff]  ;;  %v1526_v46 = vld [vmem:[#allocation6 + $0x100] sm:$0xff] }
 0x259   : > { %v1428_v37 = vpop.permute.xlu1 %1427  ;;  %v1419_v34 = vpop.permute.xlu0 %1418 }
 0x25a   : > { %v1421_v39 = vadd.f32 %v1419_v34, %v1415_v36  ;;  %v1517_v36 = vld [vmem:[#allocation6 + $0xb8] sm:$0xff] }
 0x25c   : > { %v1430_v44 = vadd.f32 %v1428_v37, %v1421_v39 }
 0x25d   : > { %v1432_v28 = vpop.permute.xlu1 %1431  ;;  %v1424_v43 = vpop.permute.xlu0 %1423 }
 0x25e   : > { %v1426_v48 = vadd.f32 %v1424_v43, %v1416_v40  ;;  %v1519_v43 = vld [vmem:[#allocation6 + $0xc8] sm:$0xff] }
 0x260   : > { %v1434_v51 = vadd.f32 %v1432_v28, %v1426_v48  ;;  %v1518_v28 = vld [vmem:[#allocation6 + $0xc0] sm:$0xff]  ;;  %v1520_v48 = vld [vmem:[#allocation6 + $0xd0] sm:$0xff] }
 0x261   : > { %v1440_v45 = vpop.permute.xlu1 %1439  ;;  %v1436_v47 = vpop.permute.xlu0 %1435 }
 0x262   : > { %v1442_v35 = vadd.f32 %v1440_v45, %v1434_v51  ;;  %v1438_v59 = vadd.f32 %v1436_v47, %v1430_v44  ;;  %v1521_v51 = vld [vmem:[#allocation6 + $0xd8] sm:$0xff] }
 0x264   : > { %v1443_v60 = vmul.f32 0.00048828125, %v1438_v59  ;;  %v1444_v49 = vmul.f32 0.00048828125, %v1442_v35  ;;  %v1522_v59 = vld [vmem:[#allocation6 + $0xe0] sm:$0xff] }
 0x266   : > { %v1445_v55 = vmul.f32 %v1443_v60, %v1443_v60  ;;  %v1450_v23 = vsub.f32 0.0, %v1443_v60  ;;  %v1523_v60 = vld [vmem:[#allocation6 + $0xe8] sm:$0xff] }
 0x268   : > { %v1446_v56 = vsub.f32 %v1444_v49, %v1445_v55  ;;  %v1524_v49 = vld [vmem:[#allocation6 + $0xf0] sm:$0xff]  ;;  %v1525_v55 = vld [vmem:[#allocation6 + $0xf8] sm:$0xff] }
 0x26a   : > { %v1447_v13 = vmax.f32 %v1446_v56, 0.0 }
 0x26c   : > { %v1448_v57 = vadd.f32 1e-05, %v1447_v13 }
 0x26e   : > { %2561 = vrsqrt.f32 %v1448_v57 }
 0x278   : > { %v2562_v61 = vpop.eup %2561 }
 0x279   : > { %v1451_v62 = vmul.f32 %v2562_v61, %v1450_v23  ;;  %v1456_v18 = vrot.slane %v2562_v61, %v1455_v58  ;;  %v1528_v23 = vld [vmem:[#allocation6 + $0x110] sm:$0xff] }
 0x27b   : > { %1460 = vrot.lane.b32.xlu1 %v1456_v18, %s2592_s9  ;;  %1457 = vrot.lane.b32.xlu0 %v1456_v18, %s2593_s18  ;;  %v1478_v1 = vrot.slane %v1451_v62, %v1455_v58  ;;  %v1527_v58 = vld [vmem:[#allocation6 + $0x108] sm:$0xff] }
 0x27f   : > { %1463 = vrot.lane.b32.xlu0 %v1456_v18, %s2594_s19  ;;  %1479 = vrot.lane.b32.xlu1 %v1478_v1, %s2593_s18 }
 0x283   : > { %1482 = vrot.lane.b32.xlu0 %v1478_v1, %s2592_s9  ;;  %1485 = vrot.lane.b32.xlu1 %v1478_v1, %s2594_s19 }
 0x2ed   : > { %v1461_v42 = vpop.permute.xlu1 %1460  ;;  %v1458_v53 = vpop.permute.xlu0 %1457 }
 0x2ee   : > { %v1467_v2 = vsel %vm1466_vm4, %v2562_v61, %v1458_v53  ;;  %v1529_v61 = vld [vmem:[#allocation6 + $0x118] sm:$0xff]  ;;  %v1530_v53 = vld [vmem:[#allocation6 + $0x120] sm:$0xff] }
 0x2ef   : > { %v1469_v3 = vsel %vm1468_vm5, %v1467_v2, %v1461_v42  ;;  %v1531_v2 = vld [vmem:[#allocation6 + $0x128] sm:$0xff] }
 0x2f1   : > { %v1464_v26 = vpop.permute.xlu0 %1463  ;;  %v1480_v54 = vpop.permute.xlu1 %1479 }
 0x2f2   : > { %v1471_v5 = vsel %vm1470_vm6, %v1469_v3, %v1464_v26  ;;  %v1488_v8 = vsel %vm1466_vm4, %v1451_v62, %v1480_v54  ;;  %v1532_v3 = vld [vmem:[#allocation6 + $0x130] sm:$0xff]  ;;  %v1533_v26 = vld [vmem:[#allocation6 + $0x138] sm:$0xff] }
 0x2f3   : > { %1473 = vst.msk [vmem:[#allocation4] sm:$0x1] %vm1472_vm7, %v1471_v5 }
 0x2f5   : > { %v1483_v0 = vpop.permute.xlu0 %1482  ;;  %v1486_v10 = vpop.permute.xlu1 %1485 }
 0x2f6   : > { %v1489_v15 = vsel %vm1468_vm5, %v1488_v8, %v1483_v0 }
 0x2f7   : > { %v1490_v21 = vsel %vm1470_vm6, %v1489_v15, %v1486_v10  ;;  %v1534_v10 = vld [vmem:[#allocation6 + $0x140] sm:$0xff] }
 0x2f8   : > { %1491 = vst.msk [vmem:[#allocation5] sm:$0x1] %vm1472_vm7, %v1490_v21 }
 0x2fa   : > { %v3272_v17 = vld [vmem:[#allocation4] ss:$0 sm:$0xff] }
 0x2fb   : > { %v3275_v40 = vmul.f32 %v3272_v17, %v1494_v6  ;;  %v3278_v37 = vmul.f32 %v3272_v17, %v1495_v41  ;;  %v3281_v34 = vmul.f32 %v3272_v17, %v1496_v11  ;;  %v3284_v39 = vmul.f32 %v3272_v17, %v1497_v14  ;;  %v1535_v6 = vld [vmem:[#allocation6 + $0x148] sm:$0xff]  ;;  %v1536_v41 = vld [vmem:[#allocation6 + $0x150] sm:$0xff] }
 0x2fc   : > { %v3287_v44 = vmul.f32 %v3272_v17, %v1498_v7  ;;  %v3290_v45 = vmul.f32 %v3272_v17, %v1499_v50  ;;  %v3293_v47 = vmul.f32 %v3272_v17, %v1500_v16  ;;  %v3296_v35 = vmul.f32 %v3272_v17, %v1501_v19  ;;  %v1537_v50 = vld [vmem:[#allocation6 + $0x158] sm:$0xff]  ;;  %v1538_v16 = vld [vmem:[#allocation6 + $0x160] sm:$0xff]  ;;  %v1539_v19 = vld [vmem:[#allocation6 + $0x168] sm:$0xff] }
 0x2fd   : > { %v3299_v56 = vmul.f32 %v3272_v17, %v1502_v38  ;;  %v3302_v13 = vmul.f32 %v3272_v17, %v1503_v22  ;;  %v3305_v57 = vmul.f32 %v3272_v17, %v1504_v25  ;;  %v3308_v4 = vmul.f32 %v3272_v17, %v1505_v63  ;;  %v1540_v63 = vld [vmem:[#allocation6 + $0x170] sm:$0xff] }
 0x2fe   : > { %v3311_v62 = vmul.f32 %v3272_v17, %v1506_v20  ;;  %v3314_v18 = vmul.f32 %v3272_v17, %v1507_v12  ;;  %v3317_v1 = vmul.f32 %v3272_v17, %v1508_v29  ;;  %v3320_v42 = vmul.f32 %v3272_v17, %v1509_v30  ;;  %v1541_v20 = vld [vmem:[#allocation6 + $0x178] sm:$0xff]  ;;  %v1542_v12 = vld [vmem:[#allocation6 + $0x180] sm:$0xff] }
 0x2ff   : > { %v3323_v54 = vmul.f32 %v3272_v17, %v1510_v9  ;;  %v3326_v5 = vmul.f32 %v3272_v17, %v1511_v31  ;;  %v3329_v8 = vmul.f32 %v3272_v17, %v1512_v27  ;;  %v3332_v0 = vmul.f32 %v3272_v17, %v1513_v32  ;;  %v1543_v27 = vld [vmem:[#allocation6 + $0x188] sm:$0xff]  ;;  %v1544_v32 = vld [vmem:[#allocation6 + $0x190] sm:$0xff] }
 0x300   : > { %v3335_v11 = vmul.f32 %v3272_v17, %v1514_v52  ;;  %v3338_v14 = vmul.f32 %v3272_v17, %v1515_v24  ;;  %v3341_v15 = vmul.f32 %v3272_v17, %v1516_v33  ;;  %v3344_v7 = vmul.f32 %v3272_v17, %v1517_v36  ;;  %v1545_v52 = vld [vmem:[#allocation6 + $0x198] sm:$0xff] }
 0x301   : > { %v3347_v21 = vmul.f32 %v3272_v17, %v1518_v28  ;;  %v3350_v38 = vmul.f32 %v3272_v17, %v1519_v43  ;;  %v3353_v22 = vmul.f32 %v3272_v17, %v1520_v48  ;;  %v3356_v25 = vmul.f32 %v3272_v17, %v1521_v51  ;;  %v1546_v43 = vld [vmem:[#allocation6 + $0x1a0] sm:$0xff]  ;;  %v1547_v48 = vld [vmem:[#allocation6 + $0x1a8] sm:$0xff]  ;;  %v1548_v51 = vld [vmem:[#allocation6 + $0x1b0] sm:$0xff] }
 0x302   : > { %v3359_v29 = vmul.f32 %v3272_v17, %v1522_v59  ;;  %v3362_v30 = vmul.f32 %v3272_v17, %v1523_v60  ;;  %v3365_v9 = vmul.f32 %v3272_v17, %v1524_v49  ;;  %v3368_v31 = vmul.f32 %v3272_v17, %v1525_v55 }
 0x303   : > { %v3371_v24 = vmul.f32 %v3272_v17, %v1526_v46  ;;  %v3374_v33 = vmul.f32 %v3272_v17, %v1527_v58  ;;  %v3377_v36 = vmul.f32 %v3272_v17, %v1528_v23  ;;  %v3380_v28 = vmul.f32 %v3272_v17, %v1529_v61  ;;  %v1549_v46 = vld [vmem:[#allocation6 + $0x1b8] sm:$0xff]  ;;  %v1550_v58 = vld [vmem:[#allocation6 + $0x1c0] sm:$0xff]  ;;  %v1551_v23 = vld [vmem:[#allocation6 + $0x1c8] sm:$0xff] }
 0x304   : > { %v3383_v59 = vmul.f32 %v3272_v17, %v1530_v53  ;;  %v3386_v60 = vmul.f32 %v3272_v17, %v1531_v2  ;;  %v3389_v49 = vmul.f32 %v3272_v17, %v1532_v3  ;;  %v3392_v55 = vmul.f32 %v3272_v17, %v1533_v26  ;;  %v1552_v3 = vld [vmem:[#allocation6 + $0x1d0] sm:$0xff] }
 0x305   : > { %4268 = vst [vmem:[#allocation7_spill] sm:$0xff] %v3380_v28  ;;  %v3395_v61 = vmul.f32 %v3272_v17, %v1534_v10  ;;  %v3398_v28 = vmul.f32 %v3272_v17, %v1535_v6  ;;  %v3401_v53 = vmul.f32 %v3272_v17, %v1536_v41  ;;  %v3404_v2 = vmul.f32 %v3272_v17, %v1537_v50  ;;  %v1555_v41 = vld [vmem:[#allocation6 + $0x1e8] sm:$0xff] }
 0x306   : > { %4269 = vst [vmem:[#allocation8_spill] sm:$0xff] %v3386_v60  ;;  %4270 = vst [vmem:[#allocation9_spill] sm:$0xff] %v3389_v49  ;;  %v1553_v49 = vld [vmem:[#allocation6 + $0x1d8] sm:$0xff]  ;;  %v1554_v60 = vld [vmem:[#allocation6 + $0x1e0] sm:$0xff]  ;;  %v3407_v26 = vmul.f32 %v3272_v17, %v1538_v16  ;;  %v3413_v10 = vmul.f32 %v3272_v17, %v1540_v63  ;;  %v3416_v6 = vmul.f32 %v3272_v17, %v1541_v20 }
 0x307   : > { %4271 = vst [vmem:[#allocation10_spill] sm:$0xff] %v3392_v55  ;;  %4272 = vst [vmem:[#allocation11_spill] sm:$0xff] %v3398_v28  ;;  %v3410_v55 = vmul.f32 %v3272_v17, %v1539_v19  ;;  %v1557_v28 = vld [vmem:[#allocation6 + $0x1f8] sm:$0xff]  ;;  %v3419_v50 = vmul.f32 %v3272_v17, %v1542_v12  ;;  %v3425_v16 = vmul.f32 %v3272_v17, %v1544_v32 }
 0x308   : > { %4273 = vst [vmem:[#allocation12_spill] sm:$0xff] %v3401_v53  ;;  %4274 = vst [vmem:[#allocation13_spill] sm:$0xff] %v3404_v2  ;;  %v1556_v53 = vld [vmem:[#allocation6 + $0x1f0] sm:$0xff]  ;;  %v3422_v2 = vmul.f32 %v3272_v17, %v1543_v27  ;;  %v3428_v19 = vmul.f32 %v3272_v17, %v1545_v52  ;;  %v3431_v63 = vmul.f32 %v3272_v17, %v1546_v43  ;;  %v3442_v27 = vld [vmem:[#allocation5] ss:$0 sm:$0xff] }
 0x309   : > { %4275 = vst [vmem:[#allocation14_spill] sm:$0xff] %v3416_v6  ;;  %v3434_v20 = vmul.f32 %v3272_v17, %v1547_v48  ;;  %v3437_v6 = vmul.f32 %v3272_v17, %v1548_v51  ;;  %v3440_v12 = vmul.f32 %v3272_v17, %v1549_v46  ;;  %v3445_v32 = vmul.f32 %v3272_v17, %v1550_v58 }
 0x30a   : > { %v3448_v52 = vmul.f32 %v3272_v17, %v1551_v23  ;;  %v3451_v43 = vmul.f32 %v3272_v17, %v1552_v3  ;;  %v3454_v48 = vmul.f32 %v3272_v17, %v1553_v49  ;;  %v3457_v51 = vmul.f32 %v3272_v17, %v1554_v60 }
 0x30b   : > { %4276 = vst [vmem:[#allocation15_spill] sm:$0xff] %v3440_v12  ;;  %v3460_v46 = vmul.f32 %v3272_v17, %v1555_v41  ;;  %v3463_v12 = vmul.f32 %v3272_v17, %v1556_v53  ;;  %v3466_v58 = vmul.f32 %v3272_v17, %v1557_v28  ;;  %v3470_v23 = vadd.f32 %v3442_v27, %v3275_v40 }
 0x30c   : > { %v3474_v49 = vadd.f32 %v3442_v27, %v3278_v37  ;;  %v3478_v60 = vadd.f32 %v3442_v27, %v3281_v34  ;;  %v3482_v3 = vadd.f32 %v3442_v27, %v3284_v39  ;;  %v3486_v17 = vadd.f32 %v3442_v27, %v3287_v44  ;;  %v4282_v28 = vld [vmem:[#allocation7_spill] sm:$0xff] }
 0x30d   : > { %v3490_v40 = vadd.f32 %v3442_v27, %v3290_v45  ;;  %v3494_v37 = vadd.f32 %v3442_v27, %v3293_v47  ;;  %v3498_v34 = vadd.f32 %v3442_v27, %v3296_v35  ;;  %v3502_v39 = vadd.f32 %v3442_v27, %v3299_v56  ;;  %v4285_v53 = vld [vmem:[#allocation8_spill] sm:$0xff]  ;;  %v4287_v41 = vld [vmem:[#allocation9_spill] sm:$0xff] }
 0x30e   : > { %v3506_v44 = vadd.f32 %v3442_v27, %v3302_v13  ;;  %v3510_v45 = vadd.f32 %v3442_v27, %v3305_v57  ;;  %v3514_v47 = vadd.f32 %v3442_v27, %v3308_v4  ;;  %v3518_v35 = vadd.f32 %v3442_v27, %v3311_v62 }
 0x30f   : > { %v3522_v56 = vadd.f32 %v3442_v27, %v3314_v18  ;;  %v3526_v13 = vadd.f32 %v3442_v27, %v3317_v1  ;;  %v3530_v57 = vadd.f32 %v3442_v27, %v3320_v42  ;;  %v3534_v4 = vadd.f32 %v3442_v27, %v3323_v54 }
 0x310   : > { %v3538_v62 = vadd.f32 %v3442_v27, %v3326_v5  ;;  %v3542_v18 = vadd.f32 %v3442_v27, %v3329_v8  ;;  %v3546_v1 = vadd.f32 %v3442_v27, %v3332_v0  ;;  %v3550_v42 = vadd.f32 %v3442_v27, %v3335_v11 }
 0x311   : > { %v3554_v54 = vadd.f32 %v3442_v27, %v3338_v14  ;;  %v3558_v5 = vadd.f32 %v3442_v27, %v3341_v15  ;;  %v3562_v8 = vadd.f32 %v3442_v27, %v3344_v7  ;;  %v3566_v0 = vadd.f32 %v3442_v27, %v3347_v21 }
 0x312   : > { %v3570_v11 = vadd.f32 %v3442_v27, %v3350_v38  ;;  %v3574_v14 = vadd.f32 %v3442_v27, %v3353_v22  ;;  %v3578_v15 = vadd.f32 %v3442_v27, %v3356_v25  ;;  %v3582_v7 = vadd.f32 %v3442_v27, %v3359_v29 }
 0x313   : > { %v3586_v21 = vadd.f32 %v3442_v27, %v3362_v30  ;;  %v3590_v38 = vadd.f32 %v3442_v27, %v3365_v9  ;;  %v3594_v22 = vadd.f32 %v3442_v27, %v3368_v31  ;;  %v3598_v25 = vadd.f32 %v3442_v27, %v3371_v24 }
 0x314   : > { %4277 = vst [vmem:[#allocation16_spill] sm:$0xff] %v3570_v11  ;;  %4278 = vst [vmem:[#allocation17_spill] sm:$0xff] %v3574_v14  ;;  %v3602_v29 = vadd.f32 %v3442_v27, %v3374_v33  ;;  %v3606_v30 = vadd.f32 %v3442_v27, %v3377_v36  ;;  %v3610_v9 = vadd.f32 %v3442_v27, %v4282_v28  ;;  %v4318_v14 = vmax.f32 %v3474_v49, 0.0 }
 0x315   : > { %4279 = vst [vmem:[#allocation18_spill] sm:$0xff] %v3578_v15  ;;  %4280 = vst [vmem:[#allocation19_spill] sm:$0xff] %v3590_v38  ;;  %v3614_v31 = vadd.f32 %v3442_v27, %v3383_v59  ;;  %v3618_v24 = vadd.f32 %v3442_v27, %v4285_v53  ;;  %v3622_v33 = vadd.f32 %v3442_v27, %v4287_v41  ;;  %v4323_v49 = vmax.f32 %v3494_v37, 0.0 }
 0x316   : > { %4281 = vst [vmem:[#allocation20_spill] sm:$0xff] %v3602_v29  ;;  %4283 = vst [vmem:[#allocation7_spill] sm:$0xff] %v3610_v9  ;;  %v4289_v29 = vld [vmem:[#allocation10_spill] sm:$0xff]  ;;  %v3630_v28 = vadd.f32 %v3442_v27, %v3395_v61  ;;  %v4290_v9 = vld [vmem:[#allocation11_spill] sm:$0xff]  ;;  %v3650_v61 = vadd.f32 %v3442_v27, %v3410_v55  ;;  %v3670_v55 = vadd.f32 %v3442_v27, %v3425_v16  ;;  %v4328_v37 = vmax.f32 %v3514_v47, 0.0 }
 0x317   : > { %4284 = vst [vmem:[#allocation21_spill] sm:$0xff] %v3614_v31  ;;  %4286 = vst [vmem:[#allocation8_spill] sm:$0xff] %v3618_v24  ;;  %v3626_v36 = vadd.f32 %v3442_v27, %v4289_v29  ;;  %v3634_v59 = vadd.f32 %v3442_v27, %v4290_v9  ;;  %v4292_v31 = vld [vmem:[#allocation12_spill] sm:$0xff]  ;;  %v4293_v24 = vld [vmem:[#allocation13_spill] sm:$0xff]  ;;  %v3646_v29 = vadd.f32 %v3442_v27, %v3407_v26  ;;  %v4331_v47 = vmax.f32 %v3526_v13, 0.0 }
 0x318   : > { %4288 = vst [vmem:[#allocation9_spill] sm:$0xff] %v3622_v33  ;;  %v3638_v53 = vadd.f32 %v3442_v27, %v4292_v31  ;;  %v3642_v41 = vadd.f32 %v3442_v27, %v4293_v24  ;;  %v3654_v9 = vadd.f32 %v3442_v27, %v3413_v10  ;;  %v3662_v24 = vadd.f32 %v3442_v27, %v3419_v50 }
 0x319   : > { %4291 = vst [vmem:[#allocation10_spill] sm:$0xff] %v3634_v59  ;;  %v4294_v59 = vld [vmem:[#allocation14_spill] sm:$0xff]  ;;  %v3666_v26 = vadd.f32 %v3442_v27, %v3422_v2  ;;  %v3674_v10 = vadd.f32 %v3442_v27, %v3428_v19  ;;  %v3682_v50 = vadd.f32 %v3442_v27, %v3434_v20  ;;  %v3686_v2 = vadd.f32 %v3442_v27, %v3437_v6 }
 0x31a   : > { %v3658_v31 = vadd.f32 %v3442_v27, %v4294_v59  ;;  %4296 = vst [vmem:[#allocation12_spill] sm:$0xff] %v3662_v24  ;;  %4298 = vst [vmem:[#allocation14_spill] sm:$0xff] %v3670_v55  ;;  %v3678_v59 = vadd.f32 %v3442_v27, %v3431_v63  ;;  %v3694_v19 = vadd.f32 %v3442_v27, %v3445_v32  ;;  %v4334_v13 = vmax.f32 %v3538_v62, 0.0 }
 0x31b   : > { %4297 = vst [vmem:[#allocation13_spill] sm:$0xff] %v3666_v26  ;;  %4299 = vst [vmem:[#allocation22_spill] sm:$0xff] %v3674_v10  ;;  %v4300_v26 = vld [vmem:[#allocation15_spill] sm:$0xff]  ;;  %v3698_v63 = vadd.f32 %v3442_v27, %v3448_v52  ;;  %v3702_v20 = vadd.f32 %v3442_v27, %v3451_v43  ;;  %v3706_v6 = vadd.f32 %v3442_v27, %v3454_v48 }
 0x31c   : > { %4295 = vst [vmem:[#allocation11_spill] sm:$0xff] %v3658_v31  ;;  %v3690_v16 = vadd.f32 %v3442_v27, %v4300_v26  ;;  %v3710_v26 = vadd.f32 %v3442_v27, %v3457_v51  ;;  %v3714_v32 = vadd.f32 %v3442_v27, %v3460_v46  ;;  %v3718_v52 = vadd.f32 %v3442_v27, %v3463_v12 }
 0x31d   : > { %4301 = vst [vmem:[#allocation15_spill] sm:$0xff] %v3702_v20  ;;  %4302 = vst [vmem:[#allocation23_spill] sm:$0xff] %v3706_v6  ;;  %v3722_v43 = vadd.f32 %v3442_v27, %v3466_v58  ;;  %v4306_v51 = vld [vmem:[#allocation20_spill] sm:$0xff]  ;;  %v4307_v46 = vld [vmem:[#allocation7_spill] sm:$0xff]  ;;  %v4312_v31 = vmov %v3702_v20  ;;  %v4313_v24 = vmov %v3706_v6  ;;  %v2343_v15 = vpack.c.bf16 %v4318_v14, %v4318_v14 }
 0x31e   : > { %4303 = vst [vmem:[#allocation24_spill] sm:$0xff] %v3710_v26  ;;  %4304 = vst [vmem:[#allocation25_spill] sm:$0xff] %v3714_v32  ;;  %v4308_v32 = vld [vmem:[#allocation21_spill] sm:$0xff]  ;;  %v4309_v12 = vld [vmem:[#allocation8_spill] sm:$0xff]  ;;  %v4314_v33 = vmov %v3710_v26  ;;  %v4316_v10 = vmov %v3718_v52  ;;  %v4317_v26 = vmax.f32 %v3470_v23, 0.0  ;;  %v4320_v58 = vmax.f32 %v3482_v3, 0.0 }
 0x31f   : > { %4305 = vst [vmem:[#allocation26_spill] sm:$0xff] %v3718_v52  ;;  %v4319_v52 = vmax.f32 %v3478_v60, 0.0  ;;  %v4321_v6 = vmax.f32 %v3486_v17, 0.0  ;;  %v4322_v23 = vmax.f32 %v3490_v40, 0.0  ;;  %v2348_v14 = vpack.c.bf16 %v4323_v49, %v4323_v49  ;;  %2022 = vst.msk [vmem:[%s4247_s2 + $0x4] sm:$0xf] %vm2020_vm8, %v2343_v15 }
 0x320   : > { %v4310_v38 = vld [vmem:[#allocation10_spill] sm:$0xff]  ;;  %v2342_v11 = vpack.c.bf16 %v4317_v26, %v4317_v26  ;;  %v2345_v48 = vpack.c.bf16 %v4320_v58, %v4320_v58  ;;  %v4324_v60 = vmax.f32 %v3498_v34, 0.0  ;;  %v4325_v3 = vmax.f32 %v3502_v39, 0.0 }
 0x321   : > { %v2344_v27 = vpack.c.bf16 %v4319_v52, %v4319_v52  ;;  %v2346_v20 = vpack.c.bf16 %v4321_v6, %v4321_v6  ;;  %v2347_v26 = vpack.c.bf16 %v4322_v23, %v4322_v23  ;;  %v4326_v17 = vmax.f32 %v3506_v44, 0.0  ;;  %2027 = vst.msk [vmem:[%s4247_s2 + $0x18] sm:$0xf] %vm2020_vm8, %v2348_v14 }
 0x322   : > { %v2349_v52 = vpack.c.bf16 %v4324_v60, %v4324_v60  ;;  %v2350_v58 = vpack.c.bf16 %v4325_v3, %v4325_v3  ;;  %v4327_v40 = vmax.f32 %v3510_v45, 0.0  ;;  %v2353_v49 = vpack.c.bf16 %v4328_v37, %v4328_v37  ;;  %2021 = vst.msk [vmem:[%s4247_s2] sm:$0xf] %vm2020_vm8, %v2342_v11  ;;  %2024 = vst.msk [vmem:[%s4247_s2 + $0xc] sm:$0xf] %vm2020_vm8, %v2345_v48  ;;  %v4346_v37 = vld [vmem:[#allocation18_spill] sm:$0xff] }
 0x323   : > { %v2351_v6 = vpack.c.bf16 %v4326_v17, %v4326_v17  ;;  %2023 = vst.msk [vmem:[%s4247_s2 + $0x8] sm:$0xf] %vm2020_vm8, %v2344_v27  ;;  %v4329_v34 = vmax.f32 %v3518_v35, 0.0  ;;  %v4330_v44 = vmax.f32 %v3522_v56, 0.0  ;;  %v2356_v11 = vpack.c.bf16 %v4331_v47, %v4331_v47  ;;  %2025 = vst.msk [vmem:[%s4247_s2 + $0x10] sm:$0xf] %vm2020_vm8, %v2346_v20 }
 0x324   : > { %v2352_v23 = vpack.c.bf16 %v4327_v40, %v4327_v40  ;;  %v4332_v15 = vmax.f32 %v3530_v57, 0.0  ;;  %2026 = vst.msk [vmem:[%s4247_s2 + $0x14] sm:$0xf] %vm2020_vm8, %v2347_v26  ;;  %2028 = vst.msk [vmem:[%s4247_s2 + $0x1c] sm:$0xf] %vm2020_vm8, %v2349_v52  ;;  %v4333_v35 = vmax.f32 %v3534_v4, 0.0  ;;  %v2359_v57 = vpack.c.bf16 %v4334_v13, %v4334_v13 }
 0x325   : > { %v4315_v55 = vld [vmem:[#allocation25_spill] sm:$0xff]  ;;  %v2354_v39 = vpack.c.bf16 %v4329_v34, %v4329_v34  ;;  %v2355_v45 = vpack.c.bf16 %v4330_v44, %v4330_v44  ;;  %v4335_v20 = vmax.f32 %v3542_v18, 0.0  ;;  %v4336_v26 = vmax.f32 %v3546_v1, 0.0  ;;  %2029 = vst.msk [vmem:[%s4247_s2 + $0x20] sm:$0xf] %vm2020_vm8, %v2350_v58  ;;  %v4350_v47 = vld [vmem:[#allocation19_spill] sm:$0xff] }
 0x326   : > { %v2357_v27 = vpack.c.bf16 %v4332_v15, %v4332_v15  ;;  %v2358_v56 = vpack.c.bf16 %v4333_v35, %v4333_v35  ;;  %2030 = vst.msk [vmem:[%s4247_s2 + $0x24] sm:$0xf] %vm2020_vm8, %v2351_v6  ;;  %2031 = vst.msk [vmem:[%s4247_s2 + $0x28] sm:$0xf] %vm2020_vm8, %v2352_v23  ;;  %v4337_v4 = vmax.f32 %v3550_v42, 0.0  ;;  %v4338_v18 = vmax.f32 %v3554_v54, 0.0 }
 0x327   : > { %v2360_v48 = vpack.c.bf16 %v4335_v20, %v4335_v20  ;;  %v2361_v14 = vpack.c.bf16 %v4336_v26, %v4336_v26  ;;  %2032 = vst.msk [vmem:[%s4247_s2 + $0x2c] sm:$0xf] %vm2020_vm8, %v2353_v49  ;;  %v4339_v60 = vmax.f32 %v3558_v5, 0.0  ;;  %v4340_v3 = vmax.f32 %v3562_v8, 0.0  ;;  %2033 = vst.msk [vmem:[%s4247_s2 + $0x30] sm:$0xf] %vm2020_vm8, %v2354_v39 }
 0x328   : > { %v2362_v62 = vpack.c.bf16 %v4337_v4, %v4337_v4  ;;  %v2363_v1 = vpack.c.bf16 %v4338_v18, %v4338_v18  ;;  %2034 = vst.msk [vmem:[%s4247_s2 + $0x34] sm:$0xf] %vm2020_vm8, %v2355_v45  ;;  %2035 = vst.msk [vmem:[%s4247_s2 + $0x38] sm:$0xf] %vm2020_vm8, %v2356_v11  ;;  %v4341_v42 = vmax.f32 %v3566_v0, 0.0  ;;  %v4342_v5 = vld [vmem:[#allocation16_spill] sm:$0xff] }
 0x329   : > { %v2364_v52 = vpack.c.bf16 %v4339_v60, %v4339_v60  ;;  %v2365_v58 = vpack.c.bf16 %v4340_v3, %v4340_v3  ;;  %2036 = vst.msk [vmem:[%s4247_s2 + $0x3c] sm:$0xf] %vm2020_vm8, %v2357_v27  ;;  %v4343_v8 = vmax.f32 %v4342_v5, 0.0  ;;  %v4344_v6 = vld [vmem:[#allocation17_spill] sm:$0xff]  ;;  %v4347_v49 = vmax.f32 %v4346_v37, 0.0  ;;  %v4369_v5 = vld [vmem:[#allocation11_spill] sm:$0xff] }
 0x32a   : > { %v2366_v54 = vpack.c.bf16 %v4341_v42, %v4341_v42  ;;  %v4345_v40 = vmax.f32 %v4344_v6, 0.0  ;;  %2037 = vst.msk [vmem:[%s4247_s2 + $0x40] sm:$0xf] %vm2020_vm8, %v2358_v56  ;;  %2038 = vst.msk [vmem:[%s4247_s2 + $0x44] sm:$0xf] %vm2020_vm8, %v2359_v57  ;;  %v4348_v0 = vmax.f32 %v3582_v7, 0.0 }
 0x32b   : > { %v2367_v17 = vpack.c.bf16 %v4343_v8, %v4343_v8  ;;  %v2369_v34 = vpack.c.bf16 %v4347_v49, %v4347_v49  ;;  %2039 = vst.msk [vmem:[%s4247_s2 + $0x48] sm:$0xf] %vm2020_vm8, %v2360_v48  ;;  %2040 = vst.msk [vmem:[%s4247_s2 + $0x4c] sm:$0xf] %vm2020_vm8, %v2361_v14  ;;  %v4349_v44 = vmax.f32 %v3586_v21, 0.0  ;;  %v4351_v11 = vmax.f32 %v4350_v47, 0.0 }
 0x32c   : > { %v2368_v23 = vpack.c.bf16 %v4345_v40, %v4345_v40  ;;  %v2370_v39 = vpack.c.bf16 %v4348_v0, %v4348_v0  ;;  %v4352_v27 = vmax.f32 %v3594_v22, 0.0  ;;  %2041 = vst.msk [vmem:[%s4247_s2 + $0x50] sm:$0xf] %vm2020_vm8, %v2362_v62  ;;  %2042 = vst.msk [vmem:[%s4247_s2 + $0x54] sm:$0xf] %vm2020_vm8, %v2363_v1  ;;  %v4353_v7 = vmax.f32 %v3598_v25, 0.0 }
 0x32d   : > { %v2371_v45 = vpack.c.bf16 %v4349_v44, %v4349_v44  ;;  %v2372_v15 = vpack.c.bf16 %v4351_v11, %v4351_v11  ;;  %2043 = vst.msk [vmem:[%s4247_s2 + $0x58] sm:$0xf] %vm2020_vm8, %v2364_v52  ;;  %2044 = vst.msk [vmem:[%s4247_s2 + $0x5c] sm:$0xf] %vm2020_vm8, %v2365_v58  ;;  %v4354_v22 = vmax.f32 %v4306_v51, 0.0  ;;  %v4355_v13 = vmax.f32 %v3606_v30, 0.0 }
 0x32e   : > { %v2373_v35 = vpack.c.bf16 %v4352_v27, %v4352_v27  ;;  %v2374_v21 = vpack.c.bf16 %v4353_v7, %v4353_v7  ;;  %v4356_v20 = vmax.f32 %v4307_v46, 0.0  ;;  %2045 = vst.msk [vmem:[%s4247_s2 + $0x60] sm:$0xf] %vm2020_vm8, %v2366_v54  ;;  %2046 = vst.msk [vmem:[%s4247_s2 + $0x64] sm:$0xf] %vm2020_vm8, %v2367_v17  ;;  %v4357_v25 = vmax.f32 %v4308_v32, 0.0 }
 0x32f   : > { %v2375_v56 = vpack.c.bf16 %v4354_v22, %v4354_v22  ;;  %v2376_v57 = vpack.c.bf16 %v4355_v13, %v4355_v13  ;;  %2047 = vst.msk [vmem:[%s4247_s2 + $0x68] sm:$0xf] %vm2020_vm8, %v2368_v23  ;;  %2048 = vst.msk [vmem:[%s4247_s2 + $0x6c] sm:$0xf] %vm2020_vm8, %v2369_v34  ;;  %v4358_v51 = vmax.f32 %v4309_v12, 0.0  ;;  %v4359_v26 = vld [vmem:[#allocation9_spill] sm:$0xff] }
 0x330   : > { %v2377_v48 = vpack.c.bf16 %v4356_v20, %v4356_v20  ;;  %v2378_v30 = vpack.c.bf16 %v4357_v25, %v4357_v25  ;;  %v4360_v14 = vmax.f32 %v4359_v26, 0.0  ;;  %v4361_v62 = vmax.f32 %v3626_v36, 0.0  ;;  %2049 = vst.msk [vmem:[%s4247_s2 + $0x70] sm:$0xf] %vm2020_vm8, %v2370_v39  ;;  %2050 = vst.msk [vmem:[%s4247_s2 + $0x74] sm:$0xf] %vm2020_vm8, %v2371_v45 }
 0x331   : > { %v2379_v46 = vpack.c.bf16 %v4358_v51, %v4358_v51  ;;  %2051 = vst.msk [vmem:[%s4247_s2 + $0x78] sm:$0xf] %vm2020_vm8, %v2372_v15  ;;  %2052 = vst.msk [vmem:[%s4247_s2 + $0x7c] sm:$0xf] %vm2020_vm8, %v2373_v35  ;;  %v4362_v36 = vmax.f32 %v3630_v28, 0.0  ;;  %v4363_v12 = vmax.f32 %v4310_v38, 0.0 }
 0x332   : > { %v2380_v4 = vpack.c.bf16 %v4360_v14, %v4360_v14  ;;  %v2381_v18 = vpack.c.bf16 %v4361_v62, %v4361_v62  ;;  %v4364_v60 = vmax.f32 %v3638_v53, 0.0  ;;  %v4365_v3 = vmax.f32 %v3642_v41, 0.0  ;;  %2053 = vst.msk [vmem:[%s4247_s2 + $0x80] sm:$0xf] %vm2020_vm8, %v2374_v21  ;;  %2054 = vst.msk [vmem:[%s4247_s2 + $0x84] sm:$0xf] %vm2020_vm8, %v2375_v56 }
 0x333   : > { %v2382_v32 = vpack.c.bf16 %v4362_v36, %v4362_v36  ;;  %v2383_v1 = vpack.c.bf16 %v4363_v12, %v4363_v12  ;;  %2055 = vst.msk [vmem:[%s4247_s2 + $0x88] sm:$0xf] %vm2020_vm8, %v2376_v57  ;;  %2056 = vst.msk [vmem:[%s4247_s2 + $0x8c] sm:$0xf] %vm2020_vm8, %v2377_v48  ;;  %v4366_v38 = vmax.f32 %v3646_v29, 0.0  ;;  %v4367_v53 = vmax.f32 %v3650_v61, 0.0 }
 0x334   : > { %v2384_v52 = vpack.c.bf16 %v4364_v60, %v4364_v60  ;;  %v2385_v58 = vpack.c.bf16 %v4365_v3, %v4365_v3  ;;  %v4368_v42 = vmax.f32 %v3654_v9, 0.0  ;;  %v4370_v8 = vmax.f32 %v4369_v5, 0.0  ;;  %2057 = vst.msk [vmem:[%s4247_s2 + $0x90] sm:$0xf] %vm2020_vm8, %v2378_v30  ;;  %2058 = vst.msk [vmem:[%s4247_s2 + $0x94] sm:$0xf] %vm2020_vm8, %v2379_v46 }
 0x335   : > { %v2386_v28 = vpack.c.bf16 %v4366_v38, %v4366_v38  ;;  %v2387_v41 = vpack.c.bf16 %v4367_v53, %v4367_v53  ;;  %2059 = vst.msk [vmem:[%s4247_s2 + $0x98] sm:$0xf] %vm2020_vm8, %v2380_v4  ;;  %2060 = vst.msk [vmem:[%s4247_s2 + $0x9c] sm:$0xf] %vm2020_vm8, %v2381_v18  ;;  %v4371_v29 = vld [vmem:[#allocation12_spill] sm:$0xff]  ;;  %v4373_v6 = vld [vmem:[#allocation13_spill] sm:$0xff] }
 0x336   : > { %v2388_v54 = vpack.c.bf16 %v4368_v42, %v4368_v42  ;;  %v2389_v17 = vpack.c.bf16 %v4370_v8, %v4370_v8  ;;  %v4372_v61 = vmax.f32 %v4371_v29, 0.0  ;;  %v4374_v40 = vmax.f32 %v4373_v6, 0.0  ;;  %v4375_v37 = vld [vmem:[#allocation14_spill] sm:$0xff]  ;;  %2061 = vst.msk [vmem:[%s4247_s2 + $0xa0] sm:$0xf] %vm2020_vm8, %v2382_v32 }
 0x337   : > { %v4376_v49 = vmax.f32 %v4375_v37, 0.0  ;;  %v4377_v0 = vld [vmem:[#allocation22_spill] sm:$0xff]  ;;  %2062 = vst.msk [vmem:[%s4247_s2 + $0xa4] sm:$0xf] %vm2020_vm8, %v2383_v1  ;;  %2063 = vst.msk [vmem:[%s4247_s2 + $0xa8] sm:$0xf] %vm2020_vm8, %v2384_v52 }
 0x338   : > { %v2390_v9 = vpack.c.bf16 %v4372_v61, %v4372_v61  ;;  %v2391_v23 = vpack.c.bf16 %v4374_v40, %v4374_v40  ;;  %v4378_v39 = vmax.f32 %v4377_v0, 0.0  ;;  %2064 = vst.msk [vmem:[%s4247_s2 + $0xac] sm:$0xf] %vm2020_vm8, %v2385_v58  ;;  %v4379_v45 = vmax.f32 %v3678_v59, 0.0  ;;  %2065 = vst.msk [vmem:[%s4247_s2 + $0xb0] sm:$0xf] %vm2020_vm8, %v2386_v28 }
 0x339   : > { %v2392_v34 = vpack.c.bf16 %v4376_v49, %v4376_v49  ;;  %v4380_v11 = vmax.f32 %v3682_v50, 0.0  ;;  %v4381_v27 = vmax.f32 %v3686_v2, 0.0  ;;  %v4382_v7 = vmax.f32 %v3690_v16, 0.0  ;;  %2066 = vst.msk [vmem:[%s4247_s2 + $0xb4] sm:$0xf] %vm2020_vm8, %v2387_v41 }
 0x33a   : > { %v2393_v44 = vpack.c.bf16 %v4378_v39, %v4378_v39  ;;  %v2394_v47 = vpack.c.bf16 %v4379_v45, %v4379_v45  ;;  %2067 = vst.msk [vmem:[%s4247_s2 + $0xb8] sm:$0xf] %vm2020_vm8, %v2388_v54  ;;  %2068 = vst.msk [vmem:[%s4247_s2 + $0xbc] sm:$0xf] %vm2020_vm8, %v2389_v17  ;;  %v4383_v59 = vmax.f32 %v3694_v19, 0.0  ;;  %v4384_v2 = vmax.f32 %v3698_v63, 0.0 }
 0x33b   : > { %v2395_v15 = vpack.c.bf16 %v4380_v11, %v4380_v11  ;;  %v2396_v35 = vpack.c.bf16 %v4381_v27, %v4381_v27  ;;  %v2397_v21 = vpack.c.bf16 %v4382_v7, %v4382_v7  ;;  %v4385_v22 = vmax.f32 %v4312_v31, 0.0  ;;  %2069 = vst.msk [vmem:[%s4247_s2 + $0xc0] sm:$0xf] %vm2020_vm8, %v2390_v9  ;;  %2070 = vst.msk [vmem:[%s4247_s2 + $0xc4] sm:$0xf] %vm2020_vm8, %v2391_v23 }
 0x33c   : > { %v2398_v50 = vpack.c.bf16 %v4383_v59, %v4383_v59  ;;  %v2399_v16 = vpack.c.bf16 %v4384_v2, %v4384_v2  ;;  %v4386_v13 = vmax.f32 %v4313_v24, 0.0  ;;  %2071 = vst.msk [vmem:[%s4247_s2 + $0xc8] sm:$0xf] %vm2020_vm8, %v2392_v34  ;;  %2072 = vst.msk [vmem:[%s4247_s2 + $0xcc] sm:$0xf] %vm2020_vm8, %v2393_v44  ;;  %v4387_v31 = vmax.f32 %v4314_v33, 0.0 }
 0x33d   : > { %v2400_v56 = vpack.c.bf16 %v4385_v22, %v4385_v22  ;;  %v4388_v19 = vmax.f32 %v4315_v55, 0.0  ;;  %v4389_v20 = vmax.f32 %v4316_v10, 0.0  ;;  %v4390_v25 = vmax.f32 %v3722_v43, 0.0  ;;  %2073 = vst.msk [vmem:[%s4247_s2 + $0xd0] sm:$0xf] %vm2020_vm8, %v2394_v47 }
 0x33e   : > { %v2401_v57 = vpack.c.bf16 %v4386_v13, %v4386_v13  ;;  %v2402_v24 = vpack.c.bf16 %v4387_v31, %v4387_v31  ;;  %2074 = vst.msk [vmem:[%s4247_s2 + $0xd4] sm:$0xf] %vm2020_vm8, %v2395_v15  ;;  %2075 = vst.msk [vmem:[%s4247_s2 + $0xd8] sm:$0xf] %vm2020_vm8, %v2396_v35 }
 0x33f   : > { %v2403_v63 = vpack.c.bf16 %v4388_v19, %v4388_v19  ;;  %v2404_v48 = vpack.c.bf16 %v4389_v20, %v4389_v20  ;;  %v2405_v30 = vpack.c.bf16 %v4390_v25, %v4390_v25  ;;  %2076 = vst.msk [vmem:[%s4247_s2 + $0xdc] sm:$0xf] %vm2020_vm8, %v2397_v21  ;;  %2077 = vst.msk [vmem:[%s4247_s2 + $0xe0] sm:$0xf] %vm2020_vm8, %v2398_v50 }
 0x340   : > { %2078 = vst.msk [vmem:[%s4247_s2 + $0xe4] sm:$0xf] %vm2020_vm8, %v2399_v16  ;;  %2079 = vst.msk [vmem:[%s4247_s2 + $0xe8] sm:$0xf] %vm2020_vm8, %v2400_v56 }
 0x341   : > { %2080 = vst.msk [vmem:[%s4247_s2 + $0xec] sm:$0xf] %vm2020_vm8, %v2401_v57  ;;  %2081 = vst.msk [vmem:[%s4247_s2 + $0xf0] sm:$0xf] %vm2020_vm8, %v2402_v24 }
 0x342   : > { %2082 = vst.msk [vmem:[%s4247_s2 + $0xf4] sm:$0xf] %vm2020_vm8, %v2403_v63  ;;  %2083 = vst.msk [vmem:[%s4247_s2 + $0xf8] sm:$0xf] %vm2020_vm8, %v2404_v48 }
 0x343   : > { %2084 = vst.msk [vmem:[%s4247_s2 + $0xfc] sm:$0xf] %vm2020_vm8, %v2405_v30 }
 0x344 PF: > { %s12_s11 = sadd.s32 1, %s2585_s11   ;;  %s4391_s9 = smov %s2581_s10 }
 0x345   : > { %p9_p7 = scmp.ge.s32.totalorder %s12_s11, 4   ;;  %s4392_s10 = smov %s4394_s12 }
 0x347   :  { %11 = sbr.rel (!%p9_p7) target bundleno = 2 (0x2), region = 76 }

// kernel: generator_forward.9
= control target key start
LH: loop header
LB: loop body
LE: loop exit
PB: predicated region body
PF: predicated region fallthrough
CT: control target
= control target key end

     0   :  { %vm944_vm0 = vcmask 588800   ;;  %vm1329_vm1 = vcmask 1043456   ;;  %vm2646_vm2 = vcmask 220160   ;;  %s5790_s1 = inlined_call_operand.vmem [shape: bf16[72,27], index: 1, kind: input, shape index: {}]   ;;  %s5791_s0 = inlined_call_operand.vmem [shape: bf16[2048,72], index: 0, kind: input, shape index: {}]   ;;  %s5792_s2 = inlined_call_operand.vmem [shape: f32[2048,27], index: 2, kind: output, shape index: {}]  }
   0x1   :  { %v3579_v0 = vld [vmem:[%s5790_s1] sm:$0xff]   ;;  %v3580_v1 = vld [vmem:[%s5790_s1 + $0x8] sm:$0xff]   ;;  %v3581_v2 = vld [vmem:[%s5790_s1 + $0x10] sm:$0xff]  }
   0x2   :  { %3301 = vmatprep.subr.bf16.mxu0 %v3579_v0  ;;  %3567 = vmatprep.subr.bf16.mxu1 %v3579_v0  ;;  %v3584_v3 = vld [vmem:[%s5791_s0] sm:$0xff]   ;;  %v3582_v5 = vld [vmem:[%s5790_s1 + $0x18] sm:$0xff]   ;;  %v3586_v8 = vld [vmem:[%s5791_s0 + $0x8] sm:$0xff]  }
   0x3   :  { %3302 = vmatpush3.bf16.msra.mxu0 %v3579_v0  ;;  %3572 = vmatpush3.bf16.msra.mxu1 %v3579_v0  ;;  %v3585_v4 = vld [vmem:[%s5791_s0 + $0x200] sm:$0xff]   ;;  %v3587_v9 = vld [vmem:[%s5791_s0 + $0x208] sm:$0xff]   ;;  %v3588_v10 = vld [vmem:[%s5791_s0 + $0x10] sm:$0xff]  }
   0x4   :  { %3303 = vmatprep.subr.bf16.mxu0 %v3580_v1  ;;  %3568 = vmatprep.subr.bf16.mxu1 %v3580_v1  ;;  %v3583_v6 = vld [vmem:[%s5790_s1 + $0x20] ss:$0 sps:$4 sm:$0xff]   ;;  %v3589_v11 = vld [vmem:[%s5791_s0 + $0x210] sm:$0xff]   ;;  %v3590_v12 = vld [vmem:[%s5791_s0 + $0x18] sm:$0xff]  }
   0x5   :  { %3311 = vmatprep.mubr.msk.bf16.mxu0 %vm944_vm0, %v3584_v3  ;;  %3439 = vmatprep.mubr.msk.bf16.mxu1 %vm944_vm0, %v3585_v4  ;;  %v1331_v7 = vsel %vm1329_vm1, %v3583_v6, 0  ;;  %v3591_v13 = vld [vmem:[%s5791_s0 + $0x218] sm:$0xff]   ;;  %v3592_v14 = vld [vmem:[%s5791_s0 + $0x20] sm:$0xff]   ;;  %v3594_v16 = vld [vmem:[%s5791_s0 + $0x28] sm:$0xff]  }
   0x6   :  { %v3593_v15 = vld [vmem:[%s5791_s0 + $0x220] sm:$0xff]   ;;  %v3595_v17 = vld [vmem:[%s5791_s0 + $0x228] sm:$0xff]   ;;  %v3596_v18 = vld [vmem:[%s5791_s0 + $0x30] sm:$0xff]  }
   0x7   :  { %3304 = vmatpush3.bf16.msra.mxu0 %v3580_v1  ;;  %3573 = vmatpush3.bf16.msra.mxu1 %v3580_v1  ;;  %v3597_v19 = vld [vmem:[%s5791_s0 + $0x230] sm:$0xff]   ;;  %v3598_v20 = vld [vmem:[%s5791_s0 + $0x38] sm:$0xff]   ;;  %v3600_v22 = vld [vmem:[%s5791_s0 + $0x40] sm:$0xff]  }
   0x8   :  { %3305 = vmatprep.subr.bf16.mxu0 %v3581_v2  ;;  %3569 = vmatprep.subr.bf16.mxu1 %v3581_v2  ;;  %v3599_v21 = vld [vmem:[%s5791_s0 + $0x238] sm:$0xff]   ;;  %v3601_v23 = vld [vmem:[%s5791_s0 + $0x240] sm:$0xff]   ;;  %v3602_v24 = vld [vmem:[%s5791_s0 + $0x48] sm:$0xff]  }
   0x9   :  { %v3603_v25 = vld [vmem:[%s5791_s0 + $0x248] sm:$0xff]   ;;  %v3604_v26 = vld [vmem:[%s5791_s0 + $0x50] sm:$0xff]   ;;  %v3606_v28 = vld [vmem:[%s5791_s0 + $0x58] sm:$0xff]  }
   0xa   :  { %v3605_v27 = vld [vmem:[%s5791_s0 + $0x250] sm:$0xff]   ;;  %v3607_v29 = vld [vmem:[%s5791_s0 + $0x258] sm:$0xff]   ;;  %v3608_v30 = vld [vmem:[%s5791_s0 + $0x60] sm:$0xff]  }
   0xb   :  { %3306 = vmatpush3.bf16.msra.mxu0 %v3581_v2  ;;  %3574 = vmatpush3.bf16.msra.mxu1 %v3581_v2  ;;  %v3609_v31 = vld [vmem:[%s5791_s0 + $0x260] sm:$0xff]   ;;  %v3610_v32 = vld [vmem:[%s5791_s0 + $0x68] sm:$0xff]   ;;  %v3612_v34 = vld [vmem:[%s5791_s0 + $0x70] sm:$0xff]  }
   0xc   :  { %3307 = vmatprep.subr.bf16.mxu0 %v3582_v5  ;;  %3570 = vmatprep.subr.bf16.mxu1 %v3582_v5  ;;  %v3611_v33 = vld [vmem:[%s5791_s0 + $0x268] sm:$0xff]   ;;  %v3613_v35 = vld [vmem:[%s5791_s0 + $0x270] sm:$0xff]   ;;  %v3614_v36 = vld [vmem:[%s5791_s0 + $0x78] sm:$0xff]  }
   0xd   :  { %v3615_v37 = vld [vmem:[%s5791_s0 + $0x278] sm:$0xff]   ;;  %v3616_v38 = vld [vmem:[%s5791_s0 + $0x80] sm:$0xff]   ;;  %v3618_v40 = vld [vmem:[%s5791_s0 + $0x88] sm:$0xff]  }
   0xe   :  { %v3617_v39 = vld [vmem:[%s5791_s0 + $0x280] sm:$0xff]   ;;  %v3619_v41 = vld [vmem:[%s5791_s0 + $0x288] sm:$0xff]   ;;  %v3620_v42 = vld [vmem:[%s5791_s0 + $0x90] sm:$0xff]  }
   0xf   :  { %3308 = vmatpush3.bf16.msra.mxu0 %v3582_v5  ;;  %3575 = vmatpush3.bf16.msra.mxu1 %v3582_v5  ;;  %v3621_v43 = vld [vmem:[%s5791_s0 + $0x290] sm:$0xff]   ;;  %v3622_v44 = vld [vmem:[%s5791_s0 + $0x98] sm:$0xff]   ;;  %v3624_v46 = vld [vmem:[%s5791_s0 + $0xa0] sm:$0xff]  }
  0x10   :  { %3577 = vmatprep.subr.msk.bf16.mxu0 %vm1329_vm1, %v3583_v6  ;;  %3578 = vmatprep.subr.msk.bf16.mxu1 %vm1329_vm1, %v3583_v6  ;;  %v3623_v45 = vld [vmem:[%s5791_s0 + $0x298] sm:$0xff]   ;;  %v3625_v47 = vld [vmem:[%s5791_s0 + $0x2a0] sm:$0xff]   ;;  %v3626_v48 = vld [vmem:[%s5791_s0 + $0xa8] sm:$0xff]  }
  0x11   :  { %v3627_v49 = vld [vmem:[%s5791_s0 + $0x2a8] sm:$0xff]   ;;  %v3628_v50 = vld [vmem:[%s5791_s0 + $0xb0] sm:$0xff]   ;;  %v3630_v52 = vld [vmem:[%s5791_s0 + $0xb8] sm:$0xff]  }
  0x12   :  { %v3629_v51 = vld [vmem:[%s5791_s0 + $0x2b0] sm:$0xff]   ;;  %v3631_v53 = vld [vmem:[%s5791_s0 + $0x2b8] sm:$0xff]   ;;  %v3632_v54 = vld [vmem:[%s5791_s0 + $0xc0] sm:$0xff]  }
  0x13   :  { %3310 = vmatpush3.bf16.msra.mxu0 %v1331_v7  ;;  %3576 = vmatpush3.bf16.msra.mxu1 %v1331_v7  ;;  %v3633_v55 = vld [vmem:[%s5791_s0 + $0x2c0] sm:$0xff]   ;;  %v3634_v56 = vld [vmem:[%s5791_s0 + $0xc8] sm:$0xff]   ;;  %v3636_v58 = vld [vmem:[%s5791_s0 + $0xd0] sm:$0xff]  }
  0x14   :  { %v3635_v57 = vld [vmem:[%s5791_s0 + $0x2c8] sm:$0xff]   ;;  %v3637_v59 = vld [vmem:[%s5791_s0 + $0x2d0] sm:$0xff]   ;;  %v3638_v60 = vld [vmem:[%s5791_s0 + $0xd8] sm:$0xff]  }
  0x15   :  { %v3639_v61 = vld [vmem:[%s5791_s0 + $0x2d8] sm:$0xff]   ;;  %v3640_v62 = vld [vmem:[%s5791_s0 + $0xe0] sm:$0xff]   ;;  %v3642_v0 = vld [vmem:[%s5791_s0 + $0xe8] sm:$0xff]  }
  0x16   :  { %3312 = vmatmul.mubr.msk.bf16.vlgmr.msra.gmra.mrb[0].mxu0 %vm944_vm0, %v3586_v8  ;;  %3440 = vmatmul.mubr.msk.bf16.vlgmr.msra.gmra.mrb[0].mxu1 %vm944_vm0, %v3587_v9  ;;  %v3641_v63 = vld [vmem:[%s5791_s0 + $0x2e0] sm:$0xff]   ;;  %v3643_v1 = vld [vmem:[%s5791_s0 + $0x2e8] sm:$0xff]   ;;  %v3644_v2 = vld [vmem:[%s5791_s0 + $0xf0] sm:$0xff]  }
  0x17   :  { %3315 = vmatprep.mubr.msk.bf16.mxu0 %vm944_vm0, %v3588_v10  ;;  %3443 = vmatprep.mubr.msk.bf16.mxu1 %vm944_vm0, %v3589_v11  ;;  %v3645_v3 = vld [vmem:[%s5791_s0 + $0x2f0] sm:$0xff]   ;;  %v3646_v4 = vld [vmem:[%s5791_s0 + $0xf8] sm:$0xff]   ;;  %v3648_v6 = vld [vmem:[%s5791_s0 + $0x100] sm:$0xff]  }
  0x18   :  { %v3647_v5 = vld [vmem:[%s5791_s0 + $0x2f8] sm:$0xff]   ;;  %v3649_v7 = vld [vmem:[%s5791_s0 + $0x300] sm:$0xff]   ;;  %v3650_v8 = vld [vmem:[%s5791_s0 + $0x108] sm:$0xff]  }
  0x19   :  { %v3651_v9 = vld [vmem:[%s5791_s0 + $0x308] sm:$0xff]   ;;  %v3652_v10 = vld [vmem:[%s5791_s0 + $0x110] sm:$0xff]  }
  0x1a   :  { %v3653_v11 = vld [vmem:[%s5791_s0 + $0x310] sm:$0xff]  }
  0x1e   :  { %3316 = vmatmul.mubr.msk.bf16.gmra.mrb[4].mxu0 %vm944_vm0, %v3590_v12  ;;  %3444 = vmatmul.mubr.msk.bf16.gmra.mrb[4].mxu1 %vm944_vm0, %v3591_v13  ;;  %v3654_v12 = vld [vmem:[%s5791_s0 + $0x118] sm:$0xff]  }
  0x1f   :  { %3319 = vmatprep.mubr.msk.bf16.mxu0 %vm944_vm0, %v3592_v14  ;;  %3447 = vmatprep.mubr.msk.bf16.mxu1 %vm944_vm0, %v3593_v15  ;;  %v3655_v13 = vld [vmem:[%s5791_s0 + $0x318] sm:$0xff]   ;;  %v3656_v14 = vld [vmem:[%s5791_s0 + $0x120] sm:$0xff]  }
  0x20   :  { %v3657_v15 = vld [vmem:[%s5791_s0 + $0x320] sm:$0xff]  }
  0x26   :  { %3320 = vmatmul.mubr.msk.bf16.gmra.mrb[8].mxu0 %vm944_vm0, %v3594_v16  ;;  %3448 = vmatmul.mubr.msk.bf16.gmra.mrb[8].mxu1 %vm944_vm0, %v3595_v17  ;;  %v3658_v16 = vld [vmem:[%s5791_s0 + $0x128] sm:$0xff]  }
  0x27   :  { %3323 = vmatprep.mubr.msk.bf16.mxu0 %vm944_vm0, %v3596_v18  ;;  %3451 = vmatprep.mubr.msk.bf16.mxu1 %vm944_vm0, %v3597_v19  ;;  %v3659_v17 = vld [vmem:[%s5791_s0 + $0x328] sm:$0xff]   ;;  %v3660_v18 = vld [vmem:[%s5791_s0 + $0x130] sm:$0xff]  }
  0x28   :  { %v3661_v19 = vld [vmem:[%s5791_s0 + $0x330] sm:$0xff]  }
  0x2e   :  { %3324 = vmatmul.mubr.msk.bf16.gmra.mrb[12].mxu0 %vm944_vm0, %v3598_v20  ;;  %3452 = vmatmul.mubr.msk.bf16.gmra.mrb[12].mxu1 %vm944_vm0, %v3599_v21  ;;  %v3662_v20 = vld [vmem:[%s5791_s0 + $0x138] sm:$0xff]  }
  0x2f   :  { %3327 = vmatprep.mubr.msk.bf16.mxu0 %vm944_vm0, %v3600_v22  ;;  %3455 = vmatprep.mubr.msk.bf16.mxu1 %vm944_vm0, %v3601_v23  ;;  %v3663_v21 = vld [vmem:[%s5791_s0 + $0x338] sm:$0xff]   ;;  %v3664_v22 = vld [vmem:[%s5791_s0 + $0x140] sm:$0xff]  }
  0x30   :  { %v3665_v23 = vld [vmem:[%s5791_s0 + $0x340] sm:$0xff]  }
  0x36   :  { %3328 = vmatmul.mubr.msk.bf16.gmra.mrb[16].mxu0 %vm944_vm0, %v3602_v24  ;;  %3456 = vmatmul.mubr.msk.bf16.gmra.mrb[16].mxu1 %vm944_vm0, %v3603_v25  ;;  %v3666_v24 = vld [vmem:[%s5791_s0 + $0x148] sm:$0xff]  }
  0x37   :  { %3331 = vmatprep.mubr.msk.bf16.mxu0 %vm944_vm0, %v3604_v26  ;;  %3459 = vmatprep.mubr.msk.bf16.mxu1 %vm944_vm0, %v3605_v27  ;;  %v3667_v25 = vld [vmem:[%s5791_s0 + $0x348] sm:$0xff]   ;;  %v3668_v26 = vld [vmem:[%s5791_s0 + $0x150] sm:$0xff]  }
  0x38   :  { %v3669_v27 = vld [vmem:[%s5791_s0 + $0x350] sm:$0xff]  }
  0x3e   :  { %3332 = vmatmul.mubr.msk.bf16.gmra.mrb[20].mxu0 %vm944_vm0, %v3606_v28  ;;  %3460 = vmatmul.mubr.msk.bf16.gmra.mrb[20].mxu1 %vm944_vm0, %v3607_v29  ;;  %v3670_v28 = vld [vmem:[%s5791_s0 + $0x158] sm:$0xff]  }
  0x3f   :  { %3335 = vmatprep.mubr.msk.bf16.mxu0 %vm944_vm0, %v3608_v30  ;;  %3463 = vmatprep.mubr.msk.bf16.mxu1 %vm944_vm0, %v3609_v31  ;;  %v3671_v29 = vld [vmem:[%s5791_s0 + $0x358] sm:$0xff]   ;;  %v3672_v30 = vld [vmem:[%s5791_s0 + $0x160] sm:$0xff]  }
  0x40   :  { %v3673_v31 = vld [vmem:[%s5791_s0 + $0x360] sm:$0xff]  }
  0x46   :  { %3336 = vmatmul.mubr.msk.bf16.gmra.mrb[24].mxu0 %vm944_vm0, %v3610_v32  ;;  %3464 = vmatmul.mubr.msk.bf16.gmra.mrb[24].mxu1 %vm944_vm0, %v3611_v33  ;;  %v3674_v32 = vld [vmem:[%s5791_s0 + $0x168] sm:$0xff]  }
  0x47   :  { %3339 = vmatprep.mubr.msk.bf16.mxu0 %vm944_vm0, %v3612_v34  ;;  %3467 = vmatprep.mubr.msk.bf16.mxu1 %vm944_vm0, %v3613_v35  ;;  %v3675_v33 = vld [vmem:[%s5791_s0 + $0x368] sm:$0xff]   ;;  %v3676_v34 = vld [vmem:[%s5791_s0 + $0x170] sm:$0xff]  }
  0x48   :  { %v3677_v35 = vld [vmem:[%s5791_s0 + $0x370] sm:$0xff]  }
  0x4e   :  { %3340 = vmatmul.mubr.msk.bf16.gmra.mrb[28].mxu0 %vm944_vm0, %v3614_v36  ;;  %3468 = vmatmul.mubr.msk.bf16.gmra.mrb[28].mxu1 %vm944_vm0, %v3615_v37  ;;  %v3678_v36 = vld [vmem:[%s5791_s0 + $0x178] sm:$0xff]  }
  0x4f   :  { %3343 = vmatprep.mubr.msk.bf16.mxu0 %vm944_vm0, %v3616_v38  ;;  %3471 = vmatprep.mubr.msk.bf16.mxu1 %vm944_vm0, %v3617_v39  ;;  %v3679_v37 = vld [vmem:[%s5791_s0 + $0x378] sm:$0xff]   ;;  %v3680_v38 = vld [vmem:[%s5791_s0 + $0x180] sm:$0xff]  }
  0x50   :  { %v3681_v39 = vld [vmem:[%s5791_s0 + $0x380] sm:$0xff]  }
  0x56   :  { %3344 = vmatmul.mubr.msk.bf16.gmra.mrb[32].mxu0 %vm944_vm0, %v3618_v40  ;;  %3472 = vmatmul.mubr.msk.bf16.gmra.mrb[32].mxu1 %vm944_vm0, %v3619_v41  ;;  %v3682_v40 = vld [vmem:[%s5791_s0 + $0x188] sm:$0xff]  }
  0x57   :  { %3347 = vmatprep.mubr.msk.bf16.mxu0 %vm944_vm0, %v3620_v42  ;;  %3475 = vmatprep.mubr.msk.bf16.mxu1 %vm944_vm0, %v3621_v43  ;;  %v3683_v41 = vld [vmem:[%s5791_s0 + $0x388] sm:$0xff]   ;;  %v3684_v42 = vld [vmem:[%s5791_s0 + $0x190] sm:$0xff]  }
  0x58   :  { %v3685_v43 = vld [vmem:[%s5791_s0 + $0x390] sm:$0xff]  }
  0x5e   :  { %3348 = vmatmul.mubr.msk.bf16.gmra.mrb[36].mxu0 %vm944_vm0, %v3622_v44  ;;  %3476 = vmatmul.mubr.msk.bf16.gmra.mrb[36].mxu1 %vm944_vm0, %v3623_v45  ;;  %v3686_v44 = vld [vmem:[%s5791_s0 + $0x198] sm:$0xff]  }
  0x5f   :  { %3351 = vmatprep.mubr.msk.bf16.mxu0 %vm944_vm0, %v3624_v46  ;;  %3479 = vmatprep.mubr.msk.bf16.mxu1 %vm944_vm0, %v3625_v47  ;;  %v3687_v45 = vld [vmem:[%s5791_s0 + $0x398] sm:$0xff]   ;;  %v3688_v46 = vld [vmem:[%s5791_s0 + $0x1a0] sm:$0xff]  }
  0x60   :  { %v3689_v47 = vld [vmem:[%s5791_s0 + $0x3a0] sm:$0xff]  }
  0x66   :  { %3352 = vmatmul.mubr.msk.bf16.gmra.mrb[40].mxu0 %vm944_vm0, %v3626_v48  ;;  %3480 = vmatmul.mubr.msk.bf16.gmra.mrb[40].mxu1 %vm944_vm0, %v3627_v49  ;;  %v3690_v48 = vld [vmem:[%s5791_s0 + $0x1a8] sm:$0xff]  }
  0x67   :  { %3355 = vmatprep.mubr.msk.bf16.mxu0 %vm944_vm0, %v3628_v50  ;;  %3483 = vmatprep.mubr.msk.bf16.mxu1 %vm944_vm0, %v3629_v51  ;;  %v3691_v49 = vld [vmem:[%s5791_s0 + $0x3a8] sm:$0xff]   ;;  %v3692_v50 = vld [vmem:[%s5791_s0 + $0x1b0] sm:$0xff]  }
  0x68   :  { %v3693_v51 = vld [vmem:[%s5791_s0 + $0x3b0] sm:$0xff]  }
  0x6e   :  { %3356 = vmatmul.mubr.msk.bf16.gmra.mrb[44].mxu0 %vm944_vm0, %v3630_v52  ;;  %3484 = vmatmul.mubr.msk.bf16.gmra.mrb[44].mxu1 %vm944_vm0, %v3631_v53 }
  0x6f   :  { %3359 = vmatprep.mubr.msk.bf16.mxu0 %vm944_vm0, %v3632_v54  ;;  %3487 = vmatprep.mubr.msk.bf16.mxu1 %vm944_vm0, %v3633_v55 }
  0x76   :  { %3360 = vmatmul.mubr.msk.bf16.gmra.mrb[48].mxu0 %vm944_vm0, %v3634_v56  ;;  %3488 = vmatmul.mubr.msk.bf16.gmra.mrb[48].mxu1 %vm944_vm0, %v3635_v57  ;;  %v3694_v56 = vld [vmem:[%s5791_s0 + $0x1b8] sm:$0xff]  }
  0x77   :  { %3363 = vmatprep.mubr.msk.bf16.mxu0 %vm944_vm0, %v3636_v58  ;;  %3491 = vmatprep.mubr.msk.bf16.mxu1 %vm944_vm0, %v3637_v59  ;;  %v3695_v57 = vld [vmem:[%s5791_s0 + $0x3b8] sm:$0xff]  }
  0x7e   :  { %3364 = vmatmul.mubr.msk.bf16.gmra.mrb[52].mxu0 %vm944_vm0, %v3638_v60  ;;  %3492 = vmatmul.mubr.msk.bf16.gmra.mrb[52].mxu1 %vm944_vm0, %v3639_v61  ;;  %v3696_v60 = vld [vmem:[%s5791_s0 + $0x1c0] sm:$0xff]  }
  0x7f   :  { %3367 = vmatprep.mubr.msk.bf16.mxu0 %vm944_vm0, %v3640_v62  ;;  %3495 = vmatprep.mubr.msk.bf16.mxu1 %vm944_vm0, %v3641_v63  ;;  %v3697_v61 = vld [vmem:[%s5791_s0 + $0x3c0] sm:$0xff]  }
  0x86   :  { %3368 = vmatmul.mubr.msk.bf16.gmra.mrb[56].mxu0 %vm944_vm0, %v3642_v0  ;;  %3496 = vmatmul.mubr.msk.bf16.gmra.mrb[56].mxu1 %vm944_vm0, %v3643_v1 }
  0x87   :  { %3371 = vmatprep.mubr.msk.bf16.mxu0 %vm944_vm0, %v3644_v2  ;;  %3499 = vmatprep.mubr.msk.bf16.mxu1 %vm944_vm0, %v3645_v3 }
  0x8e   :  { %3372 = vmatmul.mubr.msk.bf16.gmra.mrb[60].mxu0 %vm944_vm0, %v3646_v4  ;;  %3500 = vmatmul.mubr.msk.bf16.gmra.mrb[60].mxu1 %vm944_vm0, %v3647_v5  ;;  %v3698_v4 = vld [vmem:[%s5791_s0 + $0x1c8] sm:$0xff]  }
  0x8f   :  { %3375 = vmatprep.mubr.msk.bf16.mxu0 %vm944_vm0, %v3648_v6  ;;  %3503 = vmatprep.mubr.msk.bf16.mxu1 %vm944_vm0, %v3649_v7  ;;  %v3699_v5 = vld [vmem:[%s5791_s0 + $0x3c8] sm:$0xff]  }
  0x96   :  { %3376 = vmatmul.mubr.msk.bf16.gmra.mrb[64].mxu0 %vm944_vm0, %v3650_v8  ;;  %3504 = vmatmul.mubr.msk.bf16.gmra.mrb[64].mxu1 %vm944_vm0, %v3651_v9  ;;  %v3700_v8 = vld [vmem:[%s5791_s0 + $0x1d0] sm:$0xff]  }
  0x97   :  { %3379 = vmatprep.mubr.msk.bf16.mxu0 %vm944_vm0, %v3652_v10  ;;  %3507 = vmatprep.mubr.msk.bf16.mxu1 %vm944_vm0, %v3653_v11  ;;  %v3701_v9 = vld [vmem:[%s5791_s0 + $0x3d0] sm:$0xff]  }
  0x9e   :  { %3380 = vmatmul.mubr.msk.bf16.gmra.mrb[68].mxu0 %vm944_vm0, %v3654_v12  ;;  %3508 = vmatmul.mubr.msk.bf16.gmra.mrb[68].mxu1 %vm944_vm0, %v3655_v13 }
  0x9f   :  { %3383 = vmatprep.mubr.msk.bf16.mxu0 %vm944_vm0, %v3656_v14  ;;  %3511 = vmatprep.mubr.msk.bf16.mxu1 %vm944_vm0, %v3657_v15 }
  0xa6   :  { %3384 = vmatmul.mubr.msk.bf16.gmra.mrb[72].mxu0 %vm944_vm0, %v3658_v16  ;;  %3512 = vmatmul.mubr.msk.bf16.gmra.mrb[72].mxu1 %vm944_vm0, %v3659_v17 }
  0xa7   :  { %3387 = vmatprep.mubr.msk.bf16.mxu0 %vm944_vm0, %v3660_v18  ;;  %3515 = vmatprep.mubr.msk.bf16.mxu1 %vm944_vm0, %v3661_v19 }
  0xae   :  { %3388 = vmatmul.mubr.msk.bf16.gmra.mrb[76].mxu0 %vm944_vm0, %v3662_v20  ;;  %3516 = vmatmul.mubr.msk.bf16.gmra.mrb[76].mxu1 %vm944_vm0, %v3663_v21 }
  0xaf   :  { %3391 = vmatprep.mubr.msk.bf16.mxu0 %vm944_vm0, %v3664_v22  ;;  %3519 = vmatprep.mubr.msk.bf16.mxu1 %vm944_vm0, %v3665_v23  ;;  %v3702_v23 = vld [vmem:[%s5791_s0 + $0x1d8] sm:$0xff]  }
  0xb6   :  { %3392 = vmatmul.mubr.msk.bf16.gmra.mrb[80].mxu0 %vm944_vm0, %v3666_v24  ;;  %3520 = vmatmul.mubr.msk.bf16.gmra.mrb[80].mxu1 %vm944_vm0, %v3667_v25  ;;  %v3703_v24 = vld [vmem:[%s5791_s0 + $0x3d8] sm:$0xff]  }
  0xb7   :  { %3395 = vmatprep.mubr.msk.bf16.mxu0 %vm944_vm0, %v3668_v26  ;;  %3523 = vmatprep.mubr.msk.bf16.mxu1 %vm944_vm0, %v3669_v27 }
  0xbe   :  { %3396 = vmatmul.mubr.msk.bf16.gmra.mrb[84].mxu0 %vm944_vm0, %v3670_v28  ;;  %3524 = vmatmul.mubr.msk.bf16.gmra.mrb[84].mxu1 %vm944_vm0, %v3671_v29  ;;  %v3704_v28 = vld [vmem:[%s5791_s0 + $0x1e0] sm:$0xff]  }
  0xbf   :  { %3399 = vmatprep.mubr.msk.bf16.mxu0 %vm944_vm0, %v3672_v30  ;;  %3527 = vmatprep.mubr.msk.bf16.mxu1 %vm944_vm0, %v3673_v31  ;;  %v3705_v29 = vld [vmem:[%s5791_s0 + $0x3e0] sm:$0xff]  }
  0xc6   :  { %3400 = vmatmul.mubr.msk.bf16.gmra.mrb[88].mxu0 %vm944_vm0, %v3674_v32  ;;  %3528 = vmatmul.mubr.msk.bf16.gmra.mrb[88].mxu1 %vm944_vm0, %v3675_v33 }
  0xc7   :  { %3403 = vmatprep.mubr.msk.bf16.mxu0 %vm944_vm0, %v3676_v34  ;;  %3531 = vmatprep.mubr.msk.bf16.mxu1 %vm944_vm0, %v3677_v35 }
  0xce   :  { %3404 = vmatmul.mubr.msk.bf16.gmra.mrb[92].mxu0 %vm944_vm0, %v3678_v36  ;;  %3532 = vmatmul.mubr.msk.bf16.gmra.mrb[92].mxu1 %vm944_vm0, %v3679_v37 }
  0xcf   :  { %3407 = vmatprep.mubr.msk.bf16.mxu0 %vm944_vm0, %v3680_v38  ;;  %3535 = vmatprep.mubr.msk.bf16.mxu1 %vm944_vm0, %v3681_v39 }
  0xd6   :  { %3408 = vmatmul.mubr.msk.bf16.gmra.mrb[96].mxu0 %vm944_vm0, %v3682_v40  ;;  %3536 = vmatmul.mubr.msk.bf16.gmra.mrb[96].mxu1 %vm944_vm0, %v3683_v41 }
  0xd7   :  { %3411 = vmatprep.mubr.msk.bf16.mxu0 %vm944_vm0, %v3684_v42  ;;  %3539 = vmatprep.mubr.msk.bf16.mxu1 %vm944_vm0, %v3685_v43  ;;  %v3706_v43 = vld [vmem:[%s5791_s0 + $0x1e8] sm:$0xff]  }
  0xde   :  { %3412 = vmatmul.mubr.msk.bf16.gmra.mrb[100].mxu0 %vm944_vm0, %v3686_v44  ;;  %3540 = vmatmul.mubr.msk.bf16.gmra.mrb[100].mxu1 %vm944_vm0, %v3687_v45  ;;  %v3707_v44 = vld [vmem:[%s5791_s0 + $0x3e8] sm:$0xff]  }
  0xdf   :  { %3415 = vmatprep.mubr.msk.bf16.mxu0 %vm944_vm0, %v3688_v46  ;;  %3543 = vmatprep.mubr.msk.bf16.mxu1 %vm944_vm0, %v3689_v47 }
  0xe6   :  { %3416 = vmatmul.mubr.msk.bf16.gmra.mrb[104].mxu0 %vm944_vm0, %v3690_v48  ;;  %3544 = vmatmul.mubr.msk.bf16.gmra.mrb[104].mxu1 %vm944_vm0, %v3691_v49  ;;  %v3708_v48 = vld [vmem:[%s5791_s0 + $0x1f0] sm:$0xff]  }
  0xe7   :  { %3419 = vmatprep.mubr.msk.bf16.mxu0 %vm944_vm0, %v3692_v50  ;;  %3547 = vmatprep.mubr.msk.bf16.mxu1 %vm944_vm0, %v3693_v51  ;;  %v3709_v49 = vld [vmem:[%s5791_s0 + $0x3f0] sm:$0xff]  }
  0xe9   :  { %v3313_v52 = vpop.f32.mrb[0].mxu0  ;;  %v3441_v53 = vpop.f32.mrb[0].mxu1 }
  0xea   :  { %3712 = vtanh.f32 %v3313_v52  ;;  %v1367_v54 = vpop.f32.mrb[1].mxu0  ;;  %v1879_v55 = vpop.f32.mrb[1].mxu1 }
  0xeb   :  { %3714 = vtanh.f32 %v3441_v53  ;;  %v3314_v58 = vpop.f32.mrb[2].mxu0  ;;  %v3442_v59 = vpop.f32.mrb[2].mxu1 }
  0xec   :  { %3716 = vtanh.f32 %v1367_v54  ;;  %v1370_v62 = vpop.f32.mrb[3].mxu0  ;;  %v1882_v63 = vpop.f32.mrb[3].mxu1 }
  0xed   :  { %3718 = vtanh.f32 %v1879_v55 }
  0xee   :  { %3720 = vtanh.f32 %v3314_v58  ;;  %3420 = vmatmul.mubr.msk.bf16.gmra.mrb[108].mxu0 %vm944_vm0, %v3694_v56  ;;  %3548 = vmatmul.mubr.msk.bf16.gmra.mrb[108].mxu1 %vm944_vm0, %v3695_v57 }
  0xef   :  { %3722 = vtanh.f32 %v3442_v59  ;;  %3423 = vmatprep.mubr.msk.bf16.mxu0 %vm944_vm0, %v3696_v60  ;;  %3551 = vmatprep.mubr.msk.bf16.mxu1 %vm944_vm0, %v3697_v61 }
  0xf0   :  { %3724 = vtanh.f32 %v1370_v62 }
  0xf1   :  { %3726 = vtanh.f32 %v1882_v63  ;;  %v3317_v0 = vpop.f32.mrb[4].mxu0  ;;  %v3445_v1 = vpop.f32.mrb[4].mxu1  ;;  %v3710_v63 = vld [vmem:[%s5791_s0 + $0x1f8] sm:$0xff]  }
  0xf2   :  { %3728 = vtanh.f32 %v3317_v0  ;;  %v1383_v2 = vpop.f32.mrb[5].mxu0  ;;  %v1895_v3 = vpop.f32.mrb[5].mxu1  ;;  %v3711_v0 = vld [vmem:[%s5791_s0 + $0x3f8] sm:$0xff]  }
  0xf3   :  { %3730 = vtanh.f32 %v3445_v1  ;;  %v3318_v6 = vpop.f32.mrb[6].mxu0  ;;  %v3446_v7 = vpop.f32.mrb[6].mxu1 }
  0xf4   :  { %v3713_v10 = vpop.eup %3712  ;;  %3732 = vtanh.f32 %v1383_v2  ;;  %v1386_v11 = vpop.f32.mrb[7].mxu0 }
  0xf5   :  { %v1898_v12 = vpop.f32.mrb[7].mxu1  ;;  %v3715_v13 = vpop.eup %3714  ;;  %2649 = vst.msk [vmem:[%s5792_s2 + $0x10] sm:$0xff] %vm2646_vm2, %v3713_v10  ;;  %3734 = vtanh.f32 %v1895_v3 }
  0xf6   :  { %v3717_v14 = vpop.eup %3716  ;;  %2777 = vst.msk [vmem:[%s5792_s2 + $0x410] sm:$0xff] %vm2646_vm2, %v3715_v13  ;;  %3736 = vtanh.f32 %v3318_v6  ;;  %3424 = vmatmul.mubr.msk.bf16.gmra.mrb[112].mxu0 %vm944_vm0, %v3698_v4  ;;  %3552 = vmatmul.mubr.msk.bf16.gmra.mrb[112].mxu1 %vm944_vm0, %v3699_v5 }
  0xf7   :  { %v3719_v15 = vpop.eup %3718  ;;  %2647 = vst.msk [vmem:[%s5792_s2] sm:$0xff] %vm2646_vm2, %v3717_v14  ;;  %3738 = vtanh.f32 %v3446_v7  ;;  %3427 = vmatprep.mubr.msk.bf16.mxu0 %vm944_vm0, %v3700_v8  ;;  %3555 = vmatprep.mubr.msk.bf16.mxu1 %vm944_vm0, %v3701_v9 }
  0xf8   :  { %v3721_v16 = vpop.eup %3720  ;;  %2775 = vst.msk [vmem:[%s5792_s2 + $0x400] sm:$0xff] %vm2646_vm2, %v3719_v15  ;;  %3740 = vtanh.f32 %v1386_v11 }
  0xf9   :  { %v3723_v17 = vpop.eup %3722  ;;  %2650 = vst.msk [vmem:[%s5792_s2 + $0x18] sm:$0xff] %vm2646_vm2, %v3721_v16  ;;  %3742 = vtanh.f32 %v1898_v12  ;;  %v3321_v18 = vpop.f32.mrb[8].mxu0 }
  0xfa   :  { %v3449_v19 = vpop.f32.mrb[8].mxu1  ;;  %v3725_v20 = vpop.eup %3724  ;;  %2778 = vst.msk [vmem:[%s5792_s2 + $0x418] sm:$0xff] %vm2646_vm2, %v3723_v17  ;;  %3744 = vtanh.f32 %v3321_v18 }
  0xfb   :  { %v1399_v21 = vpop.f32.mrb[9].mxu0  ;;  %v1911_v22 = vpop.f32.mrb[9].mxu1  ;;  %2648 = vst.msk [vmem:[%s5792_s2 + $0x8] sm:$0xff] %vm2646_vm2, %v3725_v20  ;;  %3746 = vtanh.f32 %v3449_v19 }
  0xfc   :  { %v3727_v25 = vpop.eup %3726  ;;  %v3322_v26 = vpop.f32.mrb[10].mxu0  ;;  %3748 = vtanh.f32 %v1399_v21 }
  0xfd   :  { %v3450_v27 = vpop.f32.mrb[10].mxu1  ;;  %v3729_v30 = vpop.eup %3728  ;;  %2776 = vst.msk [vmem:[%s5792_s2 + $0x408] sm:$0xff] %vm2646_vm2, %v3727_v25  ;;  %3750 = vtanh.f32 %v1911_v22 }
  0xfe   :  { %v1402_v31 = vpop.f32.mrb[11].mxu0  ;;  %v1914_v32 = vpop.f32.mrb[11].mxu1  ;;  %2653 = vst.msk [vmem:[%s5792_s2 + $0x30] sm:$0xff] %vm2646_vm2, %v3729_v30  ;;  %3752 = vtanh.f32 %v3322_v26  ;;  %3428 = vmatmul.mubr.msk.bf16.gmra.mrb[116].mxu0 %vm944_vm0, %v3702_v23  ;;  %3556 = vmatmul.mubr.msk.bf16.gmra.mrb[116].mxu1 %vm944_vm0, %v3703_v24 }
  0xff   :  { %v3731_v33 = vpop.eup %3730  ;;  %3754 = vtanh.f32 %v3450_v27  ;;  %3431 = vmatprep.mubr.msk.bf16.mxu0 %vm944_vm0, %v3704_v28  ;;  %3559 = vmatprep.mubr.msk.bf16.mxu1 %vm944_vm0, %v3705_v29 }
 0x100   :  { %v3733_v34 = vpop.eup %3732  ;;  %2781 = vst.msk [vmem:[%s5792_s2 + $0x430] sm:$0xff] %vm2646_vm2, %v3731_v33  ;;  %3756 = vtanh.f32 %v1402_v31 }
 0x101   :  { %v3735_v35 = vpop.eup %3734  ;;  %2651 = vst.msk [vmem:[%s5792_s2 + $0x20] sm:$0xff] %vm2646_vm2, %v3733_v34  ;;  %3758 = vtanh.f32 %v1914_v32  ;;  %v3325_v38 = vpop.f32.mrb[12].mxu0 }
 0x102   :  { %v3737_v36 = vpop.eup %3736  ;;  %2779 = vst.msk [vmem:[%s5792_s2 + $0x420] sm:$0xff] %vm2646_vm2, %v3735_v35  ;;  %v3453_v39 = vpop.f32.mrb[12].mxu1  ;;  %3760 = vtanh.f32 %v3325_v38 }
 0x103   :  { %v3739_v37 = vpop.eup %3738  ;;  %2654 = vst.msk [vmem:[%s5792_s2 + $0x38] sm:$0xff] %vm2646_vm2, %v3737_v36  ;;  %v1415_v41 = vpop.f32.mrb[13].mxu0  ;;  %3762 = vtanh.f32 %v3453_v39 }
 0x104   :  { %v3741_v40 = vpop.eup %3740  ;;  %2782 = vst.msk [vmem:[%s5792_s2 + $0x438] sm:$0xff] %vm2646_vm2, %v3739_v37  ;;  %v1927_v42 = vpop.f32.mrb[13].mxu1  ;;  %3764 = vtanh.f32 %v1415_v41 }
 0x105   :  { %v3743_v45 = vpop.eup %3742  ;;  %2652 = vst.msk [vmem:[%s5792_s2 + $0x28] sm:$0xff] %vm2646_vm2, %v3741_v40  ;;  %v3326_v46 = vpop.f32.mrb[14].mxu0  ;;  %3766 = vtanh.f32 %v1927_v42 }
 0x106   :  { %v3454_v47 = vpop.f32.mrb[14].mxu1  ;;  %v3745_v50 = vpop.eup %3744  ;;  %2780 = vst.msk [vmem:[%s5792_s2 + $0x428] sm:$0xff] %vm2646_vm2, %v3743_v45  ;;  %3768 = vtanh.f32 %v3326_v46  ;;  %3432 = vmatmul.mubr.msk.bf16.gmra.mrb[120].mxu0 %vm944_vm0, %v3706_v43  ;;  %3560 = vmatmul.mubr.msk.bf16.gmra.mrb[120].mxu1 %vm944_vm0, %v3707_v44 }
 0x107   :  { %v1418_v51 = vpop.f32.mrb[15].mxu0  ;;  %v1930_v52 = vpop.f32.mrb[15].mxu1  ;;  %2657 = vst.msk [vmem:[%s5792_s2 + $0x50] sm:$0xff] %vm2646_vm2, %v3745_v50  ;;  %3770 = vtanh.f32 %v3454_v47  ;;  %3435 = vmatprep.mubr.msk.bf16.mxu0 %vm944_vm0, %v3708_v48  ;;  %3563 = vmatprep.mubr.msk.bf16.mxu1 %vm944_vm0, %v3709_v49 }
 0x108   :  { %v3747_v53 = vpop.eup %3746  ;;  %3772 = vtanh.f32 %v1418_v51 }
 0x109   :  { %v3749_v54 = vpop.eup %3748  ;;  %2785 = vst.msk [vmem:[%s5792_s2 + $0x450] sm:$0xff] %vm2646_vm2, %v3747_v53  ;;  %3774 = vtanh.f32 %v1930_v52  ;;  %v3329_v58 = vpop.f32.mrb[16].mxu0 }
 0x10a   :  { %v3751_v55 = vpop.eup %3750  ;;  %2655 = vst.msk [vmem:[%s5792_s2 + $0x40] sm:$0xff] %vm2646_vm2, %v3749_v54  ;;  %v3457_v59 = vpop.f32.mrb[16].mxu1  ;;  %3776 = vtanh.f32 %v3329_v58 }
 0x10b   :  { %v3753_v56 = vpop.eup %3752  ;;  %2783 = vst.msk [vmem:[%s5792_s2 + $0x440] sm:$0xff] %vm2646_vm2, %v3751_v55  ;;  %v1431_v61 = vpop.f32.mrb[17].mxu0  ;;  %3778 = vtanh.f32 %v3457_v59 }
 0x10c   :  { %v3755_v57 = vpop.eup %3754  ;;  %2658 = vst.msk [vmem:[%s5792_s2 + $0x58] sm:$0xff] %vm2646_vm2, %v3753_v56  ;;  %v1943_v62 = vpop.f32.mrb[17].mxu1  ;;  %3780 = vtanh.f32 %v1431_v61 }
 0x10d   :  { %v3757_v60 = vpop.eup %3756  ;;  %2786 = vst.msk [vmem:[%s5792_s2 + $0x458] sm:$0xff] %vm2646_vm2, %v3755_v57  ;;  %v3330_v2 = vpop.f32.mrb[18].mxu0  ;;  %3782 = vtanh.f32 %v1943_v62 }
 0x10e   :  { %v3759_v1 = vpop.eup %3758  ;;  %2656 = vst.msk [vmem:[%s5792_s2 + $0x48] sm:$0xff] %vm2646_vm2, %v3757_v60  ;;  %v3458_v3 = vpop.f32.mrb[18].mxu1  ;;  %3784 = vtanh.f32 %v3330_v2  ;;  %3436 = vmatmul.mubr.msk.bf16.gmra.mrb[124].mxu0 %vm944_vm0, %v3710_v63  ;;  %3564 = vmatmul.mubr.msk.bf16.gmra.mrb[124].mxu1 %vm944_vm0, %v3711_v0 }
 0x10f   :  { %v3761_v4 = vpop.eup %3760  ;;  %2784 = vst.msk [vmem:[%s5792_s2 + $0x448] sm:$0xff] %vm2646_vm2, %v3759_v1  ;;  %v1434_v5 = vpop.f32.mrb[19].mxu0  ;;  %3786 = vtanh.f32 %v3458_v3 }
 0x110   :  { %v1946_v6 = vpop.f32.mrb[19].mxu1  ;;  %v3763_v7 = vpop.eup %3762  ;;  %2661 = vst.msk [vmem:[%s5792_s2 + $0x70] sm:$0xff] %vm2646_vm2, %v3761_v4  ;;  %3788 = vtanh.f32 %v1434_v5 }
 0x111   :  { %v3765_v8 = vpop.eup %3764  ;;  %2789 = vst.msk [vmem:[%s5792_s2 + $0x470] sm:$0xff] %vm2646_vm2, %v3763_v7  ;;  %3790 = vtanh.f32 %v1946_v6  ;;  %v3333_v12 = vpop.f32.mrb[20].mxu0 }
 0x112   :  { %v3767_v9 = vpop.eup %3766  ;;  %2659 = vst.msk [vmem:[%s5792_s2 + $0x60] sm:$0xff] %vm2646_vm2, %v3765_v8  ;;  %v3461_v13 = vpop.f32.mrb[20].mxu1  ;;  %3792 = vtanh.f32 %v3333_v12 }
 0x113   :  { %v3769_v10 = vpop.eup %3768  ;;  %2787 = vst.msk [vmem:[%s5792_s2 + $0x460] sm:$0xff] %vm2646_vm2, %v3767_v9  ;;  %v1447_v15 = vpop.f32.mrb[21].mxu0  ;;  %3794 = vtanh.f32 %v3461_v13 }
 0x114   :  { %v3771_v11 = vpop.eup %3770  ;;  %2662 = vst.msk [vmem:[%s5792_s2 + $0x78] sm:$0xff] %vm2646_vm2, %v3769_v10  ;;  %v1959_v16 = vpop.f32.mrb[21].mxu1  ;;  %3796 = vtanh.f32 %v1447_v15 }
 0x115   :  { %v3773_v14 = vpop.eup %3772  ;;  %2790 = vst.msk [vmem:[%s5792_s2 + $0x478] sm:$0xff] %vm2646_vm2, %v3771_v11  ;;  %v3334_v18 = vpop.f32.mrb[22].mxu0  ;;  %3798 = vtanh.f32 %v1959_v16 }
 0x116   :  { %v3775_v17 = vpop.eup %3774  ;;  %2660 = vst.msk [vmem:[%s5792_s2 + $0x68] sm:$0xff] %vm2646_vm2, %v3773_v14  ;;  %v3462_v19 = vpop.f32.mrb[22].mxu1  ;;  %3800 = vtanh.f32 %v3334_v18 }
 0x117   :  { %v3777_v20 = vpop.eup %3776  ;;  %2788 = vst.msk [vmem:[%s5792_s2 + $0x468] sm:$0xff] %vm2646_vm2, %v3775_v17  ;;  %v1450_v21 = vpop.f32.mrb[23].mxu0  ;;  %3802 = vtanh.f32 %v3462_v19 }
 0x118   :  { %v1962_v22 = vpop.f32.mrb[23].mxu1  ;;  %v3779_v23 = vpop.eup %3778  ;;  %2665 = vst.msk [vmem:[%s5792_s2 + $0x90] sm:$0xff] %vm2646_vm2, %v3777_v20  ;;  %3804 = vtanh.f32 %v1450_v21 }
 0x119   :  { %v3781_v24 = vpop.eup %3780  ;;  %2793 = vst.msk [vmem:[%s5792_s2 + $0x490] sm:$0xff] %vm2646_vm2, %v3779_v23  ;;  %3806 = vtanh.f32 %v1962_v22  ;;  %v3337_v28 = vpop.f32.mrb[24].mxu0 }
 0x11a   :  { %v3783_v25 = vpop.eup %3782  ;;  %2663 = vst.msk [vmem:[%s5792_s2 + $0x80] sm:$0xff] %vm2646_vm2, %v3781_v24  ;;  %v3465_v29 = vpop.f32.mrb[24].mxu1  ;;  %3808 = vtanh.f32 %v3337_v28 }
 0x11b   :  { %v3785_v26 = vpop.eup %3784  ;;  %2791 = vst.msk [vmem:[%s5792_s2 + $0x480] sm:$0xff] %vm2646_vm2, %v3783_v25  ;;  %v1463_v31 = vpop.f32.mrb[25].mxu0  ;;  %3810 = vtanh.f32 %v3465_v29 }
 0x11c   :  { %v3787_v27 = vpop.eup %3786  ;;  %2666 = vst.msk [vmem:[%s5792_s2 + $0x98] sm:$0xff] %vm2646_vm2, %v3785_v26  ;;  %v1975_v32 = vpop.f32.mrb[25].mxu1  ;;  %3812 = vtanh.f32 %v1463_v31 }
 0x11d   :  { %v3789_v30 = vpop.eup %3788  ;;  %2794 = vst.msk [vmem:[%s5792_s2 + $0x498] sm:$0xff] %vm2646_vm2, %v3787_v27  ;;  %v3338_v34 = vpop.f32.mrb[26].mxu0  ;;  %3814 = vtanh.f32 %v1975_v32 }
 0x11e   :  { %v3791_v33 = vpop.eup %3790  ;;  %2664 = vst.msk [vmem:[%s5792_s2 + $0x88] sm:$0xff] %vm2646_vm2, %v3789_v30  ;;  %v3466_v35 = vpop.f32.mrb[26].mxu1  ;;  %3816 = vtanh.f32 %v3338_v34 }
 0x11f   :  { %v3793_v36 = vpop.eup %3792  ;;  %2792 = vst.msk [vmem:[%s5792_s2 + $0x488] sm:$0xff] %vm2646_vm2, %v3791_v33  ;;  %v1466_v37 = vpop.f32.mrb[27].mxu0  ;;  %3818 = vtanh.f32 %v3466_v35 }
 0x120   :  { %v1978_v38 = vpop.f32.mrb[27].mxu1  ;;  %v3795_v39 = vpop.eup %3794  ;;  %2669 = vst.msk [vmem:[%s5792_s2 + $0xb0] sm:$0xff] %vm2646_vm2, %v3793_v36  ;;  %3820 = vtanh.f32 %v1466_v37 }
 0x121   :  { %v3797_v40 = vpop.eup %3796  ;;  %2797 = vst.msk [vmem:[%s5792_s2 + $0x4b0] sm:$0xff] %vm2646_vm2, %v3795_v39  ;;  %3822 = vtanh.f32 %v1978_v38  ;;  %v3341_v44 = vpop.f32.mrb[28].mxu0 }
 0x122   :  { %v3799_v41 = vpop.eup %3798  ;;  %2667 = vst.msk [vmem:[%s5792_s2 + $0xa0] sm:$0xff] %vm2646_vm2, %v3797_v40  ;;  %v3469_v45 = vpop.f32.mrb[28].mxu1  ;;  %3824 = vtanh.f32 %v3341_v44 }
 0x123   :  { %v3801_v42 = vpop.eup %3800  ;;  %2795 = vst.msk [vmem:[%s5792_s2 + $0x4a0] sm:$0xff] %vm2646_vm2, %v3799_v41  ;;  %v1479_v47 = vpop.f32.mrb[29].mxu0  ;;  %3826 = vtanh.f32 %v3469_v45 }
 0x124   :  { %v3803_v43 = vpop.eup %3802  ;;  %2670 = vst.msk [vmem:[%s5792_s2 + $0xb8] sm:$0xff] %vm2646_vm2, %v3801_v42  ;;  %v1991_v48 = vpop.f32.mrb[29].mxu1  ;;  %3828 = vtanh.f32 %v1479_v47 }
 0x125   :  { %v3805_v46 = vpop.eup %3804  ;;  %2798 = vst.msk [vmem:[%s5792_s2 + $0x4b8] sm:$0xff] %vm2646_vm2, %v3803_v43  ;;  %v3342_v50 = vpop.f32.mrb[30].mxu0  ;;  %3830 = vtanh.f32 %v1991_v48 }
 0x126   :  { %v3807_v49 = vpop.eup %3806  ;;  %2668 = vst.msk [vmem:[%s5792_s2 + $0xa8] sm:$0xff] %vm2646_vm2, %v3805_v46  ;;  %v3470_v51 = vpop.f32.mrb[30].mxu1  ;;  %3832 = vtanh.f32 %v3342_v50 }
 0x127   :  { %v3809_v52 = vpop.eup %3808  ;;  %2796 = vst.msk [vmem:[%s5792_s2 + $0x4a8] sm:$0xff] %vm2646_vm2, %v3807_v49  ;;  %v1482_v53 = vpop.f32.mrb[31].mxu0  ;;  %3834 = vtanh.f32 %v3470_v51 }
 0x128   :  { %v1994_v54 = vpop.f32.mrb[31].mxu1  ;;  %v3811_v55 = vpop.eup %3810  ;;  %2673 = vst.msk [vmem:[%s5792_s2 + $0xd0] sm:$0xff] %vm2646_vm2, %v3809_v52  ;;  %3836 = vtanh.f32 %v1482_v53 }
 0x129   :  { %v3813_v56 = vpop.eup %3812  ;;  %2801 = vst.msk [vmem:[%s5792_s2 + $0x4d0] sm:$0xff] %vm2646_vm2, %v3811_v55  ;;  %3838 = vtanh.f32 %v1994_v54  ;;  %v3345_v60 = vpop.f32.mrb[32].mxu0 }
 0x12a   :  { %v3815_v57 = vpop.eup %3814  ;;  %2671 = vst.msk [vmem:[%s5792_s2 + $0xc0] sm:$0xff] %vm2646_vm2, %v3813_v56  ;;  %v3473_v61 = vpop.f32.mrb[32].mxu1  ;;  %3840 = vtanh.f32 %v3345_v60 }
 0x12b   :  { %v3817_v58 = vpop.eup %3816  ;;  %2799 = vst.msk [vmem:[%s5792_s2 + $0x4c0] sm:$0xff] %vm2646_vm2, %v3815_v57  ;;  %v1495_v63 = vpop.f32.mrb[33].mxu0  ;;  %3842 = vtanh.f32 %v3473_v61 }
 0x12c   :  { %v3819_v59 = vpop.eup %3818  ;;  %2674 = vst.msk [vmem:[%s5792_s2 + $0xd8] sm:$0xff] %vm2646_vm2, %v3817_v58  ;;  %v2007_v0 = vpop.f32.mrb[33].mxu1  ;;  %3844 = vtanh.f32 %v1495_v63 }
 0x12d   :  { %v3821_v62 = vpop.eup %3820  ;;  %2802 = vst.msk [vmem:[%s5792_s2 + $0x4d8] sm:$0xff] %vm2646_vm2, %v3819_v59  ;;  %v3346_v2 = vpop.f32.mrb[34].mxu0  ;;  %3846 = vtanh.f32 %v2007_v0 }
 0x12e   :  { %v3823_v1 = vpop.eup %3822  ;;  %2672 = vst.msk [vmem:[%s5792_s2 + $0xc8] sm:$0xff] %vm2646_vm2, %v3821_v62  ;;  %v3474_v3 = vpop.f32.mrb[34].mxu1  ;;  %3848 = vtanh.f32 %v3346_v2 }
 0x12f   :  { %v3825_v4 = vpop.eup %3824  ;;  %2800 = vst.msk [vmem:[%s5792_s2 + $0x4c8] sm:$0xff] %vm2646_vm2, %v3823_v1  ;;  %v1498_v5 = vpop.f32.mrb[35].mxu0  ;;  %3850 = vtanh.f32 %v3474_v3 }
 0x130   :  { %v2010_v6 = vpop.f32.mrb[35].mxu1  ;;  %v3827_v7 = vpop.eup %3826  ;;  %2677 = vst.msk [vmem:[%s5792_s2 + $0xf0] sm:$0xff] %vm2646_vm2, %v3825_v4  ;;  %3852 = vtanh.f32 %v1498_v5 }
 0x131   :  { %v3829_v8 = vpop.eup %3828  ;;  %2805 = vst.msk [vmem:[%s5792_s2 + $0x4f0] sm:$0xff] %vm2646_vm2, %v3827_v7  ;;  %3854 = vtanh.f32 %v2010_v6  ;;  %v3349_v12 = vpop.f32.mrb[36].mxu0 }
 0x132   :  { %v3831_v9 = vpop.eup %3830  ;;  %2675 = vst.msk [vmem:[%s5792_s2 + $0xe0] sm:$0xff] %vm2646_vm2, %v3829_v8  ;;  %v3477_v13 = vpop.f32.mrb[36].mxu1  ;;  %3856 = vtanh.f32 %v3349_v12 }
 0x133   :  { %v3833_v10 = vpop.eup %3832  ;;  %2803 = vst.msk [vmem:[%s5792_s2 + $0x4e0] sm:$0xff] %vm2646_vm2, %v3831_v9  ;;  %v1511_v15 = vpop.f32.mrb[37].mxu0  ;;  %3858 = vtanh.f32 %v3477_v13 }
 0x134   :  { %v3835_v11 = vpop.eup %3834  ;;  %2678 = vst.msk [vmem:[%s5792_s2 + $0xf8] sm:$0xff] %vm2646_vm2, %v3833_v10  ;;  %v2023_v16 = vpop.f32.mrb[37].mxu1  ;;  %3860 = vtanh.f32 %v1511_v15 }
 0x135   :  { %v3837_v14 = vpop.eup %3836  ;;  %2806 = vst.msk [vmem:[%s5792_s2 + $0x4f8] sm:$0xff] %vm2646_vm2, %v3835_v11  ;;  %v3350_v18 = vpop.f32.mrb[38].mxu0  ;;  %3862 = vtanh.f32 %v2023_v16 }
 0x136   :  { %v3839_v17 = vpop.eup %3838  ;;  %2676 = vst.msk [vmem:[%s5792_s2 + $0xe8] sm:$0xff] %vm2646_vm2, %v3837_v14  ;;  %v3478_v19 = vpop.f32.mrb[38].mxu1  ;;  %3864 = vtanh.f32 %v3350_v18 }
 0x137   :  { %v3841_v20 = vpop.eup %3840  ;;  %2804 = vst.msk [vmem:[%s5792_s2 + $0x4e8] sm:$0xff] %vm2646_vm2, %v3839_v17  ;;  %v1514_v21 = vpop.f32.mrb[39].mxu0  ;;  %3866 = vtanh.f32 %v3478_v19 }
 0x138   :  { %v2026_v22 = vpop.f32.mrb[39].mxu1  ;;  %v3843_v23 = vpop.eup %3842  ;;  %2681 = vst.msk [vmem:[%s5792_s2 + $0x110] sm:$0xff] %vm2646_vm2, %v3841_v20  ;;  %3868 = vtanh.f32 %v1514_v21 }
 0x139   :  { %v3845_v24 = vpop.eup %3844  ;;  %2809 = vst.msk [vmem:[%s5792_s2 + $0x510] sm:$0xff] %vm2646_vm2, %v3843_v23  ;;  %3870 = vtanh.f32 %v2026_v22  ;;  %v3353_v28 = vpop.f32.mrb[40].mxu0 }
 0x13a   :  { %v3847_v25 = vpop.eup %3846  ;;  %2679 = vst.msk [vmem:[%s5792_s2 + $0x100] sm:$0xff] %vm2646_vm2, %v3845_v24  ;;  %v3481_v29 = vpop.f32.mrb[40].mxu1  ;;  %3872 = vtanh.f32 %v3353_v28 }
 0x13b   :  { %v3849_v26 = vpop.eup %3848  ;;  %2807 = vst.msk [vmem:[%s5792_s2 + $0x500] sm:$0xff] %vm2646_vm2, %v3847_v25  ;;  %v1527_v31 = vpop.f32.mrb[41].mxu0  ;;  %3874 = vtanh.f32 %v3481_v29 }
 0x13c   :  { %v3851_v27 = vpop.eup %3850  ;;  %2682 = vst.msk [vmem:[%s5792_s2 + $0x118] sm:$0xff] %vm2646_vm2, %v3849_v26  ;;  %v2039_v32 = vpop.f32.mrb[41].mxu1  ;;  %3876 = vtanh.f32 %v1527_v31 }
 0x13d   :  { %v3853_v30 = vpop.eup %3852  ;;  %2810 = vst.msk [vmem:[%s5792_s2 + $0x518] sm:$0xff] %vm2646_vm2, %v3851_v27  ;;  %v3354_v34 = vpop.f32.mrb[42].mxu0  ;;  %3878 = vtanh.f32 %v2039_v32 }
 0x13e   :  { %v3855_v33 = vpop.eup %3854  ;;  %2680 = vst.msk [vmem:[%s5792_s2 + $0x108] sm:$0xff] %vm2646_vm2, %v3853_v30  ;;  %v3482_v35 = vpop.f32.mrb[42].mxu1  ;;  %3880 = vtanh.f32 %v3354_v34 }
 0x13f   :  { %v3857_v36 = vpop.eup %3856  ;;  %2808 = vst.msk [vmem:[%s5792_s2 + $0x508] sm:$0xff] %vm2646_vm2, %v3855_v33  ;;  %v1530_v37 = vpop.f32.mrb[43].mxu0  ;;  %3882 = vtanh.f32 %v3482_v35 }
 0x140   :  { %v2042_v38 = vpop.f32.mrb[43].mxu1  ;;  %v3859_v39 = vpop.eup %3858  ;;  %2685 = vst.msk [vmem:[%s5792_s2 + $0x130] sm:$0xff] %vm2646_vm2, %v3857_v36  ;;  %3884 = vtanh.f32 %v1530_v37 }
 0x141   :  { %v3861_v40 = vpop.eup %3860  ;;  %2813 = vst.msk [vmem:[%s5792_s2 + $0x530] sm:$0xff] %vm2646_vm2, %v3859_v39  ;;  %3886 = vtanh.f32 %v2042_v38  ;;  %v3357_v44 = vpop.f32.mrb[44].mxu0 }
 0x142   :  { %v3863_v41 = vpop.eup %3862  ;;  %2683 = vst.msk [vmem:[%s5792_s2 + $0x120] sm:$0xff] %vm2646_vm2, %v3861_v40  ;;  %v3485_v45 = vpop.f32.mrb[44].mxu1  ;;  %3888 = vtanh.f32 %v3357_v44 }
 0x143   :  { %v3865_v42 = vpop.eup %3864  ;;  %2811 = vst.msk [vmem:[%s5792_s2 + $0x520] sm:$0xff] %vm2646_vm2, %v3863_v41  ;;  %v1543_v47 = vpop.f32.mrb[45].mxu0  ;;  %3890 = vtanh.f32 %v3485_v45 }
 0x144   :  { %v3867_v43 = vpop.eup %3866  ;;  %2686 = vst.msk [vmem:[%s5792_s2 + $0x138] sm:$0xff] %vm2646_vm2, %v3865_v42  ;;  %v2055_v48 = vpop.f32.mrb[45].mxu1  ;;  %3892 = vtanh.f32 %v1543_v47 }
 0x145   :  { %v3869_v46 = vpop.eup %3868  ;;  %2814 = vst.msk [vmem:[%s5792_s2 + $0x538] sm:$0xff] %vm2646_vm2, %v3867_v43  ;;  %v3358_v50 = vpop.f32.mrb[46].mxu0  ;;  %3894 = vtanh.f32 %v2055_v48 }
 0x146   :  { %v3871_v49 = vpop.eup %3870  ;;  %2684 = vst.msk [vmem:[%s5792_s2 + $0x128] sm:$0xff] %vm2646_vm2, %v3869_v46  ;;  %v3486_v51 = vpop.f32.mrb[46].mxu1  ;;  %3896 = vtanh.f32 %v3358_v50 }
 0x147   :  { %v3873_v52 = vpop.eup %3872  ;;  %2812 = vst.msk [vmem:[%s5792_s2 + $0x528] sm:$0xff] %vm2646_vm2, %v3871_v49  ;;  %v1546_v53 = vpop.f32.mrb[47].mxu0  ;;  %3898 = vtanh.f32 %v3486_v51 }
 0x148   :  { %v2058_v54 = vpop.f32.mrb[47].mxu1  ;;  %v3875_v55 = vpop.eup %3874  ;;  %2689 = vst.msk [vmem:[%s5792_s2 + $0x150] sm:$0xff] %vm2646_vm2, %v3873_v52  ;;  %3900 = vtanh.f32 %v1546_v53 }
 0x149   :  { %v3877_v56 = vpop.eup %3876  ;;  %2817 = vst.msk [vmem:[%s5792_s2 + $0x550] sm:$0xff] %vm2646_vm2, %v3875_v55  ;;  %3902 = vtanh.f32 %v2058_v54  ;;  %v3361_v60 = vpop.f32.mrb[48].mxu0 }
 0x14a   :  { %v3879_v57 = vpop.eup %3878  ;;  %2687 = vst.msk [vmem:[%s5792_s2 + $0x140] sm:$0xff] %vm2646_vm2, %v3877_v56  ;;  %v3489_v61 = vpop.f32.mrb[48].mxu1  ;;  %3904 = vtanh.f32 %v3361_v60 }
 0x14b   :  { %v3881_v58 = vpop.eup %3880  ;;  %2815 = vst.msk [vmem:[%s5792_s2 + $0x540] sm:$0xff] %vm2646_vm2, %v3879_v57  ;;  %v1559_v63 = vpop.f32.mrb[49].mxu0  ;;  %3906 = vtanh.f32 %v3489_v61 }
 0x14c   :  { %v3883_v59 = vpop.eup %3882  ;;  %2690 = vst.msk [vmem:[%s5792_s2 + $0x158] sm:$0xff] %vm2646_vm2, %v3881_v58  ;;  %v2071_v0 = vpop.f32.mrb[49].mxu1  ;;  %3908 = vtanh.f32 %v1559_v63 }
 0x14d   :  { %v3885_v62 = vpop.eup %3884  ;;  %2818 = vst.msk [vmem:[%s5792_s2 + $0x558] sm:$0xff] %vm2646_vm2, %v3883_v59  ;;  %v3362_v2 = vpop.f32.mrb[50].mxu0  ;;  %3910 = vtanh.f32 %v2071_v0 }
 0x14e   :  { %v3887_v1 = vpop.eup %3886  ;;  %2688 = vst.msk [vmem:[%s5792_s2 + $0x148] sm:$0xff] %vm2646_vm2, %v3885_v62  ;;  %v3490_v3 = vpop.f32.mrb[50].mxu1  ;;  %3912 = vtanh.f32 %v3362_v2 }
 0x14f   :  { %v3889_v4 = vpop.eup %3888  ;;  %2816 = vst.msk [vmem:[%s5792_s2 + $0x548] sm:$0xff] %vm2646_vm2, %v3887_v1  ;;  %v1562_v5 = vpop.f32.mrb[51].mxu0  ;;  %3914 = vtanh.f32 %v3490_v3 }
 0x150   :  { %v2074_v6 = vpop.f32.mrb[51].mxu1  ;;  %v3891_v7 = vpop.eup %3890  ;;  %2693 = vst.msk [vmem:[%s5792_s2 + $0x170] sm:$0xff] %vm2646_vm2, %v3889_v4  ;;  %3916 = vtanh.f32 %v1562_v5 }
 0x151   :  { %v3893_v8 = vpop.eup %3892  ;;  %2821 = vst.msk [vmem:[%s5792_s2 + $0x570] sm:$0xff] %vm2646_vm2, %v3891_v7  ;;  %3918 = vtanh.f32 %v2074_v6  ;;  %v3365_v12 = vpop.f32.mrb[52].mxu0 }
 0x152   :  { %v3895_v9 = vpop.eup %3894  ;;  %2691 = vst.msk [vmem:[%s5792_s2 + $0x160] sm:$0xff] %vm2646_vm2, %v3893_v8  ;;  %v3493_v13 = vpop.f32.mrb[52].mxu1  ;;  %3920 = vtanh.f32 %v3365_v12 }
 0x153   :  { %v3897_v10 = vpop.eup %3896  ;;  %2819 = vst.msk [vmem:[%s5792_s2 + $0x560] sm:$0xff] %vm2646_vm2, %v3895_v9  ;;  %v1575_v15 = vpop.f32.mrb[53].mxu0  ;;  %3922 = vtanh.f32 %v3493_v13 }
 0x154   :  { %v3899_v11 = vpop.eup %3898  ;;  %2694 = vst.msk [vmem:[%s5792_s2 + $0x178] sm:$0xff] %vm2646_vm2, %v3897_v10  ;;  %v2087_v16 = vpop.f32.mrb[53].mxu1  ;;  %3924 = vtanh.f32 %v1575_v15 }
 0x155   :  { %v3901_v14 = vpop.eup %3900  ;;  %2822 = vst.msk [vmem:[%s5792_s2 + $0x578] sm:$0xff] %vm2646_vm2, %v3899_v11  ;;  %v3366_v18 = vpop.f32.mrb[54].mxu0  ;;  %3926 = vtanh.f32 %v2087_v16 }
 0x156   :  { %v3903_v17 = vpop.eup %3902  ;;  %2692 = vst.msk [vmem:[%s5792_s2 + $0x168] sm:$0xff] %vm2646_vm2, %v3901_v14  ;;  %v3494_v19 = vpop.f32.mrb[54].mxu1  ;;  %3928 = vtanh.f32 %v3366_v18 }
 0x157   :  { %v3905_v20 = vpop.eup %3904  ;;  %2820 = vst.msk [vmem:[%s5792_s2 + $0x568] sm:$0xff] %vm2646_vm2, %v3903_v17  ;;  %v1578_v21 = vpop.f32.mrb[55].mxu0  ;;  %3930 = vtanh.f32 %v3494_v19 }
 0x158   :  { %v2090_v22 = vpop.f32.mrb[55].mxu1  ;;  %v3907_v23 = vpop.eup %3906  ;;  %2697 = vst.msk [vmem:[%s5792_s2 + $0x190] sm:$0xff] %vm2646_vm2, %v3905_v20  ;;  %3932 = vtanh.f32 %v1578_v21 }
 0x159   :  { %v3909_v24 = vpop.eup %3908  ;;  %2825 = vst.msk [vmem:[%s5792_s2 + $0x590] sm:$0xff] %vm2646_vm2, %v3907_v23  ;;  %3934 = vtanh.f32 %v2090_v22  ;;  %v3369_v28 = vpop.f32.mrb[56].mxu0 }
 0x15a   :  { %v3911_v25 = vpop.eup %3910  ;;  %2695 = vst.msk [vmem:[%s5792_s2 + $0x180] sm:$0xff] %vm2646_vm2, %v3909_v24  ;;  %v3497_v29 = vpop.f32.mrb[56].mxu1  ;;  %3936 = vtanh.f32 %v3369_v28 }
 0x15b   :  { %v3913_v26 = vpop.eup %3912  ;;  %2823 = vst.msk [vmem:[%s5792_s2 + $0x580] sm:$0xff] %vm2646_vm2, %v3911_v25  ;;  %v1591_v31 = vpop.f32.mrb[57].mxu0  ;;  %3938 = vtanh.f32 %v3497_v29 }
 0x15c   :  { %v3915_v27 = vpop.eup %3914  ;;  %2698 = vst.msk [vmem:[%s5792_s2 + $0x198] sm:$0xff] %vm2646_vm2, %v3913_v26  ;;  %v2103_v32 = vpop.f32.mrb[57].mxu1  ;;  %3940 = vtanh.f32 %v1591_v31 }
 0x15d   :  { %v3917_v30 = vpop.eup %3916  ;;  %2826 = vst.msk [vmem:[%s5792_s2 + $0x598] sm:$0xff] %vm2646_vm2, %v3915_v27  ;;  %v3370_v34 = vpop.f32.mrb[58].mxu0  ;;  %3942 = vtanh.f32 %v2103_v32 }
 0x15e   :  { %v3919_v33 = vpop.eup %3918  ;;  %2696 = vst.msk [vmem:[%s5792_s2 + $0x188] sm:$0xff] %vm2646_vm2, %v3917_v30  ;;  %v3498_v35 = vpop.f32.mrb[58].mxu1  ;;  %3944 = vtanh.f32 %v3370_v34 }
 0x15f   :  { %v3921_v36 = vpop.eup %3920  ;;  %2824 = vst.msk [vmem:[%s5792_s2 + $0x588] sm:$0xff] %vm2646_vm2, %v3919_v33  ;;  %v1594_v37 = vpop.f32.mrb[59].mxu0  ;;  %3946 = vtanh.f32 %v3498_v35 }
 0x160   :  { %v2106_v38 = vpop.f32.mrb[59].mxu1  ;;  %v3923_v39 = vpop.eup %3922  ;;  %2701 = vst.msk [vmem:[%s5792_s2 + $0x1b0] sm:$0xff] %vm2646_vm2, %v3921_v36  ;;  %3948 = vtanh.f32 %v1594_v37 }
 0x161   :  { %v3925_v40 = vpop.eup %3924  ;;  %2829 = vst.msk [vmem:[%s5792_s2 + $0x5b0] sm:$0xff] %vm2646_vm2, %v3923_v39  ;;  %3950 = vtanh.f32 %v2106_v38  ;;  %v3373_v44 = vpop.f32.mrb[60].mxu0 }
 0x162   :  { %v3927_v41 = vpop.eup %3926  ;;  %2699 = vst.msk [vmem:[%s5792_s2 + $0x1a0] sm:$0xff] %vm2646_vm2, %v3925_v40  ;;  %v3501_v45 = vpop.f32.mrb[60].mxu1  ;;  %3952 = vtanh.f32 %v3373_v44 }
 0x163   :  { %v3929_v42 = vpop.eup %3928  ;;  %2827 = vst.msk [vmem:[%s5792_s2 + $0x5a0] sm:$0xff] %vm2646_vm2, %v3927_v41  ;;  %v1607_v47 = vpop.f32.mrb[61].mxu0  ;;  %3954 = vtanh.f32 %v3501_v45 }
 0x164   :  { %v3931_v43 = vpop.eup %3930  ;;  %2702 = vst.msk [vmem:[%s5792_s2 + $0x1b8] sm:$0xff] %vm2646_vm2, %v3929_v42  ;;  %v2119_v48 = vpop.f32.mrb[61].mxu1  ;;  %3956 = vtanh.f32 %v1607_v47 }
 0x165   :  { %v3933_v46 = vpop.eup %3932  ;;  %2830 = vst.msk [vmem:[%s5792_s2 + $0x5b8] sm:$0xff] %vm2646_vm2, %v3931_v43  ;;  %v3374_v50 = vpop.f32.mrb[62].mxu0  ;;  %3958 = vtanh.f32 %v2119_v48 }
 0x166   :  { %v3935_v49 = vpop.eup %3934  ;;  %2700 = vst.msk [vmem:[%s5792_s2 + $0x1a8] sm:$0xff] %vm2646_vm2, %v3933_v46  ;;  %v3502_v51 = vpop.f32.mrb[62].mxu1  ;;  %3960 = vtanh.f32 %v3374_v50 }
 0x167   :  { %v3937_v52 = vpop.eup %3936  ;;  %2828 = vst.msk [vmem:[%s5792_s2 + $0x5a8] sm:$0xff] %vm2646_vm2, %v3935_v49  ;;  %v1610_v53 = vpop.f32.mrb[63].mxu0  ;;  %3962 = vtanh.f32 %v3502_v51 }
 0x168   :  { %v2122_v54 = vpop.f32.mrb[63].mxu1  ;;  %v3939_v55 = vpop.eup %3938  ;;  %2705 = vst.msk [vmem:[%s5792_s2 + $0x1d0] sm:$0xff] %vm2646_vm2, %v3937_v52  ;;  %3964 = vtanh.f32 %v1610_v53 }
 0x169   :  { %v3941_v56 = vpop.eup %3940  ;;  %2833 = vst.msk [vmem:[%s5792_s2 + $0x5d0] sm:$0xff] %vm2646_vm2, %v3939_v55  ;;  %3966 = vtanh.f32 %v2122_v54  ;;  %v3377_v60 = vpop.f32.mrb[64].mxu0 }
 0x16a   :  { %v3943_v57 = vpop.eup %3942  ;;  %2703 = vst.msk [vmem:[%s5792_s2 + $0x1c0] sm:$0xff] %vm2646_vm2, %v3941_v56  ;;  %v3505_v61 = vpop.f32.mrb[64].mxu1  ;;  %3968 = vtanh.f32 %v3377_v60 }
 0x16b   :  { %v3945_v58 = vpop.eup %3944  ;;  %2831 = vst.msk [vmem:[%s5792_s2 + $0x5c0] sm:$0xff] %vm2646_vm2, %v3943_v57  ;;  %v1623_v63 = vpop.f32.mrb[65].mxu0  ;;  %3970 = vtanh.f32 %v3505_v61 }
 0x16c   :  { %v3947_v59 = vpop.eup %3946  ;;  %2706 = vst.msk [vmem:[%s5792_s2 + $0x1d8] sm:$0xff] %vm2646_vm2, %v3945_v58  ;;  %v2135_v0 = vpop.f32.mrb[65].mxu1  ;;  %3972 = vtanh.f32 %v1623_v63 }
 0x16d   :  { %v3949_v62 = vpop.eup %3948  ;;  %2834 = vst.msk [vmem:[%s5792_s2 + $0x5d8] sm:$0xff] %vm2646_vm2, %v3947_v59  ;;  %v3378_v2 = vpop.f32.mrb[66].mxu0  ;;  %3974 = vtanh.f32 %v2135_v0 }
 0x16e   :  { %v3951_v1 = vpop.eup %3950  ;;  %2704 = vst.msk [vmem:[%s5792_s2 + $0x1c8] sm:$0xff] %vm2646_vm2, %v3949_v62  ;;  %v3506_v3 = vpop.f32.mrb[66].mxu1  ;;  %3976 = vtanh.f32 %v3378_v2 }
 0x16f   :  { %v3953_v4 = vpop.eup %3952  ;;  %2832 = vst.msk [vmem:[%s5792_s2 + $0x5c8] sm:$0xff] %vm2646_vm2, %v3951_v1  ;;  %v1626_v5 = vpop.f32.mrb[67].mxu0  ;;  %3978 = vtanh.f32 %v3506_v3 }
 0x170   :  { %v2138_v6 = vpop.f32.mrb[67].mxu1  ;;  %v3955_v7 = vpop.eup %3954  ;;  %2709 = vst.msk [vmem:[%s5792_s2 + $0x1f0] sm:$0xff] %vm2646_vm2, %v3953_v4  ;;  %3980 = vtanh.f32 %v1626_v5 }
 0x171   :  { %v3957_v8 = vpop.eup %3956  ;;  %2837 = vst.msk [vmem:[%s5792_s2 + $0x5f0] sm:$0xff] %vm2646_vm2, %v3955_v7  ;;  %3982 = vtanh.f32 %v2138_v6  ;;  %v3381_v12 = vpop.f32.mrb[68].mxu0 }
 0x172   :  { %v3959_v9 = vpop.eup %3958  ;;  %2707 = vst.msk [vmem:[%s5792_s2 + $0x1e0] sm:$0xff] %vm2646_vm2, %v3957_v8  ;;  %v3509_v13 = vpop.f32.mrb[68].mxu1  ;;  %3984 = vtanh.f32 %v3381_v12 }
 0x173   :  { %v3961_v10 = vpop.eup %3960  ;;  %2835 = vst.msk [vmem:[%s5792_s2 + $0x5e0] sm:$0xff] %vm2646_vm2, %v3959_v9  ;;  %v1639_v15 = vpop.f32.mrb[69].mxu0  ;;  %3986 = vtanh.f32 %v3509_v13 }
 0x174   :  { %v3963_v11 = vpop.eup %3962  ;;  %2710 = vst.msk [vmem:[%s5792_s2 + $0x1f8] sm:$0xff] %vm2646_vm2, %v3961_v10  ;;  %v2151_v16 = vpop.f32.mrb[69].mxu1  ;;  %3988 = vtanh.f32 %v1639_v15 }
 0x175   :  { %v3965_v14 = vpop.eup %3964  ;;  %2838 = vst.msk [vmem:[%s5792_s2 + $0x5f8] sm:$0xff] %vm2646_vm2, %v3963_v11  ;;  %v3382_v18 = vpop.f32.mrb[70].mxu0  ;;  %3990 = vtanh.f32 %v2151_v16 }
 0x176   :  { %v3967_v17 = vpop.eup %3966  ;;  %2708 = vst.msk [vmem:[%s5792_s2 + $0x1e8] sm:$0xff] %vm2646_vm2, %v3965_v14  ;;  %v3510_v19 = vpop.f32.mrb[70].mxu1  ;;  %3992 = vtanh.f32 %v3382_v18 }
 0x177   :  { %v3969_v20 = vpop.eup %3968  ;;  %2836 = vst.msk [vmem:[%s5792_s2 + $0x5e8] sm:$0xff] %vm2646_vm2, %v3967_v17  ;;  %v1642_v21 = vpop.f32.mrb[71].mxu0  ;;  %3994 = vtanh.f32 %v3510_v19 }
 0x178   :  { %v2154_v22 = vpop.f32.mrb[71].mxu1  ;;  %v3971_v23 = vpop.eup %3970  ;;  %2713 = vst.msk [vmem:[%s5792_s2 + $0x210] sm:$0xff] %vm2646_vm2, %v3969_v20  ;;  %3996 = vtanh.f32 %v1642_v21 }
 0x179   :  { %v3973_v24 = vpop.eup %3972  ;;  %2841 = vst.msk [vmem:[%s5792_s2 + $0x610] sm:$0xff] %vm2646_vm2, %v3971_v23  ;;  %3998 = vtanh.f32 %v2154_v22  ;;  %v3385_v28 = vpop.f32.mrb[72].mxu0 }
 0x17a   :  { %v3975_v25 = vpop.eup %3974  ;;  %2711 = vst.msk [vmem:[%s5792_s2 + $0x200] sm:$0xff] %vm2646_vm2, %v3973_v24  ;;  %v3513_v29 = vpop.f32.mrb[72].mxu1  ;;  %4000 = vtanh.f32 %v3385_v28 }
 0x17b   :  { %v3977_v26 = vpop.eup %3976  ;;  %2839 = vst.msk [vmem:[%s5792_s2 + $0x600] sm:$0xff] %vm2646_vm2, %v3975_v25  ;;  %v1655_v31 = vpop.f32.mrb[73].mxu0  ;;  %4002 = vtanh.f32 %v3513_v29 }
 0x17c   :  { %v3979_v27 = vpop.eup %3978  ;;  %2714 = vst.msk [vmem:[%s5792_s2 + $0x218] sm:$0xff] %vm2646_vm2, %v3977_v26  ;;  %v2167_v32 = vpop.f32.mrb[73].mxu1  ;;  %4004 = vtanh.f32 %v1655_v31 }
 0x17d   :  { %v3981_v30 = vpop.eup %3980  ;;  %2842 = vst.msk [vmem:[%s5792_s2 + $0x618] sm:$0xff] %vm2646_vm2, %v3979_v27  ;;  %v3386_v34 = vpop.f32.mrb[74].mxu0  ;;  %4006 = vtanh.f32 %v2167_v32 }
 0x17e   :  { %v3983_v33 = vpop.eup %3982  ;;  %2712 = vst.msk [vmem:[%s5792_s2 + $0x208] sm:$0xff] %vm2646_vm2, %v3981_v30  ;;  %v3514_v35 = vpop.f32.mrb[74].mxu1  ;;  %4008 = vtanh.f32 %v3386_v34 }
 0x17f   :  { %v3985_v36 = vpop.eup %3984  ;;  %2840 = vst.msk [vmem:[%s5792_s2 + $0x608] sm:$0xff] %vm2646_vm2, %v3983_v33  ;;  %v1658_v37 = vpop.f32.mrb[75].mxu0  ;;  %4010 = vtanh.f32 %v3514_v35 }
 0x180   :  { %v2170_v38 = vpop.f32.mrb[75].mxu1  ;;  %v3987_v39 = vpop.eup %3986  ;;  %2717 = vst.msk [vmem:[%s5792_s2 + $0x230] sm:$0xff] %vm2646_vm2, %v3985_v36  ;;  %4012 = vtanh.f32 %v1658_v37 }
 0x181   :  { %v3989_v40 = vpop.eup %3988  ;;  %2845 = vst.msk [vmem:[%s5792_s2 + $0x630] sm:$0xff] %vm2646_vm2, %v3987_v39  ;;  %4014 = vtanh.f32 %v2170_v38  ;;  %v3389_v44 = vpop.f32.mrb[76].mxu0 }
 0x182   :  { %v3991_v41 = vpop.eup %3990  ;;  %2715 = vst.msk [vmem:[%s5792_s2 + $0x220] sm:$0xff] %vm2646_vm2, %v3989_v40  ;;  %v3517_v45 = vpop.f32.mrb[76].mxu1  ;;  %4016 = vtanh.f32 %v3389_v44 }
 0x183   :  { %v3993_v42 = vpop.eup %3992  ;;  %2843 = vst.msk [vmem:[%s5792_s2 + $0x620] sm:$0xff] %vm2646_vm2, %v3991_v41  ;;  %v1671_v47 = vpop.f32.mrb[77].mxu0  ;;  %4018 = vtanh.f32 %v3517_v45 }
 0x184   :  { %v3995_v43 = vpop.eup %3994  ;;  %2718 = vst.msk [vmem:[%s5792_s2 + $0x238] sm:$0xff] %vm2646_vm2, %v3993_v42  ;;  %v2183_v48 = vpop.f32.mrb[77].mxu1  ;;  %4020 = vtanh.f32 %v1671_v47 }
 0x185   :  { %v3997_v46 = vpop.eup %3996  ;;  %2846 = vst.msk [vmem:[%s5792_s2 + $0x638] sm:$0xff] %vm2646_vm2, %v3995_v43  ;;  %v3390_v50 = vpop.f32.mrb[78].mxu0  ;;  %4022 = vtanh.f32 %v2183_v48 }
 0x186   :  { %v3999_v49 = vpop.eup %3998  ;;  %2716 = vst.msk [vmem:[%s5792_s2 + $0x228] sm:$0xff] %vm2646_vm2, %v3997_v46  ;;  %v3518_v51 = vpop.f32.mrb[78].mxu1  ;;  %4024 = vtanh.f32 %v3390_v50 }
 0x187   :  { %v4001_v52 = vpop.eup %4000  ;;  %2844 = vst.msk [vmem:[%s5792_s2 + $0x628] sm:$0xff] %vm2646_vm2, %v3999_v49  ;;  %v1674_v53 = vpop.f32.mrb[79].mxu0  ;;  %4026 = vtanh.f32 %v3518_v51 }
 0x188   :  { %v2186_v54 = vpop.f32.mrb[79].mxu1  ;;  %v4003_v55 = vpop.eup %4002  ;;  %2721 = vst.msk [vmem:[%s5792_s2 + $0x250] sm:$0xff] %vm2646_vm2, %v4001_v52  ;;  %4028 = vtanh.f32 %v1674_v53 }
 0x189   :  { %v4005_v56 = vpop.eup %4004  ;;  %2849 = vst.msk [vmem:[%s5792_s2 + $0x650] sm:$0xff] %vm2646_vm2, %v4003_v55  ;;  %4030 = vtanh.f32 %v2186_v54  ;;  %v3393_v60 = vpop.f32.mrb[80].mxu0 }
 0x18a   :  { %v4007_v57 = vpop.eup %4006  ;;  %2719 = vst.msk [vmem:[%s5792_s2 + $0x240] sm:$0xff] %vm2646_vm2, %v4005_v56  ;;  %v3521_v61 = vpop.f32.mrb[80].mxu1  ;;  %4032 = vtanh.f32 %v3393_v60 }
 0x18b   :  { %v4009_v58 = vpop.eup %4008  ;;  %2847 = vst.msk [vmem:[%s5792_s2 + $0x640] sm:$0xff] %vm2646_vm2, %v4007_v57  ;;  %v1687_v63 = vpop.f32.mrb[81].mxu0  ;;  %4034 = vtanh.f32 %v3521_v61 }
 0x18c   :  { %v4011_v59 = vpop.eup %4010  ;;  %2722 = vst.msk [vmem:[%s5792_s2 + $0x258] sm:$0xff] %vm2646_vm2, %v4009_v58  ;;  %v2199_v0 = vpop.f32.mrb[81].mxu1  ;;  %4036 = vtanh.f32 %v1687_v63 }
 0x18d   :  { %v4013_v62 = vpop.eup %4012  ;;  %2850 = vst.msk [vmem:[%s5792_s2 + $0x658] sm:$0xff] %vm2646_vm2, %v4011_v59  ;;  %v3394_v2 = vpop.f32.mrb[82].mxu0  ;;  %4038 = vtanh.f32 %v2199_v0 }
 0x18e   :  { %v4015_v1 = vpop.eup %4014  ;;  %2720 = vst.msk [vmem:[%s5792_s2 + $0x248] sm:$0xff] %vm2646_vm2, %v4013_v62  ;;  %v3522_v3 = vpop.f32.mrb[82].mxu1  ;;  %4040 = vtanh.f32 %v3394_v2 }
 0x18f   :  { %v4017_v4 = vpop.eup %4016  ;;  %2848 = vst.msk [vmem:[%s5792_s2 + $0x648] sm:$0xff] %vm2646_vm2, %v4015_v1  ;;  %v1690_v5 = vpop.f32.mrb[83].mxu0  ;;  %4042 = vtanh.f32 %v3522_v3 }
 0x190   :  { %v2202_v6 = vpop.f32.mrb[83].mxu1  ;;  %v4019_v7 = vpop.eup %4018  ;;  %2725 = vst.msk [vmem:[%s5792_s2 + $0x270] sm:$0xff] %vm2646_vm2, %v4017_v4  ;;  %4044 = vtanh.f32 %v1690_v5 }
 0x191   :  { %v4021_v8 = vpop.eup %4020  ;;  %2853 = vst.msk [vmem:[%s5792_s2 + $0x670] sm:$0xff] %vm2646_vm2, %v4019_v7  ;;  %4046 = vtanh.f32 %v2202_v6  ;;  %v3397_v12 = vpop.f32.mrb[84].mxu0 }
 0x192   :  { %v4023_v9 = vpop.eup %4022  ;;  %2723 = vst.msk [vmem:[%s5792_s2 + $0x260] sm:$0xff] %vm2646_vm2, %v4021_v8  ;;  %v3525_v13 = vpop.f32.mrb[84].mxu1  ;;  %4048 = vtanh.f32 %v3397_v12 }
 0x193   :  { %v4025_v10 = vpop.eup %4024  ;;  %2851 = vst.msk [vmem:[%s5792_s2 + $0x660] sm:$0xff] %vm2646_vm2, %v4023_v9  ;;  %v1703_v15 = vpop.f32.mrb[85].mxu0  ;;  %4050 = vtanh.f32 %v3525_v13 }
 0x194   :  { %v4027_v11 = vpop.eup %4026  ;;  %2726 = vst.msk [vmem:[%s5792_s2 + $0x278] sm:$0xff] %vm2646_vm2, %v4025_v10  ;;  %v2215_v16 = vpop.f32.mrb[85].mxu1  ;;  %4052 = vtanh.f32 %v1703_v15 }
 0x195   :  { %v4029_v14 = vpop.eup %4028  ;;  %2854 = vst.msk [vmem:[%s5792_s2 + $0x678] sm:$0xff] %vm2646_vm2, %v4027_v11  ;;  %v3398_v18 = vpop.f32.mrb[86].mxu0  ;;  %4054 = vtanh.f32 %v2215_v16 }
 0x196   :  { %v4031_v17 = vpop.eup %4030  ;;  %2724 = vst.msk [vmem:[%s5792_s2 + $0x268] sm:$0xff] %vm2646_vm2, %v4029_v14  ;;  %v3526_v19 = vpop.f32.mrb[86].mxu1  ;;  %4056 = vtanh.f32 %v3398_v18 }
 0x197   :  { %v4033_v20 = vpop.eup %4032  ;;  %2852 = vst.msk [vmem:[%s5792_s2 + $0x668] sm:$0xff] %vm2646_vm2, %v4031_v17  ;;  %v1706_v21 = vpop.f32.mrb[87].mxu0  ;;  %4058 = vtanh.f32 %v3526_v19 }
 0x198   :  { %v2218_v22 = vpop.f32.mrb[87].mxu1  ;;  %v4035_v23 = vpop.eup %4034  ;;  %2729 = vst.msk [vmem:[%s5792_s2 + $0x290] sm:$0xff] %vm2646_vm2, %v4033_v20  ;;  %4060 = vtanh.f32 %v1706_v21 }
 0x199   :  { %v4037_v24 = vpop.eup %4036  ;;  %2857 = vst.msk [vmem:[%s5792_s2 + $0x690] sm:$0xff] %vm2646_vm2, %v4035_v23  ;;  %4062 = vtanh.f32 %v2218_v22  ;;  %v3401_v28 = vpop.f32.mrb[88].mxu0 }
 0x19a   :  { %v4039_v25 = vpop.eup %4038  ;;  %2727 = vst.msk [vmem:[%s5792_s2 + $0x280] sm:$0xff] %vm2646_vm2, %v4037_v24  ;;  %v3529_v29 = vpop.f32.mrb[88].mxu1  ;;  %4064 = vtanh.f32 %v3401_v28 }
 0x19b   :  { %v4041_v26 = vpop.eup %4040  ;;  %2855 = vst.msk [vmem:[%s5792_s2 + $0x680] sm:$0xff] %vm2646_vm2, %v4039_v25  ;;  %v1719_v31 = vpop.f32.mrb[89].mxu0  ;;  %4066 = vtanh.f32 %v3529_v29 }
 0x19c   :  { %v4043_v27 = vpop.eup %4042  ;;  %2730 = vst.msk [vmem:[%s5792_s2 + $0x298] sm:$0xff] %vm2646_vm2, %v4041_v26  ;;  %v2231_v32 = vpop.f32.mrb[89].mxu1  ;;  %4068 = vtanh.f32 %v1719_v31 }
 0x19d   :  { %v4045_v30 = vpop.eup %4044  ;;  %2858 = vst.msk [vmem:[%s5792_s2 + $0x698] sm:$0xff] %vm2646_vm2, %v4043_v27  ;;  %v3402_v34 = vpop.f32.mrb[90].mxu0  ;;  %4070 = vtanh.f32 %v2231_v32 }
 0x19e   :  { %v4047_v33 = vpop.eup %4046  ;;  %2728 = vst.msk [vmem:[%s5792_s2 + $0x288] sm:$0xff] %vm2646_vm2, %v4045_v30  ;;  %v3530_v35 = vpop.f32.mrb[90].mxu1  ;;  %4072 = vtanh.f32 %v3402_v34 }
 0x19f   :  { %v4049_v36 = vpop.eup %4048  ;;  %2856 = vst.msk [vmem:[%s5792_s2 + $0x688] sm:$0xff] %vm2646_vm2, %v4047_v33  ;;  %v1722_v37 = vpop.f32.mrb[91].mxu0  ;;  %4074 = vtanh.f32 %v3530_v35 }
 0x1a0   :  { %v2234_v38 = vpop.f32.mrb[91].mxu1  ;;  %v4051_v39 = vpop.eup %4050  ;;  %2733 = vst.msk [vmem:[%s5792_s2 + $0x2b0] sm:$0xff] %vm2646_vm2, %v4049_v36  ;;  %4076 = vtanh.f32 %v1722_v37 }
 0x1a1   :  { %v4053_v40 = vpop.eup %4052  ;;  %2861 = vst.msk [vmem:[%s5792_s2 + $0x6b0] sm:$0xff] %vm2646_vm2, %v4051_v39  ;;  %4078 = vtanh.f32 %v2234_v38  ;;  %v3405_v44 = vpop.f32.mrb[92].mxu0 }
 0x1a2   :  { %v4055_v41 = vpop.eup %4054  ;;  %2731 = vst.msk [vmem:[%s5792_s2 + $0x2a0] sm:$0xff] %vm2646_vm2, %v4053_v40  ;;  %v3533_v45 = vpop.f32.mrb[92].mxu1  ;;  %4080 = vtanh.f32 %v3405_v44 }
 0x1a3   :  { %v4057_v42 = vpop.eup %4056  ;;  %2859 = vst.msk [vmem:[%s5792_s2 + $0x6a0] sm:$0xff] %vm2646_vm2, %v4055_v41  ;;  %v1735_v47 = vpop.f32.mrb[93].mxu0  ;;  %4082 = vtanh.f32 %v3533_v45 }
 0x1a4   :  { %v4059_v43 = vpop.eup %4058  ;;  %2734 = vst.msk [vmem:[%s5792_s2 + $0x2b8] sm:$0xff] %vm2646_vm2, %v4057_v42  ;;  %v2247_v48 = vpop.f32.mrb[93].mxu1  ;;  %4084 = vtanh.f32 %v1735_v47 }
 0x1a5   :  { %v4061_v46 = vpop.eup %4060  ;;  %2862 = vst.msk [vmem:[%s5792_s2 + $0x6b8] sm:$0xff] %vm2646_vm2, %v4059_v43  ;;  %v3406_v50 = vpop.f32.mrb[94].mxu0  ;;  %4086 = vtanh.f32 %v2247_v48 }
 0x1a6   :  { %v4063_v49 = vpop.eup %4062  ;;  %2732 = vst.msk [vmem:[%s5792_s2 + $0x2a8] sm:$0xff] %vm2646_vm2, %v4061_v46  ;;  %v3534_v51 = vpop.f32.mrb[94].mxu1  ;;  %4088 = vtanh.f32 %v3406_v50 }
 0x1a7   :  { %v4065_v52 = vpop.eup %4064  ;;  %2860 = vst.msk [vmem:[%s5792_s2 + $0x6a8] sm:$0xff] %vm2646_vm2, %v4063_v49  ;;  %v1738_v53 = vpop.f32.mrb[95].mxu0  ;;  %4090 = vtanh.f32 %v3534_v51 }
 0x1a8   :  { %v2250_v54 = vpop.f32.mrb[95].mxu1  ;;  %v4067_v55 = vpop.eup %4066  ;;  %2737 = vst.msk [vmem:[%s5792_s2 + $0x2d0] sm:$0xff] %vm2646_vm2, %v4065_v52  ;;  %4092 = vtanh.f32 %v1738_v53 }
 0x1a9   :  { %v4069_v56 = vpop.eup %4068  ;;  %2865 = vst.msk [vmem:[%s5792_s2 + $0x6d0] sm:$0xff] %vm2646_vm2, %v4067_v55  ;;  %4094 = vtanh.f32 %v2250_v54  ;;  %v3409_v60 = vpop.f32.mrb[96].mxu0 }
 0x1aa   :  { %v4071_v57 = vpop.eup %4070  ;;  %2735 = vst.msk [vmem:[%s5792_s2 + $0x2c0] sm:$0xff] %vm2646_vm2, %v4069_v56  ;;  %v3537_v61 = vpop.f32.mrb[96].mxu1  ;;  %4096 = vtanh.f32 %v3409_v60 }
 0x1ab   :  { %v4073_v58 = vpop.eup %4072  ;;  %2863 = vst.msk [vmem:[%s5792_s2 + $0x6c0] sm:$0xff] %vm2646_vm2, %v4071_v57  ;;  %v1751_v63 = vpop.f32.mrb[97].mxu0  ;;  %4098 = vtanh.f32 %v3537_v61 }
 0x1ac   :  { %v4075_v59 = vpop.eup %4074  ;;  %2738 = vst.msk [vmem:[%s5792_s2 + $0x2d8] sm:$0xff] %vm2646_vm2, %v4073_v58  ;;  %v2263_v0 = vpop.f32.mrb[97].mxu1  ;;  %4100 = vtanh.f32 %v1751_v63 }
 0x1ad   :  { %v4077_v62 = vpop.eup %4076  ;;  %2866 = vst.msk [vmem:[%s5792_s2 + $0x6d8] sm:$0xff] %vm2646_vm2, %v4075_v59  ;;  %v3410_v2 = vpop.f32.mrb[98].mxu0  ;;  %4102 = vtanh.f32 %v2263_v0 }
 0x1ae   :  { %v4079_v1 = vpop.eup %4078  ;;  %2736 = vst.msk [vmem:[%s5792_s2 + $0x2c8] sm:$0xff] %vm2646_vm2, %v4077_v62  ;;  %v3538_v3 = vpop.f32.mrb[98].mxu1  ;;  %4104 = vtanh.f32 %v3410_v2 }
 0x1af   :  { %v4081_v4 = vpop.eup %4080  ;;  %2864 = vst.msk [vmem:[%s5792_s2 + $0x6c8] sm:$0xff] %vm2646_vm2, %v4079_v1  ;;  %v1754_v5 = vpop.f32.mrb[99].mxu0  ;;  %4106 = vtanh.f32 %v3538_v3 }
 0x1b0   :  { %v2266_v6 = vpop.f32.mrb[99].mxu1  ;;  %v4083_v7 = vpop.eup %4082  ;;  %2741 = vst.msk [vmem:[%s5792_s2 + $0x2f0] sm:$0xff] %vm2646_vm2, %v4081_v4  ;;  %4108 = vtanh.f32 %v1754_v5 }
 0x1b1   :  { %v4085_v8 = vpop.eup %4084  ;;  %2869 = vst.msk [vmem:[%s5792_s2 + $0x6f0] sm:$0xff] %vm2646_vm2, %v4083_v7  ;;  %4110 = vtanh.f32 %v2266_v6  ;;  %v3413_v12 = vpop.f32.mrb[100].mxu0 }
 0x1b2   :  { %v4087_v9 = vpop.eup %4086  ;;  %2739 = vst.msk [vmem:[%s5792_s2 + $0x2e0] sm:$0xff] %vm2646_vm2, %v4085_v8  ;;  %v3541_v13 = vpop.f32.mrb[100].mxu1  ;;  %4112 = vtanh.f32 %v3413_v12 }
 0x1b3   :  { %v4089_v10 = vpop.eup %4088  ;;  %2867 = vst.msk [vmem:[%s5792_s2 + $0x6e0] sm:$0xff] %vm2646_vm2, %v4087_v9  ;;  %v1767_v15 = vpop.f32.mrb[101].mxu0  ;;  %4114 = vtanh.f32 %v3541_v13 }
 0x1b4   :  { %v4091_v11 = vpop.eup %4090  ;;  %2742 = vst.msk [vmem:[%s5792_s2 + $0x2f8] sm:$0xff] %vm2646_vm2, %v4089_v10  ;;  %v2279_v16 = vpop.f32.mrb[101].mxu1  ;;  %4116 = vtanh.f32 %v1767_v15 }
 0x1b5   :  { %v4093_v14 = vpop.eup %4092  ;;  %2870 = vst.msk [vmem:[%s5792_s2 + $0x6f8] sm:$0xff] %vm2646_vm2, %v4091_v11  ;;  %v3414_v18 = vpop.f32.mrb[102].mxu0  ;;  %4118 = vtanh.f32 %v2279_v16 }
 0x1b6   :  { %v4095_v17 = vpop.eup %4094  ;;  %2740 = vst.msk [vmem:[%s5792_s2 + $0x2e8] sm:$0xff] %vm2646_vm2, %v4093_v14  ;;  %v3542_v19 = vpop.f32.mrb[102].mxu1  ;;  %4120 = vtanh.f32 %v3414_v18 }
 0x1b7   :  { %v4097_v20 = vpop.eup %4096  ;;  %2868 = vst.msk [vmem:[%s5792_s2 + $0x6e8] sm:$0xff] %vm2646_vm2, %v4095_v17  ;;  %v1770_v21 = vpop.f32.mrb[103].mxu0  ;;  %4122 = vtanh.f32 %v3542_v19 }
 0x1b8   :  { %v2282_v22 = vpop.f32.mrb[103].mxu1  ;;  %v4099_v23 = vpop.eup %4098  ;;  %2745 = vst.msk [vmem:[%s5792_s2 + $0x310] sm:$0xff] %vm2646_vm2, %v4097_v20  ;;  %4124 = vtanh.f32 %v1770_v21 }
 0x1b9   :  { %v4101_v24 = vpop.eup %4100  ;;  %2873 = vst.msk [vmem:[%s5792_s2 + $0x710] sm:$0xff] %vm2646_vm2, %v4099_v23  ;;  %4126 = vtanh.f32 %v2282_v22  ;;  %v3417_v28 = vpop.f32.mrb[104].mxu0 }
 0x1ba   :  { %v4103_v25 = vpop.eup %4102  ;;  %2743 = vst.msk [vmem:[%s5792_s2 + $0x300] sm:$0xff] %vm2646_vm2, %v4101_v24  ;;  %v3545_v29 = vpop.f32.mrb[104].mxu1  ;;  %4128 = vtanh.f32 %v3417_v28 }
 0x1bb   :  { %v4105_v26 = vpop.eup %4104  ;;  %2871 = vst.msk [vmem:[%s5792_s2 + $0x700] sm:$0xff] %vm2646_vm2, %v4103_v25  ;;  %v1783_v31 = vpop.f32.mrb[105].mxu0  ;;  %4130 = vtanh.f32 %v3545_v29 }
 0x1bc   :  { %v4107_v27 = vpop.eup %4106  ;;  %2746 = vst.msk [vmem:[%s5792_s2 + $0x318] sm:$0xff] %vm2646_vm2, %v4105_v26  ;;  %v2295_v32 = vpop.f32.mrb[105].mxu1  ;;  %4132 = vtanh.f32 %v1783_v31 }
 0x1bd   :  { %v4109_v30 = vpop.eup %4108  ;;  %2874 = vst.msk [vmem:[%s5792_s2 + $0x718] sm:$0xff] %vm2646_vm2, %v4107_v27  ;;  %v3418_v34 = vpop.f32.mrb[106].mxu0  ;;  %4134 = vtanh.f32 %v2295_v32 }
 0x1be   :  { %v4111_v33 = vpop.eup %4110  ;;  %2744 = vst.msk [vmem:[%s5792_s2 + $0x308] sm:$0xff] %vm2646_vm2, %v4109_v30  ;;  %v3546_v35 = vpop.f32.mrb[106].mxu1  ;;  %4136 = vtanh.f32 %v3418_v34 }
 0x1bf   :  { %v4113_v36 = vpop.eup %4112  ;;  %2872 = vst.msk [vmem:[%s5792_s2 + $0x708] sm:$0xff] %vm2646_vm2, %v4111_v33  ;;  %v1786_v37 = vpop.f32.mrb[107].mxu0  ;;  %4138 = vtanh.f32 %v3546_v35 }
 0x1c0   :  { %v2298_v38 = vpop.f32.mrb[107].mxu1  ;;  %v4115_v39 = vpop.eup %4114  ;;  %2749 = vst.msk [vmem:[%s5792_s2 + $0x330] sm:$0xff] %vm2646_vm2, %v4113_v36  ;;  %4140 = vtanh.f32 %v1786_v37 }
 0x1c1   :  { %v4117_v40 = vpop.eup %4116  ;;  %2877 = vst.msk [vmem:[%s5792_s2 + $0x730] sm:$0xff] %vm2646_vm2, %v4115_v39  ;;  %4142 = vtanh.f32 %v2298_v38  ;;  %v3421_v44 = vpop.f32.mrb[108].mxu0 }
 0x1c2   :  { %v4119_v41 = vpop.eup %4118  ;;  %2747 = vst.msk [vmem:[%s5792_s2 + $0x320] sm:$0xff] %vm2646_vm2, %v4117_v40  ;;  %v3549_v45 = vpop.f32.mrb[108].mxu1  ;;  %4144 = vtanh.f32 %v3421_v44 }
 0x1c3   :  { %v4121_v42 = vpop.eup %4120  ;;  %2875 = vst.msk [vmem:[%s5792_s2 + $0x720] sm:$0xff] %vm2646_vm2, %v4119_v41  ;;  %v1799_v47 = vpop.f32.mrb[109].mxu0  ;;  %4146 = vtanh.f32 %v3549_v45 }
 0x1c4   :  { %v4123_v43 = vpop.eup %4122  ;;  %2750 = vst.msk [vmem:[%s5792_s2 + $0x338] sm:$0xff] %vm2646_vm2, %v4121_v42  ;;  %v2311_v48 = vpop.f32.mrb[109].mxu1  ;;  %4148 = vtanh.f32 %v1799_v47 }
 0x1c5   :  { %v4125_v46 = vpop.eup %4124  ;;  %2878 = vst.msk [vmem:[%s5792_s2 + $0x738] sm:$0xff] %vm2646_vm2, %v4123_v43  ;;  %v3422_v50 = vpop.f32.mrb[110].mxu0  ;;  %4150 = vtanh.f32 %v2311_v48 }
 0x1c6   :  { %v4127_v49 = vpop.eup %4126  ;;  %2748 = vst.msk [vmem:[%s5792_s2 + $0x328] sm:$0xff] %vm2646_vm2, %v4125_v46  ;;  %v3550_v51 = vpop.f32.mrb[110].mxu1  ;;  %4152 = vtanh.f32 %v3422_v50 }
 0x1c7   :  { %v4129_v52 = vpop.eup %4128  ;;  %2876 = vst.msk [vmem:[%s5792_s2 + $0x728] sm:$0xff] %vm2646_vm2, %v4127_v49  ;;  %v1802_v53 = vpop.f32.mrb[111].mxu0  ;;  %4154 = vtanh.f32 %v3550_v51 }
 0x1c8   :  { %v2314_v54 = vpop.f32.mrb[111].mxu1  ;;  %v4131_v55 = vpop.eup %4130  ;;  %2753 = vst.msk [vmem:[%s5792_s2 + $0x350] sm:$0xff] %vm2646_vm2, %v4129_v52  ;;  %4156 = vtanh.f32 %v1802_v53 }
 0x1c9   :  { %v4133_v56 = vpop.eup %4132  ;;  %2881 = vst.msk [vmem:[%s5792_s2 + $0x750] sm:$0xff] %vm2646_vm2, %v4131_v55  ;;  %4158 = vtanh.f32 %v2314_v54  ;;  %v3425_v60 = vpop.f32.mrb[112].mxu0 }
 0x1ca   :  { %v4135_v57 = vpop.eup %4134  ;;  %2751 = vst.msk [vmem:[%s5792_s2 + $0x340] sm:$0xff] %vm2646_vm2, %v4133_v56  ;;  %v3553_v61 = vpop.f32.mrb[112].mxu1  ;;  %4160 = vtanh.f32 %v3425_v60 }
 0x1cb   :  { %v4137_v58 = vpop.eup %4136  ;;  %2879 = vst.msk [vmem:[%s5792_s2 + $0x740] sm:$0xff] %vm2646_vm2, %v4135_v57  ;;  %v1815_v63 = vpop.f32.mrb[113].mxu0  ;;  %4162 = vtanh.f32 %v3553_v61 }
 0x1cc   :  { %v4139_v59 = vpop.eup %4138  ;;  %2754 = vst.msk [vmem:[%s5792_s2 + $0x358] sm:$0xff] %vm2646_vm2, %v4137_v58  ;;  %v2327_v0 = vpop.f32.mrb[113].mxu1  ;;  %4164 = vtanh.f32 %v1815_v63 }
 0x1cd   :  { %v4141_v62 = vpop.eup %4140  ;;  %2882 = vst.msk [vmem:[%s5792_s2 + $0x758] sm:$0xff] %vm2646_vm2, %v4139_v59  ;;  %v3426_v2 = vpop.f32.mrb[114].mxu0  ;;  %4166 = vtanh.f32 %v2327_v0 }
 0x1ce   :  { %v4143_v1 = vpop.eup %4142  ;;  %2752 = vst.msk [vmem:[%s5792_s2 + $0x348] sm:$0xff] %vm2646_vm2, %v4141_v62  ;;  %v3554_v3 = vpop.f32.mrb[114].mxu1  ;;  %4168 = vtanh.f32 %v3426_v2 }
 0x1cf   :  { %v4145_v4 = vpop.eup %4144  ;;  %2880 = vst.msk [vmem:[%s5792_s2 + $0x748] sm:$0xff] %vm2646_vm2, %v4143_v1  ;;  %v1818_v5 = vpop.f32.mrb[115].mxu0  ;;  %4170 = vtanh.f32 %v3554_v3 }
 0x1d0   :  { %v2330_v6 = vpop.f32.mrb[115].mxu1  ;;  %v4147_v7 = vpop.eup %4146  ;;  %2757 = vst.msk [vmem:[%s5792_s2 + $0x370] sm:$0xff] %vm2646_vm2, %v4145_v4  ;;  %4172 = vtanh.f32 %v1818_v5 }
 0x1d1   :  { %v4149_v8 = vpop.eup %4148  ;;  %2885 = vst.msk [vmem:[%s5792_s2 + $0x770] sm:$0xff] %vm2646_vm2, %v4147_v7  ;;  %4174 = vtanh.f32 %v2330_v6  ;;  %v3429_v12 = vpop.f32.mrb[116].mxu0 }
 0x1d2   :  { %v4151_v9 = vpop.eup %4150  ;;  %2755 = vst.msk [vmem:[%s5792_s2 + $0x360] sm:$0xff] %vm2646_vm2, %v4149_v8  ;;  %v3557_v13 = vpop.f32.mrb[116].mxu1  ;;  %4176 = vtanh.f32 %v3429_v12 }
 0x1d3   :  { %v4153_v10 = vpop.eup %4152  ;;  %2883 = vst.msk [vmem:[%s5792_s2 + $0x760] sm:$0xff] %vm2646_vm2, %v4151_v9  ;;  %v1831_v15 = vpop.f32.mrb[117].mxu0  ;;  %4178 = vtanh.f32 %v3557_v13 }
 0x1d4   :  { %v4155_v11 = vpop.eup %4154  ;;  %2758 = vst.msk [vmem:[%s5792_s2 + $0x378] sm:$0xff] %vm2646_vm2, %v4153_v10  ;;  %v2343_v16 = vpop.f32.mrb[117].mxu1  ;;  %4180 = vtanh.f32 %v1831_v15 }
 0x1d5   :  { %v4157_v14 = vpop.eup %4156  ;;  %2886 = vst.msk [vmem:[%s5792_s2 + $0x778] sm:$0xff] %vm2646_vm2, %v4155_v11  ;;  %v3430_v18 = vpop.f32.mrb[118].mxu0  ;;  %4182 = vtanh.f32 %v2343_v16 }
 0x1d6   :  { %v4159_v17 = vpop.eup %4158  ;;  %2756 = vst.msk [vmem:[%s5792_s2 + $0x368] sm:$0xff] %vm2646_vm2, %v4157_v14  ;;  %v3558_v19 = vpop.f32.mrb[118].mxu1  ;;  %4184 = vtanh.f32 %v3430_v18 }
 0x1d7   :  { %v4161_v20 = vpop.eup %4160  ;;  %2884 = vst.msk [vmem:[%s5792_s2 + $0x768] sm:$0xff] %vm2646_vm2, %v4159_v17  ;;  %v1834_v21 = vpop.f32.mrb[119].mxu0  ;;  %4186 = vtanh.f32 %v3558_v19 }
 0x1d8   :  { %v2346_v22 = vpop.f32.mrb[119].mxu1  ;;  %v4163_v23 = vpop.eup %4162  ;;  %2761 = vst.msk [vmem:[%s5792_s2 + $0x390] sm:$0xff] %vm2646_vm2, %v4161_v20  ;;  %4188 = vtanh.f32 %v1834_v21 }
 0x1d9   :  { %v4165_v24 = vpop.eup %4164  ;;  %2889 = vst.msk [vmem:[%s5792_s2 + $0x790] sm:$0xff] %vm2646_vm2, %v4163_v23  ;;  %4190 = vtanh.f32 %v2346_v22  ;;  %v3433_v28 = vpop.f32.mrb[120].mxu0 }
 0x1da   :  { %v4167_v25 = vpop.eup %4166  ;;  %2759 = vst.msk [vmem:[%s5792_s2 + $0x380] sm:$0xff] %vm2646_vm2, %v4165_v24  ;;  %v3561_v29 = vpop.f32.mrb[120].mxu1  ;;  %4192 = vtanh.f32 %v3433_v28 }
 0x1db   :  { %v4169_v26 = vpop.eup %4168  ;;  %2887 = vst.msk [vmem:[%s5792_s2 + $0x780] sm:$0xff] %vm2646_vm2, %v4167_v25  ;;  %v1847_v31 = vpop.f32.mrb[121].mxu0  ;;  %4194 = vtanh.f32 %v3561_v29 }
 0x1dc   :  { %v4171_v27 = vpop.eup %4170  ;;  %2762 = vst.msk [vmem:[%s5792_s2 + $0x398] sm:$0xff] %vm2646_vm2, %v4169_v26  ;;  %v2359_v32 = vpop.f32.mrb[121].mxu1  ;;  %4196 = vtanh.f32 %v1847_v31 }
 0x1dd   :  { %v4173_v30 = vpop.eup %4172  ;;  %2890 = vst.msk [vmem:[%s5792_s2 + $0x798] sm:$0xff] %vm2646_vm2, %v4171_v27  ;;  %v3434_v34 = vpop.f32.mrb[122].mxu0  ;;  %4198 = vtanh.f32 %v2359_v32 }
 0x1de   :  { %v4175_v33 = vpop.eup %4174  ;;  %2760 = vst.msk [vmem:[%s5792_s2 + $0x388] sm:$0xff] %vm2646_vm2, %v4173_v30  ;;  %v3562_v35 = vpop.f32.mrb[122].mxu1  ;;  %4200 = vtanh.f32 %v3434_v34 }
 0x1df   :  { %v4177_v36 = vpop.eup %4176  ;;  %2888 = vst.msk [vmem:[%s5792_s2 + $0x788] sm:$0xff] %vm2646_vm2, %v4175_v33  ;;  %v1850_v37 = vpop.f32.mrb[123].mxu0  ;;  %4202 = vtanh.f32 %v3562_v35 }
 0x1e0   :  { %v2362_v38 = vpop.f32.mrb[123].mxu1  ;;  %v4179_v39 = vpop.eup %4178  ;;  %2765 = vst.msk [vmem:[%s5792_s2 + $0x3b0] sm:$0xff] %vm2646_vm2, %v4177_v36  ;;  %4204 = vtanh.f32 %v1850_v37 }
 0x1e1   :  { %v4181_v40 = vpop.eup %4180  ;;  %2893 = vst.msk [vmem:[%s5792_s2 + $0x7b0] sm:$0xff] %vm2646_vm2, %v4179_v39  ;;  %4206 = vtanh.f32 %v2362_v38  ;;  %v3437_v44 = vpop.f32.mrb[124].mxu0 }
 0x1e2   :  { %v4183_v41 = vpop.eup %4182  ;;  %2763 = vst.msk [vmem:[%s5792_s2 + $0x3a0] sm:$0xff] %vm2646_vm2, %v4181_v40  ;;  %v3565_v45 = vpop.f32.mrb[124].mxu1  ;;  %4208 = vtanh.f32 %v3437_v44 }
 0x1e3   :  { %v4185_v42 = vpop.eup %4184  ;;  %2891 = vst.msk [vmem:[%s5792_s2 + $0x7a0] sm:$0xff] %vm2646_vm2, %v4183_v41  ;;  %v1863_v47 = vpop.f32.mrb[125].mxu0  ;;  %4210 = vtanh.f32 %v3565_v45 }
 0x1e4   :  { %v4187_v43 = vpop.eup %4186  ;;  %2766 = vst.msk [vmem:[%s5792_s2 + $0x3b8] sm:$0xff] %vm2646_vm2, %v4185_v42  ;;  %v2375_v48 = vpop.f32.mrb[125].mxu1  ;;  %4212 = vtanh.f32 %v1863_v47 }
 0x1e5   :  { %v4189_v46 = vpop.eup %4188  ;;  %2894 = vst.msk [vmem:[%s5792_s2 + $0x7b8] sm:$0xff] %vm2646_vm2, %v4187_v43  ;;  %v3438_v50 = vpop.f32.mrb[126].mxu0  ;;  %4214 = vtanh.f32 %v2375_v48 }
 0x1e6   :  { %v4191_v49 = vpop.eup %4190  ;;  %2764 = vst.msk [vmem:[%s5792_s2 + $0x3a8] sm:$0xff] %vm2646_vm2, %v4189_v46  ;;  %v3566_v51 = vpop.f32.mrb[126].mxu1  ;;  %4216 = vtanh.f32 %v3438_v50 }
 0x1e7   :  { %v4193_v52 = vpop.eup %4192  ;;  %2892 = vst.msk [vmem:[%s5792_s2 + $0x7a8] sm:$0xff] %vm2646_vm2, %v4191_v49  ;;  %v1866_v53 = vpop.f32.mrb[127].mxu0  ;;  %4218 = vtanh.f32 %v3566_v51 }
 0x1e8   :  { %v2378_v54 = vpop.f32.mrb[127].mxu1  ;;  %v4195_v55 = vpop.eup %4194  ;;  %2769 = vst.msk [vmem:[%s5792_s2 + $0x3d0] sm:$0xff] %vm2646_vm2, %v4193_v52  ;;  %4220 = vtanh.f32 %v1866_v53 }
 0x1e9   :  { %v4197_v56 = vpop.eup %4196  ;;  %2897 = vst.msk [vmem:[%s5792_s2 + $0x7d0] sm:$0xff] %vm2646_vm2, %v4195_v55  ;;  %4222 = vtanh.f32 %v2378_v54 }
 0x1ea   :  { %v4199_v57 = vpop.eup %4198  ;;  %2767 = vst.msk [vmem:[%s5792_s2 + $0x3c0] sm:$0xff] %vm2646_vm2, %v4197_v56 }
 0x1eb   :  { %v4201_v58 = vpop.eup %4200  ;;  %2895 = vst.msk [vmem:[%s5792_s2 + $0x7c0] sm:$0xff] %vm2646_vm2, %v4199_v57 }
 0x1ec   :  { %v4203_v59 = vpop.eup %4202  ;;  %2770 = vst.msk [vmem:[%s5792_s2 + $0x3d8] sm:$0xff] %vm2646_vm2, %v4201_v58 }
 0x1ed   :  { %v4205_v60 = vpop.eup %4204  ;;  %2898 = vst.msk [vmem:[%s5792_s2 + $0x7d8] sm:$0xff] %vm2646_vm2, %v4203_v59 }
 0x1ee   :  { %v4207_v61 = vpop.eup %4206  ;;  %2768 = vst.msk [vmem:[%s5792_s2 + $0x3c8] sm:$0xff] %vm2646_vm2, %v4205_v60 }
 0x1ef   :  { %v4209_v62 = vpop.eup %4208  ;;  %2896 = vst.msk [vmem:[%s5792_s2 + $0x7c8] sm:$0xff] %vm2646_vm2, %v4207_v61 }
 0x1f0   :  { %v4211_v63 = vpop.eup %4210  ;;  %2773 = vst.msk [vmem:[%s5792_s2 + $0x3f0] sm:$0xff] %vm2646_vm2, %v4209_v62 }
 0x1f1   :  { %v4213_v0 = vpop.eup %4212  ;;  %2901 = vst.msk [vmem:[%s5792_s2 + $0x7f0] sm:$0xff] %vm2646_vm2, %v4211_v63 }
 0x1f2   :  { %v4215_v1 = vpop.eup %4214  ;;  %2771 = vst.msk [vmem:[%s5792_s2 + $0x3e0] sm:$0xff] %vm2646_vm2, %v4213_v0 }
 0x1f3   :  { %v4217_v2 = vpop.eup %4216  ;;  %2899 = vst.msk [vmem:[%s5792_s2 + $0x7e0] sm:$0xff] %vm2646_vm2, %v4215_v1 }
 0x1f4   :  { %v4219_v3 = vpop.eup %4218  ;;  %2774 = vst.msk [vmem:[%s5792_s2 + $0x3f8] sm:$0xff] %vm2646_vm2, %v4217_v2 }
 0x1f5   :  { %v4221_v4 = vpop.eup %4220  ;;  %2902 = vst.msk [vmem:[%s5792_s2 + $0x7f8] sm:$0xff] %vm2646_vm2, %v4219_v3 }
 0x1f6   :  { %v4223_v5 = vpop.eup %4222  ;;  %2772 = vst.msk [vmem:[%s5792_s2 + $0x3e8] sm:$0xff] %vm2646_vm2, %v4221_v4 }
 0x1f7   :  { %2900 = vst.msk [vmem:[%s5792_s2 + $0x7e8] sm:$0xff] %vm2646_vm2, %v4223_v5 }

</bundles_post_ra>
